<compile_context>
chip_gen: v6e
topology: v6e:2x2x1
jax: 0.10.0
libtpu: 0.0.40
codegen_flags: <defaults>
</compile_context>

<pallas_src>
import jax
import jax.numpy as jnp
from jax.experimental import pallas as pl
from jax.experimental.pallas import tpu as pltpu

# Deterministic stand-in for the module's random `shift_direction` (+/-1).
SHIFT = 1
J, I, K, L = 2, 32, 3, 128        # weight shape [2, 32, 3, 128]
C = J * I                         # 64 input channels


def _make_kernel(bb, H, W, shift):
    assert shift in (1, -1)
    HW = H * W

    def kernel(x_ref, wt_ref, o_ref, s_ref):
        # x_ref : (bb, 64, H*W)  f32   raw NCHW input, spatial flattened
        # wt_ref: (L, 192)       bf16  weight, column = j*96 + k*32 + i
        # o_ref : (bb, L, H*W)   f32   NCHW output, spatial flattened
        # s_ref : (2, 192, H*W)  bf16  double-buffered fused (unfolded) RHS

        # Hoisted full-size masks: built once per grid step, reused by every
        # jnp.where in the bb*2-way unrolled body (no per-use broadcasts).
        col = jax.lax.broadcasted_iota(jnp.int32, (I, HW), 1) % W
        first = col == 0            # w == 0     inside each W-wide block
        last = col == W - 1         # w == W-1   inside each W-wide block

        wt = wt_ref[...]            # (L, 192) bf16, loaded once, reused by all dots

        for b in range(bb):         # static unroll (bb <= 16)
            slot = b % 2            # double-buffer: image b+1's RHS build can
                                    # overlap image b's matmul (no WAR hazard)
            for j in range(2):
                # Band j=0 sources original channels 32..63, band j=1 channels
                # 0..31.  The (h, j)-roll and the circular w-roll are fused
                # into two flat lane rolls (shifts compose mod H*W) plus a
                # one-column select.
                if j == 0:
                    src = x_ref[b, I:C, :]        # (32, H*W) sliced read
                else:
                    src = x_ref[b, 0:I, :]
                if shift == 1:
                    if j == 0:   # h-roll +1 fused with w-roll +1
                        a = jnp.where(first, jnp.roll(src, 1, axis=1),
                                      jnp.roll(src, W + 1, axis=1))
                    else:        # w-roll +1 only
                        a = jnp.where(first, jnp.roll(src, 1 - W, axis=1),
                                      jnp.roll(src, 1, axis=1))
                else:
                    if j == 0:   # w-roll -1 only
                        a = jnp.where(last, jnp.roll(src, W - 1, axis=1),
                                      jnp.roll(src, -1, axis=1))
                    else:        # h-roll -1 fused with w-roll -1
                        a = jnp.where(last, jnp.roll(src, -1, axis=1),
                                      jnp.roll(src, -(W + 1), axis=1))

                base = j * 3 * I
                # Conv taps (zero-padded along w), stored as bf16 in
                # sublane-aligned 32-row bands (halves scratch vst traffic).
                s_ref[slot, base + 0 * I:base + 1 * I, :] = jnp.where(
                    first, 0.0, jnp.roll(a, 1, axis=1)).astype(jnp.bfloat16)
                s_ref[slot, base + 1 * I:base + 2 * I, :] = a.astype(jnp.bfloat16)
                s_ref[slot, base + 2 * I:base + 3 * I, :] = jnp.where(
                    last, 0.0, jnp.roll(a, -1, axis=1)).astype(jnp.bfloat16)

            # One fused 192-deep MXU matmul, bf16 x bf16 with f32 accumulation;
            # lane-dense (H*W wide) NCHW store.
            o_ref[b] = jnp.dot(
                wt, s_ref[slot],
                preferred_element_type=jnp.float32).astype(o_ref.dtype)

    return kernel


def _conv_shuffle(x_flat, wt, *, H, W, bb, shift):
    B, c, HW = x_flat.shape
    l, kc = wt.shape
    kernel = _make_kernel(bb, H, W, shift)
    return pl.pallas_call(
        kernel,
        out_shape=jax.ShapeDtypeStruct((B, l, HW), jnp.float32),
        grid_spec=pltpu.PrefetchScalarGridSpec(
            num_scalar_prefetch=0,
            grid=(B // bb,),
            in_specs=[
                pl.BlockSpec((bb, c, HW), lambda g: (g, 0, 0)),
                pl.BlockSpec((l, kc), lambda g: (0, 0)),
            ],
            out_specs=pl.BlockSpec((bb, l, HW), lambda g: (g, 0, 0)),
            scratch_shapes=[pltpu.VMEM((2, kc, HW), jnp.bfloat16)],
        ),
        compiler_params=pltpu.CompilerParams(
            dimension_semantics=("parallel",),
            # bb=16 blocks need ~20 MB scoped VMEM; 28 MB gives headroom and
            # also covers v5e's 16 MB default (well under physical VMEM).
            vmem_limit_bytes=28 << 20,
        ),
    )(x_flat, wt)


def kernel_generated_1_forward(x, weight, shift=SHIFT):
    """x: (B, 64, H, W) f32 NCHW; weight: (2, 32, 3, 128); shift: static +/-1."""
    B, CH, H, W = x.shape
    assert CH == J * I
    l = weight.shape[-1]
    # Free metadata reshapes only — all shuffles/pad/transpose live in-kernel.
    x_flat = x.reshape(B, CH, H * W)
    # (j, i, k, l) -> (l, j, k, i): each (j, k) tap is a contiguous,
    # sublane-aligned 32-row band of the fused 192-deep contraction.
    # bf16 operand (MXU accumulates in f32 via preferred_element_type).
    wt = jnp.transpose(weight, (3, 0, 2, 1)).reshape(l, J * K * I)
    wt = wt.astype(jnp.bfloat16)
    bb = next(d for d in (16, 8, 4, 2, 1) if B % d == 0)   # always succeeds
    y = _conv_shuffle(x_flat, wt, H=H, W=W, bb=bb, shift=shift)
    return y.reshape(B, l, H, W)                           # NCHW (B, 128, H, W)


def reference_forward(x, weight, shift=SHIFT):
    """Pure-JAX transcription of the PyTorch forward (for verification)."""
    B, CH, H, W = x.shape
    t = x.reshape(B, 2, 32, H, W)
    t = jnp.transpose(t, (0, 2, 3, 1, 4))
    t = t.reshape(B, 32, 2 * H, W)
    t = jnp.roll(t, shift, axis=2)
    t = t.reshape(B, 32, H, 2, W)
    t = jnp.roll(t, shift, axis=4)
    t = t.reshape(B, 32 * H * 2, W)
    tp = jnp.pad(t, ((0, 0), (0, 0), (1, 1)))
    patches = jnp.stack([tp[:, :, k:k + W] for k in range(3)], axis=2)
    t2 = patches.reshape(B, 32, H, 2, 3, W)
    t2 = jnp.transpose(t2, (0, 1, 2, 3, 5, 4))
    t3 = jnp.einsum('minjok,jikl->mnol', t2, weight, precision='highest')
    return jnp.transpose(t3, (0, 3, 1, 2))


if __name__ == "__main__":
    key = jax.random.PRNGKey(0)
    kx, kw = jax.random.split(key)
    # Module's reference size is B=128, H=W=28; use a small batch here.
    B, H, W = 2, 28, 28
    x = jax.random.normal(kx, (B, 64, H, W), dtype=jnp.float32)
    weight = jax.random.normal(kw, (2, 32, 3, 128), dtype=jnp.float32)

    y = jax.jit(kernel_generated_1_forward)(x, weight)
    y = jax.block_until_ready(y)
    assert y.shape == (B, 128, H, W), y.shape

    y_ref = reference_forward(x, weight)
    # bf16 matmul operands (f32 accumulation) vs the f32 'highest' reference:
    # compare with a tolerance normalized by the output scale (outputs of a
    # 192-deep contraction of N(0,1) data have magnitude O(10-60), so a fixed
    # absolute tolerance would be meaningless).
    scale = max(1.0, float(jnp.max(jnp.abs(y_ref))))
    max_err = float(jnp.max(jnp.abs(y - y_ref)))
    assert max_err <= 2e-2 * scale, (max_err, scale)
    print("KERNEL_OK")
</pallas_src>

<mosaic_0001>
module attributes {stable_mosaic.version = 11 : i64} {
  func.func @kernel(%arg0: i32, %arg1: memref<2x64x784xf32, #tpu.memory_space<vmem>>, %arg2: memref<128x192xbf16, #tpu.memory_space<vmem>>, %arg3: memref<2x128x784xf32, #tpu.memory_space<vmem>>, %arg4: memref<2x192x784xbf16, #tpu.memory_space<vmem>>) attributes {dimension_semantics = [#tpu.dimension_semantics<parallel>], iteration_bounds = array<i64: 1>, scalar_prefetch = 0 : i64, scratch_operands = 1 : i64, tpu.core_type = #tpu.core_type<tc>, window_params = [{transform_indices = @transform_0, window_bounds = array<i64: 2, 64, 784>}, {pipeline_mode = #tpu.pipeline_mode<synchronous>, transform_indices = @transform_1, window_bounds = array<i64: 128, 192>}, {transform_indices = @transform_2, window_bounds = array<i64: 2, 128, 784>}]} {
    %0 = tpu.iota {dimensions = array<i32: 1>} : vector<32x784xi32>
    %c28_i32 = arith.constant 28 : i32
    %c0_i32 = arith.constant 0 : i32
    %1 = arith.cmpi eq, %c28_i32, %c0_i32 : i32
    %c1_i32 = arith.constant 1 : i32
    %2 = arith.select %1, %c1_i32, %c28_i32 : i32
    %3 = vector.broadcast %2 : i32 to vector<32x784xi32>
    %4 = arith.remsi %0, %3 : vector<32x784xi32>
    %c0_i32_0 = arith.constant 0 : i32
    %5 = vector.broadcast %c0_i32_0 : i32 to vector<32x784xi32>
    %6 = arith.cmpi ne, %4, %5 : vector<32x784xi32>
    %c0_i32_1 = arith.constant 0 : i32
    %7 = vector.broadcast %c0_i32_1 : i32 to vector<32x784xi32>
    %8 = arith.cmpi slt, %4, %7 : vector<32x784xi32>
    %c0_i32_2 = arith.constant 0 : i32
    %9 = arith.cmpi slt, %2, %c0_i32_2 : i32
    %10 = vector.broadcast %9 : i1 to vector<32x784xi1>
    %11 = vector.broadcast %10 : vector<32x784xi1> to vector<32x784xi1>
    %12 = arith.xori %8, %11 : vector<32x784xi1>
    %13 = arith.andi %12, %6 : vector<32x784xi1>
    %14 = vector.broadcast %2 : i32 to vector<32x784xi32>
    %15 = arith.addi %4, %14 : vector<32x784xi32>
    %16 = arith.select %13, %15, %4 : vector<32x784xi1>, vector<32x784xi32>
    %c0_i32_3 = arith.constant 0 : i32
    %17 = vector.broadcast %c0_i32_3 : i32 to vector<32x784xi32>
    %18 = arith.cmpi eq, %16, %17 : vector<32x784xi32>
    %c27_i32 = arith.constant 27 : i32
    %19 = vector.broadcast %c27_i32 : i32 to vector<32x784xi32>
    %20 = arith.cmpi eq, %16, %19 : vector<32x784xi32>
    %c0 = arith.constant 0 : index
    %c0_4 = arith.constant 0 : index
    %21 = vector.load %arg2[%c0, %c0_4] : memref<128x192xbf16, #tpu.memory_space<vmem>>, vector<128x192xbf16>
    %c0_5 = arith.constant 0 : index
    %c32 = arith.constant 32 : index
    %c0_6 = arith.constant 0 : index
    %22 = vector.load %arg1[%c0_5, %c32, %c0_6] : memref<2x64x784xf32, #tpu.memory_space<vmem>>, vector<1x32x784xf32>
    %23 = vector.shape_cast %22 : vector<1x32x784xf32> to vector<32x784xf32>
    %24 = vector.extract_strided_slice %23 {offsets = [0, 783], sizes = [32, 1], strides = [1, 1]} : vector<32x784xf32> to vector<32x1xf32>
    %25 = vector.extract_strided_slice %23 {offsets = [0, 0], sizes = [32, 783], strides = [1, 1]} : vector<32x784xf32> to vector<32x783xf32>
    %26 = tpu.concatenate %24, %25 in 1 : vector<32x1xf32>, vector<32x783xf32> -> vector<32x784xf32>
    %27 = vector.extract_strided_slice %23 {offsets = [0, 755], sizes = [32, 29], strides = [1, 1]} : vector<32x784xf32> to vector<32x29xf32>
    %28 = vector.extract_strided_slice %23 {offsets = [0, 0], sizes = [32, 755], strides = [1, 1]} : vector<32x784xf32> to vector<32x755xf32>
    %29 = tpu.concatenate %27, %28 in 1 : vector<32x29xf32>, vector<32x755xf32> -> vector<32x784xf32>
    %30 = arith.select %18, %26, %29 : vector<32x784xi1>, vector<32x784xf32>
    %31 = vector.extract_strided_slice %30 {offsets = [0, 783], sizes = [32, 1], strides = [1, 1]} : vector<32x784xf32> to vector<32x1xf32>
    %32 = vector.extract_strided_slice %30 {offsets = [0, 0], sizes = [32, 783], strides = [1, 1]} : vector<32x784xf32> to vector<32x783xf32>
    %33 = tpu.concatenate %31, %32 in 1 : vector<32x1xf32>, vector<32x783xf32> -> vector<32x784xf32>
    %cst = arith.constant 0.000000e+00 : f32
    %34 = vector.broadcast %cst : f32 to vector<32x784xf32>
    %35 = arith.select %18, %34, %33 : vector<32x784xi1>, vector<32x784xf32>
    %36 = arith.truncf %35 : vector<32x784xf32> to vector<32x784xbf16>
    %c0_7 = arith.constant 0 : index
    %c0_8 = arith.constant 0 : index
    %c0_9 = arith.constant 0 : index
    %37 = vector.load %arg4[%c0_7, %c0_8, %c0_9] : memref<2x192x784xbf16, #tpu.memory_space<vmem>>, vector<1x32x784xbf16>
    %38 = vector.shape_cast %37 : vector<1x32x784xbf16> to vector<32x784xbf16>
    %39 = vector.shape_cast %36 : vector<32x784xbf16> to vector<1x32x784xbf16>
    tpu.vector_store %arg4[%c0_7, %c0_8, %c0_9], %39 {strides = array<i32>} : memref<2x192x784xbf16, #tpu.memory_space<vmem>>, vector<1x32x784xbf16>,
    %40 = arith.truncf %30 : vector<32x784xf32> to vector<32x784xbf16>
    %c0_10 = arith.constant 0 : index
    %c32_11 = arith.constant 32 : index
    %c0_12 = arith.constant 0 : index
    %41 = vector.load %arg4[%c0_10, %c32_11, %c0_12] : memref<2x192x784xbf16, #tpu.memory_space<vmem>>, vector<1x32x784xbf16>
    %42 = vector.shape_cast %41 : vector<1x32x784xbf16> to vector<32x784xbf16>
    %43 = vector.shape_cast %40 : vector<32x784xbf16> to vector<1x32x784xbf16>
    tpu.vector_store %arg4[%c0_10, %c32_11, %c0_12], %43 {strides = array<i32>} : memref<2x192x784xbf16, #tpu.memory_space<vmem>>, vector<1x32x784xbf16>,
    %44 = vector.extract_strided_slice %30 {offsets = [0, 1], sizes = [32, 783], strides = [1, 1]} : vector<32x784xf32> to vector<32x783xf32>
    %45 = vector.extract_strided_slice %30 {offsets = [0, 0], sizes = [32, 1], strides = [1, 1]} : vector<32x784xf32> to vector<32x1xf32>
    %46 = tpu.concatenate %44, %45 in 1 : vector<32x783xf32>, vector<32x1xf32> -> vector<32x784xf32>
    %cst_13 = arith.constant 0.000000e+00 : f32
    %47 = vector.broadcast %cst_13 : f32 to vector<32x784xf32>
    %48 = arith.select %20, %47, %46 : vector<32x784xi1>, vector<32x784xf32>
    %49 = arith.truncf %48 : vector<32x784xf32> to vector<32x784xbf16>
    %c0_14 = arith.constant 0 : index
    %c64 = arith.constant 64 : index
    %c0_15 = arith.constant 0 : index
    %50 = vector.load %arg4[%c0_14, %c64, %c0_15] : memref<2x192x784xbf16, #tpu.memory_space<vmem>>, vector<1x32x784xbf16>
    %51 = vector.shape_cast %50 : vector<1x32x784xbf16> to vector<32x784xbf16>
    %52 = vector.shape_cast %49 : vector<32x784xbf16> to vector<1x32x784xbf16>
    tpu.vector_store %arg4[%c0_14, %c64, %c0_15], %52 {strides = array<i32>} : memref<2x192x784xbf16, #tpu.memory_space<vmem>>, vector<1x32x784xbf16>,
    %c0_16 = arith.constant 0 : index
    %c0_17 = arith.constant 0 : index
    %c0_18 = arith.constant 0 : index
    %53 = vector.load %arg1[%c0_16, %c0_17, %c0_18] : memref<2x64x784xf32, #tpu.memory_space<vmem>>, vector<1x32x784xf32>
    %54 = vector.shape_cast %53 : vector<1x32x784xf32> to vector<32x784xf32>
    %55 = vector.extract_strided_slice %54 {offsets = [0, 27], sizes = [32, 757], strides = [1, 1]} : vector<32x784xf32> to vector<32x757xf32>
    %56 = vector.extract_strided_slice %54 {offsets = [0, 0], sizes = [32, 27], strides = [1, 1]} : vector<32x784xf32> to vector<32x27xf32>
    %57 = tpu.concatenate %55, %56 in 1 : vector<32x757xf32>, vector<32x27xf32> -> vector<32x784xf32>
    %58 = vector.extract_strided_slice %54 {offsets = [0, 783], sizes = [32, 1], strides = [1, 1]} : vector<32x784xf32> to vector<32x1xf32>
    %59 = vector.extract_strided_slice %54 {offsets = [0, 0], sizes = [32, 783], strides = [1, 1]} : vector<32x784xf32> to vector<32x783xf32>
    %60 = tpu.concatenate %58, %59 in 1 : vector<32x1xf32>, vector<32x783xf32> -> vector<32x784xf32>
    %61 = arith.select %18, %57, %60 : vector<32x784xi1>, vector<32x784xf32>
    %62 = vector.extract_strided_slice %61 {offsets = [0, 783], sizes = [32, 1], strides = [1, 1]} : vector<32x784xf32> to vector<32x1xf32>
    %63 = vector.extract_strided_slice %61 {offsets = [0, 0], sizes = [32, 783], strides = [1, 1]} : vector<32x784xf32> to vector<32x783xf32>
    %64 = tpu.concatenate %62, %63 in 1 : vector<32x1xf32>, vector<32x783xf32> -> vector<32x784xf32>
    %cst_19 = arith.constant 0.000000e+00 : f32
    %65 = vector.broadcast %cst_19 : f32 to vector<32x784xf32>
    %66 = arith.select %18, %65, %64 : vector<32x784xi1>, vector<32x784xf32>
    %67 = arith.truncf %66 : vector<32x784xf32> to vector<32x784xbf16>
    %c0_20 = arith.constant 0 : index
    %c96 = arith.constant 96 : index
    %c0_21 = arith.constant 0 : index
    %68 = vector.load %arg4[%c0_20, %c96, %c0_21] : memref<2x192x784xbf16, #tpu.memory_space<vmem>>, vector<1x32x784xbf16>
    %69 = vector.shape_cast %68 : vector<1x32x784xbf16> to vector<32x784xbf16>
    %70 = vector.shape_cast %67 : vector<32x784xbf16> to vector<1x32x784xbf16>
    tpu.vector_store %arg4[%c0_20, %c96, %c0_21], %70 {strides = array<i32>} : memref<2x192x784xbf16, #tpu.memory_space<vmem>>, vector<1x32x784xbf16>,
    %71 = arith.truncf %61 : vector<32x784xf32> to vector<32x784xbf16>
    %c0_22 = arith.constant 0 : index
    %c128 = arith.constant 128 : index
    %c0_23 = arith.constant 0 : index
    %72 = vector.load %arg4[%c0_22, %c128, %c0_23] : memref<2x192x784xbf16, #tpu.memory_space<vmem>>, vector<1x32x784xbf16>
    %73 = vector.shape_cast %72 : vector<1x32x784xbf16> to vector<32x784xbf16>
    %74 = vector.shape_cast %71 : vector<32x784xbf16> to vector<1x32x784xbf16>
    tpu.vector_store %arg4[%c0_22, %c128, %c0_23], %74 {strides = array<i32>} : memref<2x192x784xbf16, #tpu.memory_space<vmem>>, vector<1x32x784xbf16>,
    %75 = vector.extract_strided_slice %61 {offsets = [0, 1], sizes = [32, 783], strides = [1, 1]} : vector<32x784xf32> to vector<32x783xf32>
    %76 = vector.extract_strided_slice %61 {offsets = [0, 0], sizes = [32, 1], strides = [1, 1]} : vector<32x784xf32> to vector<32x1xf32>
    %77 = tpu.concatenate %75, %76 in 1 : vector<32x783xf32>, vector<32x1xf32> -> vector<32x784xf32>
    %cst_24 = arith.constant 0.000000e+00 : f32
    %78 = vector.broadcast %cst_24 : f32 to vector<32x784xf32>
    %79 = arith.select %20, %78, %77 : vector<32x784xi1>, vector<32x784xf32>
    %80 = arith.truncf %79 : vector<32x784xf32> to vector<32x784xbf16>
    %c0_25 = arith.constant 0 : index
    %c160 = arith.constant 160 : index
    %c0_26 = arith.constant 0 : index
    %81 = vector.load %arg4[%c0_25, %c160, %c0_26] : memref<2x192x784xbf16, #tpu.memory_space<vmem>>, vector<1x32x784xbf16>
    %82 = vector.shape_cast %81 : vector<1x32x784xbf16> to vector<32x784xbf16>
    %83 = vector.shape_cast %80 : vector<32x784xbf16> to vector<1x32x784xbf16>
    tpu.vector_store %arg4[%c0_25, %c160, %c0_26], %83 {strides = array<i32>} : memref<2x192x784xbf16, #tpu.memory_space<vmem>>, vector<1x32x784xbf16>,
    %c0_27 = arith.constant 0 : index
    %c0_28 = arith.constant 0 : index
    %c0_29 = arith.constant 0 : index
    %84 = vector.load %arg4[%c0_27, %c0_28, %c0_29] : memref<2x192x784xbf16, #tpu.memory_space<vmem>>, vector<1x192x784xbf16>
    %85 = vector.shape_cast %84 : vector<1x192x784xbf16> to vector<192x784xbf16>
    %cst_30 = arith.constant dense<0.000000e+00> : vector<128x784xf32>
    %86 = tpu.matmul %21, %85, %cst_30 {dimension_numbers = #tpu.dot_dimension_numbers<[1], [0], [0], [1], [0, 0, 1, 1], [], []>} : vector<128x192xbf16>, vector<192x784xbf16>, vector<128x784xf32> -> vector<128x784xf32>
    %c0_31 = arith.constant 0 : index
    %c0_32 = arith.constant 0 : index
    %c0_33 = arith.constant 0 : index
    %87 = vector.load %arg3[%c0_31, %c0_32, %c0_33] : memref<2x128x784xf32, #tpu.memory_space<vmem>>, vector<1x128x784xf32>
    %88 = vector.shape_cast %87 : vector<1x128x784xf32> to vector<128x784xf32>
    %89 = vector.shape_cast %86 : vector<128x784xf32> to vector<1x128x784xf32>
    tpu.vector_store %arg3[%c0_31, %c0_32, %c0_33], %89 {strides = array<i32>} : memref<2x128x784xf32, #tpu.memory_space<vmem>>, vector<1x128x784xf32>,
    %c1 = arith.constant 1 : index
    %c32_34 = arith.constant 32 : index
    %c0_35 = arith.constant 0 : index
    %90 = vector.load %arg1[%c1, %c32_34, %c0_35] : memref<2x64x784xf32, #tpu.memory_space<vmem>>, vector<1x32x784xf32>
    %91 = vector.shape_cast %90 : vector<1x32x784xf32> to vector<32x784xf32>
    %92 = vector.extract_strided_slice %91 {offsets = [0, 783], sizes = [32, 1], strides = [1, 1]} : vector<32x784xf32> to vector<32x1xf32>
    %93 = vector.extract_strided_slice %91 {offsets = [0, 0], sizes = [32, 783], strides = [1, 1]} : vector<32x784xf32> to vector<32x783xf32>
    %94 = tpu.concatenate %92, %93 in 1 : vector<32x1xf32>, vector<32x783xf32> -> vector<32x784xf32>
    %95 = vector.extract_strided_slice %91 {offsets = [0, 755], sizes = [32, 29], strides = [1, 1]} : vector<32x784xf32> to vector<32x29xf32>
    %96 = vector.extract_strided_slice %91 {offsets = [0, 0], sizes = [32, 755], strides = [1, 1]} : vector<32x784xf32> to vector<32x755xf32>
    %97 = tpu.concatenate %95, %96 in 1 : vector<32x29xf32>, vector<32x755xf32> -> vector<32x784xf32>
    %98 = arith.select %18, %94, %97 : vector<32x784xi1>, vector<32x784xf32>
    %99 = vector.extract_strided_slice %98 {offsets = [0, 783], sizes = [32, 1], strides = [1, 1]} : vector<32x784xf32> to vector<32x1xf32>
    %100 = vector.extract_strided_slice %98 {offsets = [0, 0], sizes = [32, 783], strides = [1, 1]} : vector<32x784xf32> to vector<32x783xf32>
    %101 = tpu.concatenate %99, %100 in 1 : vector<32x1xf32>, vector<32x783xf32> -> vector<32x784xf32>
    %cst_36 = arith.constant 0.000000e+00 : f32
    %102 = vector.broadcast %cst_36 : f32 to vector<32x784xf32>
    %103 = arith.select %18, %102, %101 : vector<32x784xi1>, vector<32x784xf32>
    %104 = arith.truncf %103 : vector<32x784xf32> to vector<32x784xbf16>
    %c1_37 = arith.constant 1 : index
    %c0_38 = arith.constant 0 : index
    %c0_39 = arith.constant 0 : index
    %105 = vector.load %arg4[%c1_37, %c0_38, %c0_39] : memref<2x192x784xbf16, #tpu.memory_space<vmem>>, vector<1x32x784xbf16>
    %106 = vector.shape_cast %105 : vector<1x32x784xbf16> to vector<32x784xbf16>
    %107 = vector.shape_cast %104 : vector<32x784xbf16> to vector<1x32x784xbf16>
    tpu.vector_store %arg4[%c1_37, %c0_38, %c0_39], %107 {strides = array<i32>} : memref<2x192x784xbf16, #tpu.memory_space<vmem>>, vector<1x32x784xbf16>,
    %108 = arith.truncf %98 : vector<32x784xf32> to vector<32x784xbf16>
    %c1_40 = arith.constant 1 : index
    %c32_41 = arith.constant 32 : index
    %c0_42 = arith.constant 0 : index
    %109 = vector.load %arg4[%c1_40, %c32_41, %c0_42] : memref<2x192x784xbf16, #tpu.memory_space<vmem>>, vector<1x32x784xbf16>
    %110 = vector.shape_cast %109 : vector<1x32x784xbf16> to vector<32x784xbf16>
    %111 = vector.shape_cast %108 : vector<32x784xbf16> to vector<1x32x784xbf16>
    tpu.vector_store %arg4[%c1_40, %c32_41, %c0_42], %111 {strides = array<i32>} : memref<2x192x784xbf16, #tpu.memory_space<vmem>>, vector<1x32x784xbf16>,
    %112 = vector.extract_strided_slice %98 {offsets = [0, 1], sizes = [32, 783], strides = [1, 1]} : vector<32x784xf32> to vector<32x783xf32>
    %113 = vector.extract_strided_slice %98 {offsets = [0, 0], sizes = [32, 1], strides = [1, 1]} : vector<32x784xf32> to vector<32x1xf32>
    %114 = tpu.concatenate %112, %113 in 1 : vector<32x783xf32>, vector<32x1xf32> -> vector<32x784xf32>
    %cst_43 = arith.constant 0.000000e+00 : f32
    %115 = vector.broadcast %cst_43 : f32 to vector<32x784xf32>
    %116 = arith.select %20, %115, %114 : vector<32x784xi1>, vector<32x784xf32>
    %117 = arith.truncf %116 : vector<32x784xf32> to vector<32x784xbf16>
    %c1_44 = arith.constant 1 : index
    %c64_45 = arith.constant 64 : index
    %c0_46 = arith.constant 0 : index
    %118 = vector.load %arg4[%c1_44, %c64_45, %c0_46] : memref<2x192x784xbf16, #tpu.memory_space<vmem>>, vector<1x32x784xbf16>
    %119 = vector.shape_cast %118 : vector<1x32x784xbf16> to vector<32x784xbf16>
    %120 = vector.shape_cast %117 : vector<32x784xbf16> to vector<1x32x784xbf16>
    tpu.vector_store %arg4[%c1_44, %c64_45, %c0_46], %120 {strides = array<i32>} : memref<2x192x784xbf16, #tpu.memory_space<vmem>>, vector<1x32x784xbf16>,
    %c1_47 = arith.constant 1 : index
    %c0_48 = arith.constant 0 : index
    %c0_49 = arith.constant 0 : index
    %121 = vector.load %arg1[%c1_47, %c0_48, %c0_49] : memref<2x64x784xf32, #tpu.memory_space<vmem>>, vector<1x32x784xf32>
    %122 = vector.shape_cast %121 : vector<1x32x784xf32> to vector<32x784xf32>
    %123 = vector.extract_strided_slice %122 {offsets = [0, 27], sizes = [32, 757], strides = [1, 1]} : vector<32x784xf32> to vector<32x757xf32>
    %124 = vector.extract_strided_slice %122 {offsets = [0, 0], sizes = [32, 27], strides = [1, 1]} : vector<32x784xf32> to vector<32x27xf32>
    %125 = tpu.concatenate %123, %124 in 1 : vector<32x757xf32>, vector<32x27xf32> -> vector<32x784xf32>
    %126 = vector.extract_strided_slice %122 {offsets = [0, 783], sizes = [32, 1], strides = [1, 1]} : vector<32x784xf32> to vector<32x1xf32>
    %127 = vector.extract_strided_slice %122 {offsets = [0, 0], sizes = [32, 783], strides = [1, 1]} : vector<32x784xf32> to vector<32x783xf32>
    %128 = tpu.concatenate %126, %127 in 1 : vector<32x1xf32>, vector<32x783xf32> -> vector<32x784xf32>
    %129 = arith.select %18, %125, %128 : vector<32x784xi1>, vector<32x784xf32>
    %130 = vector.extract_strided_slice %129 {offsets = [0, 783], sizes = [32, 1], strides = [1, 1]} : vector<32x784xf32> to vector<32x1xf32>
    %131 = vector.extract_strided_slice %129 {offsets = [0, 0], sizes = [32, 783], strides = [1, 1]} : vector<32x784xf32> to vector<32x783xf32>
    %132 = tpu.concatenate %130, %131 in 1 : vector<32x1xf32>, vector<32x783xf32> -> vector<32x784xf32>
    %cst_50 = arith.constant 0.000000e+00 : f32
    %133 = vector.broadcast %cst_50 : f32 to vector<32x784xf32>
    %134 = arith.select %18, %133, %132 : vector<32x784xi1>, vector<32x784xf32>
    %135 = arith.truncf %134 : vector<32x784xf32> to vector<32x784xbf16>
    %c1_51 = arith.constant 1 : index
    %c96_52 = arith.constant 96 : index
    %c0_53 = arith.constant 0 : index
    %136 = vector.load %arg4[%c1_51, %c96_52, %c0_53] : memref<2x192x784xbf16, #tpu.memory_space<vmem>>, vector<1x32x784xbf16>
    %137 = vector.shape_cast %136 : vector<1x32x784xbf16> to vector<32x784xbf16>
    %138 = vector.shape_cast %135 : vector<32x784xbf16> to vector<1x32x784xbf16>
    tpu.vector_store %arg4[%c1_51, %c96_52, %c0_53], %138 {strides = array<i32>} : memref<2x192x784xbf16, #tpu.memory_space<vmem>>, vector<1x32x784xbf16>,
    %139 = arith.truncf %129 : vector<32x784xf32> to vector<32x784xbf16>
    %c1_54 = arith.constant 1 : index
    %c128_55 = arith.constant 128 : index
    %c0_56 = arith.constant 0 : index
    %140 = vector.load %arg4[%c1_54, %c128_55, %c0_56] : memref<2x192x784xbf16, #tpu.memory_space<vmem>>, vector<1x32x784xbf16>
    %141 = vector.shape_cast %140 : vector<1x32x784xbf16> to vector<32x784xbf16>
    %142 = vector.shape_cast %139 : vector<32x784xbf16> to vector<1x32x784xbf16>
    tpu.vector_store %arg4[%c1_54, %c128_55, %c0_56], %142 {strides = array<i32>} : memref<2x192x784xbf16, #tpu.memory_space<vmem>>, vector<1x32x784xbf16>,
    %143 = vector.extract_strided_slice %129 {offsets = [0, 1], sizes = [32, 783], strides = [1, 1]} : vector<32x784xf32> to vector<32x783xf32>
    %144 = vector.extract_strided_slice %129 {offsets = [0, 0], sizes = [32, 1], strides = [1, 1]} : vector<32x784xf32> to vector<32x1xf32>
    %145 = tpu.concatenate %143, %144 in 1 : vector<32x783xf32>, vector<32x1xf32> -> vector<32x784xf32>
    %cst_57 = arith.constant 0.000000e+00 : f32
    %146 = vector.broadcast %cst_57 : f32 to vector<32x784xf32>
    %147 = arith.select %20, %146, %145 : vector<32x784xi1>, vector<32x784xf32>
    %148 = arith.truncf %147 : vector<32x784xf32> to vector<32x784xbf16>
    %c1_58 = arith.constant 1 : index
    %c160_59 = arith.constant 160 : index
    %c0_60 = arith.constant 0 : index
    %149 = vector.load %arg4[%c1_58, %c160_59, %c0_60] : memref<2x192x784xbf16, #tpu.memory_space<vmem>>, vector<1x32x784xbf16>
    %150 = vector.shape_cast %149 : vector<1x32x784xbf16> to vector<32x784xbf16>
    %151 = vector.shape_cast %148 : vector<32x784xbf16> to vector<1x32x784xbf16>
    tpu.vector_store %arg4[%c1_58, %c160_59, %c0_60], %151 {strides = array<i32>} : memref<2x192x784xbf16, #tpu.memory_space<vmem>>, vector<1x32x784xbf16>,
    %c1_61 = arith.constant 1 : index
    %c0_62 = arith.constant 0 : index
    %c0_63 = arith.constant 0 : index
    %152 = vector.load %arg4[%c1_61, %c0_62, %c0_63] : memref<2x192x784xbf16, #tpu.memory_space<vmem>>, vector<1x192x784xbf16>
    %153 = vector.shape_cast %152 : vector<1x192x784xbf16> to vector<192x784xbf16>
    %cst_64 = arith.constant dense<0.000000e+00> : vector<128x784xf32>
    %154 = tpu.matmul %21, %153, %cst_64 {dimension_numbers = #tpu.dot_dimension_numbers<[1], [0], [0], [1], [0, 0, 1, 1], [], []>} : vector<128x192xbf16>, vector<192x784xbf16>, vector<128x784xf32> -> vector<128x784xf32>
    %c1_65 = arith.constant 1 : index
    %c0_66 = arith.constant 0 : index
    %c0_67 = arith.constant 0 : index
    %155 = vector.load %arg3[%c1_65, %c0_66, %c0_67] : memref<2x128x784xf32, #tpu.memory_space<vmem>>, vector<1x128x784xf32>
    %156 = vector.shape_cast %155 : vector<1x128x784xf32> to vector<128x784xf32>
    %157 = vector.shape_cast %154 : vector<128x784xf32> to vector<1x128x784xf32>
    tpu.vector_store %arg3[%c1_65, %c0_66, %c0_67], %157 {strides = array<i32>} : memref<2x128x784xf32, #tpu.memory_space<vmem>>, vector<1x128x784xf32>,
    return
  }
  func.func @transform_0(%arg0: i32) -> (i32, i32, i32) {
    %c0_i32 = arith.constant 0 : i32
    %c0_i32_0 = arith.constant 0 : i32
    %c0_i32_1 = arith.constant 0 : i32
    return %arg0, %c0_i32, %c0_i32_0 : i32, i32, i32
  }
  func.func @transform_1(%arg0: i32) -> (i32, i32) {
    %c0_i32 = arith.constant 0 : i32
    %c0_i32_0 = arith.constant 0 : i32
    %c0_i32_1 = arith.constant 0 : i32
    return %c0_i32, %c0_i32_0 : i32, i32
  }
  func.func @transform_2(%arg0: i32) -> (i32, i32, i32) {
    %c0_i32 = arith.constant 0 : i32
    %c0_i32_0 = arith.constant 0 : i32
    %c0_i32_1 = arith.constant 0 : i32
    return %arg0, %c0_i32, %c0_i32_0 : i32, i32, i32
  }
}

</mosaic_0001>

<bundles_post_ra>
// kernel: kernel_generated_1_forward.1
= control target key start
LH: loop header
LB: loop body
LE: loop exit
PB: predicated region body
PF: predicated region fallthrough
CT: control target
= control target key end

     0   :  { %s9029_s25 = smov 113   ;;  %s9030_s26 = smov 1   ;;  %v12_v52 = vlaneseq  ;;  %s13920_s0 = inlined_call_operand.vmem [shape: f32[2,64,784], index: 0, kind: input, shape index: {}]   ;;  %s13921_s1 = inlined_call_operand.vmem [shape: bf16[128,192], index: 1, kind: input, shape index: {}]   ;;  %s13922_s2 = inlined_call_operand.vmem [shape: f32[2,128,784], index: 2, kind: output, shape index: {}]  }
   0x1   :  { %v9056_v0 = vld [vmem:[%s13920_s0 + $0x110] sm:$0xff]  ;;  %v196_v1 = vld [vmem:[%s13920_s0 + $0x148] sm:$0xff]  ;;  %v183_v2 = vld [vmem:[%s13920_s0 + $0xe0] sm:$0xff]  ;;  %s9031_s13 = smov 13   ;;  %s9032_s14 = smov 29  }
   0x2   :  { %v7167_v3 = vpack.i.bf16 %v196_v1, %v9056_v0  ;;  %v184_v4 = vld [vmem:[%s13920_s0 + $0xe8] sm:$0xff]  ;;  %v203_v5 = vld [vmem:[%s13920_s0 + $0x180] sm:$0xff]  ;;  %v210_v6 = vld [vmem:[%s13920_s0 + $0x1b8] sm:$0xff]  ;;  %v9174_v53 = vand.u32 127, %v12_v52  ;;  %s9034_s15 = smov 127   ;;  %s9035_s20 = smov 15  }
   0x3   :  { %v7177_v7 = vpack.i.bf16 %v184_v4, %v183_v2  ;;  %v185_v8 = vld [vmem:[%s13920_s0 + $0xf0] sm:$0xff]  ;;  %v186_v9 = vld [vmem:[%s13920_s0 + $0xf8] sm:$0xff]  ;;  %v7172_v10 = vpack.i.bf16 %v210_v6, %v203_v5  ;;  %v187_v12 = vld [vmem:[%s13920_s0 + $0x100] sm:$0xff]  ;;  %s9036_s27 = smov 101   ;;  %s9037_s30 = smov 117  }
   0x4   :  { %7168 = vrot.lane.b32.xlu0 %v7167_v3, %s9029_s25  ;;  %v7182_v11 = vpack.i.bf16 %v186_v9, %v185_v8  ;;  %v188_v13 = vld [vmem:[%s13920_s0 + $0x108] sm:$0xff]  ;;  %v190_v14 = vld [vmem:[%s13920_s0 + $0x118] sm:$0xff]  ;;  %v191_v17 = vld [vmem:[%s13920_s0 + $0x120] sm:$0xff]  ;;  %v14_v54 = vadd.s32 128, %v9174_v53  ;;  %v19_v55 = vadd.s32 768, %v9174_v53  ;;  %v9179_v56 = vadd.s32 512, %v9174_v53 }
   0x5   :  { %7178 = vrot.lane.b32.xlu1 %v7177_v7, %s9030_s26  ;;  %v7187_v15 = vpack.i.bf16 %v188_v13, %v187_v12  ;;  %v7192_v16 = vpack.i.bf16 %v190_v14, %v9056_v0  ;;  %v192_v18 = vld [vmem:[%s13920_s0 + $0x128] sm:$0xff]  ;;  %v193_v19 = vld [vmem:[%s13920_s0 + $0x130] sm:$0xff]  ;;  %v194_v20 = vld [vmem:[%s13920_s0 + $0x138] sm:$0xff]  ;;  %v7247_v44 = vpack.i.bf16 %v9056_v0, %v188_v13  ;;  %v7282_v46 = vpack.i.bf16 %v191_v17, %v190_v14 }
   0x6   :  { %v7197_v21 = vpack.i.bf16 %v192_v18, %v191_v17  ;;  %v7202_v22 = vpack.i.bf16 %v194_v20, %v193_v19  ;;  %v195_v23 = vld [vmem:[%s13920_s0 + $0x140] sm:$0xff]  ;;  %v197_v24 = vld [vmem:[%s13920_s0 + $0x150] sm:$0xff]  ;;  %v198_v25 = vld [vmem:[%s13920_s0 + $0x158] sm:$0xff]  ;;  %v7287_v47 = vpack.i.bf16 %v193_v19, %v192_v18  ;;  %v9182_v57 = vadd.s32 640, %v9174_v53 }
   0x7   :  { %v7207_v26 = vpack.i.bf16 %v196_v1, %v195_v23  ;;  %v7212_v27 = vpack.i.bf16 %v198_v25, %v197_v24  ;;  %v199_v28 = vld [vmem:[%s13920_s0 + $0x160] sm:$0xff]  ;;  %v200_v29 = vld [vmem:[%s13920_s0 + $0x168] sm:$0xff]  ;;  %v201_v30 = vld [vmem:[%s13920_s0 + $0x170] sm:$0xff]  ;;  %v7292_v48 = vpack.i.bf16 %v195_v23, %v194_v20  ;;  %v9185_v58 = vadd.s32 256, %v9174_v53 }
   0x8   :  { %7173 = vrot.lane.b32.xlu0 %v7172_v10, %s9029_s25  ;;  %v202_v31 = vld [vmem:[%s13920_s0 + $0x178] sm:$0xff]  ;;  %v7217_v32 = vpack.i.bf16 %v200_v29, %v199_v28  ;;  %v204_v34 = vld [vmem:[%s13920_s0 + $0x188] sm:$0xff]  ;;  %v205_v35 = vld [vmem:[%s13920_s0 + $0x190] sm:$0xff]  ;;  %v9187_v59 = vmul.u32.u64.low 2454267026, %v14_v54  ;;  %v9188_v60 = vmul.u32.u64.high 2454267026, %v14_v54, %v9187_v59  ;;  %v9194_v63 = vadd.s32 384, %v9174_v53 }
   0x9   :  { %7183 = vrot.lane.b32.xlu1 %v7182_v11, %s9030_s26  ;;  %v7222_v33 = vpack.i.bf16 %v202_v31, %v201_v30  ;;  %v206_v36 = vld [vmem:[%s13920_s0 + $0x198] sm:$0xff]  ;;  %v7227_v37 = vpack.i.bf16 %v204_v34, %v203_v5  ;;  %v207_v39 = vld [vmem:[%s13920_s0 + $0x1a0] sm:$0xff]  ;;  %v208_v40 = vld [vmem:[%s13920_s0 + $0x1a8] sm:$0xff]  ;;  %v7257_v45 = vpack.i.bf16 %v203_v5, %v202_v31  ;;  %v7312_v49 = vpack.i.bf16 %v205_v35, %v204_v34 }
   0xa   :  { %v7232_v38 = vpack.i.bf16 %v206_v36, %v205_v35  ;;  %v209_v41 = vld [vmem:[%s13920_s0 + $0x1b0] sm:$0xff]  ;;  %v7237_v42 = vpack.i.bf16 %v208_v40, %v207_v39  ;;  %v7317_v50 = vpack.i.bf16 %v207_v39, %v206_v36  ;;  %vm40_vm0 = vc.u32 %v9187_v59, 2454267026 }
   0xb   :  { %v7242_v43 = vpack.i.bf16 %v210_v6, %v209_v41  ;;  %v7322_v51 = vpack.i.bf16 %v209_v41, %v208_v40  ;;  %v9190_v61 = vmul.u32.u64.low 2454267026, %v19_v55  ;;  %v9191_v62 = vmul.u32.u64.high 2454267026, %v19_v55, %v9190_v61 }
   0xc   :  { %7188 = vrot.lane.b32.xlu0 %v7187_v15, %s9030_s26  ;;  %v9197_v0 = vmul.u32.u64.low 2454267026, %v9179_v56  ;;  %v9198_v1 = vmul.u32.u64.high 2454267026, %v9179_v56, %v9197_v0  ;;  %v9201_v2 = vmul.u32.u64.low 2454267026, %v9182_v57  ;;  %v9202_v3 = vmul.u32.u64.high 2454267026, %v9182_v57, %v9201_v2 }
   0xd   :  { %7193 = vrot.lane.b32.xlu1 %v7192_v16, %s9030_s26  ;;  %v9205_v4 = vmul.u32.u64.low 2454267026, %v9185_v58  ;;  %v9206_v5 = vmul.u32.u64.high 2454267026, %v9185_v58, %v9205_v4  ;;  %vm110_vm1 = vc.u32 %v9190_v61, 2454267026  ;;  %v13923_v10 = vmov 0  }
   0xe   :  { %vm82_vm2 = vc.u32 %v9197_v0, 2454267026  ;;  %v9213_v8 = vmul.u32.u64.low 2454267026, %v9174_v53  ;;  %v9214_v9 = vmul.u32.u64.high 2454267026, %v9174_v53, %v9213_v8  ;;  %vm96_vm3 = vc.u32 %v9201_v2, 2454267026 }
   0xf   :  { %v111_v13 = vsel %vm110_vm1, 1, %v13923_v10  ;;  %vm54_vm4 = vc.u32 %v9205_v4, 2454267026  ;;  %v97_v16 = vsel %vm96_vm3, 1, %v13923_v10 }
  0x10   :  { %7198 = vrot.lane.b32.xlu0 %v7197_v21, %s9030_s26  ;;  %vm26_vm6 = vc.u32 %v9213_v8, 2454267026  ;;  %v112_v18 = vadd.s32 %v9191_v62, %v111_v13  ;;  %v55_v19 = vsel %vm54_vm4, 1, %v13923_v10  ;;  %v98_v24 = vadd.s32 %v9202_v3, %v97_v16 }
  0x11   :  { %7203 = vrot.lane.b32.xlu1 %v7202_v22, %s9030_s26  ;;  %v27_v25 = vsel %vm26_vm6, 1, %v13923_v10 }
  0x12   :  { %v113_v28 = vshrl.u32 %v112_v18, 4  ;;  %v99_v34 = vshrl.u32 %v98_v24, 4 }
  0x14   :  { %7208 = vrot.lane.b32.xlu0 %v7207_v26, %s9030_s26 }
  0x15   :  { %7213 = vrot.lane.b32.xlu1 %v7212_v27, %s9030_s26 }
  0x18   :  { %7218 = vrot.lane.b32.xlu0 %v7217_v32, %s9030_s26 }
  0x19   :  { %7223 = vrot.lane.b32.xlu1 %v7222_v33, %s9030_s26 }
  0x1c   :  { %7228 = vrot.lane.b32.xlu0 %v7227_v37, %s9030_s26  ;;  %v114_v37 = vmul.u32 28, %v113_v28 }
  0x1d   :  { %7233 = vrot.lane.b32.xlu1 %v7232_v38, %s9030_s26 }
  0x20   :  { %7238 = vrot.lane.b32.xlu0 %v7237_v42, %s9030_s26 }
  0x21   :  { %7243 = vrot.lane.b32.xlu1 %v7242_v43, %s9030_s26 }
  0x24   :  { %7248 = vrot.lane.b32.xlu0 %v7247_v44, %s9031_s13 }
  0x25   :  { %7253 = vrot.lane.b32.xlu1 %v7207_v26, %s9031_s13 }
  0x28   :  { %7258 = vrot.lane.b32.xlu0 %v7257_v45, %s9031_s13 }
  0x29   :  { %7263 = vrot.lane.b32.xlu1 %v7242_v43, %s9031_s13  ;;  %v100_v43 = vmul.u32 28, %v99_v34 }
  0x2b   :  { %v101_v52 = vsub.s32 %v9182_v57, %v100_v43 }
  0x2c   :  { %7268 = vrot.lane.b32.xlu0 %v7177_v7, %s9032_s14  ;;  %v9209_v6 = vmul.u32.u64.low 2454267026, %v9194_v63  ;;  %v9210_v7 = vmul.u32.u64.high 2454267026, %v9194_v63, %v9209_v6 }
  0x2d   :  { %7273 = vrot.lane.b32.xlu1 %v7182_v11, %s9032_s14  ;;  %v41_v11 = vsel %vm40_vm0, 1, %v13923_v10  ;;  %vm123_vm13 = vcmp.ne.s32.totalorder %v101_v52, 0  ;;  %vm130_vm14 = vcmp.lt.s32.totalorder %v101_v52, 0  ;;  %v144_v3 = vadd.s32 28, %v101_v52 }
  0x2e   :  { %vm68_vm5 = vc.u32 %v9209_v6, 2454267026  ;;  %v42_v17 = vadd.s32 %v9188_v60, %v41_v11  ;;  %vm9273_vm6 = vmand %vm130_vm14, %vm123_vm13  ;;  %vm13926_vm13 = vcmask 236544  }
  0x2f   :  { %v69_v22 = vsel %vm68_vm5, 1, %v13923_v10  ;;  %v9311_v24 = vsel %vm9273_vm6, %v144_v3, %v101_v52 }
  0x30   :  { %7278 = vrot.lane.b32.xlu0 %v7187_v15, %s9032_s14  ;;  %v83_v15 = vsel %vm82_vm2, 1, %v13923_v10  ;;  %v43_v26 = vshrl.u32 %v42_v17, 4  ;;  %v70_v29 = vadd.s32 %v9210_v7, %v69_v22 }
  0x31   :  { %7283 = vrot.lane.b32.xlu1 %v7282_v46, %s9032_s14  ;;  %v84_v21 = vadd.s32 %v9198_v1, %v83_v15  ;;  %v115_v46 = vsub.s32 %v19_v55, %v114_v37 }
  0x32   :  { %v44_v35 = vmul.u32 28, %v43_v26  ;;  %v71_v38 = vshrl.u32 %v70_v29, 4 }
  0x33   :  { %v85_v31 = vshrl.u32 %v84_v21, 4  ;;  %vm124_vm9 = vcmp.ne.s32.totalorder %v115_v46, 0  ;;  %vm131_vm10 = vcmp.lt.s32.totalorder %v115_v46, 0  ;;  %v145_v62 = vadd.s32 28, %v115_v46 }
  0x34   :  { %7288 = vrot.lane.b32.xlu0 %v7287_v47, %s9032_s14  ;;  %v45_v44 = vsub.s32 %v14_v54, %v44_v35  ;;  %v72_v47 = vmul.u32 28, %v71_v38  ;;  %vm9263_vm0 = vmand %vm131_vm10, %vm124_vm9 }
  0x35   :  { %7293 = vrot.lane.b32.xlu1 %v7292_v48, %s9032_s14  ;;  %v86_v40 = vmul.u32 28, %v85_v31  ;;  %v9295_v17 = vsel %vm9263_vm0, %v145_v62, %v115_v46 }
  0x36   :  { %vm119_vm7 = vcmp.ne.s32.totalorder %v45_v44, 0  ;;  %vm126_vm8 = vcmp.lt.s32.totalorder %v45_v44, 0  ;;  %v73_v54 = vsub.s32 %v9194_v63, %v72_v47  ;;  %v140_v0 = vadd.s32 28, %v45_v44 }
  0x37   :  { %vm9259_vm15 = vmand %vm126_vm8, %vm119_vm7  ;;  %vm13938_vm0 = vcmp.eq.s32.totalorder %v9295_v17, 0 }
  0x38   :  { %7298 = vrot.lane.b32.xlu0 %v7212_v27, %s9032_s14  ;;  %v56_v27 = vadd.s32 %v9206_v5, %v55_v19  ;;  %vm121_vm4 = vcmp.ne.s32.totalorder %v73_v54, 0  ;;  %vm128_vm5 = vcmp.lt.s32.totalorder %v73_v54, 0  ;;  %v142_v7 = vadd.s32 28, %v73_v54 }
  0x39   :  { %7303 = vrot.lane.b32.xlu1 %v7217_v32, %s9032_s14  ;;  %v28_v32 = vadd.s32 %v9214_v9, %v27_v25  ;;  %vm9283_vm10 = vmand %vm128_vm5, %vm121_vm4  ;;  %v9299_v18 = vsel %vm9259_vm15, %v140_v0, %v45_v44  ;;  %vm14014_vm4 = vcmask 125952  }
  0x3a   :  { %v57_v36 = vshrl.u32 %v56_v27, 4  ;;  %vm13945_vm5 = vcmp.eq.s32.totalorder %v9299_v18, 0 }
  0x3b   :  { %v29_v41 = vshrl.u32 %v28_v32, 4 }
  0x3c   :  { %7308 = vrot.lane.b32.xlu0 %v7222_v33, %s9032_s14  ;;  %v58_v45 = vmul.u32 28, %v57_v36 }
  0x3d   :  { %7313 = vrot.lane.b32.xlu1 %v7312_v49, %s9032_s14  ;;  %v87_v49 = vsub.s32 %v9179_v56, %v86_v40 }
  0x3e   :  { %v59_v59 = vsub.s32 %v9185_v58, %v58_v45 }
  0x3f   :  { %vm122_vm11 = vcmp.ne.s32.totalorder %v87_v49, 0  ;;  %vm129_vm12 = vcmp.lt.s32.totalorder %v87_v49, 0  ;;  %v143_v2 = vadd.s32 28, %v87_v49 }
  0x40   :  { %7318 = vrot.lane.b32.xlu0 %v7317_v50, %s9032_s14  ;;  %v30_v50 = vmul.u32 28, %v29_v41  ;;  %vm120_vm1 = vcmp.ne.s32.totalorder %v59_v59, 0  ;;  %vm127_vm2 = vcmp.lt.s32.totalorder %v59_v59, 0  ;;  %vm9267_vm3 = vmand %vm129_vm12, %vm122_vm11  ;;  %v141_v5 = vadd.s32 28, %v59_v59 }
  0x41   :  { %7323 = vrot.lane.b32.xlu1 %v7322_v51, %s9032_s14  ;;  %vm9279_vm9 = vmand %vm127_vm2, %vm120_vm1  ;;  %vm13988_vm11 = vcmask 7168   ;;  %v9307_v22 = vsel %vm9267_vm3, %v143_v2, %v87_v49  ;;  %vm13927_vm1 = vcmask 105472   ;;  %vm13937_vm3 = vcmp.eq.s32.totalorder %v9311_v24, 0 }
  0x42   :  { %v31_v55 = vsub.s32 %v9174_v53, %v30_v50  ;;  %v9316_v26 = vsel %vm9279_vm9, %v141_v5, %v59_v59  ;;  %vm13936_vm2 = vcmp.eq.s32.totalorder %v9307_v22, 0 }
  0x43   :  { %vm13948_vm14 = vcmp.eq.s32.totalorder %v9316_v26, 0  ;;  %vm13928_vm9 = vcmp.eq.s32.totalorder %v9316_v26, 27 }
  0x44   :  { %vm118_vm7 = vcmp.ne.s32.totalorder %v31_v55, 0  ;;  %vm125_vm8 = vcmp.lt.s32.totalorder %v31_v55, 0  ;;  %v139_v8 = vadd.s32 28, %v31_v55 }
  0x45   :  { %vm132_vm12 = vmand %vm125_vm8, %vm118_vm7  ;;  %vm13942_vm7 = vcmask 1039360   ;;  %vm13944_vm8 = vcmp.eq.s32.totalorder %v9311_v24, 27 }
  0x46   :  { %v9322_v27 = vsel %vm132_vm12, %v139_v8, %v31_v55  ;;  %vm13943_vm12 = vcmp.eq.s32.totalorder %v9307_v22, 27 }
  0x47   :  { %vm13946_vm6 = vcmp.eq.s32.totalorder %v9322_v27, 0 }
  0x76   :  { %v9217_v12 = vpop.permute.xlu0 %7168 }
  0x77   :  { %v9220_v14 = vpop.permute.xlu1 %7178  ;;  %v7170_v13 = vunpack.i.l.bf16 %v9217_v12  ;;  %v7171_v25 = vunpack.i.h.bf16 %v9217_v12 }
  0x78   :  { %v7181_v9 = vunpack.i.h.bf16 %v9220_v14  ;;  %v7180_v11 = vunpack.i.l.bf16 %v9220_v14 }
  0x7a   :  { %v9227_v20 = vpop.permute.xlu0 %7173  ;;  %v9325_v28 = vsel %vm13988_vm11, %v7180_v11, %v7181_v9  ;;  %v9331_v12 = vsel %vm13988_vm11, %v7170_v13, %v7180_v11 }
  0x7b   :  { %v9231_v23 = vpop.permute.xlu1 %7183  ;;  %v7176_v34 = vunpack.i.h.bf16 %v9227_v20 }
  0x7c   :  { %v7185_v15 = vunpack.i.l.bf16 %v9231_v23  ;;  %v7186_v19 = vunpack.i.h.bf16 %v9231_v23  ;;  %v9320_v23 = vsel %vm9283_vm10, %v142_v7, %v73_v54 }
  0x7d   :  { %vm13939_vm15 = vcmp.eq.s32.totalorder %v9320_v23, 0  ;;  %vm13929_vm10 = vcmp.eq.s32.totalorder %v9320_v23, 27 }
  0x7e   :  { %v9237_v30 = vpop.permute.xlu0 %7188  ;;  %v9336_v36 = vsel %vm13988_vm11, %v7181_v9, %v7185_v15  ;;  %v9341_v38 = vsel %vm13988_vm11, %v7185_v15, %v7186_v19 }
  0x7f   :  { %v9240_v33 = vpop.permute.xlu1 %7193  ;;  %v7190_v21 = vunpack.i.l.bf16 %v9237_v30  ;;  %v7191_v29 = vunpack.i.h.bf16 %v9237_v30 }
  0x80   :  { %v7196_v31 = vunpack.i.h.bf16 %v9240_v33  ;;  %v7195_v32 = vunpack.i.l.bf16 %v9240_v33 }
  0x81   :  { %v9344_v30 = vsel %vm13988_vm11, %v7186_v19, %v7190_v21  ;;  %v9347_v33 = vsel %vm13988_vm11, %v7190_v21, %v7191_v29 }
  0x82   :  { %v9242_v39 = vpop.permute.xlu0 %7198  ;;  %v9359_v47 = vsel %vm13988_vm11, %v7171_v25, %v7196_v31  ;;  %v313_v49 = vsel %vm13988_vm11, %v7191_v29, %v7195_v32 }
  0x83   :  { %v9244_v42 = vpop.permute.xlu1 %7203  ;;  %v7200_v40 = vunpack.i.l.bf16 %v9242_v39  ;;  %v7201_v43 = vunpack.i.h.bf16 %v9242_v39 }
  0x84   :  { %v7206_v44 = vunpack.i.h.bf16 %v9244_v42  ;;  %v7205_v45 = vunpack.i.l.bf16 %v9244_v42 }
  0x85   :  { %v9372_v57 = vsel %vm13988_vm11, %v7196_v31, %v7200_v40 }
  0x86   :  { %v9246_v48 = vpop.permute.xlu0 %7208  ;;  %v9384_v62 = vsel %vm13988_vm11, %v7201_v43, %v7205_v45  ;;  %v9387_v63 = vsel %vm13988_vm11, %v7205_v45, %v7206_v44 }
  0x87   :  { %v9249_v51 = vpop.permute.xlu1 %7213  ;;  %v7210_v46 = vunpack.i.l.bf16 %v9246_v48  ;;  %v7211_v50 = vunpack.i.h.bf16 %v9246_v48 }
  0x88   :  { %v13925_v58 = vunpack.i.h.bf16 %v9249_v51 }
  0x89   :  { %v9390_v0 = vsel %vm13988_vm11, %v7206_v44, %v7210_v46 }
  0x8a   :  { %v9254_v60 = vpop.permute.xlu0 %7218 }
  0x8b   :  { %v9257_v56 = vpop.permute.xlu1 %7223  ;;  %v7220_v52 = vunpack.i.l.bf16 %v9254_v60  ;;  %v7221_v39 = vunpack.i.h.bf16 %v9254_v60 }
  0x8c   :  { %v7226_v59 = vunpack.i.h.bf16 %v9257_v56  ;;  %v7225_v42 = vunpack.i.l.bf16 %v9257_v56  ;;  %v9381_v56 = vsel %vm13988_vm11, %v7200_v40, %v7201_v43 }
  0x8d   :  { %v9399_v2 = vsel %vm13988_vm11, %v13925_v58, %v7220_v52  ;;  %v9404_v5 = vsel %vm13988_vm11, %v7220_v52, %v7221_v39 }
  0x8e   :  { %v9271_v53 = vpop.permute.xlu0 %7228  ;;  %v9407_v6 = vsel %vm13988_vm11, %v7221_v39, %v7225_v42  ;;  %v9410_v7 = vsel %vm13988_vm11, %v7225_v42, %v7226_v59 }
  0x8f   :  { %v9277_v1 = vpop.permute.xlu1 %7233  ;;  %v7231_v54 = vunpack.i.h.bf16 %v9271_v53  ;;  %v7230_v48 = vunpack.i.l.bf16 %v9271_v53  ;;  %v9394_v53 = vsel %vm13988_vm11, %v7210_v46, %v7211_v50 }
  0x90   :  { %v7235_v61 = vunpack.i.l.bf16 %v9277_v1  ;;  %v7236_v3 = vunpack.i.h.bf16 %v9277_v1 }
  0x91   :  { %v9413_v8 = vsel %vm13988_vm11, %v7176_v34, %v7231_v54  ;;  %v9418_v11 = vsel %vm13988_vm11, %v7226_v59, %v7230_v48 }
  0x92   :  { %v9291_v16 = vpop.permute.xlu0 %7238  ;;  %v9421_v1 = vsel %vm13988_vm11, %v7231_v54, %v7235_v61  ;;  %v9428_v32 = vsel %vm13988_vm11, %v7235_v61, %v7236_v3 }
  0x93   :  { %v9303_v14 = vpop.permute.xlu1 %7243  ;;  %v7240_v4 = vunpack.i.l.bf16 %v9291_v16  ;;  %v7241_v13 = vunpack.i.h.bf16 %v9291_v16 }
  0x94   :  { %v7246_v21 = vunpack.i.h.bf16 %v9303_v14  ;;  %v7245_v25 = vunpack.i.l.bf16 %v9303_v14 }
  0x95   :  { %v9431_v34 = vsel %vm13988_vm11, %v7236_v3, %v7240_v4 }
  0x96   :  { %v9338_v37 = vpop.permute.xlu0 %7248  ;;  %v9457_v42 = vsel %vm13988_vm11, %v7241_v13, %v7245_v25  ;;  %v9460_v54 = vsel %vm13988_vm11, %v7245_v25, %v7246_v21 }
  0x97   :  { %v9350_v41 = vpop.permute.xlu1 %7253  ;;  %v7251_v40 = vunpack.i.h.bf16 %v9338_v37  ;;  %v7250_v43 = vunpack.i.l.bf16 %v9338_v37 }
  0x98   :  { %v7256_v16 = vunpack.i.h.bf16 %v9350_v41  ;;  %v7255_v44 = vunpack.i.l.bf16 %v9350_v41  ;;  %v9454_v41 = vsel %vm13988_vm11, %v7240_v4, %v7241_v13 }
  0x9a   :  { %v9368_v55 = vpop.permute.xlu0 %7258  ;;  %v9474_v4 = vsel %vm13927_vm1, %v7255_v44, %v7256_v16 }
  0x9b   :  { %v9377_v60 = vpop.permute.xlu1 %7263 }
  0x9c   :  { %v7266_v13 = vunpack.i.h.bf16 %v9377_v60  ;;  %v7265_v16 = vunpack.i.l.bf16 %v9377_v60 }
  0x9e   :  { %v9415_v9 = vpop.permute.xlu0 %7268 }
  0x9f   :  { %v7271_v15 = vunpack.i.h.bf16 %v9415_v9  ;;  %v7274_v19 = vpop.permute.xlu1 %7273 }
  0xa0   :  { %v7276_v29 = vunpack.i.h.bf16 %v7274_v19  ;;  %v7275_v31 = vunpack.i.l.bf16 %v7274_v19 }
  0xa2   :  { %v439_v14 = vsel %vm13926_vm13, %v7271_v15, %v7275_v31  ;;  %v440_v45 = vsel %vm13926_vm13, %v7275_v31, %v7276_v29  ;;  %v7279_v46 = vpop.permute.xlu0 %7278 }
  0xa3   :  { %v7281_v50 = vunpack.i.h.bf16 %v7279_v46  ;;  %v7280_v52 = vunpack.i.l.bf16 %v7279_v46  ;;  %v9441_v39 = vpop.permute.xlu1 %7283  ;;  %v9446_v59 = vsel %vm13948_vm14, %v9336_v36, %v439_v14  ;;  %v9451_v37 = vsel %vm13939_vm15, %v9341_v38, %v440_v45 }
  0xa4   :  { %v6969_v48 = vpack.c.bf16 %v9451_v37, %v9446_v59  ;;  %v9465_v36 = vsel %vm13927_vm1, %v7250_v43, %v7251_v40  ;;  %v7260_v46 = vunpack.i.l.bf16 %v9368_v55 }
  0xa5   :  { %v441_v61 = vsel %vm13926_vm13, %v7276_v29, %v7280_v52  ;;  %v442_v38 = vsel %vm13926_vm13, %v7280_v52, %v7281_v50  ;;  %v9471_v3 = vsel %vm13938_vm0, %v313_v49, %v7281_v50  ;;  %v7286_v29 = vunpack.i.h.bf16 %v9441_v39 }
  0xa6   :  { %v7289_v19 = vpop.permute.xlu0 %7288  ;;  %v6971_v21 = vpack.c.bf16 %v9471_v3, %v9471_v3  ;;  %v494_v25 = vsel %vm13936_vm2, %v9344_v30, %v441_v61  ;;  %892 = vst [vmem:[#allocation2 + $0x78] sm:$0xff] %v6969_v48  ;;  %v495_v43 = vsel %vm13937_vm3, %v9347_v33, %v442_v38  ;;  %v7261_v30 = vunpack.i.h.bf16 %v9368_v55 }
  0xa7   :  { %v7291_v31 = vunpack.i.h.bf16 %v7289_v19  ;;  %v7290_v40 = vunpack.i.l.bf16 %v7289_v19  ;;  %v7294_v49 = vpop.permute.xlu1 %7293  ;;  %v6970_v45 = vpack.c.bf16 %v495_v43, %v494_v25  ;;  %v7285_v50 = vunpack.i.l.bf16 %v9441_v39 }
  0xa8   :  { %v7296_v44 = vunpack.i.h.bf16 %v7294_v49  ;;  %v7295_v14 = vunpack.i.l.bf16 %v7294_v49  ;;  %894 = vst.msk [vmem:[#allocation2 + $0x88] sm:$0xf] %vm14014_vm4, %v6971_v21  ;;  %v383_v39 = vsel %vm13927_vm1, %v7260_v46, %v7261_v30 }
  0xa9   :  { %v444_v52 = vsel %vm13926_vm13, %v7286_v29, %v7290_v40  ;;  %v445_v48 = vsel %vm13926_vm13, %v7290_v40, %v7291_v31  ;;  %893 = vst [vmem:[#allocation2 + $0x80] sm:$0xff] %v6970_v45 }
  0xaa   :  { %v446_v33 = vsel %vm13926_vm13, %v7291_v31, %v7295_v14  ;;  %v447_v61 = vsel %vm13926_vm13, %v7295_v14, %v7296_v44  ;;  %v9496_v60 = vpop.permute.xlu0 %7298  ;;  %v503_v38 = vsel %vm13938_vm0, %v9394_v53, %v7296_v44  ;;  %v499_v40 = vsel %vm13948_vm14, %v9381_v56, %v444_v52 }
  0xab   :  { %v7301_v19 = vunpack.i.h.bf16 %v9496_v60  ;;  %v7304_v21 = vpop.permute.xlu1 %7303  ;;  %v6975_v49 = vpack.c.bf16 %v503_v38, %v503_v38  ;;  %v7327_v10 = vpack.i.bf16 %v503_v38, %v9471_v3  ;;  %v9507_v31 = vsel %vm13927_vm1, %v7265_v16, %v7266_v13 }
  0xac   :  { %v7270_v14 = vunpack.i.l.bf16 %v9415_v9  ;;  %v7306_v35 = vunpack.i.h.bf16 %v7304_v21  ;;  %v7305_v58 = vunpack.i.l.bf16 %v7304_v21  ;;  %v443_v53 = vsel %vm13926_vm13, %v7285_v50, %v7286_v29 }
  0xad   :  { %898 = vst.msk [vmem:[#allocation2 + $0xa4] sm:$0xf] %vm14014_vm4, %v6975_v49  ;;  %7328 = vrot.lane.b32.xlu0 %v7327_v10, %s9029_s25  ;;  %v9515_v44 = vpack.i.bf16 %v495_v43, %v494_v25  ;;  %v502_v56 = vsel %vm13937_vm3, %v9390_v0, %v447_v61  ;;  %v9523_v13 = vsel %vm13939_vm15, %v9384_v62, %v445_v48  ;;  %vm13930_vm1 = vcmp.eq.s32.totalorder %v9322_v27, 27 }
  0xae   :  { %v449_v29 = vsel %vm13926_vm13, %v7301_v19, %v7305_v58  ;;  %v450_v16 = vsel %vm13926_vm13, %v7305_v58, %v7306_v35  ;;  %v7309_v10 = vpop.permute.xlu0 %7308  ;;  %v9533_v25 = vsel %vm13936_vm2, %v9387_v63, %v446_v33  ;;  %v6973_v0 = vpack.c.bf16 %v9523_v13, %v499_v40 }
  0xaf   :  { %v7311_v43 = vunpack.i.h.bf16 %v7309_v10  ;;  %v7310_v45 = vunpack.i.l.bf16 %v7309_v10  ;;  %v7314_v62 = vpop.permute.xlu1 %7313  ;;  %v506_v52 = vsel %vm13948_vm14, %v9399_v2, %v449_v29  ;;  %v507_v48 = vsel %vm13939_vm15, %v9404_v5, %v450_v16 }
  0xb0   :  { %v7316_v58 = vunpack.i.h.bf16 %v7314_v62  ;;  %v7315_v61 = vunpack.i.l.bf16 %v7314_v62  ;;  %v9545_v63 = vsel %vm13945_vm5, %v9372_v57, %v443_v53  ;;  %v6977_v33 = vpack.c.bf16 %v507_v48, %v506_v52  ;;  %896 = vst [vmem:[#allocation2 + $0x94] sm:$0xff] %v6973_v0 }
  0xb1   :  { %v451_v21 = vsel %vm13926_vm13, %v7306_v35, %v7310_v45  ;;  %v452_v49 = vsel %vm13926_vm13, %v7310_v45, %v7311_v43  ;;  %7343 = vrot.lane.b32.xlu0 %v9515_v44, %s9030_s26  ;;  %v9554_v2 = vsel %vm13938_vm0, %v9418_v11, %v7311_v43  ;;  %v6974_v5 = vpack.c.bf16 %v502_v56, %v9533_v25 }
  0xb2   :  { %v438_v57 = vsel %vm13926_vm13, %v7270_v14, %v7271_v15  ;;  %v486_v53 = vsel %vm13926_vm13, %v9465_v36, %v7270_v14  ;;  %v7319_v35 = vpop.permute.xlu0 %7318  ;;  %v9563_v29 = vpack.i.bf16 %v499_v40, %v9545_v63  ;;  %v6979_v16 = vpack.c.bf16 %v9554_v2, %v9554_v2  ;;  %900 = vst [vmem:[#allocation2 + $0xb0] sm:$0xff] %v6977_v33 }
  0xb3   :  { %v7321_v10 = vunpack.i.h.bf16 %v7319_v35  ;;  %v7320_v11 = vunpack.i.l.bf16 %v7319_v35  ;;  %v7324_v0 = vpop.permute.xlu1 %7323  ;;  %897 = vst [vmem:[#allocation2 + $0x9c] sm:$0xff] %v6974_v5  ;;  %v508_v9 = vsel %vm13936_vm2, %v9407_v6, %v451_v21  ;;  %v509_v15 = vsel %vm13937_vm3, %v9410_v7, %v452_v49 }
  0xb4   :  { %v7300_v36 = vunpack.i.l.bf16 %v9496_v60  ;;  %v7326_v40 = vunpack.i.h.bf16 %v7324_v0  ;;  %v7325_v14 = vunpack.i.l.bf16 %v7324_v0  ;;  %902 = vst.msk [vmem:[#allocation2 + $0xc0] sm:$0xf] %vm14014_vm4, %v6979_v16  ;;  %v6978_v43 = vpack.c.bf16 %v509_v15, %v508_v9 }
  0xb5   :  { %v453_v45 = vsel %vm13926_vm13, %v7315_v61, %v7316_v58  ;;  %v454_v62 = vsel %vm13926_vm13, %v7316_v58, %v7320_v11  ;;  %v455_v33 = vsel %vm13926_vm13, %v7320_v11, %v7321_v10  ;;  %7348 = vrot.lane.b32.xlu0 %v9563_v29, %s9030_s26  ;;  %v7357_v6 = vpack.i.bf16 %v503_v38, %v502_v56 }
  0xb6   :  { %v456_v21 = vsel %vm13926_vm13, %v7321_v10, %v7325_v14  ;;  %v457_v7 = vsel %vm13926_vm13, %v7325_v14, %v7326_v40  ;;  %v517_v49 = vsel %vm13938_vm0, %v9460_v54, %v7326_v40  ;;  %v514_v5 = vsel %vm13939_vm15, %v9431_v34, %v455_v33  ;;  %901 = vst [vmem:[#allocation2 + $0xb8] sm:$0xff] %v6978_v43  ;;  %v1173_v40 = vld [vmem:[%s13920_s0 + $0x40] sm:$0xff]  ;;  %v1174_v14 = vld [vmem:[%s13920_s0 + $0x48] sm:$0xff] }
  0xb7   :  { %v6983_v58 = vpack.c.bf16 %v517_v49, %v517_v49  ;;  %v7332_v35 = vpack.i.bf16 %v517_v49, %v9554_v2  ;;  %v515_v38 = vsel %vm13936_vm2, %v9454_v41, %v456_v21  ;;  %v513_v56 = vsel %vm13948_vm14, %v9428_v32, %v454_v62  ;;  %v1168_v62 = vld [vmem:[%s13920_s0 + $0x18] sm:$0xff]  ;;  %v1177_v33 = vld [vmem:[%s13920_s0 + $0x60] sm:$0xff] }
  0xb8   :  { %v489_v16 = vsel %vm13926_vm13, %v9507_v31, %v7315_v61  ;;  %v6981_v54 = vpack.c.bf16 %v514_v5, %v513_v56  ;;  %v9600_v34 = vsel %vm13946_vm6, %v9331_v12, %v486_v53  ;;  %v491_v10 = vsel %vm13945_vm5, %v9325_v28, %v438_v57  ;;  %v1165_v53 = vld [vmem:[%s13920_s0] sm:$0xff] }
  0xb9   :  { %v7215_v11 = vunpack.i.l.bf16 %v9249_v51  ;;  %v487_v32 = vsel %vm13926_vm13, %v9474_v4, %v7285_v50  ;;  %906 = vst.msk [vmem:[#allocation2 + $0xdc] sm:$0xf] %vm14014_vm4, %v6983_v58  ;;  %7333 = vrot.lane.b32.xlu1 %v7332_v35, %s9029_s25  ;;  %7358 = vrot.lane.b32.xlu0 %v7357_v6, %s9030_s26  ;;  %v512_v12 = vsel %vm13945_vm5, %v9421_v1, %v453_v45  ;;  %v14062_v60 = vunpack.i.l.bf16 %v9227_v20  ;;  %v1167_v45 = vld [vmem:[%s13920_s0 + $0x10] sm:$0xff]  ;;  %v1172_v58 = vld [vmem:[%s13920_s0 + $0x38] sm:$0xff] }
  0xba   :  { %v516_v28 = vsel %vm13937_vm3, %v9457_v42, %v457_v7  ;;  %v448_v41 = vsel %vm13926_vm13, %v7300_v36, %v7301_v19  ;;  %v7337_v4 = vpack.i.bf16 %v9451_v37, %v9446_v59  ;;  %904 = vst [vmem:[#allocation2 + $0xcc] sm:$0xff] %v6981_v54  ;;  %v488_v1 = vsel %vm13926_vm13, %v383_v39, %v7300_v36  ;;  %v1181_v35 = vld [vmem:[%s13920_s0 + $0x80] sm:$0xff]  ;;  %v1175_v54 = vld [vmem:[%s13920_s0 + $0x50] sm:$0xff]  ;;  %v1180_v39 = vld [vmem:[%s13920_s0 + $0x78] sm:$0xff] }
  0xbb   :  { %v6982_v50 = vpack.c.bf16 %v516_v28, %v515_v38  ;;  %v7362_v31 = vpack.i.bf16 %v507_v48, %v506_v52  ;;  %v6968_v42 = vpack.c.bf16 %v491_v10, %v9600_v34  ;;  %v9634_v55 = vsel %vm13946_vm6, %v9413_v8, %v489_v16 }
  0xbc   :  { %v6980_v30 = vpack.c.bf16 %v512_v12, %v9634_v55  ;;  %v497_v46 = vsel %vm13946_vm6, %v9359_v47, %v487_v32  ;;  %v14061_v59 = vunpack.i.h.bf16 %v9249_v51  ;;  %v362_v19 = vsel %vm13988_vm11, %v14062_v60, %v7215_v11 }
  0xbd   :  { %905 = vst [vmem:[#allocation2 + $0xd4] sm:$0xff] %v6982_v50  ;;  %7363 = vrot.lane.b32.xlu0 %v7362_v31, %s9030_s26  ;;  %7338 = vrot.lane.b32.xlu1 %v7337_v4, %s9030_s26  ;;  %891 = vst [vmem:[#allocation2 + $0x70] sm:$0xff] %v6968_v42  ;;  %v6972_v8 = vpack.c.bf16 %v9545_v63, %v497_v46  ;;  %v504_v52 = vsel %vm13946_vm6, %v362_v19, %v488_v1  ;;  %v1184_v42 = vld [vmem:[%s13920_s0 + $0x98] sm:$0xff]  ;;  %v1191_v19 = vld [vmem:[%s13920_s0 + $0xd0] sm:$0xff]  ;;  %vm13931_vm13 = vcmp.eq.s32.totalorder %v9299_v18, 27 }
  0xbe   :  { %v320_v37 = vsel %vm13988_vm11, %v7215_v11, %v14061_v59  ;;  %903 = vst [vmem:[#allocation2 + $0xc4] sm:$0xff] %v6980_v30  ;;  %v7377_v47 = vpack.i.bf16 %v515_v38, %v514_v5  ;;  %v7352_v20 = vpack.i.bf16 %v9533_v25, %v9523_v13  ;;  %v7367_v61 = vpack.i.bf16 %v509_v15, %v508_v9  ;;  %v1169_v9 = vld [vmem:[%s13920_s0 + $0x20] sm:$0xff]  ;;  %v1170_v15 = vld [vmem:[%s13920_s0 + $0x28] sm:$0xff]  ;;  %v1171_v5 = vld [vmem:[%s13920_s0 + $0x30] sm:$0xff] }
  0xbf   :  { %v505_v51 = vsel %vm13945_vm5, %v320_v37, %v448_v41  ;;  %895 = vst [vmem:[#allocation2 + $0x8c] sm:$0xff] %v6972_v8  ;;  %v7372_v63 = vpack.i.bf16 %v513_v56, %v512_v12  ;;  %v7382_v13 = vpack.i.bf16 %v517_v49, %v516_v28  ;;  %v7452_v25 = vpack.i.bf16 %v9634_v55, %v9554_v2  ;;  %v1166_v2 = vld [vmem:[%s13920_s0 + $0x8] sm:$0xff]  ;;  %v1179_v28 = vld [vmem:[%s13920_s0 + $0x70] sm:$0xff]  ;;  %v1189_v41 = vld [vmem:[%s13920_s0 + $0xc0] sm:$0xff] }
  0xc0   :  { %v6976_v48 = vpack.c.bf16 %v505_v51, %v504_v52  ;;  %v7442_v57 = vpack.i.bf16 %v497_v46, %v9471_v3  ;;  %v7477_v0 = vpack.i.bf16 %v497_v46, %v9600_v34  ;;  %v9690_v3 = vpack.i.bf16 %v1166_v2, %v1165_v53  ;;  %v1182_v38 = vld [vmem:[%s13920_s0 + $0x88] sm:$0xff]  ;;  %v1187_v46 = vld [vmem:[%s13920_s0 + $0xb0] sm:$0xff]  ;;  %v1188_v59 = vld [vmem:[%s13920_s0 + $0xb8] sm:$0xff] }
  0xc1   :  { %7378 = vrot.lane.b32.xlu0 %v7377_v47, %s9030_s26  ;;  %7353 = vrot.lane.b32.xlu1 %v7352_v20, %s9030_s26  ;;  %v7497_v36 = vpack.i.bf16 %v1170_v15, %v1169_v9  ;;  %v7507_v43 = vpack.i.bf16 %v1174_v14, %v1173_v40  ;;  %v7482_v21 = vpack.i.bf16 %v9634_v55, %v504_v52  ;;  %v1186_v11 = vld [vmem:[%s13920_s0 + $0xa8] sm:$0xff]  ;;  %v1192_v8 = vld [vmem:[%s13920_s0 + $0xd8] sm:$0xff] }
  0xc2   :  { %899 = vst [vmem:[#allocation2 + $0xa8] sm:$0xff] %v6976_v48  ;;  %v7492_v7 = vpack.i.bf16 %v1168_v62, %v1167_v45  ;;  %v7502_v56 = vpack.i.bf16 %v1172_v58, %v1171_v5  ;;  %v7527_v16 = vpack.i.bf16 %v1182_v38, %v1181_v35  ;;  %v7522_v50 = vpack.i.bf16 %v1180_v39, %v1179_v28 }
  0xc3   :  { %v7557_v30 = vpack.i.bf16 %v1172_v58, %v1165_v53  ;;  %v7542_v37 = vpack.i.bf16 %v1188_v59, %v1187_v46 }
  0xc5   :  { %7393 = vrot.lane.b32.xlu0 %v9515_v44, %s9034_s15  ;;  %7368 = vrot.lane.b32.xlu1 %v7367_v61, %s9030_s26  ;;  %v7437_v44 = vpack.i.bf16 %v491_v10, %v9600_v34  ;;  %v1176_v34 = vld [vmem:[%s13920_s0 + $0x58] sm:$0xff]  ;;  %v1185_v10 = vld [vmem:[%s13920_s0 + $0xa0] sm:$0xff] }
  0xc6   :  { %v7512_v32 = vpack.i.bf16 %v1176_v34, %v1175_v54  ;;  %v7537_v12 = vpack.i.bf16 %v1186_v11, %v1185_v10 }
  0xc9   :  { %7398 = vrot.lane.b32.xlu0 %v9563_v29, %s9034_s15  ;;  %7373 = vrot.lane.b32.xlu1 %v7372_v63, %s9030_s26  ;;  %v7447_v29 = vpack.i.bf16 %v505_v51, %v504_v52  ;;  %v7552_v52 = vpack.i.bf16 %v1192_v8, %v1191_v19  ;;  %v7562_v51 = vpack.i.bf16 %v1186_v11, %v1179_v28 }
  0xcd   :  { %7408 = vrot.lane.b32.xlu0 %v7357_v6, %s9034_s15  ;;  %7383 = vrot.lane.b32.xlu1 %v7382_v13, %s9030_s26  ;;  %v1178_v6 = vld [vmem:[%s13920_s0 + $0x68] sm:$0xff] }
  0xce   :  { %v7517_v49 = vpack.i.bf16 %v1178_v6, %v1177_v33  ;;  %v7567_v60 = vpack.i.bf16 %v1178_v6, %v1171_v5 }
  0xd1   :  { %7413 = vrot.lane.b32.xlu0 %v7362_v31, %s9034_s15  ;;  %7388 = vrot.lane.b32.xlu1 %v7337_v4, %s9034_s15  ;;  %v1190_v4 = vld [vmem:[%s13920_s0 + $0xc8] sm:$0xff]  ;;  %v1183_v31 = vld [vmem:[%s13920_s0 + $0x90] sm:$0xff] }
  0xd2   :  { %v7547_v1 = vpack.i.bf16 %v1190_v4, %v1189_v41  ;;  %v7532_v55 = vpack.i.bf16 %v1184_v42, %v1183_v31 }
  0xd5   :  { %7428 = vrot.lane.b32.xlu0 %v7377_v47, %s9034_s15  ;;  %7403 = vrot.lane.b32.xlu1 %v7352_v20, %s9034_s15  ;;  %v7572_v47 = vpack.i.bf16 %v1192_v8, %v1185_v10 }
  0xd9   :  { %7418 = vrot.lane.b32.xlu1 %v7367_v61, %s9034_s15  ;;  %7438 = vrot.lane.b32.xlu0 %v7437_v44, %s9030_s26 }
  0xdd   :  { %7423 = vrot.lane.b32.xlu1 %v7372_v63, %s9034_s15  ;;  %7453 = vrot.lane.b32.xlu0 %v7452_v25, %s9030_s26 }
  0xe1   :  { %7433 = vrot.lane.b32.xlu1 %v7382_v13, %s9034_s15  ;;  %7458 = vrot.lane.b32.xlu0 %v7437_v44, %s9034_s15 }
  0xe5   :  { %7443 = vrot.lane.b32.xlu1 %v7442_v57, %s9030_s26  ;;  %7473 = vrot.lane.b32.xlu0 %v7452_v25, %s9034_s15 }
  0xe9   :  { %7448 = vrot.lane.b32.xlu1 %v7447_v29, %s9030_s26  ;;  %7478 = vrot.lane.b32.xlu0 %v7477_v0, %s9035_s20 }
  0xed   :  { %7463 = vrot.lane.b32.xlu1 %v7442_v57, %s9034_s15  ;;  %7488 = vrot.lane.b32.xlu0 %v9690_v3, %s9036_s27 }
  0xf1   :  { %7468 = vrot.lane.b32.xlu1 %v7447_v29, %s9034_s15  ;;  %7498 = vrot.lane.b32.xlu0 %v7497_v36, %s9036_s27 }
  0xf5   :  { %7483 = vrot.lane.b32.xlu1 %v7482_v21, %s9035_s20  ;;  %7508 = vrot.lane.b32.xlu0 %v7507_v43, %s9036_s27 }
  0xf9   :  { %7493 = vrot.lane.b32.xlu1 %v7492_v7, %s9036_s27  ;;  %7518 = vrot.lane.b32.xlu0 %v7517_v49, %s9036_s27 }
  0xfd   :  { %7503 = vrot.lane.b32.xlu1 %v7502_v56, %s9036_s27  ;;  %7528 = vrot.lane.b32.xlu0 %v7527_v16, %s9036_s27 }
 0x101   :  { %7513 = vrot.lane.b32.xlu1 %v7512_v32, %s9036_s27  ;;  %7538 = vrot.lane.b32.xlu0 %v7537_v12, %s9036_s27 }
 0x105   :  { %7523 = vrot.lane.b32.xlu1 %v7522_v50, %s9036_s27  ;;  %7548 = vrot.lane.b32.xlu0 %v7547_v1, %s9036_s27 }
 0x109   :  { %7533 = vrot.lane.b32.xlu1 %v7532_v55, %s9036_s27  ;;  %7558 = vrot.lane.b32.xlu0 %v7557_v30, %s9037_s30 }
 0x10d   :  { %7543 = vrot.lane.b32.xlu1 %v7542_v37, %s9036_s27  ;;  %7568 = vrot.lane.b32.xlu0 %v7567_v60, %s9029_s25 }
 0x111   :  { %7553 = vrot.lane.b32.xlu1 %v7552_v52, %s9036_s27  ;;  %7578 = vrot.lane.b32.xlu0 %v9690_v3, %s9030_s26 }
 0x115   :  { %7563 = vrot.lane.b32.xlu1 %v7562_v51, %s9037_s30  ;;  %7588 = vrot.lane.b32.xlu0 %v7497_v36, %s9030_s26 }
 0x119   :  { %7573 = vrot.lane.b32.xlu1 %v7572_v47, %s9029_s25  ;;  %7598 = vrot.lane.b32.xlu0 %v7507_v43, %s9030_s26 }
 0x11d   :  { %7583 = vrot.lane.b32.xlu1 %v7492_v7, %s9030_s26  ;;  %7608 = vrot.lane.b32.xlu0 %v7517_v49, %s9030_s26 }
 0x11f   :  { %v9799_v20 = vpop.permute.xlu0 %7328 }
 0x121   :  { %7593 = vrot.lane.b32.xlu1 %v7502_v56, %s9030_s26  ;;  %7618 = vrot.lane.b32.xlu0 %v7527_v16, %s9030_s26 }
 0x123   :  { %v9803_v48 = vpop.permute.xlu0 %7343 }
 0x124   :  { %v7346_v44 = vunpack.i.h.bf16 %v9803_v48  ;;  %v7345_v25 = vunpack.i.l.bf16 %v9803_v48 }
 0x125   :  { %7603 = vrot.lane.b32.xlu1 %v7512_v32, %s9030_s26  ;;  %7628 = vrot.lane.b32.xlu0 %v7537_v12, %s9030_s26 }
 0x126   :  { %v618_v9 = vsel %vm13988_vm11, %v7345_v25, %v7346_v44 }
 0x127   :  { %v9807_v61 = vpop.permute.xlu0 %7348  ;;  %v675_v45 = vsel %vm13937_vm3, 0.0, %v618_v9 }
 0x128   :  { %v7351_v40 = vunpack.i.h.bf16 %v9807_v61  ;;  %v7350_v14 = vunpack.i.l.bf16 %v9807_v61 }
 0x129   :  { %7613 = vrot.lane.b32.xlu1 %v7522_v50, %s9030_s26  ;;  %7638 = vrot.lane.b32.xlu0 %v7547_v1, %s9030_s26 }
 0x12a   :  { %v621_v7 = vsel %vm13988_vm11, %v7350_v14, %v7351_v40 }
 0x12b   :  { %v9811_v63 = vpop.permute.xlu1 %7333  ;;  %v7359_v13 = vpop.permute.xlu0 %7358  ;;  %v679_v54 = vsel %vm13948_vm14, 0.0, %v621_v7  ;;  %v7330_v7 = vunpack.i.l.bf16 %v9799_v20 }
 0x12c   :  { %v7361_v57 = vunpack.i.h.bf16 %v7359_v13  ;;  %v7360_v53 = vunpack.i.l.bf16 %v7359_v13 }
 0x12d   :  { %7623 = vrot.lane.b32.xlu1 %v7532_v55, %s9030_s26 }
 0x12e   :  { %v625_v2 = vsel %vm13988_vm11, %v7360_v53, %v7361_v57 }
 0x12f   :  { %v683_v29 = vsel %vm13938_vm0, 0.0, %v625_v2  ;;  %v9819_v0 = vpop.permute.xlu0 %7363  ;;  %v9821_v3 = vpop.permute.xlu1 %7338 }
 0x130   :  { %v6959_v15 = vpack.c.bf16 %v683_v29, %v683_v29  ;;  %v7341_v36 = vunpack.i.h.bf16 %v9821_v3  ;;  %v7366_v39 = vunpack.i.h.bf16 %v9819_v0  ;;  %v7331_v29 = vunpack.i.h.bf16 %v9799_v20 }
 0x131   :  { %7633 = vrot.lane.b32.xlu1 %v7542_v37, %s9030_s26  ;;  %v7365_v37 = vunpack.i.l.bf16 %v9819_v0 }
 0x132   :  { %794 = vst.msk [vmem:[#allocation2 + $0x34] sm:$0xf] %vm14014_vm4, %v6959_v15  ;;  %v617_v43 = vsel %vm13988_vm11, %v7341_v36, %v7345_v25  ;;  %v7340_v15 = vunpack.i.l.bf16 %v9821_v3 }
 0x133   :  { %v674_v62 = vsel %vm13936_vm2, 0.0, %v617_v43  ;;  %v7379_v33 = vpop.permute.xlu0 %7378  ;;  %v7354_v6 = vpop.permute.xlu1 %7353  ;;  %v628_v9 = vsel %vm13988_vm11, %v7365_v37, %v7366_v39 }
 0x134   :  { %v6954_v21 = vpack.c.bf16 %v675_v45, %v674_v62  ;;  %v7356_v49 = vunpack.i.h.bf16 %v7354_v6  ;;  %v7355_v5 = vunpack.i.l.bf16 %v7354_v6  ;;  %v7381_v1 = vunpack.i.h.bf16 %v7379_v33 }
 0x135   :  { %7643 = vrot.lane.b32.xlu1 %v7552_v52, %s9030_s26  ;;  %v7380_v55 = vunpack.i.l.bf16 %v7379_v33 }
 0x136   :  { %788 = vst [vmem:[#allocation2 + $0x10] sm:$0xff] %v6954_v21  ;;  %v624_v58 = vsel %vm13988_vm11, %v7356_v49, %v7360_v53  ;;  %v622_v35 = vsel %vm13988_vm11, %v7351_v40, %v7355_v5  ;;  %v623_v38 = vsel %vm13988_vm11, %v7355_v5, %v7356_v49 }
 0x137   :  { %v9845_v56 = vpop.permute.xlu0 %7393  ;;  %v9847_v16 = vpop.permute.xlu1 %7368  ;;  %v682_v34 = vsel %vm13937_vm3, 0.0, %v624_v58  ;;  %v680_v10 = vsel %vm13939_vm15, 0.0, %v622_v35  ;;  %v681_v11 = vsel %vm13936_vm2, 0.0, %v623_v38  ;;  %v635_v25 = vsel %vm13988_vm11, %v7380_v55, %v7381_v1 }
 0x138   :  { %v6957_v32 = vpack.c.bf16 %v680_v10, %v679_v54  ;;  %v6958_v12 = vpack.c.bf16 %v682_v34, %v681_v11  ;;  %v7371_v28 = vunpack.i.h.bf16 %v9847_v16  ;;  %v7370_v41 = vunpack.i.l.bf16 %v9847_v16 }
 0x139   :  { %v695_v49 = vsel %vm13936_vm2, 0.0, %v635_v25  ;;  %v7395_v35 = vunpack.i.l.bf16 %v9845_v56  ;;  %v7336_v10 = vunpack.i.h.bf16 %v9811_v63  ;;  %v7335_v11 = vunpack.i.l.bf16 %v9811_v63 }
 0x13a   :  { %792 = vst [vmem:[#allocation2 + $0x24] sm:$0xff] %v6957_v32  ;;  %793 = vst [vmem:[#allocation2 + $0x2c] sm:$0xff] %v6958_v12  ;;  %v629_v31 = vsel %vm13988_vm11, %v7366_v39, %v7370_v41  ;;  %v630_v42 = vsel %vm13988_vm11, %v7370_v41, %v7371_v28  ;;  %v9916_v32 = vsel %vm13939_vm15, 0.0, %v628_v9  ;;  %v616_v39 = vsel %vm13988_vm11, %v7340_v15, %v7341_v36 }
 0x13b   :  { %v9860_v4 = vpop.permute.xlu0 %7398  ;;  %v9862_v50 = vpop.permute.xlu1 %7373  ;;  %v688_v30 = vsel %vm13936_vm2, 0.0, %v629_v31  ;;  %v689_v46 = vsel %vm13937_vm3, 0.0, %v630_v42  ;;  %v7396_v41 = vunpack.i.h.bf16 %v9845_v56 }
 0x13c   :  { %v7376_v59 = vunpack.i.h.bf16 %v9862_v50  ;;  %v6962_v60 = vpack.c.bf16 %v689_v46, %v688_v30  ;;  %v7375_v19 = vunpack.i.l.bf16 %v9862_v50 }
 0x13e   :  { %v634_v8 = vsel %vm13988_vm11, %v7376_v59, %v7380_v55  ;;  %797 = vst [vmem:[#allocation2 + $0x48] sm:$0xff] %v6962_v60  ;;  %v633_v13 = vsel %vm13988_vm11, %v7375_v19, %v7376_v59  ;;  %v7401_v60 = vunpack.i.h.bf16 %v9860_v4 }
 0x13f   :  { %v9877_v52 = vpop.permute.xlu0 %7408  ;;  %v7384_v51 = vpop.permute.xlu1 %7383  ;;  %v694_v47 = vsel %vm13939_vm15, 0.0, %v634_v8  ;;  %v693_v57 = vsel %vm13948_vm14, 0.0, %v633_v13  ;;  %v7400_v13 = vunpack.i.l.bf16 %v9860_v4 }
 0x140   :  { %v7386_v53 = vunpack.i.h.bf16 %v7384_v51  ;;  %v7385_v2 = vunpack.i.l.bf16 %v7384_v51  ;;  %v6965_v40 = vpack.c.bf16 %v694_v47, %v693_v57  ;;  %v7411_v43 = vunpack.i.h.bf16 %v9877_v52 }
 0x141   :  { %v7410_v45 = vunpack.i.l.bf16 %v9877_v52 }
 0x142   :  { %v636_v62 = vsel %vm13988_vm11, %v7381_v1, %v7385_v2  ;;  %v637_v33 = vsel %vm13988_vm11, %v7385_v2, %v7386_v53  ;;  %800 = vst [vmem:[#allocation2 + $0x5c] sm:$0xff] %v6965_v40 }
 0x143   :  { %v9899_v6 = vpop.permute.xlu0 %7413  ;;  %v9901_v21 = vpop.permute.xlu1 %7388  ;;  %v696_v5 = vsel %vm13937_vm3, 0.0, %v636_v62  ;;  %v697_v58 = vsel %vm13938_vm0, 0.0, %v637_v33  ;;  %v975_v1 = vsel %vm13942_vm7, %v7410_v45, %v7411_v43 }
 0x144   :  { %v6966_v38 = vpack.c.bf16 %v696_v5, %v695_v49  ;;  %v6967_v54 = vpack.c.bf16 %v697_v58, %v697_v58  ;;  %v7391_v34 = vunpack.i.h.bf16 %v9901_v21  ;;  %v7390_v12 = vunpack.i.l.bf16 %v9901_v21 }
 0x145   :  { %v7416_v30 = vunpack.i.h.bf16 %v9899_v6  ;;  %v7415_v46 = vunpack.i.l.bf16 %v9899_v6  ;;  %v1045_v25 = vsel %vm13944_vm8, 0.0, %v975_v1 }
 0x146   :  { %801 = vst [vmem:[#allocation2 + $0x64] sm:$0xff] %v6966_v38  ;;  %802 = vst.msk [vmem:[#allocation2 + $0x6c] sm:$0xf] %vm14014_vm4, %v6967_v54  ;;  %v967_v31 = vsel %vm13942_vm7, %v7391_v34, %v7395_v35  ;;  %v966_v59 = vsel %vm13942_vm7, %v7390_v12, %v7391_v34 }
 0x147   :  { %v9930_v42 = vpop.permute.xlu0 %7428  ;;  %v7404_v55 = vpop.permute.xlu1 %7403  ;;  %v1036_v36 = vsel %vm13929_vm10, 0.0, %v967_v31  ;;  %v1035_v8 = vsel %vm13928_vm9, 0.0, %v966_v59  ;;  %v978_v5 = vsel %vm13942_vm7, %v7415_v46, %v7416_v30 }
 0x148   :  { %v7406_v51 = vunpack.i.h.bf16 %v7404_v55  ;;  %v7405_v47 = vunpack.i.l.bf16 %v7404_v55  ;;  %v6985_v57 = vpack.c.bf16 %v1036_v36, %v1035_v8  ;;  %v7431_v53 = vunpack.i.h.bf16 %v9930_v42 }
 0x149   :  { %v7430_v2 = vunpack.i.l.bf16 %v9930_v42  ;;  %v673_v55 = vsel %vm13939_vm15, 0.0, %v616_v39  ;;  %v9968_v36 = vsel %vm13942_vm7, %v7395_v35, %v7396_v41 }
 0x14a   :  { %v974_v9 = vsel %vm13942_vm7, %v7406_v51, %v7410_v45  ;;  %v972_v40 = vsel %vm13942_vm7, %v7401_v60, %v7405_v47  ;;  %v973_v62 = vsel %vm13942_vm7, %v7405_v47, %v7406_v51  ;;  %1150 = vst [vmem:[#allocation2 + $0xe8] sm:$0xff] %v6985_v57  ;;  %v9973_v51 = vsel %vm13942_vm7, %v7400_v13, %v7401_v60 }
 0x14b   :  { %v9950_v33 = vpop.permute.xlu1 %7418  ;;  %v7439_v49 = vpop.permute.xlu0 %7438  ;;  %v1044_v58 = vsel %vm13943_vm12, 0.0, %v974_v9  ;;  %v1042_v38 = vsel %vm13928_vm9, 0.0, %v972_v40  ;;  %v1043_v45 = vsel %vm13929_vm10, 0.0, %v973_v62  ;;  %v1049_v47 = vsel %vm13928_vm9, 0.0, %v978_v5 }
 0x14c   :  { %v6990_v54 = vpack.c.bf16 %v1045_v25, %v1044_v58  ;;  %v6989_v34 = vpack.c.bf16 %v1043_v45, %v1042_v38  ;;  %v7421_v1 = vunpack.i.h.bf16 %v9950_v33  ;;  %v7420_v31 = vunpack.i.l.bf16 %v9950_v33 }
 0x14d   :  { %v7441_v59 = vunpack.i.h.bf16 %v7439_v49  ;;  %v7440_v8 = vunpack.i.l.bf16 %v7439_v49  ;;  %v985_v25 = vsel %vm13942_vm7, %v7430_v2, %v7431_v53 }
 0x14e   :  { %1155 = vst [vmem:[#allocation2 + $0x10c] sm:$0xff] %v6990_v54  ;;  %1154 = vst [vmem:[#allocation2 + $0x104] sm:$0xff] %v6989_v34  ;;  %v979_v39 = vsel %vm13942_vm7, %v7416_v30, %v7420_v31  ;;  %v980_v9 = vsel %vm13942_vm7, %v7420_v31, %v7421_v1  ;;  %v1057_v54 = vsel %vm13929_vm10, 0.0, %v985_v25 }
 0x14f   :  { %v9981_v35 = vpop.permute.xlu1 %7423  ;;  %v7454_v57 = vpop.permute.xlu0 %7453  ;;  %v1050_v60 = vsel %vm13929_vm10, 0.0, %v979_v39  ;;  %v615_v40 = vsel %vm13988_vm11, %v7441_v59, %v7340_v15  ;;  %v614_v62 = vsel %vm13988_vm11, %v7440_v8, %v7441_v59  ;;  %v666_v5 = vsel %vm13988_vm11, %v7330_v7, %v7440_v8 }
 0x150   :  { %v6993_v49 = vpack.c.bf16 %v1050_v60, %v1049_v47  ;;  %v672_v30 = vsel %vm13948_vm14, 0.0, %v615_v40  ;;  %v671_v58 = vsel %vm13945_vm5, 0.0, %v614_v62  ;;  %v670_v15 = vsel %vm13946_vm6, 0.0, %v666_v5 }
 0x151   :  { %v6953_v3 = vpack.c.bf16 %v673_v55, %v672_v30  ;;  %v7426_v38 = vunpack.i.h.bf16 %v9981_v35  ;;  %v7425_v45 = vunpack.i.l.bf16 %v9981_v35  ;;  %v6952_v34 = vpack.c.bf16 %v671_v58, %v670_v15 }
 0x152   :  { %1158 = vst [vmem:[#allocation2 + $0x120] sm:$0xff] %v6993_v49  ;;  %v7456_v31 = vunpack.i.h.bf16 %v7454_v57  ;;  %v7455_v7 = vunpack.i.l.bf16 %v7454_v57  ;;  %v10011_v55 = vsel %vm13943_vm12, 0.0, %v980_v9  ;;  %vm13940_vm10 = vcmp.eq.s32.totalorder %v9295_v17, 27 }
 0x153   :  { %v10007_v59 = vpop.permute.xlu1 %7433  ;;  %v7459_v8 = vpop.permute.xlu0 %7458  ;;  %787 = vst [vmem:[#allocation2 + $0x8] sm:$0xff] %v6953_v3  ;;  %v984_v47 = vsel %vm13942_vm7, %v7426_v38, %v7430_v2  ;;  %786 = vst [vmem:[#allocation2] sm:$0xff] %v6952_v34  ;;  %v983_v57 = vsel %vm13942_vm7, %v7425_v45, %v7426_v38 }
 0x154   :  { %v7436_v39 = vunpack.i.h.bf16 %v10007_v59  ;;  %v7435_v35 = vunpack.i.l.bf16 %v10007_v59  ;;  %v1056_v25 = vsel %vm13928_vm9, 0.0, %v984_v47  ;;  %v632_v60 = vsel %vm13988_vm11, %v7456_v31, %v7375_v19 }
 0x155   :  { %v669_v9 = vsel %vm13988_vm11, %v7336_v10, %v7456_v31  ;;  %v6997_v40 = vpack.c.bf16 %v1057_v54, %v1056_v25  ;;  %v692_v62 = vsel %vm13945_vm5, 0.0, %v632_v60  ;;  %v631_v49 = vsel %vm13988_vm11, %v7371_v28, %v7455_v7 }
 0x156   :  { %v691_v2 = vsel %vm13946_vm6, 0.0, %v669_v9  ;;  %vm13941_vm9 = vcmask 121856   ;;  %v690_v50 = vsel %vm13938_vm0, 0.0, %v631_v49  ;;  %v986_v19 = vsel %vm13942_vm7, %v7431_v53, %v7435_v35 }
 0x157   :  { %v6964_v30 = vpack.c.bf16 %v692_v62, %v691_v2  ;;  %v987_v10 = vsel %vm13942_vm7, %v7435_v35, %v7436_v39  ;;  %v7444_v5 = vpop.permute.xlu1 %7443  ;;  %v10040_v58 = vpop.permute.xlu0 %7473  ;;  %1162 = vst [vmem:[#allocation2 + $0x13c] sm:$0xff] %v6997_v40  ;;  %v6963_v16 = vpack.c.bf16 %v690_v50, %v690_v50  ;;  %v1058_v28 = vsel %vm13943_vm12, 0.0, %v986_v19 }
 0x158   :  { %v1059_v3 = vsel %vm13944_vm8, 0.0, %v987_v10  ;;  %v7461_v42 = vunpack.i.h.bf16 %v7459_v8  ;;  %v7460_v15 = vunpack.i.l.bf16 %v7459_v8  ;;  %v7446_v38 = vunpack.i.h.bf16 %v7444_v5 }
 0x159   :  { %799 = vst [vmem:[#allocation2 + $0x54] sm:$0xff] %v6964_v30  ;;  %v6998_v53 = vpack.c.bf16 %v1059_v3, %v1058_v28  ;;  %v7445_v54 = vunpack.i.l.bf16 %v7444_v5  ;;  %v1055_v34 = vsel %vm13931_vm13, 0.0, %v983_v57  ;;  %798 = vst.msk [vmem:[#allocation2 + $0x50] sm:$0xf] %vm14014_vm4, %v6963_v16  ;;  %v7476_v7 = vunpack.i.h.bf16 %v10040_v58 }
 0x15a   :  { %v965_v31 = vsel %vm13942_vm7, %v7461_v42, %v7390_v12  ;;  %v7475_v47 = vunpack.i.l.bf16 %v10040_v58  ;;  %v964_v8 = vsel %vm13942_vm7, %v7460_v15, %v7461_v42  ;;  %v620_v25 = vsel %vm13988_vm11, %v7446_v38, %v7350_v14 }
 0x15b   :  { %1163 = vst [vmem:[#allocation2 + $0x144] sm:$0xff] %v6998_v53  ;;  %v1034_v35 = vsel %vm13931_vm13, 0.0, %v965_v31  ;;  %v667_v21 = vsel %vm13988_vm11, %v7331_v29, %v7446_v38  ;;  %v7449_v57 = vpop.permute.xlu1 %7448  ;;  %v7479_v12 = vpop.permute.xlu0 %7478  ;;  %v1033_v60 = vsel %vm13930_vm1, 0.0, %v964_v8  ;;  %v678_v40 = vsel %vm13945_vm5, 0.0, %v620_v25 }
 0x15c   :  { %v677_v9 = vsel %vm13946_vm6, 0.0, %v667_v21  ;;  %v619_v61 = vsel %vm13988_vm11, %v7346_v44, %v7445_v54  ;;  %v6984_v14 = vpack.c.bf16 %v1034_v35, %v1033_v60  ;;  %v982_v29 = vsel %vm13942_vm7, %v7476_v7, %v7425_v45 }
 0x15d   :  { %v6956_v2 = vpack.c.bf16 %v678_v40, %v677_v9  ;;  %v676_v20 = vsel %vm13938_vm0, 0.0, %v619_v61  ;;  %v1054_v49 = vsel %vm13930_vm1, 0.0, %v982_v29  ;;  %v981_v30 = vsel %vm13942_vm7, %v7421_v1, %v7475_v47 }
 0x15e   :  { %v6955_v62 = vpack.c.bf16 %v676_v20, %v676_v20  ;;  %v7451_v48 = vunpack.i.h.bf16 %v7449_v57  ;;  %1149 = vst [vmem:[#allocation2 + $0xe0] sm:$0xff] %v6984_v14  ;;  %v6996_v44 = vpack.c.bf16 %v1055_v34, %v1054_v49  ;;  %v1052_v50 = vsel %vm13944_vm8, 0.0, %v981_v30 }
 0x15f   :  { %791 = vst [vmem:[#allocation2 + $0x1c] sm:$0xff] %v6956_v2  ;;  %v7450_v19 = vunpack.i.l.bf16 %v7449_v57  ;;  %v7481_v10 = vunpack.i.h.bf16 %v7479_v12  ;;  %v7464_v45 = vpop.permute.xlu1 %7463  ;;  %v10085_v5 = vpop.permute.xlu0 %7488  ;;  %v6994_v16 = vpack.c.bf16 %v1052_v50, %v10011_v55  ;;  %v7480_v1 = vunpack.i.l.bf16 %v7479_v12 }
 0x160   :  { %790 = vst.msk [vmem:[#allocation2 + $0x18] sm:$0xf] %vm14014_vm4, %v6955_v62  ;;  %v627_v33 = vsel %vm13988_vm11, %v7451_v48, %v7365_v37  ;;  %v7466_v28 = vunpack.i.h.bf16 %v7464_v45  ;;  %1161 = vst [vmem:[#allocation2 + $0x134] sm:$0xff] %v6996_v44 }
 0x161   :  { %v686_v3 = vsel %vm13948_vm14, 0.0, %v627_v33  ;;  %v626_v42 = vsel %vm13988_vm11, %v7450_v19, %v7451_v48  ;;  %v668_v53 = vsel %vm13988_vm11, %v7335_v11, %v7450_v19  ;;  %v1030_v55 = vsel %vm13941_vm9, %v7411_v43, %v7481_v10  ;;  %1159 = vst [vmem:[#allocation2 + $0x128] sm:$0xff] %v6994_v16 }
 0x162   :  { %v6961_v0 = vpack.c.bf16 %v9916_v32, %v686_v3  ;;  %v684_v37 = vsel %vm13946_vm6, 0.0, %v668_v53  ;;  %v685_v15 = vsel %vm13945_vm5, 0.0, %v626_v42  ;;  %v1046_v38 = vsel %vm13940_vm10, 0.0, %v1030_v55 }
 0x163   :  { %v6960_v54 = vpack.c.bf16 %v685_v15, %v684_v37  ;;  %v6991_v63 = vpack.c.bf16 %v1046_v38, %v1046_v38  ;;  %v970_v52 = vsel %vm13942_vm7, %v7466_v28, %v7400_v13  ;;  %v7465_v11 = vunpack.i.l.bf16 %v7464_v45  ;;  %v7469_v43 = vpop.permute.xlu1 %7468  ;;  %v10111_v34 = vpop.permute.xlu0 %7498 }
 0x164   :  { %v1041_v32 = vsel %vm13931_vm13, 0.0, %v9973_v51  ;;  %796 = vst [vmem:[#allocation2 + $0x40] sm:$0xff] %v6961_v0  ;;  %v1040_v31 = vsel %vm13930_vm1, 0.0, %v970_v52  ;;  %v7471_v7 = vunpack.i.h.bf16 %v7469_v43  ;;  %v7470_v8 = vunpack.i.l.bf16 %v7469_v43 }
 0x165   :  { %795 = vst [vmem:[#allocation2 + $0x38] sm:$0xff] %v6960_v54  ;;  %1156 = vst.msk [vmem:[#allocation2 + $0x114] sm:$0xf] %vm14014_vm4, %v6991_v63  ;;  %v6988_v35 = vpack.c.bf16 %v1041_v32, %v1040_v31  ;;  %v969_v4 = vsel %vm13942_vm7, %v7396_v41, %v7465_v11  ;;  %v1029_v13 = vsel %vm13941_vm9, %v7465_v11, %v7480_v1  ;;  %v1037_v51 = vsel %vm13943_vm12, 0.0, %v9968_v36 }
 0x166   :  { %v1038_v25 = vsel %vm13944_vm8, 0.0, %v969_v4  ;;  %v1039_v21 = vsel %vm13940_vm10, 0.0, %v1029_v13  ;;  %v977_v57 = vsel %vm13942_vm7, %v7471_v7, %v7415_v46  ;;  %v976_v60 = vsel %vm13942_vm7, %v7470_v8, %v7471_v7 }
 0x167   :  { %1153 = vst [vmem:[#allocation2 + $0xfc] sm:$0xff] %v6988_v35  ;;  %v6986_v56 = vpack.c.bf16 %v1038_v25, %v1037_v51  ;;  %v6987_v41 = vpack.c.bf16 %v1039_v21, %v1039_v21  ;;  %v1048_v12 = vsel %vm13931_vm13, 0.0, %v977_v57  ;;  %v7484_v9 = vpop.permute.xlu1 %7483  ;;  %v10136_v36 = vpop.permute.xlu0 %7508  ;;  %v1047_v40 = vsel %vm13930_vm1, 0.0, %v976_v60 }
 0x168   :  { %v7486_v61 = vunpack.i.h.bf16 %v7484_v9  ;;  %v6992_v6 = vpack.c.bf16 %v1048_v12, %v1047_v40  ;;  %v7485_v46 = vunpack.i.l.bf16 %v7484_v9  ;;  %v7490_v33 = vunpack.i.l.bf16 %v10085_v5 }
 0x169   :  { %1151 = vst [vmem:[#allocation2 + $0xf0] sm:$0xff] %v6986_v56  ;;  %1152 = vst.msk [vmem:[#allocation2 + $0xf8] sm:$0xf] %vm14014_vm4, %v6987_v41  ;;  %vm13989_vm1 = vcmask 826368   ;;  %v7491_v1 = vunpack.i.h.bf16 %v10085_v5  ;;  %v7501_v28 = vunpack.i.h.bf16 %v10111_v34  ;;  %v7500_v53 = vunpack.i.l.bf16 %v10111_v34 }
 0x16a   :  { %v1032_v14 = vsel %vm13941_vm9, %v7436_v39, %v7486_v61  ;;  %1157 = vst [vmem:[#allocation2 + $0x118] sm:$0xff] %v6992_v6  ;;  %v1031_v2 = vsel %vm13941_vm9, %v7475_v47, %v7485_v46  ;;  %v7511_v55 = vunpack.i.h.bf16 %v10136_v36  ;;  %v7510_v0 = vunpack.i.l.bf16 %v10136_v36 }
 0x16b   :  { %v1060_v20 = vsel %vm13940_vm10, 0.0, %v1032_v14  ;;  %v7494_v29 = vpop.permute.xlu1 %7493  ;;  %v10149_v62 = vpop.permute.xlu0 %7518  ;;  %v1053_v49 = vsel %vm13940_vm10, 0.0, %v1031_v2  ;;  %v1278_v54 = vsel %vm13989_vm1, %v7490_v33, %v7491_v1  ;;  %v10188_v52 = vsel %vm13989_vm1, %v7500_v53, %v7501_v28 }
 0x16c   :  { %v6999_v30 = vpack.c.bf16 %v1060_v20, %v1060_v20  ;;  %v6995_v48 = vpack.c.bf16 %v1053_v49, %v1053_v49  ;;  %v7495_v3 = vunpack.i.l.bf16 %v7494_v29  ;;  %v7496_v37 = vunpack.i.h.bf16 %v7494_v29 }
 0x16d   :  { %v10191_v11 = vsel %vm13989_vm1, %v7510_v0, %v7511_v55  ;;  %v7521_v43 = vunpack.i.h.bf16 %v10149_v62  ;;  %vm13932_vm13 = vcmask 957440   ;;  %v7520_v13 = vunpack.i.l.bf16 %v10149_v62 }
 0x16e   :  { %1164 = vst.msk [vmem:[#allocation2 + $0x14c] sm:$0xf] %vm14014_vm4, %v6999_v30  ;;  %1160 = vst.msk [vmem:[#allocation2 + $0x130] sm:$0xf] %vm14014_vm4, %v6995_v48  ;;  %v1279_v32 = vsel %vm13989_vm1, %v7491_v1, %v7495_v3  ;;  %v10200_v4 = vsel %vm13989_vm1, %v7495_v3, %v7496_v37  ;;  %v10220_v60 = vsel %vm13989_vm1, %v7496_v37, %v7500_v53 }
 0x16f   :  { %v7504_v59 = vpop.permute.xlu1 %7503  ;;  %v10155_v39 = vpop.permute.xlu0 %7528  ;;  %v1289_v9 = vsel %vm13989_vm1, %v7520_v13, %v7521_v43 }
 0x170   :  { %v7505_v34 = vunpack.i.l.bf16 %v7504_v59  ;;  %v7506_v31 = vunpack.i.h.bf16 %v7504_v59  ;;  %v7531_v57 = vunpack.i.h.bf16 %v10155_v39  ;;  %v7530_v56 = vunpack.i.l.bf16 %v10155_v39 }
 0x172   :  { %v1283_v36 = vsel %vm13989_vm1, %v7501_v28, %v7505_v34  ;;  %v1284_v61 = vsel %vm13989_vm1, %v7506_v31, %v7510_v0  ;;  %v10228_v6 = vsel %vm13989_vm1, %v7530_v56, %v7531_v57 }
 0x173   :  { %v10157_v58 = vpop.permute.xlu1 %7513  ;;  %v10159_v47 = vpop.permute.xlu0 %7538 }
 0x174   :  { %v7516_v41 = vunpack.i.h.bf16 %v10157_v58  ;;  %v7515_v12 = vunpack.i.l.bf16 %v10157_v58  ;;  %v7541_v2 = vunpack.i.h.bf16 %v10159_v47  ;;  %v7540_v39 = vunpack.i.l.bf16 %v10159_v47 }
 0x176   :  { %v10241_v48 = vsel %vm13989_vm1, %v7511_v55, %v7515_v12  ;;  %v10244_v59 = vsel %vm13989_vm1, %v7515_v12, %v7516_v41  ;;  %v10253_v3 = vsel %vm13989_vm1, %v7516_v41, %v7520_v13 }
 0x177   :  { %v10161_v44 = vpop.permute.xlu1 %7523  ;;  %v10163_v50 = vpop.permute.xlu0 %7548 }
 0x178   :  { %v7526_v46 = vunpack.i.h.bf16 %v10161_v44  ;;  %v7525_v14 = vunpack.i.l.bf16 %v10161_v44  ;;  %v7551_v58 = vunpack.i.h.bf16 %v10163_v50  ;;  %v7550_v44 = vunpack.i.l.bf16 %v10163_v50 }
 0x17a   :  { %v10261_v0 = vsel %vm13989_vm1, %v7526_v46, %v7530_v56 }
 0x17b   :  { %v10165_v19 = vpop.permute.xlu1 %7533  ;;  %v10167_v10 = vpop.permute.xlu0 %7558 }
 0x17c   :  { %v7535_v20 = vunpack.i.l.bf16 %v10165_v19  ;;  %v7536_v33 = vunpack.i.h.bf16 %v10165_v19  ;;  %v7561_v1 = vunpack.i.h.bf16 %v10167_v10  ;;  %v7560_v28 = vunpack.i.l.bf16 %v10167_v10 }
 0x17d   :  { %v10266_v19 = vsel %vm13989_vm1, %v7550_v44, %v7551_v58 }
 0x17e   :  { %v10269_v10 = vsel %vm13989_vm1, %v7531_v57, %v7535_v20  ;;  %v1339_v13 = vsel %vm13932_vm13, %v1283_v36, %v7560_v28 }
 0x17f   :  { %v10169_v45 = vpop.permute.xlu1 %7543  ;;  %v10171_v16 = vpop.permute.xlu0 %7568 }
 0x180   :  { %v7570_v42 = vunpack.i.l.bf16 %v10171_v16  ;;  %v7546_v53 = vunpack.i.h.bf16 %v10169_v45  ;;  %v7545_v55 = vunpack.i.l.bf16 %v10169_v45  ;;  %v7571_v56 = vunpack.i.h.bf16 %v10171_v16 }
 0x182   :  { %v10281_v57 = vsel %vm13989_vm1, %v7545_v55, %v7546_v53 }
 0x183   :  { %v10180_v15 = vpop.permute.xlu1 %7553  ;;  %v10182_v38 = vpop.permute.xlu0 %7578 }
 0x184   :  { %v7581_v5 = vunpack.i.h.bf16 %v10182_v38  ;;  %v7580_v63 = vunpack.i.l.bf16 %v10182_v38 }
 0x186   :  { %v1411_v7 = vsel %vm13988_vm11, %v7580_v63, %v7581_v5  ;;  %v1463_v35 = vsel %vm13988_vm11, %v7570_v42, %v7580_v63  ;;  %v10256_v42 = vsel %vm13989_vm1, %v7525_v14, %v7526_v46 }
 0x187   :  { %v10205_v8 = vsel %vm13946_vm6, %v1278_v54, %v1463_v35  ;;  %v10207_v51 = vpop.permute.xlu1 %7563  ;;  %v10209_v25 = vpop.permute.xlu0 %7588  ;;  %v10213_v21 = vsel %vm13945_vm5, %v1279_v32, %v1411_v7  ;;  %v10273_v7 = vsel %vm13989_vm1, %v7535_v20, %v7536_v33  ;;  %v1295_v35 = vsel %vm13989_vm1, %v7536_v33, %v7540_v39 }
 0x188   :  { %v7016_v40 = vpack.c.bf16 %v10213_v21, %v10205_v8  ;;  %v7591_v29 = vunpack.i.h.bf16 %v10209_v25  ;;  %v7590_v62 = vunpack.i.l.bf16 %v10209_v25  ;;  %v1340_v25 = vsel %vm13932_vm13, %v1289_v9, %v7561_v1 }
 0x189   :  { %v7565_v39 = vunpack.i.l.bf16 %v10207_v51 }
 0x18a   :  { %1867 = vst [vmem:[#allocation2 + $0x1c0] sm:$0xff] %v7016_v40  ;;  %v1415_v37 = vsel %vm13988_vm11, %v7590_v62, %v7591_v29 }
 0x18b   :  { %v10236_v49 = vpop.permute.xlu1 %7573  ;;  %v10238_v30 = vpop.permute.xlu0 %7598  ;;  %v1472_v16 = vsel %vm13937_vm3, %v1339_v13, %v1415_v37 }
 0x18c   :  { %v7600_v20 = vunpack.i.l.bf16 %v10238_v30  ;;  %v7601_v33 = vunpack.i.h.bf16 %v10238_v30 }
 0x18f   :  { %v7584_v54 = vpop.permute.xlu1 %7583  ;;  %v7609_v63 = vpop.permute.xlu0 %7608 }
 0x190   :  { %v7586_v43 = vunpack.i.h.bf16 %v7584_v54  ;;  %v7585_v34 = vunpack.i.l.bf16 %v7584_v54  ;;  %v7611_v32 = vunpack.i.h.bf16 %v7609_v63  ;;  %v7610_v31 = vunpack.i.l.bf16 %v7609_v63 }
 0x192   :  { %v1414_v41 = vsel %vm13988_vm11, %v7586_v43, %v7590_v62  ;;  %v1422_v12 = vsel %vm13988_vm11, %v7610_v31, %v7611_v32  ;;  %v1412_v40 = vsel %vm13988_vm11, %v7581_v5, %v7585_v34  ;;  %v1413_v38 = vsel %vm13988_vm11, %v7585_v34, %v7586_v43 }
 0x193   :  { %v7594_v46 = vpop.permute.xlu1 %7593  ;;  %v10289_v14 = vpop.permute.xlu0 %7618  ;;  %v10293_v9 = vsel %vm13938_vm0, %v7561_v1, %v1422_v12  ;;  %v1471_v36 = vsel %vm13936_vm2, %v10188_v52, %v1414_v41  ;;  %v10312_v43 = vsel %vm13948_vm14, %v10200_v4, %v1412_v40  ;;  %v10331_v4 = vsel %vm13939_vm15, %v10220_v60, %v1413_v38 }
 0x194   :  { %v7596_v62 = vunpack.i.h.bf16 %v7594_v46  ;;  %v7595_v5 = vunpack.i.l.bf16 %v7594_v46  ;;  %v7023_v1 = vpack.c.bf16 %v10293_v9, %v10293_v9  ;;  %v7018_v54 = vpack.c.bf16 %v1472_v16, %v1471_v36 }
 0x195   :  { %v7620_v13 = vunpack.i.l.bf16 %v10289_v14  ;;  %v10336_v41 = vsel %vm13989_vm1, %v7546_v53, %v7550_v44  ;;  %v7556_v46 = vunpack.i.h.bf16 %v10180_v15  ;;  %v10351_v44 = vpack.i.bf16 %v10213_v21, %v10205_v8 }
 0x196   :  { %v1416_v63 = vsel %vm13988_vm11, %v7591_v29, %v7595_v5  ;;  %v1417_v52 = vsel %vm13988_vm11, %v7596_v62, %v7600_v20  ;;  %v1464_v37 = vsel %vm13988_vm11, %v7571_v56, %v7596_v62  ;;  %1874 = vst.msk [vmem:[#allocation2 + $0x1f4] sm:$0xf] %vm14014_vm4, %v7023_v1  ;;  %1869 = vst [vmem:[#allocation2 + $0x1d0] sm:$0xff] %v7018_v54  ;;  %v7575_v62 = vunpack.i.l.bf16 %v10236_v49 }
 0x197   :  { %v10316_v34 = vsel %vm13946_vm6, %v1284_v61, %v1464_v37  ;;  %v7604_v30 = vpop.permute.xlu1 %7603  ;;  %v10320_v32 = vsel %vm13938_vm0, %v7560_v28, %v1416_v63  ;;  %v10326_v29 = vsel %vm13945_vm5, %v10191_v11, %v1417_v52  ;;  %v7621_v61 = vunpack.i.h.bf16 %v10289_v14  ;;  %v10338_v12 = vpop.permute.xlu0 %7628 }
 0x198   :  { %v7606_v56 = vunpack.i.h.bf16 %v7604_v30  ;;  %v7605_v28 = vunpack.i.l.bf16 %v7604_v30  ;;  %v7647_v11 = vpack.i.bf16 %v10293_v9, %v10320_v32  ;;  %v7019_v40 = vpack.c.bf16 %v10320_v32, %v10320_v32 }
 0x199   :  { %v7020_v60 = vpack.c.bf16 %v10326_v29, %v10316_v34  ;;  %v1341_v53 = vsel %vm13932_vm13, %v1295_v35, %v7565_v39  ;;  %v1418_v21 = vsel %vm13988_vm11, %v7600_v20, %v7601_v33  ;;  %v1425_v54 = vsel %vm13988_vm11, %v7620_v13, %v7621_v61 }
 0x19a   :  { %v1419_v14 = vsel %vm13988_vm11, %v7601_v33, %v7605_v28  ;;  %v1421_v38 = vsel %vm13988_vm11, %v7606_v56, %v7610_v31  ;;  %v1420_v5 = vsel %vm13988_vm11, %v7605_v28, %v7606_v56  ;;  %7648 = vrot.lane.b32.xlu0 %v7647_v11, %s9029_s25  ;;  %1870 = vst.msk [vmem:[#allocation2 + $0x1d8] sm:$0xf] %vm14014_vm4, %v7019_v40  ;;  %v7576_v35 = vunpack.i.h.bf16 %v10236_v49 }
 0x19b   :  { %v7614_v1 = vpop.permute.xlu1 %7613  ;;  %1871 = vst [vmem:[#allocation2 + $0x1dc] sm:$0xff] %v7020_v60  ;;  %v7017_v31 = vpack.c.bf16 %v10331_v4, %v10312_v43  ;;  %v7630_v37 = vunpack.i.l.bf16 %v10338_v12  ;;  %v1479_v30 = vsel %vm13937_vm3, %v1340_v25, %v1421_v38  ;;  %v10371_v56 = vsel %vm13939_vm15, %v10244_v59, %v1419_v14  ;;  %v7639_v11 = vpop.permute.xlu0 %7638 }
 0x19c   :  { %v7616_v63 = vunpack.i.h.bf16 %v7614_v1  ;;  %v7615_v52 = vunpack.i.l.bf16 %v7614_v1  ;;  %v10379_v49 = vsel %vm13936_vm2, %v10253_v3, %v1420_v5  ;;  %v10383_v40 = vpack.i.bf16 %v1472_v16, %v1471_v36 }
 0x19d   :  { %1868 = vst [vmem:[#allocation2 + $0x1c8] sm:$0xff] %v7017_v31  ;;  %v1476_v59 = vsel %vm13948_vm14, %v10241_v48, %v1418_v21  ;;  %v10396_v3 = vsel %vm13939_vm15, %v10269_v10, %v1425_v54  ;;  %v7631_v14 = vunpack.i.h.bf16 %v10338_v12  ;;  %v7022_v38 = vpack.c.bf16 %v1479_v30, %v10379_v49 }
 0x19e   :  { %v1423_v28 = vsel %vm13988_vm11, %v7615_v52, %v7616_v63  ;;  %v1424_v20 = vsel %vm13988_vm11, %v7616_v63, %v7620_v13  ;;  %v1465_v33 = vsel %vm13988_vm11, %v7575_v62, %v7615_v52  ;;  %7658 = vrot.lane.b32.xlu0 %v10351_v44, %s9030_s26  ;;  %v7641_v62 = vunpack.i.h.bf16 %v7639_v11 }
 0x19f   :  { %v7624_v25 = vpop.permute.xlu1 %7623  ;;  %v10391_v13 = vsel %vm13948_vm14, %v10228_v6, %v1424_v20  ;;  %v10401_v60 = vsel %vm13946_vm6, %v10256_v42, %v1465_v33  ;;  %v7021_v6 = vpack.c.bf16 %v10371_v56, %v1476_v59  ;;  %v10411_v10 = vsel %vm13945_vm5, %v10261_v0, %v1423_v28  ;;  %1873 = vst [vmem:[#allocation2 + $0x1ec] sm:$0xff] %v7022_v38 }
 0x1a0   :  { %v7626_v36 = vunpack.i.h.bf16 %v7624_v25  ;;  %v7625_v16 = vunpack.i.l.bf16 %v7624_v25  ;;  %v7025_v48 = vpack.c.bf16 %v10396_v3, %v10391_v13  ;;  %v7024_v0 = vpack.c.bf16 %v10411_v10, %v10401_v60 }
 0x1a1   :  { %1872 = vst [vmem:[#allocation2 + $0x1e4] sm:$0xff] %v7021_v6  ;;  %v7640_v54 = vunpack.i.l.bf16 %v7639_v11  ;;  %v7555_v28 = vunpack.i.l.bf16 %v10180_v15  ;;  %v7677_v20 = vpack.i.bf16 %v1476_v59, %v10326_v29  ;;  %v7566_v25 = vunpack.i.h.bf16 %v10207_v51 }
 0x1a2   :  { %v1426_v42 = vsel %vm13988_vm11, %v7621_v61, %v7625_v16  ;;  %v1427_v5 = vsel %vm13988_vm11, %v7625_v16, %v7626_v36  ;;  %v1428_v1 = vsel %vm13988_vm11, %v7626_v36, %v7630_v37  ;;  %1876 = vst [vmem:[#allocation2 + $0x200] sm:$0xff] %v7025_v48  ;;  %7668 = vrot.lane.b32.xlu0 %v10383_v40, %s9030_s26  ;;  %1875 = vst [vmem:[#allocation2 + $0x1f8] sm:$0xff] %v7024_v0  ;;  %v6663_v0 = vld [vmem:[%s13920_s0 + $0x238] sm:$0xff] }
 0x1a3   :  { %v7634_v12 = vpop.permute.xlu1 %7633  ;;  %v1487_v31 = vsel %vm13938_vm0, %v7565_v39, %v1428_v1  ;;  %v10427_v61 = vsel %vm13936_vm2, %v10273_v7, %v1426_v42  ;;  %v1486_v21 = vsel %vm13937_vm3, %v1341_v53, %v1427_v5  ;;  %v1466_v39 = vsel %vm13988_vm11, %v7576_v35, %v7631_v14 }
 0x1a4   :  { %v7636_v63 = vunpack.i.h.bf16 %v7634_v12  ;;  %v7635_v52 = vunpack.i.l.bf16 %v7634_v12  ;;  %v7027_v37 = vpack.c.bf16 %v1487_v31, %v1487_v31  ;;  %v7026_v33 = vpack.c.bf16 %v1486_v21, %v10427_v61  ;;  %v6572_v12 = vld [vmem:[%s13920_s0 + $0x2a0] sm:$0xff] }
 0x1a5   :  { %v1296_v35 = vsel %vm13989_vm1, %v7541_v2, %v7545_v55  ;;  %v1432_v2 = vsel %vm13988_vm11, %v7640_v54, %v7641_v62  ;;  %v7687_v16 = vpack.i.bf16 %v10293_v9, %v1479_v30  ;;  %v7662_v42 = vpack.i.bf16 %v10331_v4, %v10312_v43 }
 0x1a6   :  { %v1429_v7 = vsel %vm13988_vm11, %v7631_v14, %v7635_v52  ;;  %v1430_v36 = vsel %vm13988_vm11, %v7635_v52, %v7636_v63  ;;  %v1431_v53 = vsel %vm13988_vm11, %v7636_v63, %v7640_v54  ;;  %1878 = vst.msk [vmem:[#allocation2 + $0x210] sm:$0xf] %vm14014_vm4, %v7027_v37  ;;  %7678 = vrot.lane.b32.xlu0 %v7677_v20, %s9030_s26  ;;  %1877 = vst [vmem:[#allocation2 + $0x208] sm:$0xff] %v7026_v33  ;;  %v10554_v54 = vld [vmem:[%s13920_s0 + $0x278] sm:$0xff]  ;;  %v10582_v33 = vld [vmem:[%s13920_s0 + $0x290] sm:$0xff] }
 0x1a7   :  { %v7644_v29 = vpop.permute.xlu1 %7643  ;;  %v1491_v51 = vsel %vm13939_vm15, %v10266_v19, %v1431_v53  ;;  %v1489_v11 = vsel %vm13945_vm5, %v10281_v57, %v1429_v7  ;;  %v1490_v45 = vsel %vm13948_vm14, %v10336_v41, %v1430_v36  ;;  %v10457_v47 = vsel %vm13946_vm6, %v1296_v35, %v1466_v39  ;;  %v10562_v52 = vld [vmem:[%s13920_s0 + $0x258] sm:$0xff]  ;;  %v10592_v36 = vld [vmem:[%s13920_s0 + $0x2b0] sm:$0xff] }
 0x1a8   :  { %v7646_v55 = vunpack.i.h.bf16 %v7644_v29  ;;  %v7645_v59 = vunpack.i.l.bf16 %v7644_v29  ;;  %v1301_v19 = vsel %vm13989_vm1, %v7555_v28, %v7556_v46  ;;  %v7028_v57 = vpack.c.bf16 %v1489_v11, %v10457_v47  ;;  %v10575_v39 = vld [vmem:[%s13920_s0 + $0x378] sm:$0xff]  ;;  %v10600_v53 = vld [vmem:[%s13920_s0 + $0x250] sm:$0xff] }
 0x1a9   :  { %v7029_v48 = vpack.c.bf16 %v1491_v51, %v1490_v45  ;;  %v1300_v41 = vsel %vm13989_vm1, %v7551_v58, %v7555_v28  ;;  %v1342_v14 = vsel %vm13932_vm13, %v1301_v19, %v7566_v25  ;;  %v7707_v5 = vpack.i.bf16 %v10457_v47, %v1487_v31  ;;  %v10570_v28 = vld [vmem:[%s13920_s0 + $0x340] sm:$0xff] }
 0x1aa   :  { %v1433_v6 = vsel %vm13988_vm11, %v7641_v62, %v7645_v59  ;;  %v1434_v38 = vsel %vm13988_vm11, %v7645_v59, %v7646_v55  ;;  %7688 = vrot.lane.b32.xlu0 %v7687_v16, %s9030_s26  ;;  %v1492_v9 = vsel %vm13936_vm2, %v1300_v41, %v1432_v2  ;;  %1879 = vst [vmem:[#allocation2 + $0x214] sm:$0xff] %v7028_v57  ;;  %v6668_v2 = vld [vmem:[%s13920_s0 + $0x260] sm:$0xff]  ;;  %v6675_v55 = vld [vmem:[%s13920_s0 + $0x298] sm:$0xff]  ;;  %vm13935_vm13 = vcmask 523264  }
 0x1ab   :  { %v1494_v15 = vsel %vm13938_vm0, %v7566_v25, %v1434_v38  ;;  %1880 = vst [vmem:[#allocation2 + $0x21c] sm:$0xff] %v7029_v48  ;;  %v1493_v50 = vsel %vm13937_vm3, %v1342_v14, %v1433_v6  ;;  %v7697_v62 = vpack.i.bf16 %v10396_v3, %v10391_v13  ;;  %v7672_v1 = vpack.i.bf16 %v10316_v34, %v10320_v32  ;;  %v10623_v59 = vld [vmem:[%s13920_s0 + $0x1c0] sm:$0xff]  ;;  %v6650_v48 = vld [vmem:[%s13920_s0 + $0x1d0] sm:$0xff]  ;;  %v10637_v41 = vld [vmem:[%s13920_s0 + $0x1f8] sm:$0xff] }
 0x1ac   :  { %v7031_v58 = vpack.c.bf16 %v1494_v15, %v1494_v15  ;;  %v7652_v46 = vpack.i.bf16 %v1494_v15, %v1487_v31  ;;  %v7030_v30 = vpack.c.bf16 %v1493_v50, %v1492_v9  ;;  %v7717_v13 = vpack.i.bf16 %v1492_v9, %v1491_v51  ;;  %v6573_v31 = vld [vmem:[%s13920_s0 + $0x2a8] sm:$0xff]  ;;  %v6664_v51 = vld [vmem:[%s13920_s0 + $0x240] sm:$0xff]  ;;  %v6654_v38 = vld [vmem:[%s13920_s0 + $0x1f0] sm:$0xff] }
 0x1ad   :  { %v7682_v3 = vpack.i.bf16 %v10379_v49, %v10371_v56  ;;  %v7692_v43 = vpack.i.bf16 %v10411_v10, %v10401_v60  ;;  %v7702_v32 = vpack.i.bf16 %v1486_v21, %v10427_v61  ;;  %v7712_v4 = vpack.i.bf16 %v1490_v45, %v1489_v11  ;;  %v10516_v56 = vld [vmem:[%s13920_s0 + $0x2d0] sm:$0xff]  ;;  %v10521_v49 = vld [vmem:[%s13920_s0 + $0x308] sm:$0xff]  ;;  %v6672_v19 = vld [vmem:[%s13920_s0 + $0x280] sm:$0xff] }
 0x1ae   :  { %1882 = vst.msk [vmem:[#allocation2 + $0x22c] sm:$0xf] %vm14014_vm4, %v7031_v58  ;;  %7653 = vrot.lane.b32.xlu1 %v7652_v46, %s9029_s25  ;;  %1881 = vst [vmem:[#allocation2 + $0x224] sm:$0xff] %v7030_v30  ;;  %7698 = vrot.lane.b32.xlu0 %v7697_v62, %s9030_s26  ;;  %v7807_v10 = vpack.i.bf16 %v10521_v49, %v10516_v56  ;;  %v6670_v21 = vld [vmem:[%s13920_s0 + $0x270] sm:$0xff]  ;;  %v7847_v37 = vpack.i.bf16 %v10562_v52, %v6663_v0  ;;  %v6669_v11 = vld [vmem:[%s13920_s0 + $0x268] sm:$0xff] }
 0x1af   :  { %v7837_v63 = vpack.i.bf16 %v10554_v54, %v6670_v21  ;;  %v7812_v25 = vpack.i.bf16 %v10575_v39, %v10570_v28  ;;  %v7857_v7 = vpack.i.bf16 %v10582_v33, %v6670_v21  ;;  %v7832_v45 = vpack.i.bf16 %v6669_v11, %v6664_v51  ;;  %v8489_v9 = vld [vmem:[%s13921_s1 + $0x4] ss:$8 sps:$4 sm:$0xff]  }
 0x1b0   :  { %v7887_v57 = vpack.i.bf16 %v10623_v59, %v6672_v19  ;;  %v7852_v14 = vpack.i.bf16 %v6669_v11, %v6668_v2  ;;  %v7897_v6 = vpack.i.bf16 %v10637_v41, %v6650_v48  ;;  %v10655_v58 = vld [vmem:[%s13920_s0 + $0x288] sm:$0xff]  ;;  %6540 = vmatprep.mubr.msk.bf16.mxu0 %vm13935_vm13, %v8489_v9  ;;  %6548 = vmatprep.mubr.msk.bf16.mxu1 %vm13935_vm13, %v8489_v9  ;;  %v10787_v9 = vld [vmem:[%s13920_s0 + $0x310] sm:$0xff]  ;;  %vm8628_vm13 = vmneg %vm13945_vm5 }
 0x1b1   :  { %v7872_v30 = vpack.i.bf16 %v10655_v58, %v6672_v19 }
 0x1b2   :  { %7663 = vrot.lane.b32.xlu1 %v7662_v42, %s9030_s26  ;;  %7708 = vrot.lane.b32.xlu0 %v7707_v5, %s9030_s26 }
 0x1b6   :  { %7673 = vrot.lane.b32.xlu1 %v7672_v1, %s9030_s26  ;;  %7718 = vrot.lane.b32.xlu0 %v7717_v13, %s9030_s26 }
 0x1ba   :  { %7683 = vrot.lane.b32.xlu1 %v7682_v3, %s9030_s26  ;;  %7728 = vrot.lane.b32.xlu0 %v10351_v44, %s9034_s15  ;;  %v7722_v44 = vpack.i.bf16 %v1494_v15, %v1493_v50  ;;  %v6661_v15 = vld [vmem:[%s13920_s0 + $0x228] sm:$0xff]  ;;  %v7862_v50 = vpack.i.bf16 %v6664_v51, %v6675_v55 }
 0x1bb   :  { %v7907_v46 = vpack.i.bf16 %v6661_v15, %v6654_v38 }
 0x1be   :  { %7693 = vrot.lane.b32.xlu1 %v7692_v43, %s9030_s26  ;;  %7738 = vrot.lane.b32.xlu0 %v10383_v40, %s9034_s15  ;;  %v7797_v40 = vpack.i.bf16 %v10316_v34, %v10205_v8  ;;  %v10537_v8 = vpack.i.bf16 %v6573_v31, %v6572_v12  ;;  %v6662_v34 = vld [vmem:[%s13920_s0 + $0x230] sm:$0xff] }
 0x1bf   :  { %v7827_v61 = vpack.i.bf16 %v6663_v0, %v6662_v34  ;;  %v7822_v35 = vpack.i.bf16 %v6662_v34, %v10592_v36  ;;  %v10706_v0 = vld [vmem:[%s13920_s0 + $0x338] sm:$0xff] }
 0x1c2   :  { %7703 = vrot.lane.b32.xlu1 %v7702_v32, %s9030_s26  ;;  %7748 = vrot.lane.b32.xlu0 %v7677_v20, %s9034_s15  ;;  %v7802_v20 = vpack.i.bf16 %v10457_v47, %v10401_v60  ;;  %v6665_v60 = vld [vmem:[%s13920_s0 + $0x248] sm:$0xff]  ;;  %v7877_v47 = vpack.i.bf16 %v6669_v11, %v6662_v34 }
 0x1c3   :  { %v7867_v29 = vpack.i.bf16 %v10600_v53, %v6665_v60  ;;  %v10701_v34 = vld [vmem:[%s13920_s0 + $0x1e8] sm:$0xff] }
 0x1c6   :  { %7713 = vrot.lane.b32.xlu1 %v7712_v4, %s9030_s26  ;;  %7758 = vrot.lane.b32.xlu0 %v7687_v16, %s9034_s15  ;;  %v7842_v16 = vpack.i.bf16 %v6675_v55, %v6668_v2  ;;  %v10761_v2 = vld [vmem:[%s13920_s0 + $0x358] sm:$0xff] }
 0x1ca   :  { %7723 = vrot.lane.b32.xlu1 %v7722_v44, %s9030_s26  ;;  %7768 = vrot.lane.b32.xlu0 %v7697_v62, %s9034_s15  ;;  %v7917_v62 = vpack.i.bf16 %v10637_v41, %v6654_v38  ;;  %v7942_v38 = vpack.i.bf16 %v10637_v41, %v10623_v59 }
 0x1ce   :  { %7733 = vrot.lane.b32.xlu1 %v7662_v42, %s9034_s15  ;;  %7778 = vrot.lane.b32.xlu0 %v7707_v5, %s9034_s15  ;;  %v7882_v42 = vpack.i.bf16 %v10554_v54, %v6665_v60  ;;  %v7927_v5 = vpack.i.bf16 %v6650_v48, %v6661_v15 }
 0x1d2   :  { %7743 = vrot.lane.b32.xlu1 %v7672_v1, %s9034_s15  ;;  %7788 = vrot.lane.b32.xlu0 %v7717_v13, %s9034_s15  ;;  %v6649_v1 = vld [vmem:[%s13920_s0 + $0x1c8] sm:$0xff]  ;;  %v10673_v13 = vld [vmem:[%s13920_s0 + $0x210] sm:$0xff] }
 0x1d6   :  { %7753 = vrot.lane.b32.xlu1 %v7682_v3, %s9034_s15  ;;  %7798 = vrot.lane.b32.xlu0 %v7797_v40, %s9035_s20  ;;  %v10678_v3 = vld [vmem:[%s13920_s0 + $0x218] sm:$0xff] }
 0x1d7   :  { %14063 = vst [vmem:[#allocation3_spill] sm:$0xff] %v10678_v3  ;;  %v6651_v40 = vld [vmem:[%s13920_s0 + $0x1d8] sm:$0xff] }
 0x1da   :  { %7763 = vrot.lane.b32.xlu1 %v7692_v43, %s9034_s15  ;;  %7808 = vrot.lane.b32.xlu0 %v7807_v10, %s9029_s25  ;;  %v7892_v43 = vpack.i.bf16 %v6649_v1, %v10623_v59  ;;  %v10800_v59 = vld [vmem:[%s13920_s0 + $0x360] sm:$0xff] }
 0x1de   :  { %7773 = vrot.lane.b32.xlu1 %v7702_v32, %s9034_s15  ;;  %7818 = vrot.lane.b32.xlu0 %v10537_v8, %s9030_s26  ;;  %v7937_v32 = vpack.i.bf16 %v10678_v3, %v10673_v13 }
 0x1e2   :  { %7783 = vrot.lane.b32.xlu1 %v7712_v4, %s9034_s15  ;;  %7828 = vrot.lane.b32.xlu0 %v7827_v61, %s9036_s27  ;;  %v6656_v4 = vld [vmem:[%s13920_s0 + $0x200] sm:$0xff] }
 0x1e6   :  { %7793 = vrot.lane.b32.xlu1 %v7722_v44, %s9034_s15  ;;  %7838 = vrot.lane.b32.xlu0 %v7837_v63, %s9036_s27  ;;  %v6657_v44 = vld [vmem:[%s13920_s0 + $0x208] sm:$0xff] }
 0x1e7   :  { %v7902_v12 = vpack.i.bf16 %v6657_v44, %v6656_v4  ;;  %v7947_v31 = vpack.i.bf16 %v6657_v44, %v6651_v40  ;;  %v7952_v44 = vpack.i.bf16 %v10787_v9, %v10673_v13 }
 0x1ea   :  { %7803 = vrot.lane.b32.xlu1 %v7802_v20, %s9035_s20  ;;  %7848 = vrot.lane.b32.xlu0 %v7847_v37, %s9030_s26  ;;  %v7912_v37 = vpack.i.bf16 %v10701_v34, %v6649_v1  ;;  %v10718_v20 = vpack.i.bf16 %v10570_v28, %v10706_v0  ;;  %v6588_v28 = vld [vmem:[%s13920_s0 + $0x320] sm:$0xff]  ;;  %v10811_v1 = vld [vmem:[%s13920_s0 + $0x370] sm:$0xff] }
 0x1ee   :  { %7813 = vrot.lane.b32.xlu1 %v7812_v25, %s9029_s25  ;;  %7858 = vrot.lane.b32.xlu0 %v7857_v7, %s9030_s26  ;;  %v10723_v25 = vld [vmem:[%s13920_s0 + $0x220] sm:$0xff] }
 0x1ef   :  { %v7922_v51 = vpack.i.bf16 %v10723_v25, %v6656_v4 }
 0x1f2   :  { %7823 = vrot.lane.b32.xlu1 %v7822_v35, %s9030_s26  ;;  %7868 = vrot.lane.b32.xlu0 %v7867_v29, %s9036_s27  ;;  %v10736_v35 = vld [vmem:[%s13920_s0 + $0x318] sm:$0xff] }
 0x1f3   :  { %v7967_v11 = vpack.i.bf16 %v6588_v28, %v10736_v35 }
 0x1f6   :  { %7833 = vrot.lane.b32.xlu1 %v7832_v45, %s9036_s27  ;;  %7878 = vrot.lane.b32.xlu0 %v7877_v47, %s9037_s30  ;;  %v10751_v45 = vld [vmem:[%s13920_s0 + $0x1e0] sm:$0xff]  ;;  %v10756_v47 = vld [vmem:[%s13920_s0 + $0x328] sm:$0xff] }
 0x1f7   :  { %v7932_v19 = vpack.i.bf16 %v10751_v45, %v6651_v40 }
 0x1fa   :  { %7843 = vrot.lane.b32.xlu1 %v7842_v16, %s9029_s25  ;;  %7888 = vrot.lane.b32.xlu0 %v7887_v57, %s9030_s26  ;;  %v7977_v16 = vpack.i.bf16 %v10756_v47, %v10761_v2  ;;  %v10773_v57 = vld [vmem:[%s13920_s0 + $0x348] sm:$0xff] }
 0x1fb   :  { %v7987_v15 = vpack.i.bf16 %v10773_v57, %v6588_v28 }
 0x1fe   :  { %7853 = vrot.lane.b32.xlu1 %v7852_v14, %s9030_s26  ;;  %7898 = vrot.lane.b32.xlu0 %v7897_v6, %s9036_s27 }
 0x202   :  { %7863 = vrot.lane.b32.xlu1 %v7862_v50, %s9030_s26  ;;  %7908 = vrot.lane.b32.xlu0 %v7907_v46, %s9029_s25 }
 0x206   :  { %7873 = vrot.lane.b32.xlu1 %v7872_v30, %s9036_s27  ;;  %7918 = vrot.lane.b32.xlu0 %v7917_v62, %s9030_s26  ;;  %v6590_v30 = vld [vmem:[%s13920_s0 + $0x330] sm:$0xff] }
 0x207   :  { %v7997_v40 = vpack.i.bf16 %v10800_v59, %v6590_v30 }
 0x20a   :  { %7883 = vrot.lane.b32.xlu1 %v7882_v42, %s9030_s26  ;;  %7928 = vrot.lane.b32.xlu0 %v7927_v5, %s9030_s26 }
 0x20c   :  { %v10694_v10 = vpop.permute.xlu0 %7648 }
 0x20d   :  { %v7650_v21 = vunpack.i.l.bf16 %v10694_v10 }
 0x20e   :  { %7893 = vrot.lane.b32.xlu1 %v7892_v43, %s9036_s27  ;;  %7938 = vrot.lane.b32.xlu0 %v7937_v32, %s9036_s27  ;;  %v10816_v43 = vld [vmem:[%s13920_s0 + $0x350] sm:$0xff]  ;;  %v10821_v32 = vld [vmem:[%s13920_s0 + $0x2c8] sm:$0xff] }
 0x20f   :  { %v7972_v28 = vpack.i.bf16 %v10816_v43, %v10773_v57  ;;  %v7992_v57 = vpack.i.bf16 %v10761_v2, %v10816_v43 }
 0x210   :  { %v10708_v61 = vpop.permute.xlu0 %7658 }
 0x211   :  { %v7661_v54 = vunpack.i.h.bf16 %v10708_v61  ;;  %v7660_v63 = vunpack.i.l.bf16 %v10708_v61  ;;  %v6576_v61 = vld [vmem:[%s13920_s0 + $0x2c0] sm:$0xff] }
 0x212   :  { %7903 = vrot.lane.b32.xlu1 %v7902_v12, %s9036_s27  ;;  %7948 = vrot.lane.b32.xlu0 %v7947_v31, %s9030_s26  ;;  %v6580_v12 = vld [vmem:[%s13920_s0 + $0x2e0] sm:$0xff]  ;;  %v6581_v31 = vld [vmem:[%s13920_s0 + $0x2e8] sm:$0xff] }
 0x213   :  { %v10728_v7 = vsel %vm13988_vm11, %v7660_v63, %v7661_v54  ;;  %v10731_v60 = vsel %vm13988_vm11, %v7650_v21, %v7660_v63  ;;  %v10837_v21 = vld [vmem:[%s13920_s0 + $0x2d8] sm:$0xff]  ;;  %v10842_v63 = vpack.i.bf16 %v10575_v39, %v10811_v1 }
 0x214   :  { %v10741_v29 = vpop.permute.xlu0 %7668 }
 0x215   :  { %v7671_v41 = vunpack.i.h.bf16 %v10741_v29  ;;  %v7670_v62 = vunpack.i.l.bf16 %v10741_v29  ;;  %v10849_v29 = vpack.i.bf16 %v10516_v56, %v10821_v32  ;;  %v8037_v56 = vpack.i.bf16 %v10837_v21, %v10592_v36 }
 0x216   :  { %7913 = vrot.lane.b32.xlu1 %v7912_v37, %s9030_s26  ;;  %7958 = vrot.lane.b32.xlu0 %v10718_v20, %s9031_s13  ;;  %v8007_v37 = vpack.i.bf16 %v6590_v30, %v10756_v47  ;;  %v10858_v47 = vpack.i.bf16 %v6581_v31, %v6580_v12 }
 0x218   :  { %v10763_v55 = vpop.permute.xlu0 %7678 }
 0x219   :  { %v7681_v39 = vunpack.i.h.bf16 %v10763_v55 }
 0x21a   :  { %7923 = vrot.lane.b32.xlu1 %v7922_v51, %s9030_s26  ;;  %7968 = vrot.lane.b32.xlu0 %v7967_v11, %s9030_s26  ;;  %v1595_v51 = vsel %vm13988_vm11, %v7670_v62, %v7671_v41 }
 0x21c   :  { %v10775_v48 = vpop.permute.xlu0 %7688 }
 0x21d   :  { %v7691_v14 = vunpack.i.h.bf16 %v10775_v48  ;;  %v7690_v6 = vunpack.i.l.bf16 %v10775_v48 }
 0x21e   :  { %7933 = vrot.lane.b32.xlu1 %v7932_v19, %s9036_s27  ;;  %7978 = vrot.lane.b32.xlu0 %v7977_v16, %s9030_s26 }
 0x21f   :  { %v1602_v50 = vsel %vm13988_vm11, %v7690_v6, %v7691_v14  ;;  %v7982_v14 = vpack.i.bf16 %v10736_v35, %v10787_v9 }
 0x220   :  { %v10792_v46 = vpop.permute.xlu1 %7653  ;;  %v1660_v42 = vsel %vm13938_vm0, 0.0, %v1602_v50  ;;  %v10806_v5 = vpop.permute.xlu0 %7698  ;;  %v10878_v50 = vld [vmem:[%s13920_s0 + $0x368] sm:$0xff] }
 0x221   :  { %v7007_v4 = vpack.c.bf16 %v1660_v42, %v1660_v42  ;;  %v7651_v42 = vunpack.i.h.bf16 %v10694_v10 }
 0x222   :  { %7943 = vrot.lane.b32.xlu1 %v7942_v38, %s9037_s30  ;;  %7988 = vrot.lane.b32.xlu0 %v7987_v15, %s9032_s14  ;;  %v7680_v38 = vunpack.i.l.bf16 %v10763_v55  ;;  %v6575_v55 = vld [vmem:[%s13920_s0 + $0x2b8] sm:$0xff] }
 0x223   :  { %1770 = vst.msk [vmem:[#allocation2 + $0x184] sm:$0xf] %vm14014_vm4, %v7007_v4 }
 0x224   :  { %v7664_v13 = vpop.permute.xlu1 %7663  ;;  %v10852_v16 = vpop.permute.xlu0 %7708 }
 0x225   :  { %v7666_v11 = vunpack.i.h.bf16 %v7664_v13  ;;  %v7665_v19 = vunpack.i.l.bf16 %v7664_v13  ;;  %v10897_v13 = vpack.i.bf16 %v6576_v61, %v6575_v55  ;;  %v7701_v55 = vunpack.i.h.bf16 %v10806_v5 }
 0x226   :  { %7953 = vrot.lane.b32.xlu1 %v7952_v44, %s9030_s26  ;;  %7998 = vrot.lane.b32.xlu0 %v7997_v40, %s9030_s26 }
 0x227   :  { %v10868_v15 = vsel %vm13988_vm11, %v7661_v54, %v7665_v19  ;;  %v10871_v35 = vsel %vm13988_vm11, %v7665_v19, %v7666_v11  ;;  %v1594_v9 = vsel %vm13988_vm11, %v7666_v11, %v7670_v62  ;;  %v1652_v54 = vsel %vm13937_vm3, 0.0, %v1595_v51 }
 0x228   :  { %v1651_v30 = vsel %vm13936_vm2, 0.0, %v1594_v9  ;;  %v7674_v62 = vpop.permute.xlu1 %7673  ;;  %v10891_v40 = vpop.permute.xlu0 %7718  ;;  %v10902_v11 = vsel %vm13988_vm11, %v7680_v38, %v7681_v39  ;;  %v10914_v9 = vld [vmem:[%s13920_s0 + $0x300] sm:$0xff] }
 0x229   :  { %v7002_v4 = vpack.c.bf16 %v1652_v54, %v1651_v30  ;;  %v7676_v44 = vunpack.i.h.bf16 %v7674_v62  ;;  %v7675_v12 = vunpack.i.l.bf16 %v7674_v62  ;;  %v7700_v30 = vunpack.i.l.bf16 %v10806_v5 }
 0x22a   :  { %7963 = vrot.lane.b32.xlu1 %v10842_v63, %s9031_s13  ;;  %8008 = vrot.lane.b32.xlu0 %v8007_v37, %s9032_s14 }
 0x22b   :  { %1765 = vst [vmem:[#allocation2 + $0x160] sm:$0xff] %v7002_v4  ;;  %v10905_v10 = vsel %vm13988_vm11, %v7651_v42, %v7676_v44  ;;  %v10908_v19 = vsel %vm13988_vm11, %v7676_v44, %v7680_v38  ;;  %v1596_v61 = vsel %vm13988_vm11, %v7671_v41, %v7675_v12  ;;  %v10926_v44 = vpack.i.bf16 %v10521_v49, %v10914_v9 }
 0x22c   :  { %v7684_v54 = vpop.permute.xlu1 %7683  ;;  %v1653_v62 = vsel %vm13938_vm0, 0.0, %v1596_v61  ;;  %v10921_v38 = vpop.permute.xlu0 %7728  ;;  %v10943_v48 = vsel %vm13988_vm11, %v7700_v30, %v7701_v55 }
 0x22d   :  { %v7686_v42 = vunpack.i.h.bf16 %v7684_v54  ;;  %v7003_v4 = vpack.c.bf16 %v1653_v62, %v1653_v62  ;;  %v7685_v37 = vunpack.i.l.bf16 %v7684_v54  ;;  %v7730_v2 = vunpack.i.l.bf16 %v10921_v38 }
 0x22e   :  { %7973 = vrot.lane.b32.xlu1 %v7972_v28, %s9030_s26  ;;  %8018 = vrot.lane.b32.xlu0 %v10849_v29, %s9031_s13 }
 0x22f   :  { %v1601_v41 = vsel %vm13988_vm11, %v7686_v42, %v7690_v6  ;;  %1766 = vst.msk [vmem:[#allocation2 + $0x168] sm:$0xf] %vm14014_vm4, %v7003_v4  ;;  %v10937_v12 = vsel %vm13988_vm11, %v7681_v39, %v7685_v37  ;;  %v1600_v28 = vsel %vm13988_vm11, %v7685_v37, %v7686_v42  ;;  %v7655_v4 = vunpack.i.l.bf16 %v10792_v46 }
 0x230   :  { %v1659_v49 = vsel %vm13937_vm3, 0.0, %v1601_v41  ;;  %v7694_v61 = vpop.permute.xlu1 %7693  ;;  %v1658_v6 = vsel %vm13936_vm2, 0.0, %v1600_v28  ;;  %v10947_v62 = vpop.permute.xlu0 %7738  ;;  %v7711_v42 = vunpack.i.h.bf16 %v10852_v16  ;;  %vm11086_vm2 = vmpackc.low %vm8628_vm13, %vm8628_vm13 }
 0x231   :  { %v7696_v54 = vunpack.i.h.bf16 %v7694_v61  ;;  %v10950_v5 = vpack.c.bf16 %v1659_v49, %v1658_v6  ;;  %v7695_v39 = vunpack.i.l.bf16 %v7694_v61  ;;  %vm8633_vm3 = vmneg %vm13939_vm15 }
 0x232   :  { %7983 = vrot.lane.b32.xlu1 %v7982_v14, %s9032_s14  ;;  %8028 = vrot.lane.b32.xlu0 %v10858_v47, %s9030_s26  ;;  %v7656_v14 = vunpack.i.h.bf16 %v10792_v46  ;;  %vm8639_vm13 = vmneg %vm13946_vm6 }
 0x233   :  { %14064 = vst [vmem:[#allocation4_spill] sm:$0xff] %v10950_v5  ;;  %v10955_v37 = vsel %vm13988_vm11, %v7696_v54, %v7700_v30  ;;  %v10962_v28 = vsel %vm13988_vm11, %v7695_v39, %v7696_v54  ;;  %v10965_v49 = vsel %vm13988_vm11, %v7655_v4, %v7695_v39  ;;  %v7710_v30 = vunpack.i.l.bf16 %v10852_v16  ;;  %v6582_v54 = vld [vmem:[%s13920_s0 + $0x2f0] sm:$0xff]  ;;  %v6583_v4 = vld [vmem:[%s13920_s0 + $0x2f8] sm:$0xff]  ;;  %vm11106_vm15 = vmpackc.low %vm8639_vm13, %vm8639_vm13 }
 0x234   :  { %v7704_v61 = vpop.permute.xlu1 %7703  ;;  %v10968_v6 = vpop.permute.xlu0 %7748  ;;  %v10982_v46 = vsel %vm13988_vm11, %v7656_v14, %v7711_v42  ;;  %v7721_v16 = vunpack.i.h.bf16 %v10891_v40  ;;  %v7720_v39 = vunpack.i.l.bf16 %v10891_v40  ;;  %v11003_v3 = vpack.i.bf16 %v6583_v4, %v6582_v54 }
 0x235   :  { %v7706_v51 = vunpack.i.h.bf16 %v7704_v61  ;;  %v7705_v31 = vunpack.i.l.bf16 %v7704_v61  ;;  %v7731_v61 = vunpack.i.h.bf16 %v10921_v38  ;;  %v7741_v54 = vunpack.i.h.bf16 %v10947_v62 }
 0x236   :  { %7993 = vrot.lane.b32.xlu1 %v7992_v57, %s9032_s14  ;;  %8038 = vrot.lane.b32.xlu0 %v8037_v56, %s9032_s14  ;;  %v7740_v4 = vunpack.i.l.bf16 %v10947_v62  ;;  %v14070_v62 = vpack.i.bf16 %v10878_v50, %v10800_v59 }
 0x237   :  { %v10993_v43 = vsel %vm13988_vm11, %v7701_v55, %v7705_v31  ;;  %v10996_v57 = vsel %vm13988_vm11, %v7705_v31, %v7706_v51  ;;  %v1608_v14 = vsel %vm13988_vm11, %v7706_v51, %v7710_v30  ;;  %v14067_v55 = vpack.i.bf16 %v10837_v21, %v10878_v50 }
 0x238   :  { %14065 = vst [vmem:[#allocation5_spill] sm:$0xff] %v10993_v43  ;;  %14066 = vst [vmem:[#allocation6_spill] sm:$0xff] %v10996_v57  ;;  %v7714_v41 = vpop.permute.xlu1 %7713  ;;  %v1667_v40 = vsel %vm13938_vm0, 0.0, %v1608_v14  ;;  %v11001_v5 = vpop.permute.xlu0 %7758  ;;  %v11010_v31 = vsel %vm13988_vm11, %v7720_v39, %v7721_v16  ;;  %v11017_v30 = vsel %vm13942_vm7, %v7730_v2, %v7731_v61  ;;  %v7750_v2 = vunpack.i.l.bf16 %v10968_v6 }
 0x239   :  { %v7011_v36 = vpack.c.bf16 %v1667_v40, %v1667_v40  ;;  %v7716_v56 = vunpack.i.h.bf16 %v7714_v41  ;;  %14068 = vst [vmem:[#allocation7_spill] sm:$0xff] %v11010_v31  ;;  %v7715_v38 = vunpack.i.l.bf16 %v7714_v41  ;;  %14069 = vst [vmem:[#allocation8_spill] sm:$0xff] %v11017_v30  ;;  %v1943_v57 = vsel %vm13942_vm7, %v7740_v4, %v7741_v54 }
 0x23a   :  { %8003 = vrot.lane.b32.xlu1 %v14067_v55, %s9030_s26  ;;  %8048 = vrot.lane.b32.xlu0 %v10897_v13, %s9030_s26  ;;  %v14071_v30 = vunpack.i.h.bf16 %v10968_v6 }
 0x23b   :  { %1774 = vst.msk [vmem:[#allocation2 + $0x1a0] sm:$0xf] %vm14014_vm4, %v7011_v36  ;;  %v1611_v21 = vsel %vm13988_vm11, %v7716_v56, %v7720_v39  ;;  %v1609_v40 = vsel %vm13988_vm11, %v7711_v42, %v7715_v38  ;;  %v11026_v55 = vsel %vm13988_vm11, %v7715_v38, %v7716_v56 }
 0x23c   :  { %v7724_v14 = vpop.permute.xlu1 %7723  ;;  %v11028_v51 = vpop.permute.xlu0 %7768  ;;  %v11047_v59 = vsel %vm13942_vm7, %v7750_v2, %v14071_v30 }
 0x23d   :  { %v7726_v31 = vunpack.i.h.bf16 %v7724_v14  ;;  %v7725_v36 = vunpack.i.l.bf16 %v7724_v14  ;;  %v7760_v14 = vunpack.i.l.bf16 %v11001_v5 }
 0x23e   :  { %8013 = vrot.lane.b32.xlu1 %v14070_v62, %s9032_s14  ;;  %8058 = vrot.lane.b32.xlu0 %v10897_v13, %s9032_s14  ;;  %v7761_v13 = vunpack.i.h.bf16 %v11001_v5  ;;  %v14072_v5 = vpack.i.bf16 %v10811_v1, %v10706_v0  ;;  %v8631_v0 = vpack.c.bf16 %v1609_v40, %v10962_v28  ;;  %v14076_v1 = vmov 0 }
 0x23f   :  { %v11038_v42 = vsel %vm13988_vm11, %v7721_v16, %v7725_v36  ;;  %v1614_v56 = vsel %vm13988_vm11, %v7725_v36, %v7726_v31  ;;  %v14079_v28 = vmov 0  ;;  %v7771_v40 = vunpack.i.h.bf16 %v11028_v51 }
 0x240   :  { %v7734_v39 = vpop.permute.xlu1 %7733  ;;  %v11041_v43 = vpop.permute.xlu0 %7778  ;;  %v1674_v50 = vsel %vm13938_vm0, 0.0, %v1614_v56  ;;  %8632 = vmatprep.subr.msk.bf16.mxu0 %vm11086_vm2, %v8631_v0  ;;  %vm11095_vm0 = vmpackc.low %vm8633_vm3, %vm8633_vm3  ;;  %v14080_v28 = vsel %vm11106_vm15, 4294967295, %v14079_v28 }
 0x241   :  { %v7736_v38 = vunpack.i.h.bf16 %v7734_v39  ;;  %v7735_v41 = vunpack.i.l.bf16 %v7734_v39  ;;  %v7015_v16 = vpack.c.bf16 %v1674_v50, %v1674_v50  ;;  %v14077_v1 = vsel %vm11095_vm0, 4294967295, %v14076_v1  ;;  %14081 = vst [vmem:[#allocation11_spill] sm:$0xff] %v14080_v28  ;;  %vm8644_vm3 = vmneg %vm13948_vm14 }
 0x242   :  { %8023 = vrot.lane.b32.xlu1 %v10926_v44, %s9031_s13  ;;  %8068 = vrot.lane.b32.xlu0 %v10718_v20, %s9030_s26  ;;  %14078 = vst [vmem:[#allocation10_spill] sm:$0xff] %v14077_v1  ;;  %vm11123_vm13 = vmpackc.low %vm8644_vm3, %vm8644_vm3  ;;  %vm14092_vm3 = vcmp.eq.s32.totalorder %v9299_v18, 27 }
 0x243   :  { %v11055_v31 = vsel %vm13942_vm7, %v7731_v61, %v7735_v41  ;;  %v11061_v30 = vsel %vm13942_vm7, %v7735_v41, %v7736_v38  ;;  %v11064_v62 = vsel %vm13942_vm7, %v7736_v38, %v7740_v4  ;;  %1778 = vst.msk [vmem:[#allocation2 + $0x1bc] sm:$0xf] %vm14014_vm4, %v7015_v16  ;;  %v2011_v61 = vsel %vm13943_vm12, 0.0, %v1943_v57 }
 0x244   :  { %v7744_v36 = vpop.permute.xlu1 %7743  ;;  %v11067_v56 = vpop.permute.xlu0 %7788  ;;  %v1950_v4 = vsel %vm13942_vm7, %v7760_v14, %v7761_v13 }
 0x245   :  { %v7746_v39 = vunpack.i.h.bf16 %v7744_v36  ;;  %v7745_v50 = vunpack.i.l.bf16 %v7744_v36 }
 0x246   :  { %8033 = vrot.lane.b32.xlu1 %v10537_v8, %s9032_s14  ;;  %8078 = vrot.lane.b32.xlu0 %v14072_v5, %s9032_s14  ;;  %v14073_v8 = vmov 0 }
 0x247   :  { %v11074_v20 = vsel %vm13942_vm7, %v7746_v39, %v7750_v2  ;;  %v1944_v41 = vsel %vm13942_vm7, %v7741_v54, %v7745_v50  ;;  %v14074_v8 = vsel %vm11086_vm2, 4294967295, %v14073_v8  ;;  %v8636_v54 = vpack.c.bf16 %v1611_v21, %v10943_v48 }
 0x248   :  { %v7754_v38 = vpop.permute.xlu1 %7753  ;;  %v2012_v57 = vsel %vm13944_vm8, 0.0, %v1944_v41  ;;  %v7799_v36 = vpop.permute.xlu0 %7798  ;;  %14075 = vst [vmem:[#allocation9_spill] sm:$0xff] %v14074_v8  ;;  %v8642_v48 = vpack.c.bf16 %v10982_v46, %v10965_v49  ;;  %v2019_v21 = vsel %vm13944_vm8, 0.0, %v1950_v4  ;;  %v14082_v49 = vmov 0 }
 0x249   :  { %v7756_v16 = vunpack.i.h.bf16 %v7754_v38  ;;  %8637 = vmatprep.subr.msk.bf16.mxu1 %vm11095_vm0, %v8636_v54  ;;  %v7034_v2 = vpack.c.bf16 %v2012_v57, %v2011_v61  ;;  %v7755_v39 = vunpack.i.l.bf16 %v7754_v38  ;;  %v7801_v5 = vunpack.i.h.bf16 %v7799_v36 }
 0x24a   :  { %v7800_v41 = vunpack.i.l.bf16 %v7799_v36  ;;  %8043 = vrot.lane.b32.xlu1 %v10858_v47, %s9032_s14  ;;  %8643 = vmatpush1.bf16.msk.msra.mxu0 %vm11106_vm15, %v8642_v48  ;;  %v7770_v47 = vunpack.i.l.bf16 %v11028_v51  ;;  %v14083_v49 = vsel %vm11123_vm13, 4294967295, %v14082_v49  ;;  %v8647_v46 = vpack.c.bf16 %v11026_v55, %v10955_v37 }
 0x24b   :  { %v1949_v61 = vsel %vm13942_vm7, %v7756_v16, %v7760_v14  ;;  %8088 = vrot.lane.b32.xlu0 %v10926_v44, %s9030_s26  ;;  %14084 = vst [vmem:[#allocation12_spill] sm:$0xff] %v14083_v49  ;;  %2125 = vst [vmem:[#allocation2 + $0x240] sm:$0xff] %v7034_v2  ;;  %v14085_v51 = vunpack.i.h.bf16 %v10968_v6  ;;  %v11137_v44 = vsel %vm13942_vm7, %v7755_v39, %v7756_v16  ;;  %v7790_v48 = vunpack.i.l.bf16 %v11067_v56  ;;  %v8506_v49 = vld [vmem:[#allocation2 + $0x80] ss:$28 sps:$4 sm:$0xff]  }
 0x24c   :  { %8648 = vmatpush1.bf16.msk.msra.mxu1 %vm11123_vm13, %v8647_v46  ;;  %v2018_v4 = vsel %vm13943_vm12, 0.0, %v1949_v61  ;;  %v2003_v38 = vsel %vm13941_vm9, %v7745_v50, %v7800_v41  ;;  %v8652_v37 = vpack.c.bf16 %v10908_v19, %v10728_v7  ;;  %v8657_v6 = vpack.c.bf16 %v10937_v12, %v10871_v35  ;;  %v7764_v55 = vpop.permute.xlu1 %7763  ;;  %v11151_v36 = vpop.permute.xlu0 %7808  ;;  %v8447_v12 = vld [vmem:[#allocation2 + $0x11c] ss:$28 sps:$4 sm:$0xff]  }
 0x24d   :  { %v11134_v14 = vsel %vm13942_vm7, %v14085_v51, %v7755_v39  ;;  %v7038_v57 = vpack.c.bf16 %v2019_v21, %v2018_v4  ;;  %v2004_v16 = vsel %vm13941_vm9, %v7761_v13, %v7801_v5  ;;  %v2013_v50 = vsel %vm13940_vm10, 0.0, %v2003_v38  ;;  %v8449_v13 = vld [vmem:[#allocation2 + $0x124] ss:$28 sps:$4 sm:$0xff]  }
 0x24e   :  { %8653 = vmatprep.subr.msk.bf16.mxu0 %vm11086_vm2, %v8652_v37  ;;  %8658 = vmatprep.subr.msk.bf16.mxu1 %vm11095_vm0, %v8657_v6  ;;  %v2020_v7 = vsel %vm13940_vm10, 0.0, %v2004_v16  ;;  %v7766_v19 = vunpack.i.h.bf16 %v7764_v55  ;;  %v8662_v35 = vpack.c.bf16 %v10905_v10, %v10731_v60  ;;  %v11164_v0 = vsel %vm13942_vm7, %v7770_v47, %v7771_v40 }
 0x24f   :  { %8053 = vrot.lane.b32.xlu1 %v11003_v3, %s9030_s26  ;;  %2129 = vst [vmem:[#allocation2 + $0x25c] sm:$0xff] %v7038_v57  ;;  %v7035_v54 = vpack.c.bf16 %v2013_v50, %v2013_v50  ;;  %v7039_v2 = vpack.c.bf16 %v2020_v7, %v2020_v7  ;;  %v7765_v39 = vunpack.i.l.bf16 %v7764_v55  ;;  %v14086_v5 = vpack.i.bf16 %v10582_v33, %v10562_v52  ;;  %v8451_v52 = vld [vmem:[#allocation2 + $0x118] ss:$28 sps:$4 sm:$0xff]   ;;  %v8457_v55 = vld [vmem:[#allocation2 + $0xe0] ss:$28 sps:$4 sm:$0xff]  }
 0x250   :  { %8663 = vmatpush1.bf16.msk.msra.mxu0 %vm11106_vm15, %v8662_v35  ;;  %v8667_v60 = vpack.c.bf16 %v10902_v11, %v10868_v15  ;;  %v7780_v10 = vunpack.i.l.bf16 %v11041_v43  ;;  %v7791_v41 = vunpack.i.h.bf16 %v11067_v56  ;;  %v11178_v21 = vsel %vm13942_vm7, %v7766_v19, %v7770_v47  ;;  %v7774_v61 = vpop.permute.xlu1 %7773  ;;  %v11185_v46 = vpop.permute.xlu0 %7818  ;;  %v8452_v56 = vld [vmem:[#allocation2 + $0x120] ss:$28 sps:$4 sm:$0xff]   ;;  %v8459_v50 = vld [vmem:[#allocation2 + $0xac] ss:$28 sps:$4 sm:$0xff]   ;;  %v8461_v35 = vld [vmem:[#allocation2 + $0xb4] ss:$28 sps:$4 sm:$0xff]  }
 0x251   :  { %8098 = vrot.lane.b32.xlu0 %v14086_v5, %s9036_s27  ;;  %2768 = vmatprep.subr.bf16.mxu0 %v8447_v12  ;;  %2126 = vst.msk [vmem:[#allocation2 + $0x248] sm:$0xf] %vm14014_vm4, %v7035_v54  ;;  %2130 = vst.msk [vmem:[#allocation2 + $0x264] sm:$0xf] %vm14014_vm4, %v7039_v2  ;;  %v11183_v33 = vsel %vm13942_vm7, %v7765_v39, %v7766_v19  ;;  %v7776_v15 = vunpack.i.h.bf16 %v7774_v61  ;;  %v7775_v11 = vunpack.i.l.bf16 %v7774_v61  ;;  %v8453_v47 = vld [vmem:[#allocation2 + $0xe4] ss:$28 sps:$4 sm:$0xff]   ;;  %v7781_v7 = vunpack.i.h.bf16 %v11041_v43 }
 0x252   :  { %8668 = vmatpush1.bf16.msk.msra.mxu1 %vm11123_vm13, %v8667_v60  ;;  %v14087_v37 = vpack.i.bf16 %v10723_v25, %v10701_v34  ;;  %v8458_v34 = vld [vmem:[#allocation2 + $0xe8] ss:$28 sps:$4 sm:$0xff]   ;;  %v8465_v60 = vld [vmem:[#allocation2 + $0x74] ss:$28 sps:$4 sm:$0xff]  }
 0x253   :  { %2881 = vmatprep.subr.bf16.mxu1 %v8449_v13  ;;  %8063 = vrot.lane.b32.xlu1 %v11003_v3, %s9032_s14  ;;  %v11190_v51 = vsel %vm13942_vm7, %v7771_v40, %v7775_v11  ;;  %v11193_v4 = vsel %vm13942_vm7, %v7775_v11, %v7776_v15  ;;  %v11198_v38 = vsel %vm13942_vm7, %v7776_v15, %v7780_v10  ;;  %v8455_v3 = vld [vmem:[#allocation2 + $0xec] ss:$28 sps:$4 sm:$0xff]   ;;  %v2155_v15 = vld [vmem:[#allocation2 + $0x70] sm:$0xff]  ;;  %v8475_v43 = vld [vmem:[#allocation2 + $0x4] ss:$28 sps:$4 sm:$0xff]  }
 0x254   :  { %2769 = vmatpush1.bf16.msra.mxu0 %v8451_v52  ;;  %v7784_v6 = vpop.permute.xlu1 %7783  ;;  %v11205_v40 = vsel %vm13942_vm7, %v7790_v48, %v7791_v41  ;;  %v11207_v16 = vpop.permute.xlu0 %7828  ;;  %v8463_v12 = vld [vmem:[#allocation2 + $0xa8] ss:$28 sps:$4 sm:$0xff]   ;;  %v8092_v52 = vpack.i.bf16 %v10914_v9, %v10821_v32  ;;  %v2160_v11 = vld [vmem:[#allocation2 + $0x94] sm:$0xff] }
 0x255   :  { %8108 = vrot.lane.b32.xlu0 %v14087_v37, %s9036_s27  ;;  %2770 = vmatprep.subr.bf16.mxu0 %v8453_v47  ;;  %v7786_v57 = vunpack.i.h.bf16 %v7784_v6  ;;  %v7785_v19 = vunpack.i.l.bf16 %v7784_v6  ;;  %v8469_v32 = vld [vmem:[#allocation2 + $0x3c] ss:$28 sps:$4 sm:$0xff]  }
 0x256   :  { %2882 = vmatpush1.bf16.msra.mxu1 %v8452_v56  ;;  %v8467_v56 = vld [vmem:[#allocation2 + $0x7c] ss:$28 sps:$4 sm:$0xff]  }
 0x257   :  { %2883 = vmatprep.subr.bf16.mxu1 %v8455_v3  ;;  %8073 = vrot.lane.b32.xlu1 %v10842_v63, %s9030_s26  ;;  %v11213_v25 = vsel %vm13942_vm7, %v7786_v57, %v7790_v48  ;;  %v11216_v13 = vsel %vm13942_vm7, %v7781_v7, %v7785_v19  ;;  %v11219_v54 = vsel %vm13942_vm7, %v7785_v19, %v7786_v57  ;;  %v2159_v63 = vld [vmem:[#allocation2 + $0x8c] sm:$0xff] }
 0x258   :  { %2771 = vmatpush1.bf16.msra.mxu0 %v8457_v55  ;;  %v7794_v2 = vpop.permute.xlu1 %7793  ;;  %v11221_v5 = vpop.permute.xlu0 %7838  ;;  %v8464_v48 = vld [vmem:[#allocation2 + $0xb0] ss:$28 sps:$4 sm:$0xff]   ;;  %v6470_v6 = vcombine.low %v2155_v15, %v2159_v63  ;;  %v2156_v55 = vld [vmem:[#allocation2 + $0x78] sm:$0xff] }
 0x259   :  { %2772 = vmatprep.subr.bf16.mxu0 %v8459_v50  ;;  %v7796_v39 = vunpack.i.h.bf16 %v7794_v2  ;;  %v7795_v61 = vunpack.i.l.bf16 %v7794_v2  ;;  %v6472_v9 = vcombine.low %v2156_v55, %v2160_v11  ;;  %v8473_v63 = vld [vmem:[#allocation2 + $0x38] ss:$28 sps:$4 sm:$0xff]   ;;  %v8479_v15 = vld [vmem:[#allocation2] ss:$28 sps:$4 sm:$0xff]   ;;  %v14097_v55 = vmov 0 }
 0x25a   :  { %2884 = vmatpush1.bf16.msra.mxu1 %v8458_v34  ;;  %v8471_v34 = vld [vmem:[#allocation2 + $0x44] ss:$28 sps:$4 sm:$0xff]  }
 0x25b   :  { %2885 = vmatprep.subr.bf16.mxu1 %v8461_v35  ;;  %8083 = vrot.lane.b32.xlu1 %v10849_v29, %s9030_s26  ;;  %v11228_v47 = vsel %vm13942_vm7, %v7791_v41, %v7795_v61  ;;  %v11231_v37 = vsel %vm13942_vm7, %v7795_v61, %v7796_v39  ;;  %v8102_v41 = vpack.i.bf16 %v10655_v58, %v10600_v53  ;;  %vm14096_vm7 = vcmp.eq.s32.totalorder %v9320_v23, 27 }
 0x25c   :  { %2773 = vmatpush1.bf16.msra.mxu0 %v8463_v12  ;;  %v7804_v3 = vpop.permute.xlu1 %7803  ;;  %v11233_v50 = vpop.permute.xlu0 %7848  ;;  %vm8677_vm12 = vmneg %vm14096_vm7  ;;  %vm14101_vm7 = vcmp.eq.s32.totalorder %v9322_v27, 27 }
 0x25d   :  { %2774 = vmatprep.subr.bf16.mxu0 %v8465_v60  ;;  %v7806_v29 = vunpack.i.h.bf16 %v7804_v3  ;;  %v7805_v57 = vunpack.i.l.bf16 %v7804_v3  ;;  %14088 = vst [vmem:[#allocation13_spill] sm:$0xff] %v11233_v50  ;;  %v8673_v3 = vpack.c.bf16 %v11219_v54, %v11178_v21  ;;  %vm11274_vm8 = vmpackc.low %vm8677_vm12, %vm8677_vm12 }
 0x25e   :  { %2886 = vmatpush1.bf16.msra.mxu1 %v8464_v48  ;;  %v8477_v48 = vld [vmem:[#allocation2 + $0xc] ss:$28 sps:$4 sm:$0xff]   ;;  %v14098_v55 = vsel %vm11274_vm8, 4294967295, %v14097_v55 }
 0x25f   :  { %2887 = vmatprep.subr.bf16.mxu1 %v8467_v56  ;;  %8093 = vrot.lane.b32.xlu1 %v8092_v52, %s9032_s14  ;;  %v2005_v7 = vsel %vm13941_vm9, %v7780_v10, %v7805_v57  ;;  %v2006_v19 = vsel %vm13941_vm9, %v7796_v39, %v7806_v29  ;;  %v8474_v10 = vld [vmem:[#allocation2 + $0x40] ss:$28 sps:$4 sm:$0xff]   ;;  %v8480_v56 = vld [vmem:[#allocation2 + $0x8] ss:$28 sps:$4 sm:$0xff]   ;;  %14099 = vst [vmem:[#allocation16_spill] sm:$0xff] %v14098_v55  ;;  %v2215_v57 = vld [vmem:[#allocation2 + $0x214] sm:$0xff] }
 0x260   :  { %2775 = vmatpush1.bf16.msra.mxu0 %v6470_v6  ;;  %v2027_v35 = vsel %vm13940_vm10, 0.0, %v2005_v7  ;;  %v2034_v12 = vsel %vm13940_vm10, 0.0, %v2006_v19  ;;  %v11246_v2 = vpop.permute.xlu1 %7813  ;;  %v11248_v58 = vpop.permute.xlu0 %7858  ;;  %v14090_v39 = vld [vmem:[#allocation3_spill] sm:$0xff]  ;;  %vm8670_vm10 = vmneg %vm14092_vm3  ;;  %v8680_v29 = vpack.c.bf16 %v11205_v40, %v11190_v51  ;;  %v14102_v7 = vmov 0 }
 0x261   :  { %2776 = vmatprep.subr.bf16.mxu0 %v8469_v32  ;;  %v7043_v60 = vpack.c.bf16 %v2027_v35, %v2027_v35  ;;  %v7047_v53 = vpack.c.bf16 %v2034_v12, %v2034_v12  ;;  %14089 = vst [vmem:[#allocation14_spill] sm:$0xff] %v11248_v58  ;;  %v8112_v61 = vpack.i.bf16 %v14090_v39, %v10751_v45  ;;  %vm11262_vm9 = vmpackc.low %vm8670_vm10, %vm8670_vm10  ;;  %v14093_v45 = vmov 0  ;;  %v11285_v32 = vld [vmem:[#allocation2 + $0x1dc] sm:$0xff] }
 0x262   :  { %2888 = vmatpush1.bf16.msra.mxu1 %v6472_v9  ;;  %v14094_v45 = vsel %vm11262_vm9, 4294967295, %v14093_v45  ;;  %v7831_v9 = vunpack.i.h.bf16 %v11207_v16  ;;  %vm8683_vm10 = vmneg %vm14101_vm7  ;;  %v8686_v51 = vpack.c.bf16 %v11216_v13, %v11183_v33  ;;  %v11299_v40 = vld [vmem:[#allocation2 + $0x21c] sm:$0xff]  ;;  %v7850_v19 = vunpack.i.l.bf16 %v11233_v50 }
 0x263   :  { %2889 = vmatprep.subr.bf16.mxu1 %v8471_v34  ;;  %8103 = vrot.lane.b32.xlu1 %v8102_v41, %s9030_s26  ;;  %2134 = vst.msk [vmem:[#allocation2 + $0x280] sm:$0xf] %vm14014_vm4, %v7043_v60  ;;  %2138 = vst.msk [vmem:[#allocation2 + $0x29c] sm:$0xf] %vm14014_vm4, %v7047_v53  ;;  %v7830_v41 = vunpack.i.l.bf16 %v11207_v16  ;;  %v8692_v16 = vpack.c.bf16 %v11047_v59, %v11055_v31  ;;  %v2211_v35 = vld [vmem:[#allocation2 + $0x1f8] sm:$0xff]  ;;  %v11307_v12 = vld [vmem:[#allocation2 + $0x1c0] sm:$0xff]  ;;  %v8698_v13 = vpack.c.bf16 %v11213_v25, %v11164_v0 }
 0x264   :  { %2777 = vmatpush1.bf16.msra.mxu0 %v8473_v63  ;;  %v11255_v52 = vpop.permute.xlu1 %7823  ;;  %v11257_v11 = vpop.permute.xlu0 %7868  ;;  %14095 = vst [vmem:[#allocation15_spill] sm:$0xff] %v14094_v45  ;;  %vm11291_vm12 = vmpackc.low %vm8683_vm10, %vm8683_vm10  ;;  %vm14105_vm3 = vcmp.eq.s32.totalorder %v9316_v26, 27  ;;  %v14106_v33 = vmov 0  ;;  %v2212_v31 = vld [vmem:[#allocation2 + $0x200] sm:$0xff]  ;;  %v6519_v63 = vcombine.low %v2211_v35, %v2215_v57  ;;  %v6512_v60 = vcombine.low %v11307_v12, %v11285_v32  ;;  %v8502_v45 = vld [vmem:[#allocation2 + $0xb8] ss:$28 sps:$4 sm:$0xff]  }
 0x265   :  { %2778 = vmatprep.subr.bf16.mxu0 %v8475_v43  ;;  %14091 = vst [vmem:[#allocation3_spill] sm:$0xff] %v11257_v11  ;;  %v14103_v7 = vsel %vm11291_vm12, 4294967295, %v14102_v7  ;;  %v7826_v34 = vunpack.i.h.bf16 %v11255_v52  ;;  %vm8695_vm7 = vmneg %vm14105_vm3  ;;  %v8704_v43 = vpack.c.bf16 %v11137_v44, %v11064_v62  ;;  %v6521_v39 = vcombine.low %v2212_v31, %v11299_v40  ;;  %v8600_v55 = vld [vmem:[%s13920_s0 + $0x260] sm:$0xff] }
 0x266   :  { %2890 = vmatpush1.bf16.msra.mxu1 %v8474_v10  ;;  %14104 = vst [vmem:[#allocation18_spill] sm:$0xff] %v14103_v7  ;;  %vm11311_vm10 = vmpackc.low %vm8695_vm7, %vm8695_vm7  ;;  %v8481_v10 = vld [vmem:[#allocation2 + $0x1fc] ss:$28 sps:$4 sm:$0xff]   ;;  %v13951_v44 = vunpack.i.h.bf16 %v11233_v50  ;;  %v8715_v40 = vpack.c.bf16 %v11134_v14, %v11061_v30  ;;  %vm14113_vm3 = vcmp.eq.s32.totalorder %v9295_v17, 0  ;;  %vm14117_vm7 = vcmp.eq.s32.totalorder %v9311_v24, 0 }
 0x267   :  { %2891 = vmatprep.subr.bf16.mxu1 %v8477_v48  ;;  %8113 = vrot.lane.b32.xlu1 %v8112_v61, %s9030_s26  ;;  %v14107_v33 = vsel %vm11311_vm10, 4294967295, %v14106_v33  ;;  %v4415_v61 = vsel %vm13989_vm1, %v7830_v41, %v7831_v9  ;;  %v7841_v48 = vunpack.i.h.bf16 %v11221_v5  ;;  %v4547_v57 = vsel %vm13988_vm11, %v7826_v34, %v7850_v19  ;;  %v8510_v50 = vld [vmem:[#allocation2 + $0x48] ss:$28 sps:$4 sm:$0xff]  }
 0x268   :  { %2779 = vmatpush1.bf16.msra.mxu0 %v8479_v15  ;;  %v11270_v6 = vpop.permute.xlu1 %7833  ;;  %v11283_v54 = vpop.permute.xlu0 %7878  ;;  %14108 = vst [vmem:[#allocation19_spill] sm:$0xff] %v14107_v33  ;;  %v7840_v15 = vunpack.i.l.bf16 %v11221_v5 }
 0x269   :  { %8674 = vmatprep.subr.msk.bf16.mxu0 %vm11262_vm9, %v8673_v3  ;;  %v7835_v21 = vunpack.i.l.bf16 %v11270_v6  ;;  %14100 = vst [vmem:[#allocation17_spill] sm:$0xff] %v11283_v54  ;;  %v14110_v3 = vld [vmem:[#allocation8_spill] sm:$0xff]  ;;  %v13947_v41 = vunpack.i.l.bf16 %v11283_v54 }
 0x26a   :  { %2892 = vmatpush1.bf16.msra.mxu1 %v8480_v56  ;;  %v7836_v56 = vunpack.i.h.bf16 %v11270_v6  ;;  %v8710_v62 = vpack.c.bf16 %v11074_v20, %v14110_v3  ;;  %v4422_v30 = vsel %vm13989_vm1, %v7840_v15, %v7841_v48  ;;  %v2208_v3 = vld [vmem:[#allocation2 + $0x1e4] sm:$0xff]  ;;  %v14121_v6 = vld [vmem:[#allocation6_spill] sm:$0xff] }
 0x26b   :  { %8681 = vmatprep.subr.msk.bf16.mxu1 %vm11274_vm8, %v8680_v29  ;;  %v4416_v53 = vsel %vm13989_vm1, %v7831_v9, %v7835_v21  ;;  %v13952_v29 = vunpack.i.l.bf16 %v11248_v58  ;;  %v8483_v9 = vld [vmem:[#allocation2 + $0x204] ss:$28 sps:$4 sm:$0xff]  }
 0x26c   :  { %8687 = vmatpush2.bf16.msk.msra.mxu0 %vm11291_vm12, %v8686_v51  ;;  %v7844_v59 = vpop.permute.xlu1 %7843  ;;  %v11328_v25 = vpop.permute.xlu0 %7888  ;;  %v4606_v35 = vsel %vm13945_vm5, %v4416_v53, %v4547_v57  ;;  %v4421_v14 = vsel %vm13989_vm1, %v7836_v56, %v7840_v15  ;;  %v7870_v53 = vunpack.i.l.bf16 %v11257_v11  ;;  %v8487_v15 = vld [vmem:[#allocation2 + $0x1cc] ss:$28 sps:$4 sm:$0xff]  }
 0x26d   :  { %8693 = vmatprep.subr.msk.bf16.mxu0 %vm11262_vm9, %v8692_v16  ;;  %v7845_v0 = vunpack.i.l.bf16 %v7844_v59  ;;  %14109 = vst [vmem:[#allocation20_spill] sm:$0xff] %v11328_v25  ;;  %v7846_v51 = vunpack.i.h.bf16 %v7844_v59 }
 0x26e   :  { %8699 = vmatpush2.bf16.msk.msra.mxu1 %vm11311_vm10, %v8698_v13 }
 0x26f   :  { %8705 = vmatprep.subr.msk.bf16.mxu1 %vm11274_vm8, %v8704_v43  ;;  %v4589_v32 = vsel %vm13988_vm11, %v7845_v0, %v7826_v34  ;;  %v8485_v43 = vld [vmem:[#allocation2 + $0x1c4] ss:$28 sps:$4 sm:$0xff]  }
 0x270   :  { %8711 = vmatpush2.bf16.msk.msra.mxu0 %vm11291_vm12, %v8710_v62  ;;  %v11348_v20 = vsel %vm13946_vm6, %v4415_v61, %v4589_v32  ;;  %v7854_v16 = vpop.permute.xlu1 %7853  ;;  %v11356_v13 = vpop.permute.xlu0 %7898 }
 0x271   :  { %2792 = vmatprep.subr.bf16.mxu0 %v8481_v10  ;;  %14111 = vst [vmem:[#allocation8_spill] sm:$0xff] %v11348_v20  ;;  %v7856_v34 = vunpack.i.h.bf16 %v7854_v16  ;;  %v7855_v12 = vunpack.i.l.bf16 %v7854_v16  ;;  %v11359_v59 = vpack.i.bf16 %v4606_v35, %v11348_v20  ;;  %v7120_v31 = vpack.c.bf16 %v4606_v35, %v11348_v20  ;;  %v8498_v20 = vld [vmem:[#allocation2 + $0xf0] ss:$28 sps:$4 sm:$0xff]  }
 0x272   :  { %8716 = vmatpush2.bf16.msk.msra.mxu1 %vm11311_vm10, %v8715_v40  ;;  %v2204_v40 = vld [vmem:[#allocation2 + $0x1c8] sm:$0xff] }
 0x273   :  { %2905 = vmatprep.subr.bf16.mxu1 %v8483_v9  ;;  %14112 = vst [vmem:[#allocation21_spill] sm:$0xff] %v11359_v59  ;;  %v4552_v0 = vsel %vm13988_vm11, %v13951_v44, %v7855_v12  ;;  %v4553_v10 = vsel %vm13988_vm11, %v7856_v34, %v13952_v29  ;;  %v4590_v61 = vsel %vm13988_vm11, %v7846_v51, %v7856_v34  ;;  %4999 = vst [vmem:[#allocation2 + $0x498] sm:$0xff] %v7120_v31  ;;  %v2189_v31 = vld [vmem:[#allocation2 + $0x160] sm:$0xff]  ;;  %v8496_v29 = vld [vmem:[#allocation2 + $0x12c] ss:$28 sps:$4 sm:$0xff]  }
 0x274   :  { %2793 = vmatpush2.bf16.msra.mxu0 %v6519_v63  ;;  %8123 = vrot.lane.b32.xlu1 %v11359_v59, %s9030_s26  ;;  %v13949_v63 = vunpack.i.h.bf16 %v11283_v54  ;;  %v11381_v56 = vsel %vm14113_vm3, %v13947_v41, %v4552_v0  ;;  %v11385_v62 = vsel %vm13946_vm6, %v4421_v14, %v4590_v61  ;;  %v11387_v57 = vpop.permute.xlu1 %7863  ;;  %v11391_v32 = vsel %vm13945_vm5, %v4422_v30, %v4553_v10  ;;  %v11398_v34 = vpop.permute.xlu0 %7908  ;;  %v11410_v30 = vld [vmem:[%s13921_s1 + $0x14] ss:$8 sps:$4 sm:$0xff]   ;;  %vm8718_vm3 = vmneg %vm14117_vm7  ;;  %v11512_v44 = vld [vmem:[%s13921_s1 + $0x24] ss:$8 sps:$4 sm:$0xff]  }
 0x275   :  { %2794 = vmatprep.subr.bf16.mxu0 %v8485_v43  ;;  %14114 = vst [vmem:[#allocation22_spill] sm:$0xff] %v11381_v56  ;;  %14115 = vst [vmem:[#allocation23_spill] sm:$0xff] %v11385_v62  ;;  %v13950_v9 = vunpack.i.h.bf16 %v11248_v58  ;;  %v7123_v51 = vpack.c.bf16 %v11381_v56, %v11381_v56  ;;  %v7866_v16 = vunpack.i.h.bf16 %v11387_v57  ;;  %v7865_v35 = vunpack.i.l.bf16 %v11387_v57  ;;  %v8492_v41 = vld [vmem:[#allocation2 + $0x1a0] ss:$28 sps:$4 sm:$0xff]  }
 0x276   :  { %2906 = vmatpush2.bf16.msra.mxu1 %v6521_v39  ;;  %14116 = vst [vmem:[#allocation24_spill] sm:$0xff] %v11391_v32  ;;  %v11403_v39 = vld [vmem:[%s13921_s1] ss:$8 sps:$4 sm:$0xff]   ;;  %v6514_v12 = vcombine.low %v2204_v40, %v2208_v3  ;;  %v7124_v43 = vpack.c.bf16 %v11391_v32, %v11385_v62  ;;  %v4417_v0 = vsel %vm13989_vm1, %v7835_v21, %v7870_v53  ;;  %vm11428_vm5 = vmpackc.low %vm8718_vm3, %vm8718_vm3  ;;  %v14118_v61 = vmov 0 }
 0x277   :  { %2907 = vmatprep.subr.bf16.mxu1 %v8487_v15  ;;  %5002 = vst.msk [vmem:[#allocation2 + $0x4b0] sm:$0xf] %vm14014_vm4, %v7123_v51  ;;  %v4558_v10 = vsel %vm13988_vm11, %v13950_v9, %v7865_v35  ;;  %v14119_v61 = vsel %vm11428_vm5, 4294967295, %v14118_v61  ;;  %v8721_v21 = vpack.c.bf16 %v11038_v42, %v14121_v6  ;;  %vm14122_vm6 = vcmp.eq.s32.totalorder %v9295_v17, 0  ;;  %v14128_v35 = vld [vmem:[#allocation4_spill] sm:$0xff]  ;;  %v14133_v6 = vld [vmem:[#allocation5_spill] sm:$0xff] }
 0x278   :  { %2795 = vmatpush2.bf16.msra.mxu0 %v6512_v60  ;;  %v4548_v60 = vsel %vm13988_vm11, %v7850_v19, %v7866_v16  ;;  %14120 = vst [vmem:[#allocation25_spill] sm:$0xff] %v14119_v61  ;;  %v11440_v19 = vsel %vm14122_vm6, %v13949_v63, %v4558_v10  ;;  %v11442_v3 = vpop.permute.xlu1 %7873  ;;  %5003 = vst [vmem:[#allocation2 + $0x4b4] sm:$0xff] %v7124_v43  ;;  %v11450_v57 = vpop.permute.xlu0 %7918  ;;  %v14126_v51 = vmov 0   ;;  %v13957_v43 = vunpack.i.h.bf16 %v11257_v11 }
 0x279   :  { %8722 = vmatprep.subr.msk.bf16.mxu0 %vm11428_vm5, %v8721_v21  ;;  %14123 = vst [vmem:[#allocation6_spill] sm:$0xff] %v11440_v19  ;;  %14124 = vst [vmem:[#allocation26_spill] sm:$0xff] %v11442_v3  ;;  %v11446_v15 = vsel %vm13948_vm14, %v4417_v0, %v4548_v60  ;;  %v7127_v42 = vpack.c.bf16 %v11440_v19, %v11440_v19  ;;  %v11456_v40 = vpack.i.bf16 %v11440_v19, %v11381_v56  ;;  %v14130_v10 = vmov 0  ;;  %v14134_v21 = vld [vmem:[#allocation7_spill] sm:$0xff] }
 0x27a   :  { %2908 = vmatpush2.bf16.msra.mxu1 %v6514_v12  ;;  %14125 = vst [vmem:[#allocation27_spill] sm:$0xff] %v11446_v15  ;;  %v6503_v12 = vcombine.high %v2189_v31, %v14128_v35  ;;  %v13958_v0 = vunpack.i.h.bf16 %v11442_v3  ;;  %v7875_v60 = vunpack.i.l.bf16 %v11442_v3  ;;  %vm14129_vm6 = vcmp.eq.s32.totalorder %v9307_v22, 0 }
 0x27b   :  { %3103 = vmatprep.subr.bf16.mxu1 %v14126_v51  ;;  %2797 = vmatmul.mubr.bf16.vlgmr.msra.gmra.mxu0 %v11403_v39  ;;  %14127 = vst [vmem:[#allocation28_spill] sm:$0xff] %v11456_v40  ;;  %vm8724_vm7 = vmneg %vm14129_vm6  ;;  %v8727_v14 = vpack.c.bf16 %v14134_v21, %v14133_v6  ;;  %vm14135_vm14 = vcmask 523264   ;;  %v6502_v6 = vcombine.low %v2189_v31, %v14128_v35  ;;  %vm14140_vm6 = vcmp.eq.s32.totalorder %v9316_v26, 0 }
 0x27c   :  { %vm11464_vm3 = vmpackc.low %vm8724_vm7, %vm8724_vm7  ;;  %6541 = vmatprep.mubr.msk.bf16.mxu0 %vm14135_vm14, %v11410_v30  ;;  %5006 = vst.msk [vmem:[#allocation2 + $0x4cc] sm:$0xf] %vm14014_vm4, %v7127_v42  ;;  %8118 = vrot.lane.b32.xlu0 %v11456_v40, %s9029_s25  ;;  %v11481_v21 = vpop.permute.xlu1 %7883  ;;  %v11486_v63 = vpop.permute.xlu0 %7928  ;;  %v8127_v42 = vpack.i.bf16 %v11391_v32, %v11385_v62  ;;  %v4418_v31 = vsel %vm13989_vm1, %v7870_v53, %v13957_v43  ;;  %v14138_v53 = vunpack.i.l.bf16 %v11248_v58  ;;  %vm14142_vm7 = vcmp.eq.s32.totalorder %v9320_v23, 0 }
 0x27d   :  { %v14131_v10 = vsel %vm11464_vm3, 4294967295, %v14130_v10  ;;  %8728 = vmatpush1.bf16.msk.msra.mxu0 %vm11464_vm3, %v8727_v14  ;;  %2910 = vmatmul.mubr.bf16.vlgmr.msra.gmra.mxu1 %v11403_v39  ;;  %14136 = vst [vmem:[#allocation5_spill] sm:$0xff] %v11481_v21  ;;  %v7886_v9 = vunpack.i.h.bf16 %v11481_v21  ;;  %v4423_v35 = vsel %vm13989_vm1, %v7841_v48, %v7875_v60  ;;  %v8493_v14 = vld [vmem:[#allocation2 + $0x168] ss:$28 sps:$4 sm:$0xff]   ;;  %v14139_v48 = vunpack.i.l.bf16 %v11328_v25 }
 0x27e   :  { %14132 = vst [vmem:[#allocation4_spill] sm:$0xff] %v14131_v10  ;;  %3104 = vmatpush1.bf16.msra.mxu1 %v8492_v41  ;;  %2992 = vmatprep.subr.bf16.mxu0 %v6503_v12  ;;  %v11494_v41 = vld [vmem:[%s13921_s1 + $0x10] ss:$8 sps:$4 sm:$0xff]   ;;  %v4424_v12 = vsel %vm13989_vm1, %v7875_v60, %v13958_v0  ;;  %v14137_v10 = vunpack.i.l.bf16 %v11481_v21  ;;  %v8494_v60 = vld [vmem:[#allocation2 + $0x128] ss:$28 sps:$4 sm:$0xff]   ;;  %v7900_v40 = vunpack.i.l.bf16 %v11356_v13  ;;  %v14161_v54 = vunpack.i.h.bf16 %v11450_v57 }
 0x27f   :  { %3105 = vmatprep.subr.bf16.mxu1 %v14126_v51  ;;  %6549 = vmatprep.mubr.msk.bf16.mxu1 %vm14135_vm14, %v11410_v30  ;;  %v4554_v5 = vsel %vm13988_vm11, %v14138_v53, %v7886_v9  ;;  %v4555_v43 = vsel %vm13988_vm11, %v7886_v9, %v14139_v48  ;;  %vm14144_vm14 = vmmov %vm14142_vm7  ;;  %v7910_v48 = vunpack.i.l.bf16 %v11398_v34  ;;  %v11579_v9 = vld [vmem:[%s13921_s1 + $0x20] ss:$8 sps:$4 sm:$0xff]  }
 0x280   :  { %v4549_v61 = vsel %vm13988_vm11, %v7866_v16, %v14137_v10  ;;  %8128 = vrot.lane.b32.xlu0 %v8127_v42, %s9030_s26  ;;  %v11528_v0 = vsel %vm14140_vm6, %v4423_v35, %v4554_v5  ;;  %v11532_v16 = vsel %vm14142_vm7, %v4424_v12, %v4555_v43  ;;  %v8500_v43 = vld [vmem:[#allocation2 + $0xf4] ss:$28 sps:$4 sm:$0xff]   ;;  %vm14146_vm6 = vcmask 523264  }
 0x281   :  { %2993 = vmatpush1.bf16.msra.mxu0 %v6502_v6  ;;  %v11524_v6 = vpop.permute.xlu1 %7893  ;;  %14141 = vst [vmem:[#allocation7_spill] sm:$0xff] %v11528_v0  ;;  %14143 = vst [vmem:[#allocation29_spill] sm:$0xff] %v11532_v16  ;;  %v11536_v10 = vsel %vm14144_vm14, %v4418_v31, %v4549_v61  ;;  %v8137_v42 = vpack.i.bf16 %v11532_v16, %v11528_v0  ;;  %v7125_v35 = vpack.c.bf16 %v11532_v16, %v11528_v0  ;;  %v8497_v31 = vld [vmem:[#allocation2 + $0x130] ss:$28 sps:$4 sm:$0xff]  }
 0x282   :  { %2994 = vmatprep.subr.bf16.mxu0 %v8496_v29  ;;  %3106 = vmatpush1.bf16.msra.mxu1 %v8493_v14  ;;  %14145 = vst [vmem:[#allocation30_spill] sm:$0xff] %v11536_v10  ;;  %v7895_v29 = vunpack.i.l.bf16 %v11524_v6  ;;  %v11540_v14 = vpop.permute.xlu0 %7938  ;;  %v7891_v61 = vunpack.i.h.bf16 %v11328_v25  ;;  %v8132_v12 = vpack.i.bf16 %v11536_v10, %v11446_v15  ;;  %v7121_v53 = vpack.c.bf16 %v11536_v10, %v11446_v15  ;;  %vm14149_vm7 = vmmov %vm14146_vm6 }
 0x283   :  { %3107 = vmatprep.subr.bf16.mxu1 %v14126_v51  ;;  %2807 = vmatmul.mubr.bf16.gmra.mxu0 %v11494_v41  ;;  %v7911_v5 = vunpack.i.h.bf16 %v11398_v34  ;;  %5004 = vst [vmem:[#allocation2 + $0x4bc] sm:$0xff] %v7125_v35  ;;  %v8601_v34 = vld [vmem:[%s13920_s0 + $0x298] sm:$0xff]  ;;  %vm14151_vm14 = vcmp.eq.s32.totalorder %v9322_v27, 0 }
 0x284   :  { %6542 = vmatprep.mubr.msk.bf16.mxu0 %vm14146_vm6, %v11512_v44  ;;  %8138 = vrot.lane.b32.xlu0 %v8137_v42, %s9030_s26  ;;  %5000 = vst [vmem:[#allocation2 + $0x4a0] sm:$0xff] %v7121_v53  ;;  %v8142_v35 = vpack.i.bf16 %v8601_v34, %v8600_v55  ;;  %v7901_v42 = vunpack.i.h.bf16 %v11356_v13  ;;  %v8501_v55 = vld [vmem:[#allocation2 + $0xf8] ss:$28 sps:$4 sm:$0xff]   ;;  %v4587_v34 = vsel %vm13988_vm11, %v7910_v48, %v7891_v61  ;;  %vm14153_vm6 = vmmov %vm14151_vm14  ;;  %v14156_v13 = vunpack.i.h.bf16 %v11524_v6 }
 0x285   :  { %2995 = vmatpush1.bf16.msra.mxu0 %v8494_v60  ;;  %8133 = vrot.lane.b32.xlu1 %v8132_v12, %s9030_s26  ;;  %v7904_v33 = vpop.permute.xlu1 %7903  ;;  %v8504_v12 = vld [vmem:[#allocation2 + $0xbc] ss:$28 sps:$4 sm:$0xff]  }
 0x286   :  { %2996 = vmatprep.subr.bf16.mxu0 %v8500_v43  ;;  %3108 = vmatpush1.bf16.msra.mxu1 %v8497_v31  ;;  %v14147_v43 = vunpack.i.h.bf16 %v11524_v6  ;;  %v7905_v53 = vunpack.i.l.bf16 %v7904_v33  ;;  %v11572_v60 = vpop.permute.xlu0 %7948 }
 0x287   :  { %14148 = vst [vmem:[#allocation31_spill] sm:$0xff] %v11572_v60  ;;  %3109 = vmatprep.subr.bf16.mxu1 %v14126_v51  ;;  %2920 = vmatmul.mubr.bf16.gmra.mxu1 %v11494_v41 }
 0x288   :  { %v4403_v31 = vsel %vm13989_vm1, %v7895_v29, %v14147_v43  ;;  %6550 = vmatprep.mubr.msk.bf16.mxu1 %vm14149_vm7, %v11512_v44  ;;  %v11586_v29 = vld [vmem:[%s13921_s1 + $0x34] ss:$8 sps:$4 sm:$0xff]   ;;  %v14150_v43 = vunpack.i.h.bf16 %v11450_v57  ;;  %v4409_v56 = vsel %vm13989_vm1, %v7901_v42, %v7905_v53 }
 0x289   :  { %2997 = vmatpush1.bf16.msra.mxu0 %v8498_v20  ;;  %v11595_v20 = vsel %vm14151_vm14, %v4403_v31, %v4587_v34  ;;  %8143 = vrot.lane.b32.xlu1 %v8142_v35, %s9036_s27  ;;  %v11602_v48 = vpop.permute.xlu1 %7913  ;;  %v8508_v31 = vld [vmem:[#allocation2 + $0x84] ss:$28 sps:$4 sm:$0xff]   ;;  %vm14158_vm14 = vcmp.eq.s32.totalorder %v9299_v18, 0 }
 0x28a   :  { %v4588_v19 = vsel %vm13988_vm11, %v7911_v5, %v14150_v43  ;;  %2998 = vmatprep.subr.bf16.mxu0 %v8504_v12  ;;  %14152 = vst [vmem:[#allocation32_spill] sm:$0xff] %v11595_v20  ;;  %3110 = vmatpush1.bf16.msra.mxu1 %v8501_v55  ;;  %14155 = vst [vmem:[#allocation34_spill] sm:$0xff] %v11602_v48  ;;  %v7915_v5 = vunpack.i.l.bf16 %v11602_v48  ;;  %v11606_v42 = vpop.permute.xlu0 %7958  ;;  %v8505_v35 = vld [vmem:[#allocation2 + $0xc0] ss:$28 sps:$4 sm:$0xff]   ;;  %v4404_v12 = vsel %vm13989_vm1, %v14156_v13, %v7900_v40 }
 0x28b   :  { %v11599_v7 = vsel %vm14153_vm6, %v4409_v56, %v4588_v19  ;;  %3111 = vmatprep.subr.bf16.mxu1 %v14126_v51  ;;  %2817 = vmatmul.mubr.bf16.gmra.mxu0 %v11579_v9  ;;  %v7906_v19 = vunpack.i.h.bf16 %v7904_v33  ;;  %v13982_v55 = vunpack.i.l.bf16 %v11540_v14  ;;  %vm14160_vm6 = vmmov %vm14149_vm7 }
 0x28c   :  { %14154 = vst [vmem:[#allocation33_spill] sm:$0xff] %v11599_v7  ;;  %6543 = vmatprep.mubr.msk.bf16.mxu0 %vm14149_vm7, %v11586_v29  ;;  %v4535_v43 = vsel %vm13988_vm11, %v7891_v61, %v7915_v5  ;;  %v8512_v61 = vld [vmem:[#allocation2 + $0x4c] ss:$28 sps:$4 sm:$0xff]   ;;  %vm14164_vm7 = vmmov %vm14158_vm14 }
 0x28d   :  { %2999 = vmatpush1.bf16.msra.mxu0 %v8502_v45  ;;  %v11620_v56 = vpop.permute.xlu1 %7923  ;;  %v4592_v45 = vsel %vm14158_vm14, %v4404_v12, %v4535_v43  ;;  %v4410_v12 = vsel %vm13989_vm1, %v7905_v53, %v7906_v19  ;;  %v8509_v43 = vld [vmem:[#allocation2 + $0x88] ss:$28 sps:$4 sm:$0xff]   ;;  %v4411_v34 = vsel %vm13989_vm1, %v7906_v19, %v13982_v55  ;;  %vm14166_vm14 = vcmp.eq.s32.totalorder %v9316_v26, 0 }
 0x28e   :  { %3000 = vmatprep.subr.bf16.mxu0 %v8508_v31  ;;  %3112 = vmatpush1.bf16.msra.mxu1 %v8505_v35  ;;  %14157 = vst [vmem:[#allocation35_spill] sm:$0xff] %v11620_v56  ;;  %v7925_v33 = vunpack.i.l.bf16 %v11620_v56  ;;  %v11625_v1 = vpop.permute.xlu0 %7968  ;;  %v11629_v6 = vpack.i.bf16 %v4592_v45, %v11595_v20  ;;  %v7112_v13 = vpack.c.bf16 %v4592_v45, %v11595_v20  ;;  %v11636_v31 = vld [vmem:[%s13921_s1 + $0x30] ss:$8 sps:$4 sm:$0xff]   ;;  %v7931_v35 = vunpack.i.h.bf16 %v11486_v63  ;;  %v11645_v45 = vld [vmem:[%s13921_s1 + $0x44] ss:$8 sps:$4 sm:$0xff]  }
 0x28f   :  { %3113 = vmatprep.subr.bf16.mxu1 %v14126_v51  ;;  %2930 = vmatmul.mubr.bf16.gmra.mxu1 %v11579_v9  ;;  %v13987_v20 = vunpack.i.l.bf16 %v11572_v60 }
 0x290   :  { %14159 = vst [vmem:[#allocation36_spill] sm:$0xff] %v11629_v6  ;;  %6551 = vmatprep.mubr.msk.bf16.mxu1 %vm14160_vm6, %v11586_v29  ;;  %v4541_v53 = vsel %vm13988_vm11, %v14161_v54, %v7925_v33  ;;  %4991 = vst [vmem:[#allocation2 + $0x460] sm:$0xff] %v7112_v13  ;;  %8153 = vrot.lane.b32.xlu1 %v11629_v6, %s9030_s26  ;;  %v4536_v55 = vsel %vm13988_vm11, %v7915_v5, %v7931_v35  ;;  %v7930_v6 = vunpack.i.l.bf16 %v11486_v63 }
 0x291   :  { %3001 = vmatpush1.bf16.msra.mxu0 %v8506_v49  ;;  %v14162_v49 = vunpack.i.h.bf16 %v11572_v60  ;;  %v11659_v28 = vpop.permute.xlu1 %7933  ;;  %v11663_v19 = vsel %vm14164_vm7, %v4410_v12, %v4541_v53  ;;  %vm14170_vm7 = vmmov %vm14166_vm14 }
 0x292   :  { %3002 = vmatprep.subr.bf16.mxu0 %v8512_v61  ;;  %3114 = vmatpush1.bf16.msra.mxu1 %v8509_v43  ;;  %14163 = vst [vmem:[#allocation37_spill] sm:$0xff] %v11659_v28  ;;  %14165 = vst [vmem:[#allocation38_spill] sm:$0xff] %v11663_v19  ;;  %v11671_v13 = vpop.permute.xlu0 %7978  ;;  %v8516_v61 = vld [vmem:[#allocation2 + $0x14] ss:$28 sps:$4 sm:$0xff]   ;;  %v7116_v43 = vpack.c.bf16 %v11663_v19, %v11599_v7  ;;  %v14168_v12 = vunpack.i.h.bf16 %v11659_v28 }
 0x293   :  { %v4542_v58 = vsel %vm13988_vm11, %v7925_v33, %v14162_v49  ;;  %v7935_v33 = vunpack.i.l.bf16 %v11659_v28  ;;  %3115 = vmatprep.subr.bf16.mxu1 %v14126_v51  ;;  %2827 = vmatmul.mubr.bf16.gmra.mxu0 %v11636_v31  ;;  %v4537_v49 = vsel %vm13988_vm11, %v7931_v35, %v13987_v20 }
 0x294   :  { %v11667_v54 = vsel %vm14166_vm14, %v4411_v34, %v4542_v58  ;;  %v8513_v58 = vld [vmem:[#allocation2 + $0x50] ss:$28 sps:$4 sm:$0xff]   ;;  %6544 = vmatprep.mubr.msk.bf16.mxu0 %vm14160_vm6, %v11645_v45  ;;  %4995 = vst [vmem:[#allocation2 + $0x47c] sm:$0xff] %v7116_v43  ;;  %vm14172_vm14 = vcmp.eq.s32.totalorder %v9320_v23, 0  ;;  %v14175_v43 = vunpack.i.h.bf16 %v11620_v56 }
 0x295   :  { %14167 = vst [vmem:[#allocation39_spill] sm:$0xff] %v11667_v54  ;;  %3003 = vmatpush1.bf16.msra.mxu0 %v8510_v50  ;;  %v4405_v8 = vsel %vm13989_vm1, %v7900_v40, %v7935_v33  ;;  %v4406_v53 = vsel %vm13989_vm1, %v7935_v33, %v14168_v12  ;;  %v7920_v50 = vunpack.i.l.bf16 %v11450_v57  ;;  %v8514_v34 = vld [vmem:[#allocation2 + $0x10] ss:$28 sps:$4 sm:$0xff]   ;;  %v11693_v16 = vpop.permute.xlu1 %7943 }
 0x296   :  { %3004 = vmatprep.subr.bf16.mxu0 %v8516_v61  ;;  %3116 = vmatpush1.bf16.msra.mxu1 %v8513_v58  ;;  %14169 = vst [vmem:[#allocation40_spill] sm:$0xff] %v11693_v16  ;;  %v11697_v20 = vsel %vm14170_vm7, %v4405_v8, %v4536_v55  ;;  %v11701_v40 = vsel %vm14172_vm14, %v4406_v53, %v4537_v49  ;;  %v13990_v35 = vunpack.i.l.bf16 %v11693_v16  ;;  %v11705_v33 = vpop.permute.xlu0 %7988  ;;  %v11716_v8 = vld [vmem:[%s13921_s1 + $0x40] ss:$8 sps:$4 sm:$0xff]   ;;  %v14174_v55 = vunpack.i.h.bf16 %v11602_v48  ;;  %v8517_v53 = vld [vmem:[#allocation2 + $0x18] ss:$28 sps:$4 sm:$0xff]  }
 0x297   :  { %14171 = vst [vmem:[#allocation41_spill] sm:$0xff] %v11697_v20  ;;  %14173 = vst [vmem:[#allocation42_spill] sm:$0xff] %v11701_v40  ;;  %3117 = vmatprep.subr.bf16.mxu1 %v14126_v51  ;;  %v8162_v63 = vpack.i.bf16 %v11701_v40, %v11697_v20  ;;  %v7113_v57 = vpack.c.bf16 %v11701_v40, %v11697_v20  ;;  %2940 = vmatmul.mubr.bf16.gmra.mxu1 %v11636_v31  ;;  %v13997_v49 = vunpack.i.h.bf16 %v11540_v14  ;;  %v8518_v58 = vld [vmem:[#allocation2 + $0x280] ss:$28 sps:$4 sm:$0xff]   ;;  %v8526_v48 = vld [vmem:[#allocation2 + $0x210] ss:$28 sps:$4 sm:$0xff]  }
 0x298   :  { %v4540_v61 = vsel %vm13988_vm11, %v14174_v55, %v7920_v50  ;;  %v4546_v12 = vsel %vm13988_vm11, %v14175_v43, %v7930_v6  ;;  %6552 = vmatprep.mubr.msk.bf16.mxu1 %vm14160_vm6, %v11645_v45  ;;  %vm14176_vm7 = vcmp.eq.s32.totalorder %v9295_v17, 0  ;;  %v14178_v50 = vunpack.i.h.bf16 %v11693_v16  ;;  %v8523_v16 = vld [vmem:[#allocation2 + $0x208] ss:$28 sps:$4 sm:$0xff]  }
 0x299   :  { %3005 = vmatpush1.bf16.msra.mxu0 %v8514_v34  ;;  %v11733_v5 = vsel %vm14176_vm7, %v13990_v35, %v4540_v61  ;;  %vm14179_vm14 = vmmov %vm14176_vm7  ;;  %4992 = vst [vmem:[#allocation2 + $0x468] sm:$0xff] %v7113_v57  ;;  %8163 = vrot.lane.b32.xlu1 %v8162_v63, %s9030_s26  ;;  %vm14181_vm6 = vcmp.eq.s32.totalorder %v9311_v24, 27  ;;  %v14182_v34 = vmov 0  ;;  %v8733_v55 = vpack.c.bf16 %v11231_v37, %v11198_v38  ;;  %v8602_v61 = vld [vmem:[%s13920_s0 + $0x1f0] sm:$0xff]  ;;  %v8603_v63 = vld [vmem:[%s13920_s0 + $0x228] sm:$0xff]  ;;  %v11762_v38 = vpop.permute.xlu1 %7953 }
 0x29a   :  { %14177 = vst [vmem:[#allocation43_spill] sm:$0xff] %v11733_v5  ;;  %v11739_v6 = vsel %vm14179_vm14, %v14178_v50, %v4546_v12  ;;  %vm8730_vm11 = vmneg %vm14181_vm6  ;;  %v8172_v57 = vpack.i.bf16 %v8603_v63, %v8602_v61  ;;  %v7115_v43 = vpack.c.bf16 %v11733_v5, %v11733_v5  ;;  %3118 = vmatpush1.bf16.msra.mxu1 %v8517_v53  ;;  %v11771_v50 = vld [vmem:[%s13921_s1 + $0x54] ss:$8 sps:$4 sm:$0xff]   ;;  %v11774_v61 = vpop.permute.xlu0 %7998  ;;  %v8521_v63 = vld [vmem:[#allocation2 + $0x244] ss:$28 sps:$4 sm:$0xff]   ;;  %v14188_v53 = vmov 0 }
 0x29b   :  { %14180 = vst [vmem:[#allocation44_spill] sm:$0xff] %v11739_v6  ;;  %vm11744_vm1 = vmpackc.low %vm8730_vm11, %vm8730_vm11  ;;  %v7119_v12 = vpack.c.bf16 %v11739_v6, %v11739_v6  ;;  %v11766_v37 = vpack.i.bf16 %v11739_v6, %v11733_v5  ;;  %3127 = vmatprep.subr.bf16.mxu1 %v14126_v51  ;;  %2837 = vmatmul.mubr.bf16.gmra.mxu0 %v11716_v8  ;;  %vm14187_vm11 = vcmp.eq.s32.totalorder %v9307_v22, 27  ;;  %vm14192_vm6 = vcmask 826368  }
 0x29c   :  { %v14183_v34 = vsel %vm11744_vm1, 4294967295, %v14182_v34  ;;  %8734 = vmatprep.subr.msk.bf16.mxu0 %vm11744_vm1, %v8733_v55  ;;  %14185 = vst [vmem:[#allocation46_spill] sm:$0xff] %v11762_v38  ;;  %v13996_v55 = vunpack.i.l.bf16 %v11762_v38  ;;  %4994 = vst.msk [vmem:[#allocation2 + $0x478] sm:$0xf] %vm14014_vm4, %v7115_v43  ;;  %v8739_v35 = vpack.c.bf16 %v11228_v47, %v11193_v4  ;;  %v14191_v43 = vunpack.i.l.bf16 %v11540_v14  ;;  %v8519_v4 = vld [vmem:[#allocation2 + $0x240] ss:$28 sps:$4 sm:$0xff]  }
 0x29d   :  { %14184 = vst [vmem:[#allocation45_spill] sm:$0xff] %v14183_v34  ;;  %14186 = vst [vmem:[#allocation47_spill] sm:$0xff] %v11766_v37  ;;  %8148 = vrot.lane.b32.xlu0 %v11766_v37, %s9029_s25  ;;  %v14193_v34 = vunpack.i.h.bf16 %v11572_v60  ;;  %8173 = vrot.lane.b32.xlu1 %v8172_v57, %s9036_s27  ;;  %v7964_v47 = vpop.permute.xlu1 %7963  ;;  %v11820_v57 = vld [vmem:[%s13921_s1 + $0x50] ss:$8 sps:$4 sm:$0xff]   ;;  %v7960_v6 = vunpack.i.l.bf16 %v11606_v42  ;;  %v7990_v40 = vunpack.i.l.bf16 %v11705_v33  ;;  %v14203_v32 = vunpack.i.l.bf16 %v11774_v61 }
 0x29e   :  { %4998 = vst.msk [vmem:[#allocation2 + $0x494] sm:$0xf] %vm14014_vm4, %v7119_v12  ;;  %vm8736_vm7 = vmneg %vm14187_vm11  ;;  %v4412_v12 = vsel %vm14192_vm6, %v14191_v43, %v13997_v49  ;;  %vm14194_vm11 = vcmask 7168   ;;  %3128 = vmatpush2.bf16.msra.mxu1 %v8518_v58  ;;  %vm14197_vm6 = vcmask 523264   ;;  %v11811_v43 = vpop.permute.xlu0 %8008  ;;  %v8522_v49 = vld [vmem:[#allocation2 + $0x248] ss:$28 sps:$4 sm:$0xff]  }
 0x29f   :  { %vm11784_vm14 = vmpackc.low %vm8736_vm7, %vm8736_vm7  ;;  %v4543_v5 = vsel %vm14194_vm11, %v14193_v34, %v13996_v55  ;;  %vm14195_vm7 = vcmp.eq.s32.totalorder %v9320_v23, 0  ;;  %6545 = vmatprep.mubr.msk.bf16.mxu0 %vm14197_vm6, %v11771_v50  ;;  %3129 = vmatprep.subr.bf16.mxu1 %v14126_v51  ;;  %v8525_v34 = vld [vmem:[#allocation2 + $0x20c] ss:$28 sps:$4 sm:$0xff]   ;;  %14198 = vst [vmem:[#allocation50_spill] sm:$0xff] %v11820_v57  ;;  %v7965_v55 = vunpack.i.l.bf16 %v7964_v47  ;;  %v8010_v56 = vunpack.i.l.bf16 %v11811_v43 }
 0x2a0   :  { %v14189_v53 = vsel %vm11784_vm14, 4294967295, %v14188_v53  ;;  %8740 = vmatpush2.bf16.msk.msra.mxu0 %vm11784_vm14, %v8739_v35  ;;  %v8157_v35 = vpack.i.bf16 %v11663_v19, %v11599_v7  ;;  %2950 = vmatmul.mubr.bf16.gmra.mxu1 %v11716_v8  ;;  %vm14199_vm11 = vmmov %vm14197_vm6  ;;  %vm14202_vm6 = vcmask 105472   ;;  %vm14205_vm4 = vcmask 236544  }
 0x2a1   :  { %14190 = vst [vmem:[#allocation48_spill] sm:$0xff] %v14189_v53  ;;  %3016 = vmatprep.subr.bf16.mxu0 %v8521_v63  ;;  %v11807_v53 = vsel %vm14195_vm7, %v4412_v12, %v4543_v5  ;;  %v7961_v5 = vunpack.i.h.bf16 %v11606_v42  ;;  %v7981_v63 = vunpack.i.h.bf16 %v11671_v13  ;;  %v7966_v12 = vunpack.i.h.bf16 %v7964_v47  ;;  %6553 = vmatprep.mubr.msk.bf16.mxu1 %vm14199_vm11, %v11771_v50  ;;  %v11834_v47 = vld [vmem:[%s13921_s1 + $0x64] ss:$8 sps:$4 sm:$0xff]   ;;  %v7974_v37 = vpop.permute.xlu1 %7973  ;;  %vm14207_vm14 = vmmov %vm14205_vm4 }
 0x2a2   :  { %14196 = vst [vmem:[#allocation49_spill] sm:$0xff] %v11807_v53  ;;  %v7117_v58 = vpack.c.bf16 %v11807_v53, %v11667_v54  ;;  %8158 = vrot.lane.b32.xlu0 %v8157_v35, %s9030_s26  ;;  %14200 = vst [vmem:[#allocation51_spill] sm:$0xff] %v11834_v47  ;;  %v7970_v42 = vunpack.i.l.bf16 %v11625_v1  ;;  %v7956_v35 = vunpack.i.h.bf16 %v11762_v38  ;;  %3130 = vmatpush2.bf16.msra.mxu1 %v8522_v49  ;;  %v7975_v19 = vunpack.i.l.bf16 %v7974_v37  ;;  %v11844_v20 = vpop.permute.xlu0 %8018 }
 0x2a3   :  { %3131 = vmatprep.subr.bf16.mxu1 %v14126_v51  ;;  %2847 = vmatmul.mubr.bf16.gmra.mxu0 %v11820_v57  ;;  %v7815_v49 = vunpack.i.l.bf16 %v11246_v2  ;;  %vm14201_vm7 = vcmask 7168   ;;  %v7976_v28 = vunpack.i.h.bf16 %v7974_v37  ;;  %v3578_v10 = vsel %vm14205_vm4, %v7990_v40, %v8010_v56 }
 0x2a4   :  { %3017 = vmatpush2.bf16.msra.mxu0 %v8519_v4  ;;  %4996 = vst [vmem:[#allocation2 + $0x484] sm:$0xff] %v7117_v58  ;;  %v7971_v4 = vunpack.i.h.bf16 %v11625_v1  ;;  %v7816_v58 = vunpack.i.h.bf16 %v11246_v2  ;;  %v8529_v1 = vld [vmem:[#allocation2 + $0x1d4] ss:$28 sps:$4 sm:$0xff]   ;;  %vm14204_vm11 = vmmov %vm14201_vm7  ;;  %v14206_v3 = vunpack.i.h.bf16 %v11811_v43  ;;  %v3512_v37 = vsel %vm14202_vm6, %v7960_v6, %v7961_v5 }
 0x2a5   :  { %3018 = vmatprep.subr.bf16.mxu0 %v8525_v34  ;;  %v8167_v34 = vpack.i.bf16 %v11807_v53, %v11667_v54  ;;  %v3513_v54 = vsel %vm14202_vm6, %v7965_v55, %v7966_v12  ;;  %v3453_v0 = vsel %vm14204_vm11, %v7981_v63, %v14203_v32  ;;  %vm14209_vm1 = vmmov %vm14204_vm11  ;;  %v8527_v32 = vld [vmem:[#allocation2 + $0x1d0] ss:$28 sps:$4 sm:$0xff]  }
 0x2a6   :  { %v3452_v7 = vsel %vm14201_vm7, %v7971_v4, %v7981_v63  ;;  %v3579_v2 = vsel %vm14207_vm14, %v8010_v56, %v14206_v3  ;;  %vm14208_vm7 = vcmask 523264   ;;  %vm14210_vm3 = vmmov %vm14209_vm1  ;;  %3132 = vmatpush2.bf16.msra.mxu1 %v8526_v48  ;;  %v7984_v63 = vpop.permute.xlu1 %7983  ;;  %v11870_v15 = vpop.permute.xlu0 %8028  ;;  %v11877_v48 = vld [vmem:[%s13921_s1 + $0x60] ss:$8 sps:$4 sm:$0xff]  }
 0x2a7   :  { %8168 = vrot.lane.b32.xlu0 %v8167_v34, %s9030_s26  ;;  %6546 = vmatprep.mubr.msk.bf16.mxu0 %vm14208_vm7, %v11834_v47  ;;  %v3450_v55 = vsel %vm14210_vm3, %v7956_v35, %v7970_v42  ;;  %vm14211_vm5 = vmmov %vm14209_vm1  ;;  %v14212_v34 = vunpack.i.h.bf16 %v11705_v33  ;;  %v7986_v56 = vunpack.i.h.bf16 %v7984_v63  ;;  %14214 = vst [vmem:[#allocation52_spill] sm:$0xff] %v11877_v48  ;;  %v3456_v5 = vsel %vm14210_vm3, %v7975_v19, %v7976_v28 }
 0x2a8   :  { %3019 = vmatpush2.bf16.msra.mxu0 %v8523_v16  ;;  %v3451_v16 = vsel %vm14209_vm1, %v7970_v42, %v7971_v4  ;;  %v3492_v12 = vsel %vm14211_vm5, %v7815_v49, %v7956_v35  ;;  %vm14213_vm14 = vmmov %vm14209_vm1  ;;  %3133 = vmatprep.subr.bf16.mxu1 %v14126_v51  ;;  %vm14215_vm1 = vcmp.eq.s32.totalorder %v9320_v23, 0  ;;  %vm14216_vm5 = vcmp.eq.s32.totalorder %v9307_v22, 0  ;;  %v8530_v4 = vld [vmem:[#allocation2 + $0x1d8] ss:$28 sps:$4 sm:$0xff]  }
 0x2a9   :  { %3020 = vmatprep.subr.bf16.mxu0 %v8529_v1  ;;  %v3617_v60 = vsel %vm14205_vm4, %v3513_v54, %v14212_v34  ;;  %v3493_v3 = vsel %vm14213_vm14, %v7816_v58, %v7975_v19  ;;  %v7985_v1 = vunpack.i.l.bf16 %v7984_v63  ;;  %2960 = vmatmul.mubr.bf16.gmra.mxu1 %v11820_v57  ;;  %v11881_v6 = vsel %vm14215_vm1, %v3452_v7, %v3578_v10  ;;  %vm14217_vm11 = vmmov %vm14208_vm7  ;;  %v11893_v42 = vld [vmem:[%s13921_s1 + $0x74] ss:$8 sps:$4 sm:$0xff]  }
 0x2aa   :  { %v11885_v54 = vsel %vm14216_vm5, %v3453_v0, %v3579_v2  ;;  %6554 = vmatprep.mubr.msk.bf16.mxu1 %vm14217_vm11, %v11834_v47  ;;  %14218 = vst [vmem:[#allocation53_spill] sm:$0xff] %v11893_v42  ;;  %v14219_v35 = vunpack.i.l.bf16 %v11671_v13  ;;  %vm14220_vm7 = vmmov %vm14210_vm3  ;;  %v3577_v0 = vsel %vm14205_vm4, %v7986_v56, %v7990_v40  ;;  %vm14223_vm1 = vcmp.eq.s32.totalorder %v9322_v27, 0  ;;  %3134 = vmatpush2.bf16.msra.mxu1 %v8530_v4  ;;  %v11918_v34 = vpop.permute.xlu0 %8038 }
 0x2ab   :  { %vm14221_vm6 = vmmov %vm14205_vm4  ;;  %v11903_v58 = vsel %vm14223_vm1, %v3493_v3, %v3617_v60  ;;  %vm14226_vm3 = vcmp.eq.s32.totalorder %v9299_v18, 0  ;;  %vm14227_vm11 = vcmp.eq.s32.totalorder %v9316_v26, 0  ;;  %2857 = vmatmul.mubr.bf16.gmra.mxu0 %v11877_v48 }
 0x2ac   :  { %3021 = vmatpush2.bf16.msra.mxu0 %v8527_v32  ;;  %v3457_v7 = vsel %vm14220_vm7, %v7976_v28, %v14219_v35  ;;  %v3576_v10 = vsel %vm14221_vm6, %v7985_v1, %v7986_v56  ;;  %vm14222_vm14 = vmmov %vm14205_vm4  ;;  %v11913_v28 = vsel %vm14227_vm11, %v3451_v16, %v3577_v0  ;;  %v7994_v32 = vpop.permute.xlu1 %7993  ;;  %vm14228_vm7 = vcmask 523264  }
 0x2ad   :  { %v3616_v19 = vsel %vm14222_vm14, %v3512_v37, %v7985_v1  ;;  %vm14224_vm5 = vmmov %vm14223_vm1  ;;  %v3633_v2 = vsel %vm14226_vm3, %v3450_v55, %v3576_v10  ;;  %v7073_v37 = vpack.c.bf16 %v11881_v6, %v11913_v28  ;;  %v7996_v60 = vunpack.i.h.bf16 %v7994_v32  ;;  %6547 = vmatprep.mubr.msk.bf16.mxu0 %vm14228_vm7, %v11893_v42 }
 0x2ae   :  { %v11907_v49 = vsel %vm14224_vm5, %v3492_v12, %v3616_v19  ;;  %v7995_v63 = vunpack.i.l.bf16 %v7994_v32  ;;  %v7810_v12 = vunpack.i.l.bf16 %v11151_v36  ;;  %v14026_v55 = vunpack.i.h.bf16 %v11185_v46  ;;  %vm14230_vm6 = vmmov %vm14205_vm4 }
 0x2af   :  { %14225 = vst [vmem:[#allocation54_spill] sm:$0xff] %v11907_v49  ;;  %v7072_v40 = vpack.c.bf16 %v3633_v2, %v11907_v49  ;;  %v11924_v16 = vpack.i.bf16 %v3633_v2, %v11907_v49  ;;  %v8182_v3 = vpack.i.bf16 %v11903_v58, %v11913_v28  ;;  %v7820_v56 = vunpack.i.l.bf16 %v11185_v46  ;;  %4028 = vst [vmem:[#allocation2 + $0x350] sm:$0xff] %v7073_v37  ;;  %v11956_v37 = vpop.permute.xlu0 %8048 }
 0x2b0   :  { %v14229_v1 = vunpack.i.h.bf16 %v11705_v33  ;;  %v3582_v35 = vsel %vm14205_vm4, %v7995_v63, %v7996_v60  ;;  %v8192_v10 = vpack.i.bf16 %v11885_v54, %v11881_v6  ;;  %v8001_v0 = vunpack.i.h.bf16 %v11774_v61  ;;  %vm14231_vm14 = vmmov %vm14226_vm3  ;;  %v11949_v33 = vpop.permute.xlu1 %8003 }
 0x2b1   :  { %4027 = vst [vmem:[#allocation2 + $0x348] sm:$0xff] %v7072_v40  ;;  %vm14232_vm1 = vmmov %vm14227_vm11  ;;  %8178 = vrot.lane.b32.xlu0 %v11924_v16, %s9034_s15  ;;  %8183 = vrot.lane.b32.xlu1 %v8182_v3, %s9034_s15  ;;  %v7811_v3 = vunpack.i.h.bf16 %v11151_v36  ;;  %vm14235_vm3 = vcmask 7168   ;;  %v14237_v32 = vunpack.i.l.bf16 %v11671_v13  ;;  %v8020_v13 = vunpack.i.l.bf16 %v11844_v20 }
 0x2b2   :  { %v3581_v4 = vsel %vm14230_vm6, %v14229_v1, %v7995_v63  ;;  %v11944_v2 = vsel %vm14232_vm1, %v3457_v7, %v3582_v35  ;;  %2970 = vmatmul.mubr.bf16.gmra.mxu1 %v11877_v48  ;;  %v11964_v63 = vld [vmem:[%s13921_s1 + $0x70] ss:$8 sps:$4 sm:$0xff]   ;;  %vm14234_vm5 = vmmov %vm14228_vm7  ;;  %v11972_v1 = vsel %vm14235_vm3, %v7820_v56, %v14026_v55  ;;  %v7825_v35 = vunpack.i.l.bf16 %v11255_v52 }
 0x2b3   :  { %v11940_v19 = vsel %vm14231_vm14, %v3456_v5, %v3581_v4  ;;  %14233 = vst [vmem:[#allocation55_spill] sm:$0xff] %v11964_v63  ;;  %6555 = vmatprep.mubr.msk.bf16.mxu1 %vm14234_vm5, %v11893_v42  ;;  %vm14236_vm11 = vmmov %vm14235_vm3  ;;  %v14239_v55 = vunpack.i.l.bf16 %v11949_v33  ;;  %2867 = vmatmul.mubr.bf16.gmra.mxu0 %v11964_v63  ;;  %vm14243_vm14 = vcmask 236544   ;;  %v8050_v42 = vunpack.i.l.bf16 %v11956_v37 }
 0x2b4   :  { %v7076_v40 = vpack.c.bf16 %v11940_v19, %v11903_v58  ;;  %v8187_v7 = vpack.i.bf16 %v11944_v2, %v11940_v19  ;;  %v11975_v4 = vsel %vm14236_vm11, %v7810_v12, %v7820_v56  ;;  %vm14238_vm7 = vmmov %vm14235_vm3  ;;  %v11983_v36 = vpop.permute.xlu1 %8013  ;;  %v11991_v56 = vpop.permute.xlu0 %8058 }
 0x2b5   :  { %v3458_v5 = vsel %vm14238_vm7, %v14237_v32, %v8001_v0  ;;  %8193 = vrot.lane.b32.xlu1 %v8192_v10, %s9034_s15  ;;  %vm14240_vm6 = vmmov %vm14235_vm3  ;;  %v8015_v52 = vunpack.i.l.bf16 %v11983_v36  ;;  %v8030_v32 = vunpack.i.l.bf16 %v11870_v15  ;;  %v8060_v49 = vunpack.i.l.bf16 %v11991_v56 }
 0x2b6   :  { %4031 = vst [vmem:[#allocation2 + $0x364] sm:$0xff] %v7076_v40  ;;  %8188 = vrot.lane.b32.xlu0 %v8187_v7, %s9034_s15  ;;  %v8021_v40 = vunpack.i.h.bf16 %v11844_v20  ;;  %v3459_v51 = vsel %vm14240_vm6, %v8001_v0, %v14239_v55  ;;  %v12001_v55 = vld [vmem:[%s13921_s1 + $0x4] ss:$8 sps:$4 sm:$0xff]   ;;  %vm14242_vm4 = vmmov %vm14234_vm5  ;;  %v8040_v0 = vunpack.i.l.bf16 %v11918_v34  ;;  %v14244_v20 = vunpack.i.h.bf16 %v11983_v36 }
 0x2b7   :  { %14241 = vst [vmem:[#allocation56_spill] sm:$0xff] %v12001_v55  ;;  %6556 = vmatprep.mubr.msk.bf16.mxu0 %vm14242_vm4, %v12001_v55  ;;  %v3583_v12 = vsel %vm14243_vm14, %v7996_v60, %v8015_v52  ;;  %vm14245_vm1 = vmmov %vm14243_vm14  ;;  %v8006_v7 = vunpack.i.h.bf16 %v11949_v33  ;;  %vm14246_vm5 = vcmp.eq.s32.totalorder %v9320_v23, 0  ;;  %vm14247_vm3 = vcmp.eq.s32.totalorder %v9307_v22, 0 }
 0x2b8   :  { %v3584_v10 = vsel %vm14245_vm1, %v8015_v52, %v14244_v20  ;;  %v12015_v48 = vsel %vm14246_vm5, %v3458_v5, %v3583_v12  ;;  %v8024_v59 = vpop.permute.xlu1 %8023  ;;  %v8069_v47 = vpop.permute.xlu0 %8068  ;;  %vm14248_vm11 = vmmov %vm14242_vm4  ;;  %v14252_v20 = vunpack.i.h.bf16 %v11870_v15 }
 0x2b9   :  { %v12019_v62 = vsel %vm14247_vm3, %v3459_v51, %v3584_v10  ;;  %v7077_v52 = vpack.c.bf16 %v12015_v48, %v11944_v2  ;;  %v8026_v25 = vunpack.i.h.bf16 %v8024_v59  ;;  %v8025_v11 = vunpack.i.l.bf16 %v8024_v59  ;;  %vm14250_vm7 = vmmov %vm14240_vm6 }
 0x2ba   :  { %2980 = vmatmul.mubr.bf16.gmra.mxu1 %v11964_v63  ;;  %v8071_v57 = vunpack.i.h.bf16 %v8069_v47  ;;  %v8070_v5 = vunpack.i.l.bf16 %v8069_v47  ;;  %v8197_v12 = vpack.i.bf16 %v12019_v62, %v12015_v48  ;;  %v14249_v51 = vunpack.i.h.bf16 %v11185_v46  ;;  %vm14253_vm4 = vmmov %vm14250_vm7 }
 0x2bb   :  { %6564 = vmatprep.mubr.msk.bf16.mxu1 %vm14248_vm11, %v12001_v55  ;;  %vm14251_vm6 = vcmask 105472   ;;  %v3445_v21 = vsel %vm14253_vm4, %v8030_v32, %v14252_v20  ;;  %4032 = vst [vmem:[#allocation2 + $0x36c] sm:$0xff] %v7077_v52  ;;  %vm14254_vm14 = vmmov %vm14245_vm1  ;;  %v14261_v20 = vunpack.i.h.bf16 %v11918_v34  ;;  %3023 = vmatmul.mubr.bf16.vlgmr.msra.gmra.mxu0 %v11403_v39 }
 0x2bc   :  { %v3439_v10 = vsel %vm14250_vm7, %v14249_v51, %v7825_v35  ;;  %v3510_v60 = vsel %vm14251_vm6, %v8020_v13, %v8021_v40  ;;  %v3568_v59 = vsel %vm14254_vm14, %v8040_v0, %v8060_v49  ;;  %vm14255_vm1 = vmmov %vm14253_vm4  ;;  %8198 = vrot.lane.b32.xlu0 %v8197_v12, %s9034_s15  ;;  %v8034_v46 = vpop.permute.xlu1 %8033  ;;  %v14259_v40 = vunpack.i.h.bf16 %v11956_v37 }
 0x2bd   :  { %v3444_v47 = vsel %vm14255_vm1, %v8006_v7, %v8030_v32  ;;  %vm14256_vm5 = vmmov %vm14255_vm1  ;;  %v8036_v51 = vunpack.i.h.bf16 %v8034_v46  ;;  %v8035_v38 = vunpack.i.l.bf16 %v8034_v46  ;;  %v12049_v32 = vpop.permute.xlu0 %8078 }
 0x2be   :  { %v3491_v63 = vsel %vm14256_vm5, %v7811_v3, %v8006_v7  ;;  %vm14257_vm3 = vmmov %vm14255_vm1  ;;  %v14263_v3 = vunpack.i.h.bf16 %v11991_v56  ;;  %vm14266_vm5 = vcmask 523264   ;;  %v14267_v7 = vunpack.i.l.bf16 %v11774_v61 }
 0x2bf   :  { %v3440_v53 = vsel %vm14257_vm3, %v7825_v35, %v8050_v42  ;;  %vm14258_vm11 = vmmov %vm14251_vm6  ;;  %v8080_v35 = vunpack.i.l.bf16 %v12049_v32  ;;  %6557 = vmatprep.mubr.msk.bf16.mxu0 %vm14266_vm5, %v11410_v30  ;;  %vm14275_vm5 = vcmp.eq.s32.totalorder %v9316_v26, 0 }
 0x2c0   :  { %v3511_v55 = vsel %vm14258_vm11, %v8025_v11, %v8026_v25  ;;  %vm14260_vm7 = vmmov %vm14255_vm1 }
 0x2c1   :  { %v3441_v13 = vsel %vm14260_vm7, %v8050_v42, %v14259_v40  ;;  %vm14262_vm6 = vmmov %vm14254_vm14  ;;  %vm14265_vm14 = vcmp.eq.s32.totalorder %v9320_v23, 0  ;;  %v3455_v42 = vsel %vm14255_vm1, %v8070_v5, %v8071_v57 }
 0x2c2   :  { %v3615_v52 = vsel %vm14262_vm6, %v3511_v55, %v14261_v20  ;;  %vm14264_vm4 = vmmov %vm14262_vm6  ;;  %v12057_v25 = vsel %vm14265_vm14, %v3440_v53, %v3568_v59  ;;  %3136 = vmatmul.mubr.bf16.vlgmr.msra.gmra.mxu1 %v11403_v39 }
 0x2c3   :  { %v3569_v11 = vsel %vm14264_vm4, %v8060_v49, %v14263_v3  ;;  %vm14268_vm3 = vmmov %vm14255_vm1  ;;  %vm14274_vm1 = vcmp.eq.s32.totalorder %v9299_v18, 0  ;;  %3033 = vmatmul.mubr.bf16.gmra.mxu0 %v11494_v41 }
 0x2c4   :  { %v3454_v55 = vsel %vm14268_vm3, %v14267_v7, %v8070_v5  ;;  %vm14269_vm11 = vmmov %vm14264_vm4 }
 0x2c5   :  { %v3566_v12 = vsel %vm14269_vm11, %v8035_v38, %v8036_v51  ;;  %vm14270_vm7 = vmmov %vm14264_vm4  ;;  %vm14278_vm11 = vcmp.eq.s32.totalorder %v9295_v17, 0 }
 0x2c6   :  { %v3567_v46 = vsel %vm14270_vm7, %v8036_v51, %v8040_v0  ;;  %vm14271_vm6 = vmmov %vm14264_vm4  ;;  %vm14272_vm4 = vcmp.eq.s32.totalorder %v9322_v27, 0  ;;  %v3619_v61 = vsel %vm14274_vm1, %v11972_v1, %v3566_v12  ;;  %v8044_v0 = vpop.permute.xlu1 %8043  ;;  %vm14279_vm7 = vcmp.eq.s32.totalorder %v9311_v24, 0 }
 0x2c7   :  { %v3614_v49 = vsel %vm14271_vm6, %v3510_v60, %v8035_v38  ;;  %v12071_v53 = vsel %vm14272_vm4, %v3491_v63, %v3615_v52  ;;  %vm14273_vm14 = vmmov %vm14272_vm4  ;;  %v12083_v5 = vsel %vm14275_vm5, %v3439_v10, %v3567_v46  ;;  %v14276_v60 = vunpack.i.h.bf16 %v11811_v43 }
 0x2c8   :  { %v12076_v57 = vsel %vm14273_vm14, %v11975_v4, %v3614_v49  ;;  %v7065_v63 = vpack.c.bf16 %v12057_v25, %v12083_v5  ;;  %vm14277_vm3 = vmmov %vm14271_vm6  ;;  %v12093_v4 = vsel %vm14278_vm11, %v3455_v42, %v8080_v35  ;;  %v8046_v59 = vunpack.i.h.bf16 %v8044_v0 }
 0x2c9   :  { %v7064_v38 = vpack.c.bf16 %v3619_v61, %v12076_v57  ;;  %v3580_v27 = vsel %vm14277_vm3, %v14276_v60, %v8080_v35  ;;  %v7075_v10 = vpack.c.bf16 %v12093_v4, %v12093_v4  ;;  %v8045_v40 = vunpack.i.l.bf16 %v8044_v0  ;;  %vm14284_vm1 = vmmov %vm14277_vm3 }
 0x2ca   :  { %v12098_v1 = vsel %vm14279_vm7, %v3454_v55, %v3580_v27  ;;  %vm14280_vm6 = vcmask 523264   ;;  %4020 = vst [vmem:[#allocation2 + $0x318] sm:$0xff] %v7065_v63  ;;  %v8207_v39 = vpack.i.bf16 %v12071_v53, %v12083_v5  ;;  %vm14281_vm4 = vcmp.eq.s32.totalorder %v9307_v22, 0  ;;  %vm14285_vm5 = vmmov %vm14284_vm1  ;;  %v12120_v42 = vpop.permute.xlu1 %8053  ;;  %v8089_v27 = vpop.permute.xlu0 %8088 }
 0x2cb   :  { %6565 = vmatprep.mubr.msk.bf16.mxu1 %vm14280_vm6, %v11410_v30  ;;  %4019 = vst [vmem:[#allocation2 + $0x310] sm:$0xff] %v7064_v38  ;;  %v7074_v43 = vpack.c.bf16 %v12098_v1, %v11885_v54  ;;  %v12110_v20 = vsel %vm14281_vm4, %v3441_v13, %v3569_v11  ;;  %vm14282_vm14 = vcmask 125952   ;;  %v14283_v52 = vunpack.i.h.bf16 %v11918_v34  ;;  %vm14288_vm7 = vmmov %vm14280_vm6 }
 0x2cc   :  { %4030 = vst.msk [vmem:[#allocation2 + $0x360] sm:$0xf] %vm14282_vm14, %v7075_v10  ;;  %v3572_v30 = vsel %vm14285_vm5, %v8045_v40, %v8046_v59  ;;  %v12118_v3 = vpack.i.bf16 %v3619_v61, %v12076_v57  ;;  %vm14286_vm3 = vcmp.eq.s32.totalorder %v9299_v18, 0  ;;  %vm14287_vm11 = vcmp.eq.s32.totalorder %v9316_v26, 0  ;;  %8208 = vrot.lane.b32.xlu0 %v8207_v39, %s9034_s15  ;;  %6558 = vmatprep.mubr.msk.bf16.mxu0 %vm14288_vm7, %v11512_v44  ;;  %vm14292_vm14 = vmmov %vm14288_vm7 }
 0x2cd   :  { %v3571_v51 = vsel %vm14284_vm1, %v14283_v52, %v8045_v40  ;;  %4029 = vst [vmem:[#allocation2 + $0x358] sm:$0xff] %v7074_v43  ;;  %v12128_v13 = vsel %vm14287_vm11, %v3445_v21, %v3572_v30  ;;  %v8056_v34 = vunpack.i.h.bf16 %v12120_v42  ;;  %v8055_v18 = vunpack.i.l.bf16 %v12120_v42  ;;  %3144 = vmatmul.mubr.bf16.gmra.mxu1 %v11494_v41  ;;  %vm14293_vm5 = vmmov %vm14284_vm1  ;;  %3043 = vmatmul.mubr.bf16.gmra.mxu0 %v11579_v9 }
 0x2ce   :  { %v12124_v35 = vsel %vm14286_vm3, %v3444_v47, %v3571_v51  ;;  %8203 = vrot.lane.b32.xlu1 %v12118_v3, %s9034_s15  ;;  %v8217_v26 = vpack.i.bf16 %v12110_v20, %v12057_v25  ;;  %v14289_v47 = vunpack.i.h.bf16 %v11870_v15  ;;  %vm14290_vm6 = vcmask 7168   ;;  %v8064_v12 = vpop.permute.xlu1 %8063  ;;  %6566 = vmatprep.mubr.msk.bf16.mxu1 %vm14292_vm14, %v11512_v44 }
 0x2cf   :  { %v7068_v11 = vpack.c.bf16 %v12124_v35, %v12071_v53  ;;  %v8212_v21 = vpack.i.bf16 %v12128_v13, %v12124_v35  ;;  %vm14291_vm4 = vmmov %vm14290_vm6  ;;  %v8066_v46 = vunpack.i.h.bf16 %v8064_v12  ;;  %v8065_v49 = vunpack.i.l.bf16 %v8064_v12  ;;  %6559 = vmatprep.mubr.msk.bf16.mxu0 %vm14288_vm7, %v11586_v29 }
 0x2d0   :  { %v3446_v7 = vsel %vm14290_vm6, %v14289_v47, %v8055_v18  ;;  %v3447_v55 = vsel %vm14291_vm4, %v8055_v18, %v8056_v34  ;;  %8218 = vrot.lane.b32.xlu0 %v8217_v26, %s9034_s15  ;;  %v8357_v61 = vpack.i.bf16 %v12093_v4, %v12098_v1  ;;  %v8081_v38 = vunpack.i.h.bf16 %v12049_v32  ;;  %vm14297_vm6 = vmmov %vm14284_vm1 }
 0x2d1   :  { %4023 = vst [vmem:[#allocation2 + $0x32c] sm:$0xff] %v7068_v11  ;;  %v3573_v63 = vsel %vm14284_vm1, %v8046_v59, %v8065_v49  ;;  %v3574_v60 = vsel %vm14293_vm5, %v8065_v49, %v8066_v46  ;;  %vm14294_vm3 = vcmp.eq.s32.totalorder %v9320_v23, 0  ;;  %vm14295_vm11 = vcmp.eq.s32.totalorder %v9307_v22, 0  ;;  %vm14299_vm14 = vmmov %vm14291_vm4 }
 0x2d2   :  { %8213 = vrot.lane.b32.xlu1 %v8212_v21, %s9034_s15  ;;  %v12164_v10 = vsel %vm14294_vm3, %v3446_v7, %v3573_v63  ;;  %v12168_v41 = vsel %vm14295_vm11, %v3447_v55, %v3574_v60  ;;  %v8074_v40 = vpop.permute.xlu1 %8073  ;;  %v14296_v23 = vunpack.i.h.bf16 %v11983_v36  ;;  %v14298_v52 = vunpack.i.l.bf16 %v11949_v33  ;;  %v12198_v55 = vpop.permute.xlu0 %8098  ;;  %vm14302_vm3 = vmmov %vm14288_vm7 }
 0x2d3   :  { %v7069_v43 = vpack.c.bf16 %v12164_v10, %v12128_v13  ;;  %v8076_v44 = vunpack.i.h.bf16 %v8074_v40  ;;  %v8075_v39 = vunpack.i.l.bf16 %v8074_v40  ;;  %v8222_v32 = vpack.i.bf16 %v12168_v41, %v12164_v10  ;;  %vm14304_vm7 = vmmov %vm14291_vm4 }
 0x2d4   :  { %v3585_v59 = vsel %vm14297_vm6, %v14296_v23, %v8081_v38  ;;  %v8091_v42 = vunpack.i.h.bf16 %v8089_v27  ;;  %v8090_v11 = vunpack.i.l.bf16 %v8089_v27  ;;  %vm14300_vm1 = vcmp.eq.s32.totalorder %v9311_v24, 0  ;;  %vm14305_vm6 = vmmov %vm14291_vm4 }
 0x2d5   :  { %4024 = vst [vmem:[#allocation2 + $0x334] sm:$0xff] %v7069_v43  ;;  %v3460_v51 = vsel %vm14291_vm4, %v14298_v52, %v8075_v39  ;;  %v3461_v30 = vsel %vm14299_vm14, %v8075_v39, %v8076_v44  ;;  %vm14301_vm5 = vcmp.eq.s32.totalorder %v9295_v17, 0  ;;  %3152 = vmatmul.mubr.bf16.gmra.mxu1 %v11579_v9  ;;  %vm14303_vm11 = vcmask 125952   ;;  %3053 = vmatmul.mubr.bf16.gmra.mxu0 %v11636_v31  ;;  %vm14307_vm14 = vmmov %vm14291_vm4 }
 0x2d6   :  { %8223 = vrot.lane.b32.xlu1 %v8222_v32, %s9034_s15  ;;  %v12187_v18 = vsel %vm14300_vm1, %v3460_v51, %v3585_v59  ;;  %v12191_v36 = vsel %vm14301_vm5, %v3461_v30, %v8081_v38  ;;  %v8084_v26 = vpop.permute.xlu1 %8083  ;;  %6567 = vmatprep.mubr.msk.bf16.mxu1 %vm14302_vm3, %v11586_v29  ;;  %v3449_v9 = vsel %vm14304_vm7, %v8090_v11, %v8091_v42  ;;  %v14306_v44 = vunpack.i.h.bf16 %v11956_v37  ;;  %vm14308_vm1 = vmmov %vm14302_vm3 }
 0x2d7   :  { %v7078_v33 = vpack.c.bf16 %v12187_v18, %v12019_v62  ;;  %v7079_v21 = vpack.c.bf16 %v12191_v36, %v12191_v36  ;;  %v8086_v47 = vunpack.i.h.bf16 %v8084_v26  ;;  %v8085_v7 = vunpack.i.l.bf16 %v8084_v26  ;;  %6560 = vmatprep.mubr.msk.bf16.mxu0 %vm14308_vm1, %v11645_v45 }
 0x2d8   :  { %v12202_v12 = vpack.i.bf16 %v12191_v36, %v12093_v4  ;;  %v8362_v49 = vpack.i.bf16 %v12191_v36, %v12187_v18  ;;  %v3448_v27 = vsel %vm14291_vm4, %v8056_v34, %v8090_v11  ;;  %v8242_v29 = vpack.i.bf16 %v11881_v6, %v11913_v28 }
 0x2d9   :  { %4033 = vst [vmem:[#allocation2 + $0x374] sm:$0xff] %v7078_v33  ;;  %4034 = vst.msk [vmem:[#allocation2 + $0x37c] sm:$0xf] %vm14303_vm11, %v7079_v21  ;;  %v3443_v63 = vsel %vm14305_vm6, %v8085_v7, %v8086_v47  ;;  %v8237_v39 = vpack.i.bf16 %v11940_v19, %v11903_v58  ;;  %v14309_v32 = vunpack.i.h.bf16 %v11991_v56  ;;  %vm14310_vm5 = vcmask 236544   ;;  %v12241_v19 = vpop.permute.xlu0 %8108 }
 0x2da   :  { %8233 = vrot.lane.b32.xlu1 %v11924_v16, %s9030_s26  ;;  %8228 = vrot.lane.b32.xlu0 %v12202_v12, %s9029_s25  ;;  %v8094_v60 = vpop.permute.xlu1 %8093  ;;  %v3442_v16 = vsel %vm14307_vm14, %v14306_v44, %v8085_v7  ;;  %vm14311_vm3 = vmmov %vm14310_vm5  ;;  %vm14312_vm11 = vcmp.eq.s32.totalorder %v9295_v17, 0  ;;  %vm14314_vm6 = vcmp.eq.s32.totalorder %v9311_v24, 0  ;;  %v8247_v42 = vpack.i.bf16 %v12015_v48, %v11944_v2 }
 0x2db   :  { %v8096_v40 = vunpack.i.h.bf16 %v8094_v60  ;;  %v8095_v43 = vunpack.i.l.bf16 %v8094_v60  ;;  %vm14313_vm7 = vmmov %vm14312_vm11  ;;  %vm14316_vm14 = vcmask 125952   ;;  %v14320_v7 = vunpack.i.h.bf16 %v11540_v14  ;;  %v14326_v14 = vld [vmem:[#allocation49_spill] sm:$0xff] }
 0x2dc   :  { %vm14315_vm4 = vmmov %vm14314_vm6  ;;  %v8267_v44 = vpack.i.bf16 %v12057_v25, %v12083_v5  ;;  %v8101_v25 = vunpack.i.h.bf16 %v12198_v55  ;;  %v14332_v5 = vld [vmem:[#allocation3_spill] sm:$0xff] }
 0x2dd   :  { %v3570_v34 = vsel %vm14310_vm5, %v14309_v32, %v8095_v43  ;;  %v3575_v23 = vsel %vm14311_vm3, %v8066_v46, %v8096_v40  ;;  %v12234_v6 = vsel %vm14312_vm11, %v3443_v63, %v8095_v43  ;;  %v12238_v28 = vsel %vm14313_vm7, %v3449_v9, %v8096_v40  ;;  %3160 = vmatmul.mubr.bf16.gmra.mxu1 %v11636_v31  ;;  %vm14317_vm1 = vmmov %vm14316_vm14  ;;  %v14322_v63 = vld [vmem:[#allocation46_spill] sm:$0xff] }
 0x2de   :  { %8243 = vrot.lane.b32.xlu1 %v8242_v29, %s9030_s26  ;;  %v12245_v37 = vsel %vm14314_vm6, %v3442_v16, %v3570_v34  ;;  %v12249_v56 = vsel %vm14315_vm4, %v3448_v27, %v3575_v23  ;;  %v7067_v46 = vpack.c.bf16 %v12234_v6, %v12234_v6  ;;  %v7071_v59 = vpack.c.bf16 %v12238_v28, %v12238_v28  ;;  %v12256_v52 = vpop.permute.xlu1 %8103 }
 0x2df   :  { %8238 = vrot.lane.b32.xlu0 %v8237_v39, %s9030_s26  ;;  %v7066_v51 = vpack.c.bf16 %v12245_v37, %v12110_v20  ;;  %v7070_v30 = vpack.c.bf16 %v12249_v56, %v12168_v41  ;;  %v12269_v11 = vpack.i.bf16 %v12238_v28, %v12234_v6  ;;  %v8377_v26 = vpack.i.bf16 %v12238_v28, %v12249_v56  ;;  %v14328_v39 = vld [vmem:[#allocation5_spill] sm:$0xff] }
 0x2e0   :  { %4022 = vst.msk [vmem:[#allocation2 + $0x328] sm:$0xf] %vm14316_vm14, %v7067_v46  ;;  %v8372_v33 = vpack.i.bf16 %v12234_v6, %v12245_v37  ;;  %vm14318_vm5 = vcmask 523264   ;;  %v8111_v31 = vunpack.i.h.bf16 %v12241_v19  ;;  %3063 = vmatmul.mubr.bf16.gmra.mxu0 %v11716_v8  ;;  %vm14321_vm11 = vcmask 826368   ;;  %v14338_v46 = vld [vmem:[#allocation20_spill] sm:$0xff] }
 0x2e1   :  { %4026 = vst.msk [vmem:[#allocation2 + $0x344] sm:$0xf] %vm14317_vm1, %v7071_v59  ;;  %6568 = vmatprep.mubr.msk.bf16.mxu1 %vm14318_vm5, %v11645_v45  ;;  %4021 = vst [vmem:[#allocation2 + $0x320] sm:$0xff] %v7066_v51  ;;  %v8262_v45 = vpack.i.bf16 %v12124_v35, %v12071_v53  ;;  %v14323_v60 = vunpack.i.l.bf16 %v14322_v63  ;;  %vm14324_vm7 = vcmask 7168   ;;  %v8105_v40 = vunpack.i.l.bf16 %v12256_v52 }
 0x2e2   :  { %4025 = vst [vmem:[#allocation2 + $0x33c] sm:$0xff] %v7070_v30  ;;  %8253 = vrot.lane.b32.xlu1 %v12269_v11, %s9029_s25  ;;  %v12283_v48 = vpop.permute.xlu1 %8113  ;;  %vm14319_vm3 = vmmov %vm14318_vm5  ;;  %v4413_v9 = vsel %vm14321_vm11, %v14320_v7, %v8111_v31  ;;  %vm14325_vm6 = vcmp.eq.s32.totalorder %v9307_v22, 0  ;;  %v8100_v29 = vunpack.i.l.bf16 %v12198_v55  ;;  %v8272_v16 = vpack.i.bf16 %v12164_v10, %v12128_v13  ;;  %v14335_v10 = vld [vmem:[#allocation51_spill] sm:$0xff]  ;;  %v14341_v30 = vld [vmem:[#allocation21_spill] sm:$0xff] }
 0x2e3   :  { %8248 = vrot.lane.b32.xlu0 %v8247_v42, %s9030_s26  ;;  %v8116_v47 = vunpack.i.h.bf16 %v12283_v48  ;;  %6561 = vmatprep.mubr.msk.bf16.mxu0 %vm14319_vm3, %v11771_v50  ;;  %vm14327_vm4 = vmmov %vm14319_vm3  ;;  %v14329_v32 = vunpack.i.l.bf16 %v14328_v39  ;;  %v14339_v59 = vunpack.i.l.bf16 %v14338_v46  ;;  %v14342_v42 = vld [vmem:[#allocation23_spill] sm:$0xff]  ;;  %v14355_v46 = vld [vmem:[#allocation29_spill] sm:$0xff]  ;;  %v14432_v6 = vpack.i.bf16 %v12071_v53, %v12076_v57 }
 0x2e4   :  { %vm14330_vm14 = vmmov %vm14324_vm7 }
 0x2e5   :  { %v4544_v27 = vsel %vm14324_vm7, %v14323_v60, %v8116_v47  ;;  %3168 = vmatmul.mubr.bf16.gmra.mxu1 %v11716_v8  ;;  %v4550_v34 = vsel %vm14330_vm14, %v14329_v32, %v8105_v40  ;;  %v14331_v8 = vld [vmem:[#allocation50_spill] sm:$0xff]  ;;  %vm14334_vm1 = vmmov %vm14321_vm11  ;;  %v14351_v32 = vld [vmem:[#allocation7_spill] sm:$0xff] }
 0x2e6   :  { %v12306_v35 = vsel %vm14325_vm6, %v4413_v9, %v4544_v27  ;;  %8263 = vrot.lane.b32.xlu1 %v8262_v45, %s9030_s26  ;;  %6569 = vmatprep.mubr.msk.bf16.mxu1 %vm14327_vm4, %v11771_v50  ;;  %v14333_v50 = vunpack.i.h.bf16 %v14332_v5  ;;  %vm14336_vm5 = vmmov %vm14319_vm3  ;;  %v14343_v45 = vld [vmem:[#allocation27_spill] sm:$0xff]  ;;  %v14345_v9 = vld [vmem:[#allocation26_spill] sm:$0xff]  ;;  %v8124_v39 = vpop.permute.xlu1 %8123  ;;  %v8110_v5 = vunpack.i.l.bf16 %v12241_v19 }
 0x2e7   :  { %8258 = vrot.lane.b32.xlu0 %v12118_v3, %s9030_s26  ;;  %v8322_v43 = vpack.i.bf16 %v12306_v35, %v14326_v14  ;;  %v8106_v3 = vunpack.i.h.bf16 %v12256_v52  ;;  %vm14337_vm3 = vmmov %vm14325_vm6  ;;  %v14344_v7 = vpack.i.bf16 %v14342_v42, %v14343_v45  ;;  %v14346_v63 = vunpack.i.h.bf16 %v14345_v9  ;;  %v14348_v27 = vld [vmem:[#allocation30_spill] sm:$0xff]  ;;  %v14361_v9 = vld [vmem:[#allocation36_spill] sm:$0xff] }
 0x2e8   :  { %3073 = vmatmul.mubr.bf16.gmra.mxu0 %v14331_v8  ;;  %v4419_v13 = vsel %vm14334_vm1, %v14333_v50, %v8100_v29  ;;  %vm14340_vm11 = vmmov %vm14324_vm7  ;;  %v14354_v50 = vld [vmem:[#allocation52_spill] sm:$0xff] }
 0x2e9   :  { %6562 = vmatprep.mubr.msk.bf16.mxu0 %vm14336_vm5, %v14335_v10  ;;  %v12340_v23 = vsel %vm14337_vm3, %v4419_v13, %v4550_v34  ;;  %v4556_v51 = vsel %vm14340_vm11, %v14339_v59, %v8106_v3  ;;  %vm14347_vm7 = vmmov %vm14334_vm1  ;;  %v14352_v34 = vld [vmem:[#allocation24_spill] sm:$0xff]  ;;  %v8126_v13 = vunpack.i.h.bf16 %v8124_v39 }
 0x2ea   :  { %8273 = vrot.lane.b32.xlu1 %v8272_v16, %s9030_s26  ;;  %v4425_v60 = vsel %vm14347_vm7, %v14346_v63, %v8101_v25  ;;  %v8292_v14 = vpack.i.bf16 %v12340_v23, %v14348_v27  ;;  %vm14349_vm6 = vmmov %vm14327_vm4  ;;  %v8115_v16 = vunpack.i.l.bf16 %v12283_v48  ;;  %v14362_v63 = vld [vmem:[#allocation37_spill] sm:$0xff] }
 0x2eb   :  { %8268 = vrot.lane.b32.xlu0 %v8267_v44, %s9030_s26  ;;  %vm14350_vm4 = vmmov %vm14337_vm3 }
 0x2ec   :  { %v12365_v44 = vsel %vm14350_vm4, %v4425_v60, %v4556_v51  ;;  %v14356_v51 = vld [vmem:[#allocation53_spill] sm:$0xff]  ;;  %vm14357_vm14 = vmmov %vm14336_vm5  ;;  %v14363_v60 = vunpack.i.h.bf16 %v14362_v63 }
 0x2ed   :  { %3176 = vmatmul.mubr.bf16.gmra.mxu1 %v14331_v8  ;;  %v14353_v8 = vpack.i.bf16 %v14351_v32, %v14352_v34  ;;  %v8297_v59 = vpack.i.bf16 %v12365_v44, %v14355_v46  ;;  %vm14360_vm1 = vmmov %vm14340_vm11  ;;  %v14368_v46 = vld [vmem:[#allocation33_spill] sm:$0xff] }
 0x2ee   :  { %8283 = vrot.lane.b32.xlu1 %v14344_v7, %s9034_s15  ;;  %6570 = vmatprep.mubr.msk.bf16.mxu1 %vm14349_vm6, %v14335_v10  ;;  %v8125_v10 = vunpack.i.l.bf16 %v8124_v39  ;;  %vm14364_vm5 = vmmov %vm14347_vm7 }
 0x2ef   :  { %8278 = vrot.lane.b32.xlu0 %v14341_v30, %s9034_s15  ;;  %v14358_v30 = vld [vmem:[#allocation31_spill] sm:$0xff]  ;;  %v4407_v27 = vsel %vm14364_vm5, %v14363_v60, %v8110_v5  ;;  %vm14365_vm11 = vmmov %vm14360_vm1 }
 0x2f0   :  { %3083 = vmatmul.mubr.bf16.gmra.mxu0 %v14354_v50  ;;  %v14359_v45 = vunpack.i.l.bf16 %v14358_v30  ;;  %v4727_v32 = vsel %vm14365_vm11, %v8125_v10, %v8126_v13  ;;  %vm14366_vm7 = vmmov %vm14349_vm6  ;;  %v14375_v60 = vld [vmem:[#allocation55_spill] sm:$0xff] }
 0x2f1   :  { %6563 = vmatprep.mubr.msk.bf16.mxu0 %vm14357_vm14, %v14356_v51  ;;  %vm14367_vm6 = vmmov %vm14360_vm1 }
 0x2f2   :  { %8293 = vrot.lane.b32.xlu1 %v8292_v14, %s9034_s15  ;;  %v4538_v7 = vsel %vm14360_vm1, %v14359_v45, %v8115_v16  ;;  %v8119_v14 = vpop.permute.xlu0 %8118  ;;  %v14371_v45 = vld [vmem:[#allocation39_spill] sm:$0xff]  ;;  %vm14377_vm4 = vmmov %vm14366_vm7 }
 0x2f3   :  { %8288 = vrot.lane.b32.xlu0 %v14353_v8, %s9034_s15  ;;  %v12395_v39 = vsel %vm14337_vm3, %v4407_v27, %v4538_v7  ;;  %v8120_v34 = vunpack.i.l.bf16 %v8119_v14  ;;  %v14374_v7 = vld [vmem:[#allocation42_spill] sm:$0xff]  ;;  %v8121_v27 = vunpack.i.h.bf16 %v8119_v14  ;;  %vm14378_vm14 = vmmov %vm14360_vm1 }
 0x2f4   :  { %v8317_v63 = vpack.i.bf16 %v12395_v39, %v14374_v7  ;;  %vm14379_vm5 = vmmov %vm14377_vm4 }
 0x2f5   :  { %3184 = vmatmul.mubr.bf16.gmra.mxu1 %v14354_v50  ;;  %v4769_v8 = vsel %vm14367_vm6, %v8120_v34, %v8125_v10  ;;  %v14372_v50 = vld [vmem:[#allocation38_spill] sm:$0xff]  ;;  %v14376_v10 = vld [vmem:[#allocation56_spill] sm:$0xff]  ;;  %vm14380_vm3 = vmmov %vm14360_vm1 }
 0x2f6   :  { %8303 = vrot.lane.b32.xlu1 %v14361_v9, %s9034_s15  ;;  %6571 = vmatprep.mubr.msk.bf16.mxu1 %vm14366_vm7, %v14356_v51  ;;  %v14373_v9 = vpack.i.bf16 %v14371_v45, %v14372_v50  ;;  %v8129_v22 = vpop.permute.xlu0 %8128  ;;  %vm14381_vm11 = vmmov %vm14360_vm1 }
 0x2f7   :  { %8298 = vrot.lane.b32.xlu0 %v8297_v59, %s9034_s15  ;;  %v14369_v59 = vld [vmem:[#allocation41_spill] sm:$0xff]  ;;  %v8131_v51 = vunpack.i.h.bf16 %v8129_v22  ;;  %v8130_v2 = vunpack.i.l.bf16 %v8129_v22  ;;  %v12423_v50 = vpop.permute.xlu1 %8133  ;;  %vm14382_vm7 = vmmov %vm14360_vm1 }
 0x2f8   :  { %v14370_v30 = vpack.i.bf16 %v14368_v46, %v14369_v59  ;;  %3093 = vmatmul.mubr.bf16.gmra.mxu0 %v14375_v60  ;;  %vm14383_vm6 = vmmov %vm14360_vm1 }
 0x2f9   :  { %6808 = vmatprep.mubr.msk.bf16.mxu0 %vm14377_vm4, %v14376_v10  ;;  %v4733_v34 = vsel %vm14378_vm14, %v8130_v2, %v8131_v51  ;;  %v4770_v59 = vsel %vm14360_vm1, %v8121_v27, %v8130_v2  ;;  %v8135_v2 = vunpack.i.l.bf16 %v12423_v50  ;;  %vm14386_vm4 = vcmask 826368  }
 0x2fa   :  { %8313 = vrot.lane.b32.xlu1 %v14373_v9, %s9034_s15  ;;  %v8136_v9 = vunpack.i.h.bf16 %v12423_v50  ;;  %v8746_v27 = vpack.c.bf16 %v4733_v34, %v4727_v32  ;;  %v8751_v15 = vpack.c.bf16 %v4770_v59, %v4769_v8  ;;  %vm14387_vm14 = vmmov %vm14386_vm4  ;;  %v14390_v34 = vld [vmem:[#allocation14_spill] sm:$0xff]  ;;  %v14393_v8 = vld [vmem:[#allocation17_spill] sm:$0xff] }
 0x2fb   :  { %8308 = vrot.lane.b32.xlu0 %v14370_v30, %s9034_s15  ;;  %v12418_v30 = vpop.permute.xlu0 %8138  ;;  %v4728_v7 = vsel %vm14382_vm7, %v8126_v13, %v8135_v2  ;;  %v14394_v59 = vunpack.i.h.bf16 %v14393_v8  ;;  %v14396_v55 = vunpack.i.l.bf16 %v14393_v8  ;;  %vm14398_vm7 = vcmp.eq.s32.totalorder %v9311_v24, 0  ;;  %v12941_v50 = vld [vmem:[%s13921_s1 + $0x14] ss:$8 sps:$4 sm:$0xff]  }
 0x2fc   :  { %v8141_v45 = vunpack.i.h.bf16 %v12418_v30  ;;  %v8140_v14 = vunpack.i.l.bf16 %v12418_v30  ;;  %8747 = vmatprep.subr.msk.bf16.mxu0 %vm11086_vm2, %v8746_v27 }
 0x2fd   :  { %3192 = vmatmul.mubr.bf16.gmra.mxu1 %v14375_v60  ;;  %v8144_v60 = vpop.permute.xlu1 %8143  ;;  %8752 = vmatpush1.bf16.msk.msra.mxu0 %vm11106_vm15, %v8751_v15 }
 0x2fe   :  { %8323 = vrot.lane.b32.xlu1 %v8322_v43, %s9034_s15  ;;  %6816 = vmatprep.mubr.msk.bf16.mxu1 %vm14379_vm5, %v14376_v10  ;;  %v4734_v22 = vsel %vm14380_vm3, %v8131_v51, %v8140_v14  ;;  %v4735_v43 = vsel %vm14381_vm11, %v8140_v14, %v8141_v45  ;;  %v8146_v10 = vunpack.i.h.bf16 %v8144_v60  ;;  %v8145_v38 = vunpack.i.l.bf16 %v8144_v60  ;;  %v14388_v14 = vld [vmem:[#allocation13_spill] sm:$0xff]  ;;  %vm14392_vm5 = vmmov %vm14360_vm1 }
 0x2ff   :  { %8318 = vrot.lane.b32.xlu0 %v8317_v63, %s9034_s15  ;;  %v4729_v63 = vsel %vm14383_vm6, %v8135_v2, %v8136_v9  ;;  %v14389_v2 = vunpack.i.h.bf16 %v14388_v14  ;;  %v14391_v60 = vunpack.i.h.bf16 %v14390_v34  ;;  %vm14395_vm3 = vcmask 957440   ;;  %vm14399_vm6 = vmmov %vm14398_vm7 }
 0x300   :  { %v4426_v51 = vsel %vm14386_vm4, %v8101_v25, %v8146_v10  ;;  %v4420_v13 = vsel %vm14387_vm14, %v8100_v29, %v8145_v38  ;;  %vm14397_vm11 = vmmov %vm14395_vm3  ;;  %v8758_v27 = vpack.c.bf16 %v4735_v43, %v4729_v63  ;;  %v8763_v14 = vpack.c.bf16 %v4734_v22, %v4728_v7  ;;  %v14402_v63 = vld [vmem:[#allocation28_spill] sm:$0xff] }
 0x301   :  { %v4551_v32 = vsel %vm14360_vm1, %v8105_v40, %v14389_v2  ;;  %v4557_v15 = vsel %vm14392_vm5, %v8106_v3, %v14391_v60  ;;  %v4466_v25 = vsel %vm14395_vm3, %v4426_v51, %v14394_v59  ;;  %v4465_v38 = vsel %vm14397_vm11, %v4420_v13, %v14396_v55  ;;  %vm14403_vm4 = vmmov %vm14360_vm1 }
 0x302   :  { %v12465_v29 = vsel %vm14398_vm7, %v4465_v38, %v4551_v32  ;;  %v12469_v40 = vsel %vm14399_vm6, %v4466_v25, %v4557_v15  ;;  %8759 = vmatprep.subr.msk.bf16.mxu1 %vm11095_vm0, %v8758_v27  ;;  %v8154_v43 = vpop.permute.xlu1 %8153  ;;  %vm14404_vm14 = vmmov %vm14360_vm1  ;;  %v14405_v27 = vld [vmem:[#allocation34_spill] sm:$0xff]  ;;  %vm14412_vm7 = vcmask 826368  }
 0x303   :  { %v8327_v3 = vpack.i.bf16 %v12465_v29, %v12340_v23  ;;  %v7122_v10 = vpack.c.bf16 %v12465_v29, %v12340_v23  ;;  %v8332_v51 = vpack.i.bf16 %v12469_v40, %v12365_v44  ;;  %v7126_v13 = vpack.c.bf16 %v12469_v40, %v12365_v44  ;;  %8764 = vmatpush1.bf16.msk.msra.mxu1 %vm11123_vm13, %v8763_v14  ;;  %vm14407_vm5 = vmmov %vm14360_vm1 }
 0x304   :  { %v8156_v23 = vunpack.i.h.bf16 %v8154_v43  ;;  %v8155_v32 = vunpack.i.l.bf16 %v8154_v43  ;;  %vm14410_vm3 = vmmov %vm14360_vm1 }
 0x305   :  { %5001 = vst [vmem:[#allocation2 + $0x4a8] sm:$0xff] %v7122_v10  ;;  %8328 = vrot.lane.b32.xlu0 %v8327_v3, %s9030_s26  ;;  %5005 = vst [vmem:[#allocation2 + $0x4c4] sm:$0xff] %v7126_v13  ;;  %8333 = vrot.lane.b32.xlu1 %v8332_v51, %s9030_s26  ;;  %v14406_v3 = vunpack.i.h.bf16 %v14405_v27  ;;  %v14408_v51 = vld [vmem:[#allocation35_spill] sm:$0xff] }
 0x306   :  { %v4715_v8 = vsel %vm14360_vm1, %v8155_v32, %v8156_v23  ;;  %v14409_v13 = vunpack.i.h.bf16 %v14408_v51  ;;  %vm14411_vm11 = vmmov %vm14360_vm1  ;;  %vm14419_vm1 = vcmp.eq.s32.totalorder %v9311_v24, 0 }
 0x307   :  { %v4539_v10 = vsel %vm14407_vm5, %v8115_v16, %v14406_v3  ;;  %vm14413_vm6 = vmmov %vm14412_vm7 }
 0x308   :  { %v4545_v14 = vsel %vm14410_vm3, %v8116_v47, %v14409_v13  ;;  %vm14420_vm5 = vmmov %vm14419_vm1 }
 0x309   :  { %8338 = vrot.lane.b32.xlu0 %v14402_v63, %s9030_s26 }
 0x30b   :  { %v12487_v34 = vpop.permute.xlu1 %8163 }
 0x30c   :  { %v8166_v44 = vunpack.i.h.bf16 %v12487_v34  ;;  %v8165_v22 = vunpack.i.l.bf16 %v12487_v34 }
 0x30e   :  { %v4716_v7 = vsel %vm14403_vm4, %v8156_v23, %v8165_v22  ;;  %v4717_v60 = vsel %vm14404_vm14, %v8165_v22, %v8166_v44  ;;  %vm14416_vm4 = vcmask 957440  }
 0x30f   :  { %v8149_v15 = vpop.permute.xlu0 %8148  ;;  %v8174_v25 = vpop.permute.xlu1 %8173  ;;  %vm14418_vm14 = vmmov %vm14416_vm4 }
 0x310   :  { %v8150_v59 = vunpack.i.l.bf16 %v8149_v15  ;;  %v8176_v55 = vunpack.i.h.bf16 %v8174_v25  ;;  %v8175_v38 = vunpack.i.l.bf16 %v8174_v25  ;;  %v14414_v25 = vld [vmem:[#allocation40_spill] sm:$0xff]  ;;  %v8151_v51 = vunpack.i.h.bf16 %v8149_v15 }
 0x311   :  { %v14415_v27 = vunpack.i.h.bf16 %v14414_v25  ;;  %v14417_v3 = vunpack.i.l.bf16 %v14414_v25  ;;  %v14425_v25 = vld [vmem:[#allocation54_spill] sm:$0xff] }
 0x312   :  { %v4767_v43 = vsel %vm14411_vm11, %v8150_v59, %v8155_v32  ;;  %v4414_v63 = vsel %vm14412_vm7, %v8111_v31, %v8176_v55  ;;  %v4408_v23 = vsel %vm14413_vm6, %v8110_v5, %v8175_v38  ;;  %vm14421_vm11 = vmmov %vm14410_vm3 }
 0x313   :  { %v4464_v16 = vsel %vm14416_vm4, %v4414_v63, %v14415_v27  ;;  %v4463_v48 = vsel %vm14418_vm14, %v4408_v23, %v14417_v3  ;;  %vm14422_vm7 = vmmov %vm14410_vm3  ;;  %v14424_v63 = vld [vmem:[#allocation47_spill] sm:$0xff]  ;;  %v14426_v27 = vpack.i.bf16 %v11903_v58, %v14425_v25  ;;  %vm14427_vm4 = vcmask 1039360  }
 0x314   :  { %v8159_v22 = vpop.permute.xlu0 %8158  ;;  %v12521_v59 = vsel %vm14419_vm1, %v4464_v16, %v4545_v14  ;;  %v12525_v19 = vsel %vm14420_vm5, %v4463_v48, %v4539_v10  ;;  %vm14423_vm6 = vmmov %vm14410_vm3 }
 0x315   :  { %v8161_v47 = vunpack.i.h.bf16 %v8159_v22  ;;  %v8160_v32 = vunpack.i.l.bf16 %v8159_v22  ;;  %v8347_v31 = vpack.i.bf16 %v12521_v59, %v12306_v35  ;;  %v7118_v5 = vpack.c.bf16 %v12521_v59, %v12306_v35  ;;  %vm14428_vm14 = vmmov %vm14427_vm4 }
 0x316   :  { %v8342_v55 = vpack.i.bf16 %v12525_v19, %v12395_v39  ;;  %v7114_v15 = vpack.c.bf16 %v12525_v19, %v12395_v39  ;;  %vm14429_vm1 = vmmov %vm14427_vm4 }
 0x317   :  { %v4721_v38 = vsel %vm14410_vm3, %v8160_v32, %v8161_v47  ;;  %v4768_v13 = vsel %vm14421_vm11, %v8151_v51, %v8160_v32  ;;  %4997 = vst [vmem:[#allocation2 + $0x48c] sm:$0xff] %v7118_v5  ;;  %8348 = vrot.lane.b32.xlu0 %v8347_v31, %s9030_s26  ;;  %vm14430_vm5 = vmmov %vm14429_vm1 }
 0x318   :  { %4993 = vst [vmem:[#allocation2 + $0x470] sm:$0xff] %v7114_v15  ;;  %8343 = vrot.lane.b32.xlu1 %v8342_v55, %s9030_s26  ;;  %v8770_v23 = vpack.c.bf16 %v4721_v38, %v4715_v8  ;;  %v8775_v22 = vpack.c.bf16 %v4768_v13, %v4767_v43  ;;  %vm14433_vm3 = vmmov %vm14429_vm1  ;;  %v14435_v15 = vpack.i.bf16 %v12187_v18, %v12019_v62  ;;  %v8564_v38 = vld [vmem:[#allocation2 + $0x498] ss:$28 sps:$4 sm:$0xff]  }
 0x319   :  { %v12537_v14 = vpop.permute.xlu0 %8168  ;;  %vm14434_vm11 = vmmov %vm14429_vm1  ;;  %v14440_v18 = vpack.i.bf16 %v12249_v56, %v12168_v41 }
 0x31a   :  { %v8171_v24 = vunpack.i.h.bf16 %v12537_v14  ;;  %v8170_v10 = vunpack.i.l.bf16 %v12537_v14  ;;  %8771 = vmatprep.subr.msk.bf16.mxu0 %vm11086_vm2, %v8770_v23 }
 0x31b   :  { %8358 = vrot.lane.b32.xlu0 %v8357_v61, %s9034_s15  ;;  %8776 = vmatpush1.bf16.msk.msra.mxu0 %vm11106_vm15, %v8775_v22  ;;  %v14443_v22 = vld [vmem:[#allocation6_spill] sm:$0xff] }
 0x31c   :  { %v4722_v35 = vsel %vm14422_vm7, %v8161_v47, %v8170_v10  ;;  %v4723_v39 = vsel %vm14423_vm6, %v8170_v10, %v8171_v24  ;;  %8353 = vrot.lane.b32.xlu1 %v14424_v63, %s9030_s26  ;;  %vm14438_vm7 = vmmov %vm14429_vm1  ;;  %v8422_v25 = vpack.i.bf16 %v14443_v22, %v12469_v40  ;;  %v8552_v22 = vld [vmem:[#allocation2 + $0x348] ss:$28 sps:$4 sm:$0xff]  }
 0x31d   :  { %v8782_v8 = vpack.c.bf16 %v4723_v39, %v4717_v60  ;;  %v8787_v48 = vpack.c.bf16 %v4722_v35, %v4716_v7  ;;  %vm14439_vm6 = vmmov %vm14429_vm1  ;;  %v14441_v35 = vpack.i.bf16 %v12245_v37, %v12110_v20  ;;  %v14442_v39 = vld [vmem:[#allocation22_spill] sm:$0xff] }
 0x31e   :  { %v8417_v63 = vpack.i.bf16 %v14442_v39, %v12465_v29 }
 0x31f   :  { %8368 = vrot.lane.b32.xlu0 %v14426_v27, %s9035_s20  ;;  %8783 = vmatprep.subr.msk.bf16.mxu1 %vm11095_vm0, %v8782_v8  ;;  %v14446_v8 = vld [vmem:[#allocation8_spill] sm:$0xff] }
 0x320   :  { %8363 = vrot.lane.b32.xlu1 %v8362_v49, %s9034_s15  ;;  %8788 = vmatpush1.bf16.msk.msra.mxu1 %vm11123_vm13, %v8787_v48 }
 0x323   :  { %v8179_v4 = vpop.permute.xlu0 %8178  ;;  %v8184_v61 = vpop.permute.xlu1 %8183  ;;  %8378 = vrot.lane.b32.xlu0 %v8377_v26, %s9034_s15  ;;  %v14431_v26 = vpack.i.bf16 %v12098_v1, %v11885_v54 }
 0x324   :  { %v8181_v43 = vunpack.i.h.bf16 %v8179_v4  ;;  %v8180_v16 = vunpack.i.l.bf16 %v8179_v4  ;;  %v8185_v3 = vunpack.i.l.bf16 %v8184_v61  ;;  %8373 = vrot.lane.b32.xlu1 %v8372_v33, %s9034_s15  ;;  %v8186_v36 = vunpack.i.h.bf16 %v8184_v61 }
 0x326   :  { %v4103_v58 = vsel %vm14427_vm4, %v8180_v16, %v8181_v43  ;;  %v4104_v47 = vsel %vm14428_vm14, %v8181_v43, %v8185_v3  ;;  %vm14448_vm4 = vmmov %vm14429_vm1 }
 0x327   :  { %v12579_v7 = vpop.permute.xlu1 %8193  ;;  %8388 = vrot.lane.b32.xlu0 %v14431_v26, %s9030_s26  ;;  %vm14449_vm14 = vmmov %vm14429_vm1  ;;  %v14455_v26 = vld [vmem:[#allocation32_spill] sm:$0xff] }
 0x328   :  { %v8189_v49 = vpop.permute.xlu0 %8188  ;;  %v8196_v32 = vunpack.i.h.bf16 %v12579_v7  ;;  %v8195_v31 = vunpack.i.l.bf16 %v12579_v7  ;;  %8383 = vrot.lane.b32.xlu1 %v14432_v6, %s9035_s20  ;;  %v14456_v6 = vpack.i.bf16 %v14368_v46, %v14455_v26 }
 0x329   :  { %v8191_v60 = vunpack.i.h.bf16 %v8189_v49  ;;  %v8190_v51 = vunpack.i.l.bf16 %v8189_v49 }
 0x32a   :  { %v4105_v33 = vsel %vm14433_vm3, %v8185_v3, %v8195_v31  ;;  %v4106_v55 = vsel %vm14434_vm11, %v8195_v31, %v8196_v32  ;;  %v14450_v3 = vld [vmem:[#allocation44_spill] sm:$0xff]  ;;  %vm14453_vm3 = vmmov %vm14429_vm1 }
 0x32b   :  { %v4109_v5 = vsel %vm14429_vm1, %v8186_v36, %v8190_v51  ;;  %v4110_v28 = vsel %vm14430_vm5, %v8190_v51, %v8191_v60  ;;  %8398 = vrot.lane.b32.xlu0 %v12202_v12, %s9030_s26  ;;  %v8437_v48 = vpack.i.bf16 %v14450_v3, %v12521_v59  ;;  %vm14452_vm5 = vmmov %vm14429_vm1 }
 0x32c   :  { %8393 = vrot.lane.b32.xlu1 %v14435_v15, %s9030_s26  ;;  %v8794_v57 = vpack.c.bf16 %v4110_v28, %v4104_v47  ;;  %v8799_v13 = vpack.c.bf16 %v4109_v5, %v4103_v58  ;;  %v14451_v58 = vld [vmem:[#allocation43_spill] sm:$0xff]  ;;  %vm14454_vm11 = vmmov %vm14429_vm1 }
 0x32d   :  { %v8432_v47 = vpack.i.bf16 %v14451_v58, %v12525_v19 }
 0x32e   :  { %v12603_v54 = vpop.permute.xlu0 %8198  ;;  %8795 = vmatprep.subr.msk.bf16.mxu0 %vm11262_vm9, %v8794_v57 }
 0x32f   :  { %v8201_v1 = vunpack.i.h.bf16 %v12603_v54  ;;  %v8200_v53 = vunpack.i.l.bf16 %v12603_v54  ;;  %8800 = vmatpush1.bf16.msk.msra.mxu0 %vm11291_vm12, %v8799_v13  ;;  %8408 = vrot.lane.b32.xlu0 %v14440_v18, %s9030_s26 }
 0x330   :  { %8403 = vrot.lane.b32.xlu1 %v14441_v35, %s9030_s26 }
 0x331   :  { %v4111_v12 = vsel %vm14438_vm7, %v8191_v60, %v8200_v53  ;;  %v4112_v62 = vsel %vm14439_vm6, %v8200_v53, %v8201_v1  ;;  %vm14457_vm7 = vmmov %vm14429_vm1 }
 0x332   :  { %v8806_v27 = vpack.c.bf16 %v4112_v62, %v4106_v55  ;;  %v8811_v20 = vpack.c.bf16 %v4111_v12, %v4105_v33  ;;  %vm14458_vm6 = vmmov %vm14429_vm1  ;;  %v8554_v62 = vld [vmem:[#allocation2 + $0x34c] ss:$28 sps:$4 sm:$0xff]  }
 0x333   :  { %8418 = vrot.lane.b32.xlu0 %v8417_v63, %s9034_s15 }
 0x334   :  { %8413 = vrot.lane.b32.xlu1 %v12269_v11, %s9030_s26  ;;  %8807 = vmatprep.subr.msk.bf16.mxu1 %vm11274_vm8, %v8806_v27  ;;  %v14447_v11 = vpack.i.bf16 %v14342_v42, %v14446_v8 }
 0x335   :  { %8812 = vmatpush1.bf16.msk.msra.mxu1 %vm11311_vm10, %v8811_v20 }
 0x337   :  { %8428 = vrot.lane.b32.xlu0 %v14447_v11, %s9035_s20  ;;  %v8560_v11 = vld [vmem:[#allocation2 + $0x354] ss:$28 sps:$4 sm:$0xff]  }
 0x338   :  { %8423 = vrot.lane.b32.xlu1 %v8422_v25, %s9034_s15 }
 0x33b   :  { %8438 = vrot.lane.b32.xlu0 %v8437_v48, %s9034_s15 }
 0x33c   :  { %8433 = vrot.lane.b32.xlu1 %v8432_v47, %s9034_s15  ;;  %v8555_v47 = vld [vmem:[#allocation2 + $0x310] ss:$28 sps:$4 sm:$0xff]  }
 0x33e   :  { %v8209_v23 = vpop.permute.xlu0 %8208 }
 0x33f   :  { %v8210_v56 = vunpack.i.l.bf16 %v8209_v23  ;;  %v8211_v60 = vunpack.i.h.bf16 %v8209_v23 }
 0x340   :  { %v8204_v4 = vpop.permute.xlu1 %8203  ;;  %8443 = vrot.lane.b32.xlu1 %v14456_v6, %s9035_s20 }
 0x341   :  { %v8206_v29 = vunpack.i.h.bf16 %v8204_v4  ;;  %v8205_v61 = vunpack.i.l.bf16 %v8204_v4  ;;  %v8557_v4 = vld [vmem:[#allocation2 + $0x314] ss:$28 sps:$4 sm:$0xff]  }
 0x342   :  { %v12641_v16 = vpop.permute.xlu0 %8218 }
 0x343   :  { %v4092_v40 = vsel %vm14448_vm4, %v8206_v29, %v8210_v56  ;;  %v4091_v43 = vsel %vm14449_vm14, %v8205_v61, %v8206_v29  ;;  %v8221_v36 = vunpack.i.h.bf16 %v12641_v16  ;;  %v8220_v49 = vunpack.i.l.bf16 %v12641_v16 }
 0x344   :  { %v8214_v42 = vpop.permute.xlu1 %8213  ;;  %vm14459_vm4 = vcmask 7168  }
 0x345   :  { %v8216_v51 = vunpack.i.h.bf16 %v8214_v42  ;;  %v8215_v31 = vunpack.i.l.bf16 %v8214_v42  ;;  %v4093_v5 = vsel %vm14429_vm1, %v8210_v56, %v8220_v49  ;;  %v4094_v59 = vsel %vm14452_vm5, %v8220_v49, %v8221_v36  ;;  %vm14460_vm14 = vmmov %vm14459_vm4 }
 0x346   :  { %vm14461_vm1 = vmmov %vm14459_vm4 }
 0x347   :  { %v4097_v19 = vsel %vm14453_vm3, %v8211_v60, %v8215_v31  ;;  %v4098_v28 = vsel %vm14454_vm11, %v8215_v31, %v8216_v51  ;;  %vm14462_vm5 = vmmov %vm14461_vm1  ;;  %v8558_v60 = vld [vmem:[#allocation2 + $0x350] ss:$28 sps:$4 sm:$0xff]  }
 0x348   :  { %v12661_v33 = vpop.permute.xlu1 %8223  ;;  %v8818_v12 = vpack.c.bf16 %v4098_v28, %v4092_v40  ;;  %v8823_v39 = vpack.c.bf16 %v4097_v19, %v4091_v43  ;;  %vm14463_vm3 = vmmov %vm14461_vm1  ;;  %v2798_v28 = vpop.f32.mrf.mxu0 }
 0x349   :  { %v8226_v55 = vunpack.i.h.bf16 %v12661_v33  ;;  %v8225_v15 = vunpack.i.l.bf16 %v12661_v33  ;;  %vm14464_vm11 = vmmov %vm14461_vm1  ;;  %3200 = vst [vmem:[%s13922_s2] sm:$0xff] %v2798_v28 }
 0x34a   :  { %8819 = vmatprep.subr.msk.bf16.mxu0 %vm11262_vm9, %v8818_v12 }
 0x34b   :  { %v4099_v53 = vsel %vm14457_vm7, %v8216_v51, %v8225_v15  ;;  %v4100_v57 = vsel %vm14458_vm6, %v8225_v15, %v8226_v55  ;;  %8824 = vmatpush1.bf16.msk.msra.mxu0 %vm11291_vm12, %v8823_v39  ;;  %vm14465_vm7 = vmmov %vm14461_vm1 }
 0x34c   :  { %v8234_v13 = vpop.permute.xlu1 %8233  ;;  %v8229_v46 = vpop.permute.xlu0 %8228  ;;  %5799 = vmatprep.subr.bf16.mxu0 %v8554_v62  ;;  %v8830_v8 = vpack.c.bf16 %v4100_v57, %v4094_v59  ;;  %v8835_v3 = vpack.c.bf16 %v4099_v53, %v4093_v5  ;;  %v8563_v5 = vld [vmem:[#allocation2 + $0x31c] ss:$28 sps:$4 sm:$0xff]   ;;  %vm14466_vm6 = vmmov %vm14461_vm1 }
 0x34d   :  { %v8236_v18 = vunpack.i.h.bf16 %v8234_v13  ;;  %v8235_v35 = vunpack.i.l.bf16 %v8234_v13  ;;  %v8230_v63 = vunpack.i.l.bf16 %v8229_v46  ;;  %v8231_v25 = vunpack.i.h.bf16 %v8229_v46  ;;  %v8561_v53 = vld [vmem:[#allocation2 + $0x318] ss:$28 sps:$4 sm:$0xff]   ;;  %v2911_v57 = vpop.f32.mrf.mxu1 }
 0x34e   :  { %8831 = vmatprep.subr.msk.bf16.mxu1 %vm11274_vm8, %v8830_v8  ;;  %3202 = vst [vmem:[%s13922_s2 + $0x10] sm:$0xff] %v2911_v57 }
 0x34f   :  { %v3754_v23 = vsel %vm14459_vm4, %v8235_v35, %v8236_v18  ;;  %v3796_v27 = vsel %vm14460_vm14, %v8230_v63, %v8235_v35  ;;  %5800 = vmatpush1.bf16.msra.mxu0 %v8552_v22  ;;  %8836 = vmatpush1.bf16.msk.msra.mxu1 %vm11311_vm10, %v8835_v3  ;;  %v2800_v63 = vpop.f32.mrf.mxu0  ;;  %v2913_v22 = vpop.f32.mrf.mxu1  ;;  %vm14467_vm4 = vmmov %vm14461_vm1 }
 0x350   :  { %v12675_v56 = vpop.permute.xlu1 %8243  ;;  %5801 = vmatprep.subr.bf16.mxu0 %v8557_v4  ;;  %5912 = vmatprep.subr.bf16.mxu1 %v8560_v11  ;;  %3201 = vst [vmem:[%s13922_s2 + $0x8] sm:$0xff] %v2800_v63  ;;  %3203 = vst [vmem:[%s13922_s2 + $0x18] sm:$0xff] %v2913_v22 }
 0x351   :  { %v8239_v20 = vpop.permute.xlu0 %8238  ;;  %v8246_v29 = vunpack.i.h.bf16 %v12675_v56  ;;  %v8245_v61 = vunpack.i.l.bf16 %v12675_v56  ;;  %vm14468_vm14 = vmmov %vm14461_vm1  ;;  %v2915_v8 = vpop.f32.mrf.mxu1 }
 0x352   :  { %v8241_v40 = vunpack.i.h.bf16 %v8239_v20  ;;  %v8240_v43 = vunpack.i.l.bf16 %v8239_v20  ;;  %3210 = vst [vmem:[%s13922_s2 + $0x48] sm:$0xff] %v2915_v8 }
 0x353   :  { %v3755_v48 = vsel %vm14461_vm1, %v8236_v18, %v8245_v61  ;;  %v3756_v58 = vsel %vm14462_vm5, %v8245_v61, %v8246_v29  ;;  %5802 = vmatpush1.bf16.msra.mxu0 %v8555_v47  ;;  %5913 = vmatpush1.bf16.msra.mxu1 %v8558_v60  ;;  %v2802_v61 = vpop.f32.mrf.mxu0  ;;  %vm14469_vm5 = vmmov %vm14461_vm1 }
 0x354   :  { %v3760_v49 = vsel %vm14463_vm3, %v8240_v43, %v8241_v40  ;;  %v3797_v42 = vsel %vm14464_vm11, %v8231_v25, %v8240_v43  ;;  %v8254_v31 = vpop.permute.xlu1 %8253  ;;  %5914 = vmatprep.subr.bf16.mxu1 %v8563_v5  ;;  %3208 = vst [vmem:[%s13922_s2 + $0x38] sm:$0xff] %v2802_v61  ;;  %vm14470_vm3 = vmmov %vm14461_vm1 }
 0x355   :  { %v12689_v51 = vpop.permute.xlu0 %8248  ;;  %v8255_v26 = vunpack.i.l.bf16 %v8254_v31  ;;  %v8256_v13 = vunpack.i.h.bf16 %v8254_v31  ;;  %v8842_v39 = vpack.c.bf16 %v3760_v49, %v3754_v23  ;;  %v8847_v4 = vpack.c.bf16 %v3797_v42, %v3796_v27  ;;  %v2804_v49 = vpop.f32.mrf.mxu0  ;;  %vm14471_vm11 = vmmov %vm14461_vm1 }
 0x356   :  { %v8251_v59 = vunpack.i.h.bf16 %v12689_v51  ;;  %v8250_v19 = vunpack.i.l.bf16 %v12689_v51  ;;  %v2917_v42 = vpop.f32.mrf.mxu1  ;;  %3209 = vst [vmem:[%s13922_s2 + $0x40] sm:$0xff] %v2804_v49 }
 0x357   :  { %8843 = vmatprep.subr.msk.bf16.mxu0 %vm11086_vm2, %v8842_v39  ;;  %5915 = vmatpush1.bf16.msra.mxu1 %v8561_v53  ;;  %3211 = vst [vmem:[%s13922_s2 + $0x50] sm:$0xff] %v2917_v42 }
 0x358   :  { %v3761_v6 = vsel %vm14465_vm7, %v8241_v40, %v8250_v19  ;;  %v3762_v15 = vsel %vm14466_vm6, %v8250_v19, %v8251_v59  ;;  %v8264_v62 = vpop.permute.xlu1 %8263  ;;  %8848 = vmatpush1.bf16.msk.msra.mxu0 %vm11106_vm15, %v8847_v4  ;;  %v2921_v28 = vpop.f32.mrf.mxu1  ;;  %vm14472_vm7 = vmmov %vm14461_vm1 }
 0x359   :  { %v8259_v12 = vpop.permute.xlu0 %8258  ;;  %v8266_v35 = vunpack.i.h.bf16 %v8264_v62  ;;  %v8265_v25 = vunpack.i.l.bf16 %v8264_v62  ;;  %v8854_v47 = vpack.c.bf16 %v3762_v15, %v3756_v58  ;;  %v8859_v19 = vpack.c.bf16 %v3761_v6, %v3755_v48  ;;  %v2808_v58 = vpop.f32.mrf.mxu0  ;;  %vm14473_vm6 = vmmov %vm14461_vm1  ;;  %3217 = vst [vmem:[%s13922_s2 + $0x80] sm:$0xff] %v2921_v28 }
 0x35a   :  { %v8261_v46 = vunpack.i.h.bf16 %v8259_v12  ;;  %v8260_v18 = vunpack.i.l.bf16 %v8259_v12  ;;  %3215 = vst [vmem:[%s13922_s2 + $0x70] sm:$0xff] %v2808_v58  ;;  %v2923_v12 = vpop.f32.mrf.mxu1 }
 0x35b   :  { %v3748_v11 = vsel %vm14461_vm1, %v8265_v25, %v8266_v35  ;;  %v3795_v27 = vsel %vm14469_vm5, %v8256_v13, %v8265_v25  ;;  %8855 = vmatprep.subr.msk.bf16.mxu1 %vm11095_vm0, %v8854_v47  ;;  %v2810_v13 = vpop.f32.mrf.mxu0  ;;  %3218 = vst [vmem:[%s13922_s2 + $0x88] sm:$0xff] %v2923_v12 }
 0x35c   :  { %v3742_v23 = vsel %vm14467_vm4, %v8260_v18, %v8261_v46  ;;  %v3794_v20 = vsel %vm14468_vm14, %v8255_v26, %v8260_v18  ;;  %v12719_v43 = vpop.permute.xlu1 %8273  ;;  %8860 = vmatpush1.bf16.msk.msra.mxu1 %vm11123_vm13, %v8859_v19  ;;  %3216 = vst [vmem:[%s13922_s2 + $0x78] sm:$0xff] %v2810_v13  ;;  %v2925_v39 = vpop.f32.mrf.mxu1  ;;  %vm14474_vm4 = vcmask 1039360  }
 0x35d   :  { %v12717_v40 = vpop.permute.xlu0 %8268  ;;  %v8276_v31 = vunpack.i.h.bf16 %v12719_v43  ;;  %v8275_v5 = vunpack.i.l.bf16 %v12719_v43  ;;  %3224 = vst [vmem:[%s13922_s2 + $0xb8] sm:$0xff] %v2925_v39  ;;  %vm14475_vm14 = vmmov %vm14474_vm4  ;;  %v8868_v49 = vpack.c.bf16 %v3748_v11, %v3742_v23  ;;  %v8873_v58 = vpack.c.bf16 %v3795_v27, %v3794_v20  ;;  %v14556_v43 = vld [vmem:[#allocation45_spill] sm:$0xff] }
 0x35e   :  { %v8271_v3 = vunpack.i.h.bf16 %v12717_v40  ;;  %v8270_v60 = vunpack.i.l.bf16 %v12717_v40 }
 0x35f   :  { %v3749_v48 = vsel %vm14472_vm7, %v8266_v35, %v8275_v5  ;;  %v3750_v6 = vsel %vm14473_vm6, %v8275_v5, %v8276_v31  ;;  %v2812_v35 = vpop.f32.mrf.mxu0  ;;  %8869 = vmatprep.subr.msk.bf16.mxu0 %vm11086_vm2, %v8868_v49  ;;  %vm14476_vm2 = vmmov %vm14474_vm4 }
 0x360   :  { %v3743_v26 = vsel %vm14470_vm3, %v8261_v46, %v8270_v60  ;;  %v3744_v15 = vsel %vm14471_vm11, %v8270_v60, %v8271_v3  ;;  %v8284_v57 = vpop.permute.xlu1 %8283  ;;  %3222 = vst [vmem:[%s13922_s2 + $0xa8] sm:$0xff] %v2812_v35  ;;  %v2927_v60 = vpop.f32.mrf.mxu1  ;;  %8874 = vmatpush1.bf16.msk.msra.mxu0 %vm11106_vm15, %v8873_v58  ;;  %vm14477_vm1 = vmmov %vm14476_vm2 }
 0x361   :  { %v8279_v53 = vpop.permute.xlu0 %8278  ;;  %v8285_v18 = vunpack.i.l.bf16 %v8284_v57  ;;  %v8286_v22 = vunpack.i.h.bf16 %v8284_v57  ;;  %v2814_v42 = vpop.f32.mrf.mxu0  ;;  %v8878_v28 = vpack.c.bf16 %v3750_v6, %v3744_v15  ;;  %3225 = vst [vmem:[%s13922_s2 + $0xc0] sm:$0xff] %v2927_v60  ;;  %v8883_v20 = vpack.c.bf16 %v3749_v48, %v3743_v26  ;;  %vm14478_vm15 = vmmov %vm14477_vm1 }
 0x362   :  { %v8281_v62 = vunpack.i.h.bf16 %v8279_v53  ;;  %v8280_v46 = vunpack.i.l.bf16 %v8279_v53  ;;  %3223 = vst [vmem:[%s13922_s2 + $0xb0] sm:$0xff] %v2814_v42  ;;  %v2931_v11 = vpop.f32.mrf.mxu1 }
 0x363   :  { %8879 = vmatprep.subr.msk.bf16.mxu1 %vm11095_vm0, %v8878_v28  ;;  %v2818_v0 = vpop.f32.mrf.mxu0  ;;  %vm14479_vm0 = vmmov %vm14477_vm1  ;;  %3231 = vst [vmem:[%s13922_s2 + $0xf0] sm:$0xff] %v2931_v11 }
 0x364   :  { %v5075_v63 = vsel %vm14474_vm4, %v8280_v46, %v8281_v62  ;;  %v12762_v4 = vpop.permute.xlu1 %8293  ;;  %v5076_v61 = vsel %vm14475_vm14, %v8281_v62, %v8285_v18  ;;  %8884 = vmatpush1.bf16.msk.msra.mxu1 %vm11123_vm13, %v8883_v20  ;;  %3229 = vst [vmem:[%s13922_s2 + $0xe0] sm:$0xff] %v2818_v0  ;;  %v2933_v48 = vpop.f32.mrf.mxu1  ;;  %vm14480_vm13 = vmmov %vm14479_vm0 }
 0x365   :  { %v8289_v25 = vpop.permute.xlu0 %8288  ;;  %v8296_v5 = vunpack.i.h.bf16 %v12762_v4  ;;  %v8295_v19 = vunpack.i.l.bf16 %v12762_v4  ;;  %v2820_v26 = vpop.f32.mrf.mxu0  ;;  %3232 = vst [vmem:[%s13922_s2 + $0xf8] sm:$0xff] %v2933_v48  ;;  %vm14481_vm5 = vmmov %vm14479_vm0 }
 0x366   :  { %v8291_v8 = vunpack.i.h.bf16 %v8289_v25  ;;  %v8290_v47 = vunpack.i.l.bf16 %v8289_v25  ;;  %3230 = vst [vmem:[%s13922_s2 + $0xe8] sm:$0xff] %v2820_v26  ;;  %v2935_v62 = vpop.f32.mrf.mxu1  ;;  %vm14482_vm3 = vmmov %vm14479_vm0 }
 0x367   :  { %v12790_v52 = vsel %vm14478_vm15, %v8285_v18, %v8295_v19  ;;  %v5078_v27 = vsel %vm14479_vm0, %v8295_v19, %v8296_v5  ;;  %v2822_v12 = vpop.f32.mrf.mxu0  ;;  %3238 = vst [vmem:[%s13922_s2 + $0x128] sm:$0xff] %v2935_v62  ;;  %vm14483_vm11 = vmmov %vm14479_vm0  ;;  %vm14494_vm15 = vcmask 523264  }
 0x368   :  { %v5081_v21 = vsel %vm14476_vm2, %v8286_v22, %v8290_v47  ;;  %v5082_v23 = vsel %vm14477_vm1, %v8290_v47, %v8291_v8  ;;  %v8304_v6 = vpop.permute.xlu1 %8303  ;;  %3236 = vst [vmem:[%s13922_s2 + $0x118] sm:$0xff] %v2822_v12  ;;  %v2937_v49 = vpop.f32.mrf.mxu1  ;;  %vm14484_vm7 = vmmov %vm14479_vm0 }
 0x369   :  { %v12795_v15 = vpop.permute.xlu0 %8298  ;;  %v8306_v57 = vunpack.i.h.bf16 %v8304_v6  ;;  %v8305_v13 = vunpack.i.l.bf16 %v8304_v6  ;;  %v8890_v47 = vpack.c.bf16 %v5082_v23, %v5076_v61  ;;  %v8895_v58 = vpack.c.bf16 %v5081_v21, %v5075_v63  ;;  %3239 = vst [vmem:[%s13922_s2 + $0x130] sm:$0xff] %v2937_v49  ;;  %vm14485_vm6 = vmmov %vm14479_vm0 }
 0x36a   :  { %v8301_v2 = vunpack.i.h.bf16 %v12795_v15  ;;  %v8300_v53 = vunpack.i.l.bf16 %v12795_v15  ;;  %v2941_v28 = vpop.f32.mrf.mxu1  ;;  %vm14486_vm4 = vmmov %vm14479_vm0 }
 0x36b   :  { %v5063_v35 = vsel %vm14482_vm3, %v8305_v13, %v8306_v57  ;;  %8891 = vmatprep.subr.msk.bf16.mxu0 %vm11262_vm9, %v8890_v47  ;;  %3245 = vst [vmem:[%s13922_s2 + $0x160] sm:$0xff] %v2941_v28  ;;  %vm14487_vm14 = vmmov %vm14479_vm0 }
 0x36c   :  { %v5083_v46 = vsel %vm14480_vm13, %v8291_v8, %v8300_v53  ;;  %v5084_v18 = vsel %vm14481_vm5, %v8300_v53, %v8301_v2  ;;  %v8314_v22 = vpop.permute.xlu1 %8313  ;;  %v2824_v8 = vpop.f32.mrf.mxu0  ;;  %8896 = vmatpush2.bf16.msk.msra.mxu0 %vm11291_vm12, %v8895_v58  ;;  %vm14488_vm2 = vmmov %vm14479_vm0  ;;  %vm14498_vm5 = vcmp.eq.s32.totalorder %v9295_v17, 0 }
 0x36d   :  { %v8309_v39 = vpop.permute.xlu0 %8308  ;;  %v8316_v60 = vunpack.i.h.bf16 %v8314_v22  ;;  %v8315_v19 = vunpack.i.l.bf16 %v8314_v22  ;;  %3237 = vst [vmem:[%s13922_s2 + $0x120] sm:$0xff] %v2824_v8  ;;  %v2943_v26 = vpop.f32.mrf.mxu1  ;;  %vm14489_vm1 = vmmov %vm14479_vm0  ;;  %v8904_v47 = vpack.c.bf16 %v5084_v18, %v5078_v27 }
 0x36e   :  { %v8311_v25 = vunpack.i.h.bf16 %v8309_v39  ;;  %v8310_v42 = vunpack.i.l.bf16 %v8309_v39  ;;  %v2828_v61 = vpop.f32.mrf.mxu0  ;;  %3246 = vst [vmem:[%s13922_s2 + $0x168] sm:$0xff] %v2943_v26  ;;  %vm14499_vm3 = vmmov %vm14498_vm5 }
 0x36f   :  { %v5070_v0 = vsel %vm14485_vm6, %v8315_v19, %v8316_v60  ;;  %3243 = vst [vmem:[%s13922_s2 + $0x150] sm:$0xff] %v2828_v61  ;;  %v2945_v12 = vpop.f32.mrf.mxu1  ;;  %8905 = vmatprep.subr.msk.bf16.mxu1 %vm11274_vm8, %v8904_v47  ;;  %v8569_v61 = vld [vmem:[#allocation2 + $0x464] ss:$28 sps:$4 sm:$0xff]   ;;  %vm14504_vm6 = vmmov %vm14494_vm15 }
 0x370   :  { %v5064_v23 = vsel %vm14483_vm11, %v8306_v57, %v8310_v42  ;;  %v5069_v20 = vsel %vm14484_vm7, %v8311_v25, %v8315_v19  ;;  %v12837_v21 = vpop.permute.xlu1 %8323  ;;  %v2830_v6 = vpop.f32.mrf.mxu0  ;;  %3252 = vst [vmem:[%s13922_s2 + $0x198] sm:$0xff] %v2945_v12 }
 0x371   :  { %v12835_v63 = vpop.permute.xlu0 %8318  ;;  %v8326_v53 = vunpack.i.h.bf16 %v12837_v21  ;;  %3244 = vst [vmem:[%s13922_s2 + $0x158] sm:$0xff] %v2830_v6  ;;  %v8325_v57 = vunpack.i.l.bf16 %v12837_v21  ;;  %v2947_v49 = vpop.f32.mrf.mxu1  ;;  %v8914_v19 = vpack.c.bf16 %v5070_v0, %v5064_v23  ;;  %v8919_v27 = vpack.c.bf16 %v5069_v20, %v5063_v35  ;;  %v8572_v35 = vld [vmem:[#allocation2 + $0x4a4] ss:$28 sps:$4 sm:$0xff]  }
 0x372   :  { %v8321_v11 = vunpack.i.h.bf16 %v12835_v63  ;;  %v8320_v48 = vunpack.i.l.bf16 %v12835_v63  ;;  %v2832_v13 = vpop.f32.mrf.mxu0  ;;  %3253 = vst [vmem:[%s13922_s2 + $0x1a0] sm:$0xff] %v2947_v49  ;;  %v8567_v0 = vld [vmem:[#allocation2 + $0x460] ss:$28 sps:$4 sm:$0xff]  }
 0x373   :  { %3250 = vst [vmem:[%s13922_s2 + $0x188] sm:$0xff] %v2832_v13  ;;  %v5071_v22 = vsel %vm14488_vm2, %v8316_v60, %v8325_v57  ;;  %v5072_v25 = vsel %vm14489_vm1, %v8325_v57, %v8326_v53  ;;  %8915 = vmatprep.subr.msk.bf16.mxu0 %vm11262_vm9, %v8914_v19  ;;  %v8566_v60 = vld [vmem:[#allocation2 + $0x49c] ss:$28 sps:$4 sm:$0xff]   ;;  %vm14507_vm2 = vmmov %vm14504_vm6 }
 0x374   :  { %v5065_v62 = vsel %vm14486_vm4, %v8310_v42, %v8320_v48  ;;  %v5066_v39 = vsel %vm14487_vm14, %v8320_v48, %v8321_v11  ;;  %v2834_v8 = vpop.f32.mrf.mxu0  ;;  %v8909_v42 = vpack.c.bf16 %v5083_v46, %v12790_v52  ;;  %8920 = vmatpush2.bf16.msk.msra.mxu0 %vm11291_vm12, %v8919_v27  ;;  %v2951_v46 = vpop.f32.mrf.mxu1  ;;  %v8570_v57 = vld [vmem:[#allocation2 + $0x4a0] ss:$28 sps:$4 sm:$0xff]   ;;  %vm14505_vm4 = vcmask 125952   ;;  %vm14508_vm1 = vmmov %vm14507_vm2 }
 0x375   :  { %3251 = vst [vmem:[%s13922_s2 + $0x190] sm:$0xff] %v2834_v8  ;;  %5819 = vmatprep.subr.bf16.mxu0 %v8566_v60  ;;  %3259 = vst [vmem:[%s13922_s2 + $0x1d0] sm:$0xff] %v2951_v46  ;;  %v8926_v10 = vpack.c.bf16 %v5072_v25, %v5066_v39  ;;  %v8931_v20 = vpack.c.bf16 %v5071_v22, %v5065_v62  ;;  %v8575_v39 = vld [vmem:[#allocation2 + $0x46c] ss:$28 sps:$4 sm:$0xff]   ;;  %v8583_v21 = vld [vmem:[#allocation2 + $0x320] ss:$28 sps:$4 sm:$0xff]  }
 0x376   :  { %8910 = vmatpush2.bf16.msk.msra.mxu1 %vm11311_vm10, %v8909_v42  ;;  %v2838_v52 = vpop.f32.mrf.mxu0  ;;  %v2953_v58 = vpop.f32.mrf.mxu1  ;;  %v12929_v46 = vld [vmem:[%s13921_s1] ss:$8 sps:$4 sm:$0xff]   ;;  %vm14506_vm14 = vmmov %vm14505_vm4 }
 0x377   :  { %3257 = vst [vmem:[%s13922_s2 + $0x1c0] sm:$0xff] %v2838_v52  ;;  %3260 = vst [vmem:[%s13922_s2 + $0x1d8] sm:$0xff] %v2953_v58  ;;  %8927 = vmatprep.subr.msk.bf16.mxu1 %vm11274_vm8, %v8926_v10  ;;  %v8329_v26 = vpop.permute.xlu0 %8328  ;;  %v8334_v48 = vpop.permute.xlu1 %8333  ;;  %vm14490_vm8 = vcmask 7168   ;;  %v8573_v52 = vld [vmem:[#allocation2 + $0x468] ss:$28 sps:$4 sm:$0xff]  }
 0x378   :  { %v2840_v18 = vpop.f32.mrf.mxu0  ;;  %5820 = vmatpush2.bf16.msra.mxu0 %v8564_v38  ;;  %v2955_v23 = vpop.f32.mrf.mxu1  ;;  %v8331_v37 = vunpack.i.h.bf16 %v8329_v26  ;;  %v8330_v13 = vunpack.i.l.bf16 %v8329_v26  ;;  %v8336_v12 = vunpack.i.h.bf16 %v8334_v48  ;;  %v8335_v62 = vunpack.i.l.bf16 %v8334_v48  ;;  %vm14491_vm9 = vmmov %vm14490_vm8 }
 0x379   :  { %3258 = vst [vmem:[%s13922_s2 + $0x1c8] sm:$0xff] %v2840_v18  ;;  %5821 = vmatprep.subr.bf16.mxu0 %v8569_v61  ;;  %3266 = vst [vmem:[%s13922_s2 + $0x208] sm:$0xff] %v2955_v23  ;;  %v14497_v61 = vmov 0  }
 0x37a   :  { %v2842_v28 = vpop.f32.mrf.mxu0  ;;  %8932 = vmatpush2.bf16.msk.msra.mxu1 %vm11311_vm10, %v8931_v20  ;;  %v2957_v6 = vpop.f32.mrf.mxu1  ;;  %v4730_v47 = vsel %vm14490_vm8, %v8136_v9, %v8330_v13  ;;  %v4731_v8 = vsel %vm14491_vm9, %v8330_v13, %v8331_v37  ;;  %vm14492_vm12 = vmmov %vm14490_vm8  ;;  %vm3206_vm9 = vcmask 130048  }
 0x37b   :  { %3264 = vst [vmem:[%s13922_s2 + $0x1f8] sm:$0xff] %v2842_v28  ;;  %5932 = vmatprep.subr.bf16.mxu1 %v8572_v35  ;;  %3267 = vst [vmem:[%s13922_s2 + $0x210] sm:$0xff] %v2957_v6  ;;  %v4736_v49 = vsel %vm14492_vm12, %v8141_v45, %v8335_v62  ;;  %v8339_v27 = vpop.permute.xlu0 %8338  ;;  %v14500_v6 = vld [vmem:[#allocation25_spill] sm:$0xff] }
 0x37c   :  { %v2844_v41 = vpop.f32.mrf.mxu0  ;;  %5822 = vmatpush2.bf16.msra.mxu0 %v8567_v0  ;;  %v2961_v25 = vpop.f32.mrf.mxu1  ;;  %vm14493_vm10 = vmmov %vm14490_vm8  ;;  %v8341_v30 = vunpack.i.h.bf16 %v8339_v27  ;;  %v8340_v45 = vunpack.i.l.bf16 %v8339_v27  ;;  %vm14501_vm11 = vnez %v14500_v6 }
 0x37d   :  { %3265 = vst [vmem:[%s13922_s2 + $0x200] sm:$0xff] %v2844_v41  ;;  %3273 = vst [vmem:[%s13922_s2 + $0x240] sm:$0xff] %v2961_v25  ;;  %v4737_v42 = vsel %vm14493_vm10, %v8335_v62, %v8336_v12  ;;  %v12982_v62 = vld [vmem:[%s13921_s1 + $0x10] ss:$8 sps:$4 sm:$0xff]  }
 0x37e   :  { %v2848_v22 = vpop.f32.mrf.mxu0  ;;  %5933 = vmatpush2.bf16.msra.mxu1 %v8570_v57  ;;  %v2963_v60 = vpop.f32.mrf.mxu1  ;;  %vm14495_vm0 = vmmov %vm14490_vm8  ;;  %v8938_v41 = vpack.c.bf16 %v4737_v42, %v4731_v8  ;;  %v8943_v57 = vpack.c.bf16 %v4736_v49, %v4730_v47 }
 0x37f   :  { %3271 = vst [vmem:[%s13922_s2 + $0x230] sm:$0xff] %v2848_v22  ;;  %5934 = vmatprep.subr.bf16.mxu1 %v8575_v39  ;;  %5824 = vmatmul.mubr.bf16.vlgmr.msra.gmra.mxu0 %v12929_v46  ;;  %3274 = vst [vmem:[%s13922_s2 + $0x248] sm:$0xff] %v2963_v60  ;;  %v4732_v18 = vsel %vm14495_vm0, %v8331_v37, %v8340_v45  ;;  %v14502_v37 = vld [vmem:[#allocation4_spill] sm:$0xff] }
 0x380   :  { %v2850_v19 = vpop.f32.mrf.mxu0  ;;  %6809 = vmatprep.mubr.msk.bf16.mxu0 %vm14494_vm15, %v12941_v50  ;;  %v2965_v38 = vpop.f32.mrf.mxu1  ;;  %vm14496_vm13 = vmmov %vm14495_vm0  ;;  %v4791_v28 = vsel %vm14498_vm5, 0.0, %v4732_v18  ;;  %8939 = vmatprep.subr.msk.bf16.mxu0 %vm14501_vm11, %v8938_v41  ;;  %vm14503_vm7 = vnez %v14502_v37  ;;  %v12994_v39 = vld [vmem:[%s13921_s1 + $0x24] ss:$8 sps:$4 sm:$0xff]  }
 0x381   :  { %3272 = vst [vmem:[%s13922_s2 + $0x238] sm:$0xff] %v2850_v19  ;;  %3280 = vst [vmem:[%s13922_s2 + $0x278] sm:$0xff] %v2965_v38  ;;  %v4738_v58 = vsel %vm14496_vm13, %v8336_v12, %v8341_v30  ;;  %v7107_v20 = vpack.c.bf16 %v4791_v28, %v4791_v28  ;;  %8944 = vmatpush1.bf16.msk.msra.mxu0 %vm14503_vm7, %v8943_v57  ;;  %v13022_v38 = vld [vmem:[%s13921_s1 + $0x20] ss:$8 sps:$4 sm:$0xff]   ;;  %vm14513_vm13 = vcmask 1039360  }
 0x382   :  { %v2852_v9 = vpop.f32.mrf.mxu0  ;;  %5935 = vmatpush2.bf16.msra.mxu1 %v8573_v52  ;;  %v2967_v35 = vpop.f32.mrf.mxu1  ;;  %v4798_v23 = vsel %vm14499_vm3, 0.0, %v4738_v58  ;;  %vm14509_vm8 = vmmov %vm14508_vm1 }
 0x383   :  { %3278 = vst [vmem:[%s13922_s2 + $0x268] sm:$0xff] %v2852_v9  ;;  %6130 = vmatprep.subr.bf16.mxu1 %v14497_v61  ;;  %3281 = vst [vmem:[%s13922_s2 + $0x280] sm:$0xff] %v2967_v35  ;;  %v7111_v0 = vpack.c.bf16 %v4798_v23, %v4798_v23 }
 0x384   :  { %v2854_v10 = vpop.f32.mrf.mxu0  ;;  %v2971_v48 = vpop.f32.mrf.mxu1  ;;  %4898 = vst.msk [vmem:[#allocation2 + $0x440] sm:$0xf] %vm14505_vm4, %v7107_v20  ;;  %vm14510_vm12 = vmmov %vm14495_vm0 }
 0x385   :  { %3279 = vst [vmem:[%s13922_s2 + $0x270] sm:$0xff] %v2854_v10  ;;  %5937 = vmatmul.mubr.bf16.vlgmr.msra.gmra.mxu1 %v12929_v46  ;;  %3287 = vst [vmem:[%s13922_s2 + $0x2b0] sm:$0xff] %v2971_v48  ;;  %v13029_v10 = vld [vmem:[%s13921_s1 + $0x34] ss:$8 sps:$4 sm:$0xff]  }
 0x386   :  { %v2858_v26 = vpop.f32.mrf.mxu0  ;;  %6817 = vmatprep.mubr.msk.bf16.mxu1 %vm14504_vm6, %v12941_v50  ;;  %4902 = vst.msk [vmem:[#allocation2 + $0x45c] sm:$0xf] %vm14506_vm14, %v7111_v0  ;;  %v2973_v12 = vpop.f32.mrf.mxu1  ;;  %vm14511_vm10 = vmmov %vm14495_vm0  ;;  %vm14518_vm14 = vcmp.eq.s32.totalorder %v9295_v17, 0 }
 0x387   :  { %3285 = vst [vmem:[%s13922_s2 + $0x2a0] sm:$0xff] %v2858_v26  ;;  %5834 = vmatmul.mubr.bf16.gmra.mxu0 %v12982_v62  ;;  %3288 = vst [vmem:[%s13922_s2 + $0x2b8] sm:$0xff] %v2973_v12 }
 0x388   :  { %v2860_v13 = vpop.f32.mrf.mxu0  ;;  %6810 = vmatprep.mubr.msk.bf16.mxu0 %vm14507_vm2, %v12994_v39  ;;  %v2975_v25 = vpop.f32.mrf.mxu1  ;;  %vm14512_vm15 = vmmov %vm14495_vm0 }
 0x389   :  { %3286 = vst [vmem:[%s13922_s2 + $0x2a8] sm:$0xff] %v2860_v13  ;;  %3294 = vst [vmem:[%s13922_s2 + $0x2e8] sm:$0xff] %v2975_v25  ;;  %v8349_v60 = vpop.permute.xlu0 %8348 }
 0x38a   :  { %v2862_v22 = vpop.f32.mrf.mxu0  ;;  %v2977_v8 = vpop.f32.mrf.mxu1  ;;  %v8351_v52 = vunpack.i.h.bf16 %v8349_v60  ;;  %v8350_v30 = vunpack.i.l.bf16 %v8349_v60  ;;  %vm14514_vm5 = vmmov %vm14513_vm13 }
 0x38b   :  { %3292 = vst [vmem:[%s13922_s2 + $0x2d8] sm:$0xff] %v2862_v22  ;;  %3295 = vst [vmem:[%s13922_s2 + $0x2f0] sm:$0xff] %v2977_v8  ;;  %v8344_v27 = vpop.permute.xlu1 %8343 }
 0x38c   :  { %v2864_v47 = vpop.f32.mrf.mxu0  ;;  %v2981_v42 = vpop.f32.mrf.mxu1  ;;  %v8346_v45 = vunpack.i.h.bf16 %v8344_v27  ;;  %v8345_v9 = vunpack.i.l.bf16 %v8344_v27  ;;  %v4724_v35 = vsel %vm14510_vm12, %v8171_v24, %v8350_v30  ;;  %v4725_v28 = vsel %vm14511_vm10, %v8350_v30, %v8351_v52  ;;  %vm14515_vm3 = vmmov %vm14508_vm1 }
 0x38d   :  { %3293 = vst [vmem:[%s13922_s2 + $0x2e0] sm:$0xff] %v2864_v47  ;;  %5947 = vmatmul.mubr.bf16.gmra.mxu1 %v12982_v62  ;;  %v8576_v19 = vld [vmem:[#allocation2 + $0x440] ss:$28 sps:$4 sm:$0xff]   ;;  %3301 = vst [vmem:[%s13922_s2 + $0x320] sm:$0xff] %v2981_v42  ;;  %v8359_v26 = vpop.permute.xlu0 %8358  ;;  %vm14522_vm10 = vcmask 121856  }
 0x38e   :  { %v2868_v49 = vpop.f32.mrf.mxu0  ;;  %6818 = vmatprep.mubr.msk.bf16.mxu1 %vm14508_vm1, %v12994_v39  ;;  %6131 = vmatpush1.bf16.msra.mxu1 %v8576_v19  ;;  %v2983_v58 = vpop.f32.mrf.mxu1  ;;  %v4718_v23 = vsel %vm14512_vm15, %v8166_v44, %v8345_v9  ;;  %v4719_v20 = vsel %vm14495_vm0, %v8345_v9, %v8346_v45  ;;  %v8361_v14 = vunpack.i.h.bf16 %v8359_v26  ;;  %v8360_v24 = vunpack.i.l.bf16 %v8359_v26  ;;  %vm14516_vm6 = vmmov %vm14495_vm0 }
 0x38f   :  { %3299 = vst [vmem:[%s13922_s2 + $0x310] sm:$0xff] %v2868_v49  ;;  %5844 = vmatmul.mubr.bf16.gmra.mxu0 %v13022_v38  ;;  %6132 = vmatprep.subr.bf16.mxu1 %v14497_v61  ;;  %3302 = vst [vmem:[%s13922_s2 + $0x328] sm:$0xff] %v2983_v58  ;;  %v8354_v48 = vpop.permute.xlu1 %8353  ;;  %v8950_v27 = vpack.c.bf16 %v4725_v28, %v4719_v20  ;;  %v13096_v28 = vld [vmem:[%s13921_s1 + $0x44] ss:$8 sps:$4 sm:$0xff]  }
 0x390   :  { %v2870_v18 = vpop.f32.mrf.mxu0  ;;  %6811 = vmatprep.mubr.msk.bf16.mxu0 %vm14509_vm8, %v13029_v10  ;;  %v2985_v41 = vpop.f32.mrf.mxu1  ;;  %v8356_v13 = vunpack.i.h.bf16 %v8354_v48  ;;  %v8355_v44 = vunpack.i.l.bf16 %v8354_v48  ;;  %v13063_v12 = vsel %vm14513_vm13, %v8196_v32, %v8360_v24  ;;  %v13066_v22 = vsel %vm14514_vm5, %v8360_v24, %v8361_v14  ;;  %vm14517_vm4 = vmmov %vm14495_vm0 }
 0x391   :  { %3300 = vst [vmem:[%s13922_s2 + $0x318] sm:$0xff] %v2870_v18  ;;  %3308 = vst [vmem:[%s13922_s2 + $0x358] sm:$0xff] %v2985_v41  ;;  %v8369_v42 = vpop.permute.xlu0 %8368  ;;  %8951 = vmatprep.subr.msk.bf16.mxu0 %vm14501_vm11, %v8950_v27  ;;  %v8955_v41 = vpack.c.bf16 %v4724_v35, %v4718_v23  ;;  %vm14520_vm8 = vcmask 125952   ;;  %vm14524_vm0 = vcmp.eq.s32.totalorder %v9295_v17, 27 }
 0x392   :  { %v2872_v0 = vpop.f32.mrf.mxu0  ;;  %v2987_v34 = vpop.f32.mrf.mxu1  ;;  %v4726_v8 = vsel %vm14516_vm6, %v8351_v52, %v8356_v13  ;;  %v4720_v49 = vsel %vm14517_vm4, %v8346_v45, %v8355_v44  ;;  %vm14519_vm2 = vmmov %vm14518_vm14  ;;  %v8371_v60 = vunpack.i.h.bf16 %v8369_v42  ;;  %v13088_v52 = vld [vmem:[%s13921_s1 + $0x30] ss:$8 sps:$4 sm:$0xff]   ;;  %v8370_v58 = vunpack.i.l.bf16 %v8369_v42 }
 0x393   :  { %3306 = vst [vmem:[%s13922_s2 + $0x348] sm:$0xff] %v2872_v0  ;;  %3309 = vst [vmem:[%s13922_s2 + $0x360] sm:$0xff] %v2987_v34  ;;  %v8364_v19 = vpop.permute.xlu1 %8363  ;;  %v4784_v7 = vsel %vm14518_vm14, 0.0, %v4726_v8  ;;  %v4777_v32 = vsel %vm14519_vm2, 0.0, %v4720_v49  ;;  %8956 = vmatpush1.bf16.msk.msra.mxu0 %vm14503_vm7, %v8955_v41 }
 0x394   :  { %v2874_v57 = vpop.f32.mrf.mxu0  ;;  %v3137_v47 = vpop.f32.mrf.mxu1  ;;  %v7103_v9 = vpack.c.bf16 %v4784_v7, %v4784_v7  ;;  %v7099_v18 = vpack.c.bf16 %v4777_v32, %v4777_v32  ;;  %v8366_v0 = vunpack.i.h.bf16 %v8364_v19  ;;  %v8365_v20 = vunpack.i.l.bf16 %v8364_v19  ;;  %vm14521_vm12 = vmmov %vm14520_vm8 }
 0x395   :  { %5957 = vmatmul.mubr.bf16.gmra.mxu1 %v13022_v38  ;;  %3307 = vst [vmem:[%s13922_s2 + $0x350] sm:$0xff] %v2874_v57  ;;  %3207 = vst.msk [vmem:[%s13922_s2 + $0x30] sm:$0xff] %vm3206_vm9, %v3137_v47  ;;  %v4157_v35 = vsel %vm14522_vm10, %v8361_v14, %v8370_v58  ;;  %v8379_v24 = vpop.permute.xlu0 %8378  ;;  %v13152_v58 = vld [vmem:[%s13921_s1 + $0x40] ss:$8 sps:$4 sm:$0xff]  }
 0x396   :  { %6819 = vmatprep.mubr.msk.bf16.mxu1 %vm14515_vm3, %v13029_v10  ;;  %v3024_v25 = vpop.f32.mrf.mxu0  ;;  %v3139_v45 = vpop.f32.mrf.mxu1  ;;  %4894 = vst.msk [vmem:[#allocation2 + $0x424] sm:$0xf] %vm14520_vm8, %v7103_v9  ;;  %vm14523_vm15 = vmmov %vm14522_vm10  ;;  %v4179_v34 = vsel %vm14524_vm0, 0.0, %v4157_v35  ;;  %v13121_v14 = vsel %vm14514_vm5, %v8201_v1, %v8365_v20  ;;  %v8381_v42 = vunpack.i.h.bf16 %v8379_v24  ;;  %v8380_v19 = vunpack.i.l.bf16 %v8379_v24 }
 0x397   :  { %3204 = vst [vmem:[%s13922_s2 + $0x20] sm:$0xff] %v3024_v25  ;;  %5854 = vmatmul.mubr.bf16.gmra.mxu0 %v13088_v52  ;;  %4890 = vst.msk [vmem:[#allocation2 + $0x408] sm:$0xf] %vm14521_vm12, %v7099_v18  ;;  %v4158_v23 = vsel %vm14523_vm15, %v8366_v0, %v8371_v60  ;;  %v8374_v57 = vpop.permute.xlu1 %8373  ;;  %v7091_v8 = vpack.c.bf16 %v4179_v34, %v4179_v34  ;;  %vm14535_vm15 = vcmask 7168   ;;  %v8969_v40 = vpack.c.bf16 %v13121_v14, %v13063_v12 }
 0x398   :  { %v3026_v30 = vpop.f32.mrf.mxu0  ;;  %6812 = vmatprep.mubr.msk.bf16.mxu0 %vm14508_vm1, %v13096_v28  ;;  %v3140_v48 = vpop.f32.mrf.mxu1  ;;  %vm14525_vm13 = vmmov %vm14524_vm0  ;;  %v8376_v7 = vunpack.i.h.bf16 %v8374_v57  ;;  %v8375_v32 = vunpack.i.l.bf16 %v8374_v57 }
 0x399   :  { %3205 = vst [vmem:[%s13922_s2 + $0x28] sm:$0xff] %v3026_v30  ;;  %3214 = vst.msk [vmem:[%s13922_s2 + $0x68] sm:$0xff] %vm3206_vm9, %v3140_v48  ;;  %v4186_v13 = vsel %vm14525_vm13, 0.0, %v4158_v23  ;;  %v8389_v60 = vpop.permute.xlu0 %8388  ;;  %vm14537_vm13 = vcmask 121856  }
 0x39a   :  { %v3028_v26 = vpop.f32.mrf.mxu0  ;;  %vm14526_vm3 = vmmov %vm14514_vm5  ;;  %v3142_v47 = vpop.f32.mrf.mxu1  ;;  %v7095_v49 = vpack.c.bf16 %v4186_v13, %v4186_v13  ;;  %v8391_v9 = vunpack.i.h.bf16 %v8389_v60  ;;  %v8390_v18 = vunpack.i.l.bf16 %v8389_v60  ;;  %vm14538_vm5 = vcmp.eq.s32.totalorder %v9295_v17, 27 }
 0x39b   :  { %3212 = vst [vmem:[%s13922_s2 + $0x58] sm:$0xff] %v3028_v26  ;;  %v13124_v44 = vsel %vm14526_vm3, %v8365_v20, %v8366_v0  ;;  %vm14527_vm6 = vmmov %vm14508_vm1  ;;  %v8384_v27 = vpop.permute.xlu1 %8383  ;;  %v13166_v20 = vld [vmem:[%s13921_s1 + $0x54] ss:$8 sps:$4 sm:$0xff]  }
 0x39c   :  { %v3030_v25 = vpop.f32.mrf.mxu0  ;;  %v3145_v1 = vpop.f32.mrf.mxu1  ;;  %vm14528_vm4 = vmmov %vm14520_vm8  ;;  %v13176_v16 = vsel %vm14535_vm15, %v8246_v29, %v8390_v18  ;;  %v8386_v35 = vunpack.i.h.bf16 %v8384_v27  ;;  %v8385_v56 = vunpack.i.l.bf16 %v8384_v27 }
 0x39d   :  { %5967 = vmatmul.mubr.bf16.gmra.mxu1 %v13088_v52  ;;  %3213 = vst [vmem:[%s13922_s2 + $0x60] sm:$0xff] %v3030_v25  ;;  %4286 = vst.msk [vmem:[#allocation2 + $0x3d0] sm:$0xf] %vm14528_vm4, %v7091_v8  ;;  %v8399_v23 = vpop.permute.xlu0 %8398 }
 0x39e   :  { %6820 = vmatprep.mubr.msk.bf16.mxu1 %vm14527_vm6, %v13096_v28  ;;  %v3034_v54 = vpop.f32.mrf.mxu0  ;;  %vm14529_vm14 = vmmov %vm14528_vm4  ;;  %3221 = vst.msk [vmem:[%s13922_s2 + $0xa0] sm:$0xff] %vm3206_vm9, %v3145_v1  ;;  %v3147_v41 = vpop.f32.mrf.mxu1  ;;  %v8577_v57 = vld [vmem:[#allocation2 + $0x408] ss:$28 sps:$4 sm:$0xff]   ;;  %v8401_v29 = vunpack.i.h.bf16 %v8399_v23  ;;  %v8400_v34 = vunpack.i.l.bf16 %v8399_v23  ;;  %v4156_v47 = vsel %vm14537_vm13, %v8381_v42, %v8386_v35 }
 0x39f   :  { %4290 = vst.msk [vmem:[#allocation2 + $0x3ec] sm:$0xf] %vm14529_vm14, %v7095_v49  ;;  %3219 = vst [vmem:[%s13922_s2 + $0x90] sm:$0xff] %v3034_v54  ;;  %5864 = vmatmul.mubr.bf16.gmra.mxu0 %v13152_v58  ;;  %v8394_v24 = vpop.permute.xlu1 %8393  ;;  %6133 = vmatpush1.bf16.msra.mxu1 %v8577_v57  ;;  %vm14542_vm14 = vcmp.eq.s32.totalorder %v9295_v17, 0 }
 0x3a0   :  { %vm14530_vm2 = vmmov %vm14526_vm3  ;;  %v3036_v0 = vpop.f32.mrf.mxu0  ;;  %v3148_v26 = vpop.f32.mrf.mxu1  ;;  %v8396_v8 = vunpack.i.h.bf16 %v8394_v24  ;;  %v8395_v49 = vunpack.i.l.bf16 %v8394_v24  ;;  %6134 = vmatprep.subr.bf16.mxu1 %v14497_v61  ;;  %v13226_v24 = vld [vmem:[%s13921_s1 + $0x50] ss:$8 sps:$4 sm:$0xff]  }
 0x3a1   :  { %v13144_v30 = vsel %vm14530_vm2, %v8226_v55, %v8380_v19  ;;  %vm14531_vm1 = vmmov %vm14530_vm2  ;;  %3220 = vst [vmem:[%s13922_s2 + $0x98] sm:$0xff] %v3036_v0  ;;  %v13203_v41 = vpop.permute.xlu0 %8408 }
 0x3a2   :  { %v13147_v45 = vsel %vm14531_vm1, %v8380_v19, %v8381_v42  ;;  %vm14532_vm8 = vmmov %vm14531_vm1  ;;  %3228 = vst.msk [vmem:[%s13922_s2 + $0xd8] sm:$0xff] %vm3206_vm9, %v3148_v26  ;;  %v3150_v25 = vpop.f32.mrf.mxu1  ;;  %v4172_v19 = vsel %vm14538_vm5, 0.0, %v4156_v47  ;;  %v8411_v51 = vunpack.i.h.bf16 %v13203_v41 }
 0x3a3   :  { %v13158_v33 = vsel %vm14532_vm8, %v8221_v36, %v8375_v32  ;;  %vm14533_vm12 = vmmov %vm14531_vm1  ;;  %v3038_v36 = vpop.f32.mrf.mxu0  ;;  %v7087_v60 = vpack.c.bf16 %v4172_v19, %v4172_v19 }
 0x3a4   :  { %v13161_v55 = vsel %vm14533_vm12, %v8375_v32, %v8376_v7  ;;  %vm14534_vm10 = vmmov %vm14527_vm6  ;;  %3226 = vst [vmem:[%s13922_s2 + $0xc8] sm:$0xff] %v3038_v36  ;;  %v3153_v42 = vpop.f32.mrf.mxu1 }
 0x3a5   :  { %6813 = vmatprep.mubr.msk.bf16.mxu0 %vm14534_vm10, %v13166_v20  ;;  %vm14536_vm0 = vmmov %vm14535_vm15  ;;  %v3040_v13 = vpop.f32.mrf.mxu0  ;;  %5977 = vmatmul.mubr.bf16.gmra.mxu1 %v13152_v58  ;;  %3235 = vst.msk [vmem:[%s13922_s2 + $0x110] sm:$0xff] %vm3206_vm9, %v3153_v42  ;;  %v8419_v19 = vpop.permute.xlu0 %8418 }
 0x3a6   :  { %v13179_v48 = vsel %vm14536_vm0, %v8390_v18, %v8391_v9  ;;  %3227 = vst [vmem:[%s13922_s2 + $0xd0] sm:$0xff] %v3040_v13  ;;  %vm14539_vm3 = vmmov %vm14537_vm13  ;;  %v8410_v13 = vunpack.i.l.bf16 %v13203_v41  ;;  %v8420_v41 = vunpack.i.l.bf16 %v8419_v19 }
 0x3a7   :  { %v4155_v54 = vsel %vm14539_vm3, %v8376_v7, %v8385_v56  ;;  %vm14540_vm6 = vmmov %vm14536_vm0  ;;  %v3044_v32 = vpop.f32.mrf.mxu0  ;;  %v13205_v7 = vpop.permute.xlu1 %8403  ;;  %5874 = vmatmul.mubr.bf16.gmra.mxu0 %v13226_v24 }
 0x3a8   :  { %v3759_v1 = vsel %vm14540_vm6, %v8391_v9, %v8400_v34  ;;  %vm14541_vm4 = vmmov %vm14538_vm5  ;;  %v8578_v9 = vld [vmem:[#allocation2 + $0x3d0] ss:$28 sps:$4 sm:$0xff]   ;;  %3233 = vst [vmem:[%s13922_s2 + $0x100] sm:$0xff] %v3044_v32  ;;  %v3155_v56 = vpop.f32.mrf.mxu1  ;;  %v8406_v25 = vunpack.i.h.bf16 %v13205_v7  ;;  %v8405_v47 = vunpack.i.l.bf16 %v13205_v7 }
 0x3a9   :  { %v4165_v27 = vsel %vm14541_vm4, 0.0, %v4155_v54  ;;  %v3818_v18 = vsel %vm14542_vm14, 0.0, %v3759_v1  ;;  %vm14543_vm2 = vmmov %vm14536_vm0  ;;  %v3046_v57 = vpop.f32.mrf.mxu0  ;;  %6135 = vmatpush1.bf16.msra.mxu1 %v8578_v9  ;;  %v13310_v56 = vld [vmem:[%s13921_s1 + $0x60] ss:$8 sps:$4 sm:$0xff]  }
 0x3aa   :  { %v3765_v0 = vsel %vm14543_vm2, %v8396_v8, %v8401_v29  ;;  %vm14544_vm1 = vmmov %vm14534_vm10  ;;  %v7083_v36 = vpack.c.bf16 %v4165_v27, %v4165_v27  ;;  %v7059_v26 = vpack.c.bf16 %v3818_v18, %v3818_v18  ;;  %vm14547_vm10 = vcmask 125952   ;;  %3234 = vst [vmem:[%s13922_s2 + $0x108] sm:$0xff] %v3046_v57  ;;  %6136 = vmatprep.subr.bf16.mxu1 %v14497_v61 }
 0x3ab   :  { %6821 = vmatprep.mubr.msk.bf16.mxu1 %vm14544_vm1, %v13166_v20  ;;  %vm14545_vm8 = vmmov %vm14542_vm14  ;;  %4282 = vst.msk [vmem:[#allocation2 + $0x3b4] sm:$0xf] %vm14547_vm10, %v7087_v60  ;;  %v8414_v54 = vpop.permute.xlu1 %8413  ;;  %v13272_v60 = vsel %vm14543_vm2, %v8405_v47, %v8406_v25 }
 0x3ac   :  { %v3825_v35 = vsel %vm14545_vm8, 0.0, %v3765_v0  ;;  %vm14546_vm12 = vmmov %vm14536_vm0  ;;  %v8964_v0 = vpack.c.bf16 %v13124_v44, %v13066_v22  ;;  %v8416_v22 = vunpack.i.h.bf16 %v8414_v54  ;;  %v8415_v44 = vunpack.i.l.bf16 %v8414_v54 }
 0x3ad   :  { %v13221_v23 = vsel %vm14546_vm12, %v8251_v59, %v8395_v49  ;;  %v7063_v29 = vpack.c.bf16 %v3825_v35, %v3825_v35  ;;  %vm14548_vm15 = vmmov %vm14536_vm0  ;;  %v13237_v59 = vld [vmem:[%s13921_s1 + $0x64] ss:$8 sps:$4 sm:$0xff]   ;;  %5987 = vmatmul.mubr.bf16.gmra.mxu1 %v13226_v24 }
 0x3ae   :  { %v13231_v34 = vsel %vm14548_vm15, %v8395_v49, %v8396_v8  ;;  %vm14549_vm0 = vmmov %vm14544_vm1  ;;  %v3048_v8 = vpop.f32.mrf.mxu0  ;;  %v3156_v49 = vpop.f32.mrf.mxu1  ;;  %vm14557_vm1 = vnez %v14556_v43 }
 0x3af   :  { %6814 = vmatprep.mubr.msk.bf16.mxu0 %vm14549_vm0, %v13237_v59  ;;  %vm14550_vm13 = vmmov %vm14547_vm10  ;;  %3240 = vst [vmem:[%s13922_s2 + $0x138] sm:$0xff] %v3048_v8  ;;  %8965 = vmatprep.subr.msk.bf16.mxu0 %vm14557_vm1, %v8964_v0  ;;  %v8424_v35 = vpop.permute.xlu1 %8423  ;;  %v13318_v8 = vld [vmem:[%s13921_s1 + $0x74] ss:$8 sps:$4 sm:$0xff]  }
 0x3b0   :  { %4278 = vst.msk [vmem:[#allocation2 + $0x398] sm:$0xf] %vm14550_vm13, %v7083_v36  ;;  %vm14551_vm5 = vmmov %vm14547_vm10  ;;  %v3050_v27 = vpop.f32.mrf.mxu0  ;;  %v3158_v18 = vpop.f32.mrf.mxu1  ;;  %v8974_v36 = vpack.c.bf16 %v13147_v45, %v13161_v55  ;;  %vm14561_vm10 = vcmask 1039360   ;;  %v8581_v45 = vld [vmem:[#allocation2 + $0x35c] ss:$28 sps:$4 sm:$0xff]   ;;  %5884 = vmatmul.mubr.bf16.gmra.mxu0 %v13310_v56 }
 0x3b1   :  { %3926 = vst.msk [vmem:[#allocation2 + $0x2f0] sm:$0xf] %vm14551_vm5, %v7059_v26  ;;  %vm14552_vm3 = vmmov %vm14551_vm5  ;;  %v8429_v26 = vpop.permute.xlu0 %8428  ;;  %v13302_v12 = vsel %vm14561_vm10, %v8296_v5, %v8420_v41 }
 0x3b2   :  { %3930 = vst.msk [vmem:[#allocation2 + $0x30c] sm:$0xf] %vm14552_vm3, %v7063_v29  ;;  %vm14553_vm6 = vmmov %vm14543_vm2  ;;  %v3054_v7 = vpop.f32.mrf.mxu0  ;;  %v3161_v9 = vpop.f32.mrf.mxu1  ;;  %v8431_v55 = vunpack.i.h.bf16 %v8429_v26  ;;  %v8430_v57 = vunpack.i.l.bf16 %v8429_v26  ;;  %vm14566_vm3 = vcmp.eq.s32.totalorder %v9295_v17, 0 }
 0x3b3   :  { %3242 = vst.msk [vmem:[%s13922_s2 + $0x148] sm:$0xff] %vm3206_vm9, %v3156_v49  ;;  %v13261_v1 = vsel %vm14553_vm6, %v8276_v31, %v8410_v13  ;;  %vm14554_vm4 = vmmov %vm14543_vm2  ;;  %v8421_v31 = vunpack.i.h.bf16 %v8419_v19 }
 0x3b4   :  { %v13264_v32 = vsel %vm14554_vm4, %v8410_v13, %v8411_v51  ;;  %vm14555_vm14 = vmmov %vm14543_vm2  ;;  %3241 = vst [vmem:[%s13922_s2 + $0x140] sm:$0xff] %v3050_v27  ;;  %v3056_v29 = vpop.f32.mrf.mxu0  ;;  %v3163_v13 = vpop.f32.mrf.mxu1  ;;  %vm14568_vm4 = vcmask 121856  }
 0x3b5   :  { %v13269_v42 = vsel %vm14555_vm14, %v8271_v3, %v8405_v47  ;;  %v14558_v3 = vld [vmem:[#allocation48_spill] sm:$0xff]  ;;  %vm14560_vm12 = vmmov %vm14549_vm0  ;;  %3247 = vst [vmem:[%s13922_s2 + $0x170] sm:$0xff] %v3054_v7  ;;  %v5129_v19 = vsel %vm14568_vm4, %v8421_v31, %v8430_v57  ;;  %vm14569_vm14 = vcmp.eq.s32.totalorder %v9295_v17, 27  ;;  %v8439_v7 = vpop.permute.xlu0 %8438  ;;  %v8585_v57 = vld [vmem:[#allocation2 + $0x324] ss:$28 sps:$4 sm:$0xff]   ;;  %v8997_v17 = vpack.c.bf16 %v13264_v32, %v13272_v60 }
 0x3b6   :  { %vm14559_vm8 = vnez %v14558_v3  ;;  %6822 = vmatprep.mubr.msk.bf16.mxu1 %vm14560_vm12, %v13237_v59  ;;  %3249 = vst.msk [vmem:[%s13922_s2 + $0x180] sm:$0xff] %vm3206_vm9, %v3161_v9  ;;  %vm14562_vm15 = vmmov %vm14561_vm10  ;;  %v3058_v54 = vpop.f32.mrf.mxu0  ;;  %v3164_v27 = vpop.f32.mrf.mxu1  ;;  %v9004_v32 = vpack.c.bf16 %v13261_v1, %v13269_v42  ;;  %v8597_v3 = vld [vmem:[#allocation2 + $0x474] ss:$28 sps:$4 sm:$0xff]  }
 0x3b7   :  { %8970 = vmatpush1.bf16.msk.msra.mxu0 %vm14559_vm8, %v8969_v40  ;;  %v13305_v14 = vsel %vm14562_vm15, %v8420_v41, %v8421_v31  ;;  %vm14563_vm0 = vmmov %vm14543_vm2  ;;  %v8582_v47 = vld [vmem:[#allocation2 + $0x398] ss:$28 sps:$4 sm:$0xff]   ;;  %3248 = vst [vmem:[%s13922_s2 + $0x178] sm:$0xff] %v3056_v29  ;;  %v5151_v40 = vsel %vm14569_vm14, 0.0, %v5129_v19  ;;  %v8426_v41 = vunpack.i.h.bf16 %v8424_v35  ;;  %v13336_v9 = vpop.permute.xlu1 %8433  ;;  %v8425_v31 = vunpack.i.l.bf16 %v8424_v35  ;;  %5997 = vmatmul.mubr.bf16.gmra.mxu1 %v13310_v56 }
 0x3b8   :  { %8975 = vmatprep.subr.msk.bf16.mxu0 %vm14557_vm1, %v8974_v36  ;;  %v3753_v4 = vsel %vm14563_vm0, %v8411_v51, %v8416_v22  ;;  %vm14564_vm13 = vmmov %vm14563_vm0  ;;  %6137 = vmatpush1.bf16.msra.mxu1 %v8582_v47  ;;  %3254 = vst [vmem:[%s13922_s2 + $0x1a8] sm:$0xff] %v3058_v54  ;;  %v8441_v22 = vunpack.i.h.bf16 %v8439_v7  ;;  %v3060_v36 = vpop.f32.mrf.mxu0  ;;  %v3166_v26 = vpop.f32.mrf.mxu1  ;;  %vm14570_vm2 = vcmask 125952   ;;  %v8436_v29 = vunpack.i.h.bf16 %v13336_v9  ;;  %v13390_v19 = vld [vmem:[%s13921_s1 + $0x70] ss:$8 sps:$4 sm:$0xff]  }
 0x3b9   :  { %v3747_v5 = vsel %vm14564_vm13, %v8406_v25, %v8415_v44  ;;  %vm14565_vm5 = vmmov %vm14560_vm12  ;;  %v3811_v49 = vsel %vm14566_vm3, 0.0, %v3753_v4  ;;  %v8979_v25 = vpack.c.bf16 %v13144_v30, %v13158_v33  ;;  %3256 = vst.msk [vmem:[%s13922_s2 + $0x1b8] sm:$0xff] %vm3206_vm9, %v3164_v27  ;;  %v8579_v30 = vld [vmem:[#allocation2 + $0x358] ss:$28 sps:$4 sm:$0xff]   ;;  %v7139_v33 = vpack.c.bf16 %v5151_v40, %v5151_v40  ;;  %6138 = vmatprep.subr.bf16.mxu1 %v14497_v61  ;;  %v8586_v4 = vld [vmem:[#allocation2 + $0x360] ss:$28 sps:$4 sm:$0xff]  }
 0x3ba   :  { %6815 = vmatprep.mubr.msk.bf16.mxu0 %vm14565_vm5, %v13318_v8  ;;  %vm14567_vm6 = vmmov %vm14566_vm3  ;;  %v7055_v18 = vpack.c.bf16 %v3811_v49, %v3811_v49  ;;  %v8440_v44 = vunpack.i.l.bf16 %v8439_v7  ;;  %v8435_v13 = vunpack.i.l.bf16 %v13336_v9  ;;  %3255 = vst [vmem:[%s13922_s2 + $0x1b0] sm:$0xff] %v3060_v36  ;;  %vm14575_vm13 = vcmask 1039360   ;;  %v3064_v49 = vpop.f32.mrf.mxu0  ;;  %v8588_v36 = vld [vmem:[#allocation2 + $0x2f0] ss:$28 sps:$4 sm:$0xff]  }
 0x3bb   :  { %v3804_v51 = vsel %vm14567_vm6, 0.0, %v3747_v5  ;;  %8980 = vmatpush1.bf16.msk.msra.mxu0 %vm14559_vm8, %v8979_v25  ;;  %vm14571_vm12 = vmmov %vm14570_vm2  ;;  %v13360_v5 = vsel %vm14575_vm13, %v8301_v2, %v8425_v31  ;;  %v8444_v2 = vpop.permute.xlu1 %8443  ;;  %3261 = vst [vmem:[%s13922_s2 + $0x1e0] sm:$0xff] %v3064_v49  ;;  %v8985_v9 = vpack.c.bf16 %v13231_v34, %v13179_v48 }
 0x3bc   :  { %v7051_v0 = vpack.c.bf16 %v3804_v51, %v3804_v51  ;;  %6025 = vmatprep.subr.bf16.mxu0 %v8581_v45  ;;  %3922 = vst.msk [vmem:[#allocation2 + $0x2d4] sm:$0xf] %vm14570_vm2, %v7055_v18  ;;  %vm14572_vm10 = vmmov %vm14568_vm4  ;;  %v3169_v51 = vpop.f32.mrf.mxu1  ;;  %6139 = vmatpush1.bf16.msra.mxu1 %v8586_v4  ;;  %v3066_v54 = vpop.f32.mrf.mxu0  ;;  %v8446_v63 = vunpack.i.h.bf16 %v8444_v2  ;;  %v8445_v40 = vunpack.i.l.bf16 %v8444_v2 }
 0x3bd   :  { %v5130_v45 = vsel %vm14572_vm10, %v8426_v41, %v8431_v55  ;;  %vm14573_vm15 = vmmov %vm14570_vm2  ;;  %3263 = vst.msk [vmem:[%s13922_s2 + $0x1f0] sm:$0xff] %vm3206_vm9, %v3169_v51  ;;  %6140 = vmatprep.subr.bf16.mxu1 %v14497_v61  ;;  %5894 = vmatmul.mubr.bf16.gmra.mxu0 %v13390_v19 }
 0x3be   :  { %3918 = vst.msk [vmem:[#allocation2 + $0x2b8] sm:$0xf] %vm14571_vm12, %v7051_v0  ;;  %vm14574_vm0 = vmmov %vm14569_vm14  ;;  %v3171_v27 = vpop.f32.mrf.mxu1  ;;  %v8587_v0 = vld [vmem:[#allocation2 + $0x328] ss:$28 sps:$4 sm:$0xff]   ;;  %vm14582_vm12 = vcmask 523264  }
 0x3bf   :  { %5258 = vst.msk [vmem:[#allocation2 + $0x520] sm:$0xf] %vm14573_vm15, %v7139_v33  ;;  %v5158_v35 = vsel %vm14574_vm0, 0.0, %v5130_v45  ;;  %vm14576_vm5 = vmmov %vm14575_vm13  ;;  %6026 = vmatpush1.bf16.msra.mxu0 %v8579_v30  ;;  %6823 = vmatprep.mubr.msk.bf16.mxu1 %vm14582_vm12, %v13318_v8  ;;  %vm14584_vm15 = vcmask 121856   ;;  %v8992_v45 = vpack.c.bf16 %v13221_v23, %v13176_v16 }
 0x3c0   :  { %v13363_v55 = vsel %vm14576_vm5, %v8425_v31, %v8426_v41  ;;  %vm14577_vm3 = vmmov %vm14576_vm5  ;;  %v7143_v25 = vpack.c.bf16 %v5158_v35, %v5158_v35  ;;  %6027 = vmatprep.subr.bf16.mxu0 %v8585_v57  ;;  %3262 = vst [vmem:[%s13922_s2 + $0x1e8] sm:$0xff] %v3066_v54  ;;  %v3068_v41 = vpop.f32.mrf.mxu0  ;;  %v3172_v7 = vpop.f32.mrf.mxu1  ;;  %v5128_v30 = vsel %vm14584_vm15, %v8441_v22, %v8446_v63  ;;  %v8598_v54 = vld [vmem:[#allocation2 + $0x4b0] ss:$28 sps:$4 sm:$0xff]  }
 0x3c1   :  { %v13368_v47 = vsel %vm14577_vm3, %v8326_v53, %v8440_v44  ;;  %vm14578_vm6 = vmmov %vm14577_vm3  ;;  %6141 = vmatpush1.bf16.msra.mxu1 %v8587_v0  ;;  %3268 = vst [vmem:[%s13922_s2 + $0x218] sm:$0xff] %v3068_v41  ;;  %v5144_v33 = vsel %vm14574_vm0, 0.0, %v5128_v30  ;;  %v9010_v4 = vpack.c.bf16 %v13363_v55, %v13305_v14  ;;  %v9016_v14 = vpack.c.bf16 %v13360_v5, %v13302_v12  ;;  %v8595_v63 = vld [vmem:[#allocation2 + $0x470] ss:$28 sps:$4 sm:$0xff]  }
 0x3c2   :  { %v13372_v15 = vsel %vm14578_vm6, %v8440_v44, %v8441_v22  ;;  %vm14579_vm4 = vmmov %vm14577_vm3  ;;  %3270 = vst.msk [vmem:[%s13922_s2 + $0x228] sm:$0xff] %vm3206_vm9, %v3172_v7  ;;  %6142 = vmatprep.subr.bf16.mxu1 %v14497_v61  ;;  %v3070_v34 = vpop.f32.mrf.mxu0  ;;  %v3174_v31 = vpop.f32.mrf.mxu1  ;;  %v7135_v22 = vpack.c.bf16 %v5144_v33, %v5144_v33  ;;  %6007 = vmatmul.mubr.bf16.gmra.mxu1 %v13390_v19 }
 0x3c3   :  { %v13384_v53 = vsel %vm14579_vm4, %v8321_v11, %v8435_v13  ;;  %vm14580_vm14 = vmmov %vm14570_vm2  ;;  %v8620_v11 = vld [vmem:[%s13921_s1 + $0x4] ss:$8 sps:$4 sm:$0xff]   ;;  %6028 = vmatpush1.bf16.msra.mxu0 %v8583_v21  ;;  %3269 = vst [vmem:[%s13922_s2 + $0x220] sm:$0xff] %v3070_v34 }
 0x3c4   :  { %5262 = vst.msk [vmem:[#allocation2 + $0x53c] sm:$0xf] %vm14580_vm14, %v7143_v25  ;;  %vm14581_vm2 = vmmov %vm14577_vm3  ;;  %8986 = vmatprep.subr.msk.bf16.mxu0 %vm14501_vm11, %v8985_v9  ;;  %v3074_v57 = vpop.f32.mrf.mxu0  ;;  %v8593_v25 = vld [vmem:[#allocation2 + $0x4ac] ss:$28 sps:$4 sm:$0xff]   ;;  %v9027_v43 = vpack.c.bf16 %v13368_v47, %v13384_v53 }
 0x3c5   :  { %v13395_v18 = vsel %vm14581_vm2, %v8435_v13, %v8436_v29  ;;  %vm14583_vm10 = vmmov %vm14582_vm12  ;;  %6143 = vmatpush1.bf16.msra.mxu1 %v8588_v36  ;;  %3275 = vst [vmem:[%s13922_s2 + $0x250] sm:$0xff] %v3074_v57  ;;  %v8589_v6 = vld [vmem:[#allocation2 + $0x2b8] ss:$28 sps:$4 sm:$0xff]   ;;  %v8591_v21 = vld [vmem:[#allocation2 + $0x4a8] ss:$28 sps:$4 sm:$0xff]  }
 0x3c6   :  { %6824 = vmatprep.mubr.msk.bf16.mxu0 %vm14583_vm10, %v8620_v11  ;;  %vm14585_vm13 = vmmov %vm14584_vm15  ;;  %6144 = vmatprep.subr.bf16.mxu1 %v14497_v61  ;;  %v3076_v16 = vpop.f32.mrf.mxu0  ;;  %v9022_v49 = vpack.c.bf16 %v13372_v15, %v13395_v18 }
 0x3c7   :  { %v5127_v48 = vsel %vm14585_vm13, %v8436_v29, %v8445_v40  ;;  %vm14586_vm5 = vmmov %vm14574_vm0  ;;  %8993 = vmatpush1.bf16.msk.msra.mxu0 %vm14503_vm7, %v8992_v45  ;;  %v3177_v29 = vpop.f32.mrf.mxu1  ;;  %3276 = vst [vmem:[%s13922_s2 + $0x258] sm:$0xff] %v3076_v16  ;;  %v8599_v40 = vld [vmem:[#allocation2 + $0x478] ss:$28 sps:$4 sm:$0xff]  }
 0x3c8   :  { %v5137_v44 = vsel %vm14586_vm5, 0.0, %v5127_v48  ;;  %vm14587_vm3 = vmmov %vm14580_vm14  ;;  %8998 = vmatprep.subr.msk.bf16.mxu0 %vm14501_vm11, %v8997_v17  ;;  %3277 = vst.msk [vmem:[%s13922_s2 + $0x260] sm:$0xff] %vm3206_vm9, %v3177_v29  ;;  %v3078_v60 = vpop.f32.mrf.mxu0 }
 0x3c9   :  { %v7131_v26 = vpack.c.bf16 %v5137_v44, %v5137_v44  ;;  %5254 = vst.msk [vmem:[#allocation2 + $0x504] sm:$0xf] %vm14587_vm3, %v7135_v22  ;;  %vm14588_vm6 = vmmov %vm14587_vm3  ;;  %v3179_v23 = vpop.f32.mrf.mxu1  ;;  %6145 = vmatpush1.bf16.msra.mxu1 %v8589_v6 }
 0x3ca   :  { %vm14589_vm4 = vmmov %vm14583_vm10  ;;  %3282 = vst [vmem:[%s13922_s2 + $0x288] sm:$0xff] %v3078_v60  ;;  %6154 = vmatprep.subr.bf16.mxu1 %v14497_v61  ;;  %v3080_v37 = vpop.f32.mrf.mxu0 }
 0x3cb   :  { %5250 = vst.msk [vmem:[#allocation2 + $0x4e8] sm:$0xf] %vm14588_vm6, %v7131_v26  ;;  %6832 = vmatprep.mubr.msk.bf16.mxu1 %vm14589_vm4, %v8620_v11  ;;  %9005 = vmatpush1.bf16.msk.msra.mxu0 %vm14503_vm7, %v9004_v32  ;;  %v3180_v13 = vpop.f32.mrf.mxu1  ;;  %v8590_v42 = vld [vmem:[#allocation2 + $0x520] ss:$28 sps:$4 sm:$0xff]   ;;  %3283 = vst [vmem:[%s13922_s2 + $0x290] sm:$0xff] %v3080_v37 }
 0x3cc   :  { %9011 = vmatprep.subr.msk.bf16.mxu0 %vm14557_vm1, %v9010_v4  ;;  %3284 = vst.msk [vmem:[%s13922_s2 + $0x298] sm:$0xff] %vm3206_vm9, %v3180_v13  ;;  %v3084_v35 = vpop.f32.mrf.mxu0  ;;  %vm14590_vm11 = vmmov %vm14589_vm4 }
 0x3cd   :  { %v3182_v1 = vpop.f32.mrf.mxu1  ;;  %6155 = vmatpush2.bf16.msra.mxu1 %v8590_v42  ;;  %3289 = vst [vmem:[%s13922_s2 + $0x2c0] sm:$0xff] %v3084_v35  ;;  %vm14591_vm7 = vmmov %vm14589_vm4 }
 0x3ce   :  { %6156 = vmatprep.subr.bf16.mxu1 %v14497_v61  ;;  %v3086_v12 = vpop.f32.mrf.mxu0 }
 0x3cf   :  { %9017 = vmatpush2.bf16.msk.msra.mxu0 %vm14559_vm8, %v9016_v14  ;;  %v3185_v55 = vpop.f32.mrf.mxu1  ;;  %3290 = vst [vmem:[%s13922_s2 + $0x2c8] sm:$0xff] %v3086_v12 }
 0x3d0   :  { %9023 = vmatprep.subr.msk.bf16.mxu0 %vm14557_vm1, %v9022_v49  ;;  %3291 = vst.msk [vmem:[%s13922_s2 + $0x2d0] sm:$0xff] %vm3206_vm9, %v3185_v55  ;;  %v3088_v15 = vpop.f32.mrf.mxu0  ;;  %vm14592_vm1 = vmmov %vm14589_vm4 }
 0x3d1   :  { %v3187_v5 = vpop.f32.mrf.mxu1  ;;  %3296 = vst [vmem:[%s13922_s2 + $0x2f8] sm:$0xff] %v3088_v15  ;;  %vm14594_vm14 = vmmov %vm14592_vm1 }
 0x3d2   :  { %v8594_v51 = vld [vmem:[#allocation2 + $0x4e8] ss:$28 sps:$4 sm:$0xff]   ;;  %v3090_v47 = vpop.f32.mrf.mxu0  ;;  %vm14595_vm2 = vmmov %vm14592_vm1 }
 0x3d3   :  { %9028 = vmatpush2.bf16.msk.msra.mxu0 %vm14559_vm8, %v9027_v43  ;;  %v3188_v2 = vpop.f32.mrf.mxu1  ;;  %6157 = vmatpush2.bf16.msra.mxu1 %v8594_v51  ;;  %3297 = vst [vmem:[%s13922_s2 + $0x300] sm:$0xff] %v3090_v47  ;;  %vm14593_vm8 = vmmov %vm14592_vm1 }
 0x3d4   :  { %6045 = vmatprep.subr.bf16.mxu0 %v8593_v25  ;;  %3298 = vst.msk [vmem:[%s13922_s2 + $0x308] sm:$0xff] %vm3206_vm9, %v3188_v2  ;;  %6158 = vmatprep.subr.bf16.mxu1 %v14497_v61  ;;  %v3094_v27 = vpop.f32.mrf.mxu0  ;;  %vm14596_vm12 = vmmov %vm14592_vm1 }
 0x3d5   :  { %v3190_v53 = vpop.f32.mrf.mxu1  ;;  %3303 = vst [vmem:[%s13922_s2 + $0x330] sm:$0xff] %v3094_v27  ;;  %vm14597_vm10 = vmmov %vm14592_vm1 }
 0x3d6   :  { %v3096_v0 = vpop.f32.mrf.mxu0  ;;  %vm14598_vm15 = vmmov %vm14592_vm1 }
 0x3d7   :  { %6046 = vmatpush2.bf16.msra.mxu0 %v8591_v21  ;;  %v3193_v18 = vpop.f32.mrf.mxu1  ;;  %6159 = vmatpush2.bf16.msra.mxu1 %v8598_v54  ;;  %3304 = vst [vmem:[%s13922_s2 + $0x338] sm:$0xff] %v3096_v0  ;;  %vm14599_vm0 = vmmov %vm14592_vm1 }
 0x3d8   :  { %6047 = vmatprep.subr.bf16.mxu0 %v8597_v3  ;;  %3305 = vst.msk [vmem:[%s13922_s2 + $0x340] sm:$0xff] %vm3206_vm9, %v3193_v18  ;;  %6160 = vmatprep.subr.bf16.mxu1 %v14497_v61  ;;  %v3098_v41 = vpop.f32.mrf.mxu0  ;;  %vm14600_vm13 = vmmov %vm14599_vm0 }
 0x3d9   :  { %v3195_v11 = vpop.f32.mrf.mxu1  ;;  %3310 = vst [vmem:[%s13922_s2 + $0x368] sm:$0xff] %v3098_v41  ;;  %vm14601_vm5 = vmmov %vm14599_vm0 }
 0x3da   :  { %v3100_v61 = vpop.f32.mrf.mxu0  ;;  %vm14602_vm3 = vmmov %vm14599_vm0 }
 0x3db   :  { %6048 = vmatpush2.bf16.msra.mxu0 %v8595_v63  ;;  %v3196_v7 = vpop.f32.mrf.mxu1  ;;  %6161 = vmatpush2.bf16.msra.mxu1 %v8599_v40  ;;  %3311 = vst [vmem:[%s13922_s2 + $0x370] sm:$0xff] %v3100_v61  ;;  %vm14603_vm6 = vmmov %vm14599_vm0 }
 0x3dc   :  { %3312 = vst.msk [vmem:[%s13922_s2 + $0x378] sm:$0xff] %vm3206_vm9, %v3196_v7 }
 0x3dd   :  { %v3198_v9 = vpop.f32.mrf.mxu1 }
 0x3de   :  { %6050 = vmatmul.mubr.bf16.vlgmr.msra.gmra.mxu0 %v12929_v46  ;;  %6163 = vmatmul.mubr.bf16.vlgmr.msra.gmra.mxu1 %v12929_v46 }
 0x3df   :  { %6825 = vmatprep.mubr.msk.bf16.mxu0 %vm14590_vm11, %v12941_v50  ;;  %6833 = vmatprep.mubr.msk.bf16.mxu1 %vm14591_vm7, %v12941_v50 }
 0x3e6   :  { %6060 = vmatmul.mubr.bf16.gmra.mxu0 %v12982_v62  ;;  %6171 = vmatmul.mubr.bf16.gmra.mxu1 %v12982_v62 }
 0x3e7   :  { %6826 = vmatprep.mubr.msk.bf16.mxu0 %vm14592_vm1, %v12994_v39  ;;  %6834 = vmatprep.mubr.msk.bf16.mxu1 %vm14593_vm8, %v12994_v39 }
 0x3ee   :  { %6070 = vmatmul.mubr.bf16.gmra.mxu0 %v13022_v38  ;;  %6179 = vmatmul.mubr.bf16.gmra.mxu1 %v13022_v38 }
 0x3ef   :  { %6827 = vmatprep.mubr.msk.bf16.mxu0 %vm14594_vm14, %v13029_v10  ;;  %6835 = vmatprep.mubr.msk.bf16.mxu1 %vm14595_vm2, %v13029_v10 }
 0x3f6   :  { %6080 = vmatmul.mubr.bf16.gmra.mxu0 %v13088_v52  ;;  %6187 = vmatmul.mubr.bf16.gmra.mxu1 %v13088_v52 }
 0x3f7   :  { %6828 = vmatprep.mubr.msk.bf16.mxu0 %vm14596_vm12, %v13096_v28  ;;  %6836 = vmatprep.mubr.msk.bf16.mxu1 %vm14597_vm10, %v13096_v28 }
 0x3fe   :  { %6090 = vmatmul.mubr.bf16.gmra.mxu0 %v13152_v58  ;;  %6195 = vmatmul.mubr.bf16.gmra.mxu1 %v13152_v58 }
 0x3ff   :  { %6829 = vmatprep.mubr.msk.bf16.mxu0 %vm14598_vm15, %v13166_v20  ;;  %6837 = vmatprep.mubr.msk.bf16.mxu1 %vm14599_vm0, %v13166_v20 }
 0x406   :  { %6100 = vmatmul.mubr.bf16.gmra.mxu0 %v13226_v24  ;;  %6203 = vmatmul.mubr.bf16.gmra.mxu1 %v13226_v24 }
 0x407   :  { %6830 = vmatprep.mubr.msk.bf16.mxu0 %vm14600_vm13, %v13237_v59  ;;  %6838 = vmatprep.mubr.msk.bf16.mxu1 %vm14601_vm5, %v13237_v59 }
 0x40e   :  { %6110 = vmatmul.mubr.bf16.gmra.mxu0 %v13310_v56  ;;  %6211 = vmatmul.mubr.bf16.gmra.mxu1 %v13310_v56 }
 0x40f   :  { %6831 = vmatprep.mubr.msk.bf16.mxu0 %vm14602_vm3, %v13318_v8  ;;  %6839 = vmatprep.mubr.msk.bf16.mxu1 %vm14603_vm6, %v13318_v8 }
 0x416   :  { %6120 = vmatmul.mubr.bf16.gmra.mxu0 %v13390_v19  ;;  %6219 = vmatmul.mubr.bf16.gmra.mxu1 %v13390_v19 }
 0x43f   :  { %v5825_v46 = vpop.f32.mrf.mxu0 }
 0x440   :  { %6840 = vst [vmem:[%s13922_s2 + $0x380] sm:$0xff] %v5825_v46 }
 0x441   :  { %v5827_v50 = vpop.f32.mrf.mxu0 }
 0x442   :  { %6841 = vst [vmem:[%s13922_s2 + $0x388] sm:$0xff] %v5827_v50 }
 0x443   :  { %v5829_v62 = vpop.f32.mrf.mxu0 }
 0x444   :  { %6847 = vst [vmem:[%s13922_s2 + $0x3b8] sm:$0xff] %v5829_v62 }
 0x445   :  { %v5938_v39 = vpop.f32.mrf.mxu1  ;;  %v5831_v38 = vpop.f32.mrf.mxu0 }
 0x446   :  { %6842 = vst [vmem:[%s13922_s2 + $0x390] sm:$0xff] %v5938_v39  ;;  %6848 = vst [vmem:[%s13922_s2 + $0x3c0] sm:$0xff] %v5831_v38 }
 0x447   :  { %v5940_v10 = vpop.f32.mrf.mxu1  ;;  %v5835_v52 = vpop.f32.mrf.mxu0 }
 0x448   :  { %6843 = vst [vmem:[%s13922_s2 + $0x398] sm:$0xff] %v5940_v10  ;;  %6854 = vst [vmem:[%s13922_s2 + $0x3f0] sm:$0xff] %v5835_v52 }
 0x449   :  { %v5942_v28 = vpop.f32.mrf.mxu1  ;;  %v5837_v58 = vpop.f32.mrf.mxu0 }
 0x44a   :  { %6849 = vst [vmem:[%s13922_s2 + $0x3c8] sm:$0xff] %v5942_v28  ;;  %6855 = vst [vmem:[%s13922_s2 + $0x3f8] sm:$0xff] %v5837_v58 }
 0x44b   :  { %v5944_v20 = vpop.f32.mrf.mxu1  ;;  %v5839_v24 = vpop.f32.mrf.mxu0 }
 0x44c   :  { %6850 = vst [vmem:[%s13922_s2 + $0x3d0] sm:$0xff] %v5944_v20  ;;  %6861 = vst [vmem:[%s13922_s2 + $0x428] sm:$0xff] %v5839_v24 }
 0x44d   :  { %v5948_v59 = vpop.f32.mrf.mxu1  ;;  %v5841_v56 = vpop.f32.mrf.mxu0 }
 0x44e   :  { %6856 = vst [vmem:[%s13922_s2 + $0x400] sm:$0xff] %v5948_v59  ;;  %6862 = vst [vmem:[%s13922_s2 + $0x430] sm:$0xff] %v5841_v56 }
 0x44f   :  { %v5950_v8 = vpop.f32.mrf.mxu1  ;;  %v5845_v19 = vpop.f32.mrf.mxu0 }
 0x450   :  { %6857 = vst [vmem:[%s13922_s2 + $0x408] sm:$0xff] %v5950_v8  ;;  %6868 = vst [vmem:[%s13922_s2 + $0x460] sm:$0xff] %v5845_v19 }
 0x451   :  { %v5952_v30 = vpop.f32.mrf.mxu1  ;;  %v5847_v33 = vpop.f32.mrf.mxu0 }
 0x452   :  { %6863 = vst [vmem:[%s13922_s2 + $0x438] sm:$0xff] %v5952_v30  ;;  %6869 = vst [vmem:[%s13922_s2 + $0x468] sm:$0xff] %v5847_v33 }
 0x453   :  { %v5954_v48 = vpop.f32.mrf.mxu1  ;;  %v5849_v34 = vpop.f32.mrf.mxu0 }
 0x454   :  { %6864 = vst [vmem:[%s13922_s2 + $0x440] sm:$0xff] %v5954_v48  ;;  %6875 = vst [vmem:[%s13922_s2 + $0x498] sm:$0xff] %v5849_v34 }
 0x455   :  { %v5958_v31 = vpop.f32.mrf.mxu1  ;;  %v5851_v22 = vpop.f32.mrf.mxu0 }
 0x456   :  { %6870 = vst [vmem:[%s13922_s2 + $0x470] sm:$0xff] %v5958_v31  ;;  %6876 = vst [vmem:[%s13922_s2 + $0x4a0] sm:$0xff] %v5851_v22 }
 0x457   :  { %v5960_v44 = vpop.f32.mrf.mxu1  ;;  %v5855_v36 = vpop.f32.mrf.mxu0 }
 0x458   :  { %6871 = vst [vmem:[%s13922_s2 + $0x478] sm:$0xff] %v5960_v44  ;;  %6882 = vst [vmem:[%s13922_s2 + $0x4d0] sm:$0xff] %v5855_v36 }
 0x459   :  { %v5962_v26 = vpop.f32.mrf.mxu1  ;;  %v5857_v45 = vpop.f32.mrf.mxu0 }
 0x45a   :  { %6877 = vst [vmem:[%s13922_s2 + $0x4a8] sm:$0xff] %v5962_v26  ;;  %6883 = vst [vmem:[%s13922_s2 + $0x4d8] sm:$0xff] %v5857_v45 }
 0x45b   :  { %v5964_v57 = vpop.f32.mrf.mxu1  ;;  %v5859_v29 = vpop.f32.mrf.mxu0 }
 0x45c   :  { %6878 = vst [vmem:[%s13922_s2 + $0x4b0] sm:$0xff] %v5964_v57  ;;  %6889 = vst [vmem:[%s13922_s2 + $0x508] sm:$0xff] %v5859_v29 }
 0x45d   :  { %v5968_v17 = vpop.f32.mrf.mxu1  ;;  %v5861_v16 = vpop.f32.mrf.mxu0 }
 0x45e   :  { %6884 = vst [vmem:[%s13922_s2 + $0x4e0] sm:$0xff] %v5968_v17  ;;  %6890 = vst [vmem:[%s13922_s2 + $0x510] sm:$0xff] %v5861_v16 }
 0x45f   :  { %v5970_v23 = vpop.f32.mrf.mxu1  ;;  %v5865_v6 = vpop.f32.mrf.mxu0 }
 0x460   :  { %6885 = vst [vmem:[%s13922_s2 + $0x4e8] sm:$0xff] %v5970_v23  ;;  %6896 = vst [vmem:[%s13922_s2 + $0x540] sm:$0xff] %v5865_v6 }
 0x461   :  { %v5972_v32 = vpop.f32.mrf.mxu1  ;;  %v5867_v60 = vpop.f32.mrf.mxu0 }
 0x462   :  { %6891 = vst [vmem:[%s13922_s2 + $0x518] sm:$0xff] %v5972_v32  ;;  %6897 = vst [vmem:[%s13922_s2 + $0x548] sm:$0xff] %v5867_v60 }
 0x463   :  { %v5974_v13 = vpop.f32.mrf.mxu1  ;;  %v5869_v4 = vpop.f32.mrf.mxu0 }
 0x464   :  { %6892 = vst [vmem:[%s13922_s2 + $0x520] sm:$0xff] %v5974_v13  ;;  %6903 = vst [vmem:[%s13922_s2 + $0x578] sm:$0xff] %v5869_v4 }
 0x465   :  { %v5978_v37 = vpop.f32.mrf.mxu1  ;;  %v5871_v1 = vpop.f32.mrf.mxu0 }
 0x466   :  { %6898 = vst [vmem:[%s13922_s2 + $0x550] sm:$0xff] %v5978_v37  ;;  %6904 = vst [vmem:[%s13922_s2 + $0x580] sm:$0xff] %v5871_v1 }
 0x467   :  { %v5980_v42 = vpop.f32.mrf.mxu1  ;;  %v5875_v14 = vpop.f32.mrf.mxu0 }
 0x468   :  { %6899 = vst [vmem:[%s13922_s2 + $0x558] sm:$0xff] %v5980_v42  ;;  %6910 = vst [vmem:[%s13922_s2 + $0x5b0] sm:$0xff] %v5875_v14 }
 0x469   :  { %v5982_v35 = vpop.f32.mrf.mxu1  ;;  %v5877_v55 = vpop.f32.mrf.mxu0 }
 0x46a   :  { %6905 = vst [vmem:[%s13922_s2 + $0x588] sm:$0xff] %v5982_v35  ;;  %6911 = vst [vmem:[%s13922_s2 + $0x5b8] sm:$0xff] %v5877_v55 }
 0x46b   :  { %v5984_v49 = vpop.f32.mrf.mxu1  ;;  %v5879_v51 = vpop.f32.mrf.mxu0 }
 0x46c   :  { %6906 = vst [vmem:[%s13922_s2 + $0x590] sm:$0xff] %v5984_v49  ;;  %6917 = vst [vmem:[%s13922_s2 + $0x5e8] sm:$0xff] %v5879_v51 }
 0x46d   :  { %v5988_v12 = vpop.f32.mrf.mxu1  ;;  %v5881_v5 = vpop.f32.mrf.mxu0 }
 0x46e   :  { %6912 = vst [vmem:[%s13922_s2 + $0x5c0] sm:$0xff] %v5988_v12  ;;  %6918 = vst [vmem:[%s13922_s2 + $0x5f0] sm:$0xff] %v5881_v5 }
 0x46f   :  { %v5990_v25 = vpop.f32.mrf.mxu1 }
 0x470   :  { %v5885_v43 = vpop.f32.mrf.mxu0  ;;  %6913 = vst [vmem:[%s13922_s2 + $0x5c8] sm:$0xff] %v5990_v25 }
 0x471   :  { %6924 = vst [vmem:[%s13922_s2 + $0x620] sm:$0xff] %v5885_v43  ;;  %v5992_v15 = vpop.f32.mrf.mxu1 }
 0x472   :  { %v5887_v2 = vpop.f32.mrf.mxu0  ;;  %6919 = vst [vmem:[%s13922_s2 + $0x5f8] sm:$0xff] %v5992_v15 }
 0x473   :  { %6925 = vst [vmem:[%s13922_s2 + $0x628] sm:$0xff] %v5887_v2  ;;  %v5994_v21 = vpop.f32.mrf.mxu1 }
 0x474   :  { %v5889_v47 = vpop.f32.mrf.mxu0  ;;  %6920 = vst [vmem:[%s13922_s2 + $0x600] sm:$0xff] %v5994_v21 }
 0x475   :  { %6931 = vst [vmem:[%s13922_s2 + $0x658] sm:$0xff] %v5889_v47 }
 0x476   :  { %v5891_v3 = vpop.f32.mrf.mxu0 }
 0x477   :  { %v5998_v53 = vpop.f32.mrf.mxu1  ;;  %6932 = vst [vmem:[%s13922_s2 + $0x660] sm:$0xff] %v5891_v3 }
 0x478   :  { %6926 = vst [vmem:[%s13922_s2 + $0x630] sm:$0xff] %v5998_v53 }
 0x479   :  { %v6000_v54 = vpop.f32.mrf.mxu1 }
 0x47a   :  { %6927 = vst [vmem:[%s13922_s2 + $0x638] sm:$0xff] %v6000_v54 }
 0x47b   :  { %v6002_v18 = vpop.f32.mrf.mxu1 }
 0x47c   :  { %6933 = vst [vmem:[%s13922_s2 + $0x668] sm:$0xff] %v6002_v18 }
 0x47d   :  { %v5895_v27 = vpop.f32.mrf.mxu0  ;;  %v6004_v0 = vpop.f32.mrf.mxu1 }
 0x47e   :  { %6938 = vst [vmem:[%s13922_s2 + $0x690] sm:$0xff] %v5895_v27  ;;  %6934 = vst [vmem:[%s13922_s2 + $0x670] sm:$0xff] %v6004_v0 }
 0x47f   :  { %v5897_v63 = vpop.f32.mrf.mxu0 }
 0x480   :  { %6939 = vst [vmem:[%s13922_s2 + $0x698] sm:$0xff] %v5897_v63 }
 0x481   :  { %v5899_v11 = vpop.f32.mrf.mxu0 }
 0x482   :  { %6945 = vst [vmem:[%s13922_s2 + $0x6c8] sm:$0xff] %v5899_v11  ;;  %v6008_v40 = vpop.f32.mrf.mxu1 }
 0x483   :  { %v5901_v41 = vpop.f32.mrf.mxu0  ;;  %6940 = vst [vmem:[%s13922_s2 + $0x6a0] sm:$0xff] %v6008_v40 }
 0x484   :  { %6946 = vst [vmem:[%s13922_s2 + $0x6d0] sm:$0xff] %v5901_v41  ;;  %v6010_v7 = vpop.f32.mrf.mxu1 }
 0x485   :  { %6941 = vst [vmem:[%s13922_s2 + $0x6a8] sm:$0xff] %v6010_v7 }
 0x486   :  { %v6012_v61 = vpop.f32.mrf.mxu1 }
 0x487   :  { %6947 = vst [vmem:[%s13922_s2 + $0x6d8] sm:$0xff] %v6012_v61 }
 0x488   :  { %v6014_v9 = vpop.f32.mrf.mxu1 }
 0x489   :  { %6948 = vst [vmem:[%s13922_s2 + $0x6e0] sm:$0xff] %v6014_v9 }
 0x49e   :  { %v6051_v46 = vpop.f32.mrf.mxu0  ;;  %v6164_v50 = vpop.f32.mrf.mxu1 }
 0x49f   :  { %6844 = vst [vmem:[%s13922_s2 + $0x3a0] sm:$0xff] %v6051_v46  ;;  %6846 = vst.msk [vmem:[%s13922_s2 + $0x3b0] sm:$0xff] %vm3206_vm9, %v6164_v50 }
 0x4a0   :  { %v6053_v62 = vpop.f32.mrf.mxu0  ;;  %v6166_v39 = vpop.f32.mrf.mxu1 }
 0x4a1   :  { %6845 = vst [vmem:[%s13922_s2 + $0x3a8] sm:$0xff] %v6053_v62 }
 0x4a2   :  { %v6055_v38 = vpop.f32.mrf.mxu0  ;;  %v6167_v10 = vpop.f32.mrf.mxu1 }
 0x4a3   :  { %6851 = vst [vmem:[%s13922_s2 + $0x3d8] sm:$0xff] %v6055_v38  ;;  %6853 = vst.msk [vmem:[%s13922_s2 + $0x3e8] sm:$0xff] %vm3206_vm9, %v6167_v10 }
 0x4a4   :  { %v6057_v52 = vpop.f32.mrf.mxu0  ;;  %v6169_v28 = vpop.f32.mrf.mxu1 }
 0x4a5   :  { %6852 = vst [vmem:[%s13922_s2 + $0x3e0] sm:$0xff] %v6057_v52 }
 0x4a6   :  { %v6061_v58 = vpop.f32.mrf.mxu0  ;;  %v6172_v20 = vpop.f32.mrf.mxu1 }
 0x4a7   :  { %6858 = vst [vmem:[%s13922_s2 + $0x410] sm:$0xff] %v6061_v58  ;;  %6860 = vst.msk [vmem:[%s13922_s2 + $0x420] sm:$0xff] %vm3206_vm9, %v6172_v20 }
 0x4a8   :  { %v6063_v24 = vpop.f32.mrf.mxu0  ;;  %v6174_v59 = vpop.f32.mrf.mxu1 }
 0x4a9   :  { %6859 = vst [vmem:[%s13922_s2 + $0x418] sm:$0xff] %v6063_v24 }
 0x4aa   :  { %v6065_v56 = vpop.f32.mrf.mxu0  ;;  %v6175_v8 = vpop.f32.mrf.mxu1 }
 0x4ab   :  { %6865 = vst [vmem:[%s13922_s2 + $0x448] sm:$0xff] %v6065_v56  ;;  %6867 = vst.msk [vmem:[%s13922_s2 + $0x458] sm:$0xff] %vm3206_vm9, %v6175_v8 }
 0x4ac   :  { %v6067_v19 = vpop.f32.mrf.mxu0  ;;  %v6177_v30 = vpop.f32.mrf.mxu1 }
 0x4ad   :  { %6866 = vst [vmem:[%s13922_s2 + $0x450] sm:$0xff] %v6067_v19 }
 0x4ae   :  { %v6071_v33 = vpop.f32.mrf.mxu0  ;;  %v6180_v48 = vpop.f32.mrf.mxu1 }
 0x4af   :  { %6872 = vst [vmem:[%s13922_s2 + $0x480] sm:$0xff] %v6071_v33  ;;  %6874 = vst.msk [vmem:[%s13922_s2 + $0x490] sm:$0xff] %vm3206_vm9, %v6180_v48 }
 0x4b0   :  { %v6073_v34 = vpop.f32.mrf.mxu0  ;;  %v6182_v31 = vpop.f32.mrf.mxu1 }
 0x4b1   :  { %6873 = vst [vmem:[%s13922_s2 + $0x488] sm:$0xff] %v6073_v34 }
 0x4b2   :  { %v6075_v22 = vpop.f32.mrf.mxu0  ;;  %v6183_v44 = vpop.f32.mrf.mxu1 }
 0x4b3   :  { %6879 = vst [vmem:[%s13922_s2 + $0x4b8] sm:$0xff] %v6075_v22  ;;  %6881 = vst.msk [vmem:[%s13922_s2 + $0x4c8] sm:$0xff] %vm3206_vm9, %v6183_v44 }
 0x4b4   :  { %v6077_v36 = vpop.f32.mrf.mxu0  ;;  %v6185_v26 = vpop.f32.mrf.mxu1 }
 0x4b5   :  { %6880 = vst [vmem:[%s13922_s2 + $0x4c0] sm:$0xff] %v6077_v36 }
 0x4b6   :  { %v6081_v45 = vpop.f32.mrf.mxu0  ;;  %v6188_v57 = vpop.f32.mrf.mxu1 }
 0x4b7   :  { %6886 = vst [vmem:[%s13922_s2 + $0x4f0] sm:$0xff] %v6081_v45  ;;  %6888 = vst.msk [vmem:[%s13922_s2 + $0x500] sm:$0xff] %vm3206_vm9, %v6188_v57 }
 0x4b8   :  { %v6083_v29 = vpop.f32.mrf.mxu0  ;;  %v6190_v17 = vpop.f32.mrf.mxu1 }
 0x4b9   :  { %6887 = vst [vmem:[%s13922_s2 + $0x4f8] sm:$0xff] %v6083_v29 }
 0x4ba   :  { %v6085_v16 = vpop.f32.mrf.mxu0  ;;  %v6191_v23 = vpop.f32.mrf.mxu1 }
 0x4bb   :  { %6893 = vst [vmem:[%s13922_s2 + $0x528] sm:$0xff] %v6085_v16  ;;  %6895 = vst.msk [vmem:[%s13922_s2 + $0x538] sm:$0xff] %vm3206_vm9, %v6191_v23 }
 0x4bc   :  { %v6087_v6 = vpop.f32.mrf.mxu0  ;;  %v6193_v32 = vpop.f32.mrf.mxu1 }
 0x4bd   :  { %6894 = vst [vmem:[%s13922_s2 + $0x530] sm:$0xff] %v6087_v6 }
 0x4be   :  { %v6091_v60 = vpop.f32.mrf.mxu0  ;;  %v6196_v13 = vpop.f32.mrf.mxu1 }
 0x4bf   :  { %6900 = vst [vmem:[%s13922_s2 + $0x560] sm:$0xff] %v6091_v60  ;;  %6902 = vst.msk [vmem:[%s13922_s2 + $0x570] sm:$0xff] %vm3206_vm9, %v6196_v13 }
 0x4c0   :  { %v6093_v4 = vpop.f32.mrf.mxu0  ;;  %v6198_v37 = vpop.f32.mrf.mxu1 }
 0x4c1   :  { %6901 = vst [vmem:[%s13922_s2 + $0x568] sm:$0xff] %v6093_v4 }
 0x4c2   :  { %v6095_v1 = vpop.f32.mrf.mxu0  ;;  %v6199_v42 = vpop.f32.mrf.mxu1 }
 0x4c3   :  { %6907 = vst [vmem:[%s13922_s2 + $0x598] sm:$0xff] %v6095_v1  ;;  %6909 = vst.msk [vmem:[%s13922_s2 + $0x5a8] sm:$0xff] %vm3206_vm9, %v6199_v42 }
 0x4c4   :  { %v6097_v14 = vpop.f32.mrf.mxu0  ;;  %v6201_v35 = vpop.f32.mrf.mxu1 }
 0x4c5   :  { %6908 = vst [vmem:[%s13922_s2 + $0x5a0] sm:$0xff] %v6097_v14 }
 0x4c6   :  { %v6101_v55 = vpop.f32.mrf.mxu0  ;;  %v6204_v49 = vpop.f32.mrf.mxu1 }
 0x4c7   :  { %6914 = vst [vmem:[%s13922_s2 + $0x5d0] sm:$0xff] %v6101_v55  ;;  %6916 = vst.msk [vmem:[%s13922_s2 + $0x5e0] sm:$0xff] %vm3206_vm9, %v6204_v49 }
 0x4c8   :  { %v6103_v51 = vpop.f32.mrf.mxu0  ;;  %v6206_v12 = vpop.f32.mrf.mxu1 }
 0x4c9   :  { %6915 = vst [vmem:[%s13922_s2 + $0x5d8] sm:$0xff] %v6103_v51 }
 0x4ca   :  { %v6105_v5 = vpop.f32.mrf.mxu0  ;;  %v6207_v25 = vpop.f32.mrf.mxu1 }
 0x4cb   :  { %6921 = vst [vmem:[%s13922_s2 + $0x608] sm:$0xff] %v6105_v5  ;;  %6923 = vst.msk [vmem:[%s13922_s2 + $0x618] sm:$0xff] %vm3206_vm9, %v6207_v25 }
 0x4cc   :  { %v6107_v43 = vpop.f32.mrf.mxu0  ;;  %v6209_v15 = vpop.f32.mrf.mxu1 }
 0x4cd   :  { %6922 = vst [vmem:[%s13922_s2 + $0x610] sm:$0xff] %v6107_v43 }
 0x4ce   :  { %v6111_v2 = vpop.f32.mrf.mxu0  ;;  %v6212_v21 = vpop.f32.mrf.mxu1 }
 0x4cf   :  { %6928 = vst [vmem:[%s13922_s2 + $0x640] sm:$0xff] %v6111_v2  ;;  %6930 = vst.msk [vmem:[%s13922_s2 + $0x650] sm:$0xff] %vm3206_vm9, %v6212_v21 }
 0x4d0   :  { %v6113_v47 = vpop.f32.mrf.mxu0  ;;  %v6214_v53 = vpop.f32.mrf.mxu1 }
 0x4d1   :  { %6929 = vst [vmem:[%s13922_s2 + $0x648] sm:$0xff] %v6113_v47 }
 0x4d2   :  { %v6115_v3 = vpop.f32.mrf.mxu0  ;;  %v6215_v54 = vpop.f32.mrf.mxu1 }
 0x4d3   :  { %6935 = vst [vmem:[%s13922_s2 + $0x678] sm:$0xff] %v6115_v3  ;;  %6937 = vst.msk [vmem:[%s13922_s2 + $0x688] sm:$0xff] %vm3206_vm9, %v6215_v54 }
 0x4d4   :  { %v6117_v27 = vpop.f32.mrf.mxu0  ;;  %v6217_v18 = vpop.f32.mrf.mxu1 }
 0x4d5   :  { %6936 = vst [vmem:[%s13922_s2 + $0x680] sm:$0xff] %v6117_v27 }
 0x4d6   :  { %v6121_v63 = vpop.f32.mrf.mxu0  ;;  %v6220_v0 = vpop.f32.mrf.mxu1 }
 0x4d7   :  { %6942 = vst [vmem:[%s13922_s2 + $0x6b0] sm:$0xff] %v6121_v63  ;;  %6944 = vst.msk [vmem:[%s13922_s2 + $0x6c0] sm:$0xff] %vm3206_vm9, %v6220_v0 }
 0x4d8   :  { %v6123_v11 = vpop.f32.mrf.mxu0  ;;  %v6222_v40 = vpop.f32.mrf.mxu1 }
 0x4d9   :  { %6943 = vst [vmem:[%s13922_s2 + $0x6b8] sm:$0xff] %v6123_v11 }
 0x4da   :  { %v6125_v41 = vpop.f32.mrf.mxu0  ;;  %v6223_v7 = vpop.f32.mrf.mxu1 }
 0x4db   :  { %6949 = vst [vmem:[%s13922_s2 + $0x6e8] sm:$0xff] %v6125_v41  ;;  %6951 = vst.msk [vmem:[%s13922_s2 + $0x6f8] sm:$0xff] %vm3206_vm9, %v6223_v7 }
 0x4dc   :  { %v6127_v61 = vpop.f32.mrf.mxu0  ;;  %v6225_v9 = vpop.f32.mrf.mxu1 }
 0x4dd   :  { %6950 = vst [vmem:[%s13922_s2 + $0x6f0] sm:$0xff] %v6127_v61 }

</bundles_post_ra>
